<compile_context>
chip_gen: v5e
topology: v5e:2x2
jax: 0.10.0
libtpu: 0.0.40
codegen_flags: <defaults>
</compile_context>

<pallas_src>
import functools

import jax
import jax.numpy as jnp
import numpy as np
from jax import lax
from jax.experimental import pallas as pl
from jax.experimental.pallas import tpu as pltpu


def _pcf_kernel(feat_ref, inds_ref, guid_ref, wn_ref,
                e_ref, r_ref, t_ref, out_ref, *, gather_dtype):
    """One (batch b, TM-point tile) step of the fused PCF forward."""
    _, N, C = feat_ref.shape          # (1, N, C)       full point cloud of batch b
    _, TMK, _ = inds_ref.shape        # (1, TM*K, 1)    int32 neighbor ids
    _, TM, CD = out_ref.shape         # (1, TM, C*Cmid) lane-dense output tile
    K = TMK // TM
    f32 = jnp.float32

    feat = feat_ref[0]                # (N, C)
    inds = inds_ref[0]                # (TM*K, 1)
    guid = guid_ref[0]                # (TM*K, H)
    wn = wn_ref[0]                    # (TM*K, Cmid)

    # ---- Fused gather: one big one-hot matmul on the MXU ---------------------
    # (TM*K, N) @ (N, C) -> (TM*K, C).  One-hot selection is exact even in bf16.
    col_ids = lax.broadcasted_iota(jnp.int32, (TMK, N), 1)
    onehot = (inds == col_ids).astype(gather_dtype)
    gathered = jnp.dot(onehot, feat.astype(gather_dtype),
                       preferred_element_type=f32)                       # (TM*K, C)

    # ---- Guided (multi-head) scaling ------------------------------------------
    # e_ref[h, c] = 1 iff channel c belongs to head h: one MXU expansion + one
    # VPU multiply replaces the per-head slice/concat of v1.
    guid_c = jnp.dot(guid, e_ref[...], preferred_element_type=f32)       # (TM*K, C)
    scaled = gathered * guid_c                                           # (TM*K, C)

    # ---- Per-point contraction, kept lane-dense --------------------------------
    #   out[m, c*Cmid + d] = sum_k scaled[m*K+k, c] * wn[m*K+k, d]
    # r_ref[c, c*Cmid+d] = 1 and t_ref[d, c*Cmid+d] = 1 expand both operands to
    # the flattened output lane axis (MXU); one VPU multiply; then reduce the K
    # neighbor rows of each point (aligned sublane reduction).
    scaled_rep = jnp.dot(scaled, r_ref[...], preferred_element_type=f32)  # (TM*K, CD)
    wn_rep = jnp.dot(wn, t_ref[...], preferred_element_type=f32)          # (TM*K, CD)
    prod = scaled_rep * wn_rep                                            # (TM*K, CD)
    out = prod.reshape(TM, K, CD).sum(axis=1)                             # (TM, CD)
    out_ref[0] = out.astype(out_ref.dtype)


def _ceil_to(x, m):
    return -(-x // m) * m


def _padded_block_bytes(shape, itemsize=4):
    s = list(shape)
    s[-1] = _ceil_to(s[-1], 128)
    if len(s) >= 2:
        s[-2] = _ceil_to(s[-2], 8)
    return int(np.prod(s)) * itemsize


def pcf_forward(input_features, neighbor_inds, guidance, weightnet, *,
                tm=None, gather_dtype=jnp.float32):
    """Pallas TPU implementation of PCF.forward -> (B, M, C_in * C_mid).

    gather_dtype=jnp.bfloat16 runs the (N-proportional) one-hot gather matmul in
    bf16 on the MXU (selection stays exact, features are rounded to bf16):
    ~2-4x faster on v6e/v7x at a small, documented precision change.
    """
    B, N, C = input_features.shape
    _, M, K = neighbor_inds.shape
    H = guidance.shape[-1]
    Cmid = weightnet.shape[-1]
    CD = C * Cmid
    assert C % H == 0, "C_in must be divisible by num_heads"

    if tm is None:
        tm = min(128, M)            # large point tile (review item 2)
    assert M % tm == 0, "M must be divisible by the point-tile size"
    grid = (B, M // tm)

    # Free metadata reshapes: one row per (point, neighbor) so the kernel needs
    # no in-kernel relayout of these operands.
    inds_flat = neighbor_inds.astype(jnp.int32).reshape(B, M * K, 1)
    guid_flat = guidance.reshape(B, M * K, H)
    wn_flat = weightnet.reshape(B, M * K, Cmid)

    # Tiny constant 0/1 selector matrices (built host-side, DMA'd once).
    cc = C // H
    e_mat = jnp.asarray((np.arange(C)[None, :] // cc == np.arange(H)[:, None])
                        .astype(np.float32))                       # (H, C)
    r_mat = jnp.asarray((np.arange(CD)[None, :] // Cmid == np.arange(C)[:, None])
                        .astype(np.float32))                       # (C, CD)
    t_mat = jnp.asarray((np.arange(CD)[None, :] % Cmid == np.arange(Cmid)[:, None])
                        .astype(np.float32))                       # (Cmid, CD)

    # Advisory cost estimate (dominated by the one-hot gather matmul).
    flops = 2 * B * M * K * (N * C + H * C + C * CD + Cmid * CD + 2 * C * Cmid)
    bytes_accessed = 4 * (B * N * C + B * M * K * (1 + H + Cmid) + B * M * CD)
    cost = pl.CostEstimate(flops=int(flops), transcendentals=0,
                           bytes_accessed=int(bytes_accessed))

    # VMEM budget: double-buffered pipeline blocks + in-kernel temporaries.
    # Only raise the scoped limit when the 32 MiB default would not fit.
    block_shapes = [(1, N, C), (1, tm * K, 1), (1, tm * K, H),
                    (1, tm * K, Cmid), (1, tm, CD)]
    pipe_bytes = 2 * sum(_padded_block_bytes(s) for s in block_shapes)
    temp_bytes = 4 * tm * K * (2 * _ceil_to(N, 128) + 3 * _ceil_to(CD, 128)
                               + 3 * _ceil_to(C, 128))
    vmem_need = pipe_bytes + temp_bytes
    cp_kwargs = dict(dimension_semantics=("parallel", "parallel"))
    if vmem_need > 32 * 1024 * 1024:
        # TODO(synk): for very large N the resident (N, C) feature block should be
        # N-chunked (partial one-hot gathers over an extra grid axis) or
        # single-buffered so it also fits v7x's 64 MiB VMEM.
        cp_kwargs["vmem_limit_bytes"] = int(min(vmem_need * 5 // 4, 96 * 1024 * 1024))

    kernel = functools.partial(_pcf_kernel, gather_dtype=gather_dtype)

    return pl.pallas_call(
        kernel,
        out_shape=jax.ShapeDtypeStruct((B, M, CD), input_features.dtype),
        grid_spec=pltpu.PrefetchScalarGridSpec(
            num_scalar_prefetch=0,
            grid=grid,
            in_specs=[
                # Whole point cloud of batch b stays resident; its block index is
                # constant in mt, so the pipeline only re-fetches it at batch
                # boundaries.
                pl.BlockSpec((1, N, C), lambda b, mt: (b, 0, 0)),
                pl.BlockSpec((1, tm * K, 1), lambda b, mt: (b, mt, 0)),
                pl.BlockSpec((1, tm * K, H), lambda b, mt: (b, mt, 0)),
                pl.BlockSpec((1, tm * K, Cmid), lambda b, mt: (b, mt, 0)),
                pl.BlockSpec((H, C), lambda b, mt: (0, 0)),
                pl.BlockSpec((C, CD), lambda b, mt: (0, 0)),
                pl.BlockSpec((Cmid, CD), lambda b, mt: (0, 0)),
            ],
            # Lane-dense output rows: full C_in*C_mid per point, unmasked stores.
            out_specs=pl.BlockSpec((1, tm, CD), lambda b, mt: (b, mt, 0)),
        ),
        compiler_params=pltpu.CompilerParams(**cp_kwargs),
        cost_estimate=cost,
    )(input_features, inds_flat, guid_flat, wn_flat, e_mat, r_mat, t_mat)


def pcf_reference(input_features, neighbor_inds, guidance, weightnet):
    """Pure-JAX reference matching the unfused PyTorch PCF path."""
    B, N, C = input_features.shape
    _, M, K = neighbor_inds.shape
    H = guidance.shape[-1]
    Cmid = weightnet.shape[-1]
    gathered = jax.vmap(lambda f, i: f[i])(input_features, neighbor_inds)  # (B,M,K,C)
    scaled = (gathered.reshape(B, M, K, H, C // H) * guidance[..., None]
              ).reshape(B, M, K, C)
    out = jnp.einsum('bmkc,bmkd->bmcd', scaled, weightnet,
                     precision=lax.Precision.HIGHEST)
    return out.reshape(B, M, C * Cmid)


if __name__ == "__main__":
    # Small shapes consistent with PCF's forward signature; C_in*C_mid = 128 so
    # the output rows are exactly lane-dense, tm = 128 exercises the big tile.
    B, N, M, K, C_in, H, C_mid = 2, 512, 256, 8, 16, 4, 8

    key = jax.random.PRNGKey(0)
    k_feat, k_inds, k_guid, k_wn = jax.random.split(key, 4)

    input_features = jax.random.normal(k_feat, (B, N, C_in), dtype=jnp.float32)
    neighbor_inds = jax.random.randint(k_inds, (B, M, K), 0, N, dtype=jnp.int32)
    guidance = jax.random.uniform(k_guid, (B, M, K, H), dtype=jnp.float32)
    weightnet = jax.random.normal(k_wn, (B, M, K, C_mid), dtype=jnp.float32)

    out = pcf_forward(input_features, neighbor_inds, guidance, weightnet)
    out = jax.block_until_ready(out)

    ref = pcf_reference(input_features, neighbor_inds, guidance, weightnet)
    np.testing.assert_allclose(np.asarray(out), np.asarray(ref), rtol=1e-2, atol=1e-2)

    print("KERNEL_OK")
</pallas_src>

<mosaic_0001>
module attributes {stable_mosaic.version = 11 : i64} {
  func.func @_pcf_kernel(%arg0: i32, %arg1: i32, %arg2: memref<1x512x16xf32, #tpu.memory_space<vmem>>, %arg3: memref<1x1024x1xi32, #tpu.memory_space<vmem>>, %arg4: memref<1x1024x4xf32, #tpu.memory_space<vmem>>, %arg5: memref<1x1024x8xf32, #tpu.memory_space<vmem>>, %arg6: memref<4x16xf32, #tpu.memory_space<vmem>>, %arg7: memref<16x128xf32, #tpu.memory_space<vmem>>, %arg8: memref<8x128xf32, #tpu.memory_space<vmem>>, %arg9: memref<1x128x128xf32, #tpu.memory_space<vmem>>) attributes {dimension_semantics = [#tpu.dimension_semantics<parallel>, #tpu.dimension_semantics<parallel>], iteration_bounds = array<i64: 2, 2>, scalar_prefetch = 0 : i64, scratch_operands = 0 : i64, tpu.core_type = #tpu.core_type<tc>, window_params = [{transform_indices = @transform_0, window_bounds = array<i64: 1, 512, 16>}, {transform_indices = @transform_1, window_bounds = array<i64: 1, 1024, 1>}, {transform_indices = @transform_2, window_bounds = array<i64: 1, 1024, 4>}, {transform_indices = @transform_3, window_bounds = array<i64: 1, 1024, 8>}, {pipeline_mode = #tpu.pipeline_mode<synchronous>, transform_indices = @transform_4, window_bounds = array<i64: 4, 16>}, {pipeline_mode = #tpu.pipeline_mode<synchronous>, transform_indices = @transform_5, window_bounds = array<i64: 16, 128>}, {pipeline_mode = #tpu.pipeline_mode<synchronous>, transform_indices = @transform_6, window_bounds = array<i64: 8, 128>}, {transform_indices = @transform_7, window_bounds = array<i64: 1, 128, 128>}]} {
    %c0 = arith.constant 0 : index
    %c0_0 = arith.constant 0 : index
    %c0_1 = arith.constant 0 : index
    %0 = vector.load %arg2[%c0, %c0_0, %c0_1] : memref<1x512x16xf32, #tpu.memory_space<vmem>>, vector<1x512x16xf32>
    %1 = vector.shape_cast %0 : vector<1x512x16xf32> to vector<512x16xf32>
    %c0_2 = arith.constant 0 : index
    %c0_3 = arith.constant 0 : index
    %c0_4 = arith.constant 0 : index
    %2 = vector.load %arg3[%c0_2, %c0_3, %c0_4] : memref<1x1024x1xi32, #tpu.memory_space<vmem>>, vector<1x1024x1xi32>
    %3 = vector.shape_cast %2 : vector<1x1024x1xi32> to vector<1024x1xi32>
    %c0_5 = arith.constant 0 : index
    %c0_6 = arith.constant 0 : index
    %c0_7 = arith.constant 0 : index
    %4 = vector.load %arg4[%c0_5, %c0_6, %c0_7] : memref<1x1024x4xf32, #tpu.memory_space<vmem>>, vector<1x1024x4xf32>
    %5 = vector.shape_cast %4 : vector<1x1024x4xf32> to vector<1024x4xf32>
    %c0_8 = arith.constant 0 : index
    %c0_9 = arith.constant 0 : index
    %c0_10 = arith.constant 0 : index
    %6 = vector.load %arg5[%c0_8, %c0_9, %c0_10] : memref<1x1024x8xf32, #tpu.memory_space<vmem>>, vector<1x1024x8xf32>
    %7 = vector.shape_cast %6 : vector<1x1024x8xf32> to vector<1024x8xf32>
    %8 = tpu.iota {dimensions = array<i32: 1>} : vector<1024x512xi32>
    %9 = vector.broadcast %3 : vector<1024x1xi32> to vector<1024x512xi32>
    %10 = arith.cmpi eq, %9, %8 : vector<1024x512xi32>
    %11 = arith.extui %10 : vector<1024x512xi1> to vector<1024x512xi32>
    %12 = arith.sitofp %11 : vector<1024x512xi32> to vector<1024x512xf32>
    %cst = arith.constant dense<0.000000e+00> : vector<1024x16xf32>
    %13 = tpu.matmul %12, %1, %cst {dimension_numbers = #tpu.dot_dimension_numbers<[1], [0], [0], [1], [0, 0, 1, 1], [], []>} : vector<1024x512xf32>, vector<512x16xf32>, vector<1024x16xf32> -> vector<1024x16xf32>
    %c0_11 = arith.constant 0 : index
    %c0_12 = arith.constant 0 : index
    %14 = vector.load %arg6[%c0_11, %c0_12] : memref<4x16xf32, #tpu.memory_space<vmem>>, vector<4x16xf32>
    %cst_13 = arith.constant dense<0.000000e+00> : vector<1024x16xf32>
    %15 = tpu.matmul %5, %14, %cst_13 {dimension_numbers = #tpu.dot_dimension_numbers<[1], [0], [0], [1], [0, 0, 1, 1], [], []>} : vector<1024x4xf32>, vector<4x16xf32>, vector<1024x16xf32> -> vector<1024x16xf32>
    %16 = arith.mulf %13, %15 : vector<1024x16xf32>
    %c0_14 = arith.constant 0 : index
    %c0_15 = arith.constant 0 : index
    %17 = vector.load %arg7[%c0_14, %c0_15] : memref<16x128xf32, #tpu.memory_space<vmem>>, vector<16x128xf32>
    %cst_16 = arith.constant dense<0.000000e+00> : vector<1024x128xf32>
    %18 = tpu.matmul %16, %17, %cst_16 {dimension_numbers = #tpu.dot_dimension_numbers<[1], [0], [0], [1], [0, 0, 1, 1], [], []>} : vector<1024x16xf32>, vector<16x128xf32>, vector<1024x128xf32> -> vector<1024x128xf32>
    %c0_17 = arith.constant 0 : index
    %c0_18 = arith.constant 0 : index
    %19 = vector.load %arg8[%c0_17, %c0_18] : memref<8x128xf32, #tpu.memory_space<vmem>>, vector<8x128xf32>
    %cst_19 = arith.constant dense<0.000000e+00> : vector<1024x128xf32>
    %20 = tpu.matmul %7, %19, %cst_19 {dimension_numbers = #tpu.dot_dimension_numbers<[1], [0], [0], [1], [0, 0, 1, 1], [], []>} : vector<1024x8xf32>, vector<8x128xf32>, vector<1024x128xf32> -> vector<1024x128xf32>
    %21 = arith.mulf %18, %20 : vector<1024x128xf32>
    %22 = vector.shape_cast %21 : vector<1024x128xf32> to vector<128x8x128xf32>
    %cst_20 = arith.constant dense<0.000000e+00> : vector<128x128xf32>
    %23 = vector.multi_reduction <add>, %22, %cst_20 [1] : vector<128x8x128xf32> to vector<128x128xf32>
    %c0_21 = arith.constant 0 : index
    %c0_22 = arith.constant 0 : index
    %c0_23 = arith.constant 0 : index
    %24 = vector.load %arg9[%c0_21, %c0_22, %c0_23] : memref<1x128x128xf32, #tpu.memory_space<vmem>>, vector<1x128x128xf32>
    %25 = vector.shape_cast %24 : vector<1x128x128xf32> to vector<128x128xf32>
    %26 = vector.shape_cast %23 : vector<128x128xf32> to vector<1x128x128xf32>
    tpu.vector_store %arg9[%c0_21, %c0_22, %c0_23], %26 {strides = array<i32>} : memref<1x128x128xf32, #tpu.memory_space<vmem>>, vector<1x128x128xf32>,
    return
  }
  func.func @transform_0(%arg0: i32, %arg1: i32) -> (i32, i32, i32) {
    %c0_i32 = arith.constant 0 : i32
    %c0_i32_0 = arith.constant 0 : i32
    %c0_i32_1 = arith.constant 0 : i32
    return %arg0, %c0_i32, %c0_i32_0 : i32, i32, i32
  }
  func.func @transform_1(%arg0: i32, %arg1: i32) -> (i32, i32, i32) {
    %c0_i32 = arith.constant 0 : i32
    %c0_i32_0 = arith.constant 0 : i32
    return %arg0, %arg1, %c0_i32 : i32, i32, i32
  }
  func.func @transform_2(%arg0: i32, %arg1: i32) -> (i32, i32, i32) {
    %c0_i32 = arith.constant 0 : i32
    %c0_i32_0 = arith.constant 0 : i32
    return %arg0, %arg1, %c0_i32 : i32, i32, i32
  }
  func.func @transform_3(%arg0: i32, %arg1: i32) -> (i32, i32, i32) {
    %c0_i32 = arith.constant 0 : i32
    %c0_i32_0 = arith.constant 0 : i32
    return %arg0, %arg1, %c0_i32 : i32, i32, i32
  }
  func.func @transform_4(%arg0: i32, %arg1: i32) -> (i32, i32) {
    %c0_i32 = arith.constant 0 : i32
    %c0_i32_0 = arith.constant 0 : i32
    %c0_i32_1 = arith.constant 0 : i32
    return %c0_i32, %c0_i32_0 : i32, i32
  }
  func.func @transform_5(%arg0: i32, %arg1: i32) -> (i32, i32) {
    %c0_i32 = arith.constant 0 : i32
    %c0_i32_0 = arith.constant 0 : i32
    %c0_i32_1 = arith.constant 0 : i32
    return %c0_i32, %c0_i32_0 : i32, i32
  }
  func.func @transform_6(%arg0: i32, %arg1: i32) -> (i32, i32) {
    %c0_i32 = arith.constant 0 : i32
    %c0_i32_0 = arith.constant 0 : i32
    %c0_i32_1 = arith.constant 0 : i32
    return %c0_i32, %c0_i32_0 : i32, i32
  }
  func.func @transform_7(%arg0: i32, %arg1: i32) -> (i32, i32, i32) {
    %c0_i32 = arith.constant 0 : i32
    %c0_i32_0 = arith.constant 0 : i32
    return %arg0, %arg1, %c0_i32 : i32, i32, i32
  }
}

</mosaic_0001>

<bundles_post_ra>
// kernel: tpu_custom_call.1
= control target key start
LH: loop header
LB: loop body
LE: loop exit
PB: predicated region body
PF: predicated region fallthrough
CT: control target
= control target key end

     0   :  { %12 = vsyncpa [#allocation3], 0  ;;  %s14444_s0 = inlined_call_operand.vmem [shape: f32[2,512,16], index: 0, kind: input, shape index: {}]   ;;  %s14445_s1 = inlined_call_operand.vmem [shape: s32[2,2048,1], index: 1, kind: input, shape index: {}]   ;;  %s14446_s2 = inlined_call_operand.vmem [shape: f32[2,2048,4], index: 2, kind: input, shape index: {}]   ;;  %s14447_s3 = inlined_call_operand.vmem [shape: f32[2,2048,8], index: 3, kind: input, shape index: {}]   ;;  %s14448_s4 = inlined_call_operand.vmem [shape: f32[4,16], index: 4, kind: input, shape index: {}]   ;;  %s14449_s5 = inlined_call_operand.vmem [shape: f32[16,128], index: 5, kind: input, shape index: {}]   ;;  %s14450_s6 = inlined_call_operand.vmem [shape: f32[8,128], index: 6, kind: input, shape index: {}]   ;;  %s14451_s7 = inlined_call_operand.hbm [shape: f32[2,256,128], index: 7, kind: output, shape index: {}]  }
   0x1   :  { %14 = vsyncpa [#allocation3 + $0x1], 0  ;;  %s9893_s24 = smov 0   ;;  %s9895_s25 = smov 0  }
   0x2   :  { %s9897_s26 = smov 0   ;;  %s9899_s27 = smov 0  }
   0x3   :  { %s9901_s28 = smov 0   ;;  %s9903_s29 = smov 0  }
   0x4   :  { %s9905_s30 = smov 0   ;;  %s9907_s8 = smov 0  }
   0x5 LB: > { %s8194_s9 = sadd.s32 4294967295, %s9847_s8   ;;  %s8195_s10 = sadd.s32 4294967294, %s9847_s8   ;;  %s9847_s8 = sphi %s9907_s8, %s20_s8   ;;  %s9843_s30 = sphi %s9905_s30, %s15485_s30   ;;  %s9839_s29 = sphi %s9903_s29, %s15484_s29   ;;  %s9835_s28 = sphi %s9901_s28, %s15483_s28   ;;  %s9831_s27 = sphi %s9899_s27, %s15482_s27   ;;  %s9827_s26 = sphi %s9897_s26, %s15481_s26   ;;  %s9823_s25 = sphi %s9895_s25, %s15480_s25   ;;  %s9819_s24 = sphi %s9893_s24, %s15479_s24  }
   0x6   : > { %s29_s11 = sadd.s32 1, %s9839_s29  ;;  %s32_s12 = sadd.s32 1, %s9843_s30 }
   0x7   : > { %p30_p0 = scmp.ge.s32.totalorder %s29_s11, 2  ;;  %p224_p1 = scmp.ne.s32.totalorder %s9827_s26, %s9823_s25 }
   0x8   : > { %p225_p2 = scmp.eq.s32.totalorder %s8194_s9, 3  ;;  %p230_p5 = scmp.ne.s32.totalorder %s9823_s25, %s9819_s24 }
   0x9   : > { %s15487_s11 = smov (%p30_p0, %s29_s11), 0  ;;  %s15489_s12 = smov (!%p30_p0, %s32_s12), %s9843_s30 }
   0xa   : > { %s210_s13 = ssub.s32 %s9839_s29, %s15487_s11  ;;  %p9944_p3 = por %p225_p2, %p224_p1 }
   0xb   : > { %p34_p4 = scmp.ge.s32.totalorder %s15489_s12, 2  ;;  %p231_p6 = scmp.eq.s32.totalorder %s8195_s10, 3 }
   0xc   : > { %p8198_p7 = scmp.ge.s32.totalorder %s9847_s8, 1  ;;  %p305_p9 = scmp.lt.s32.totalorder %s9847_s8, 5 }
   0xd   : > { %s15491_s12 = smov (%p34_p4, %s15489_s12), 0  ;;  %p9953_p8 = por %p231_p6, %p230_p5 }
   0xe   : > { %s209_s16 = ssub.s32 %s9843_s30, %s15491_s12  ;;  %s214_s17 = sadd.s32 1, %s9827_s26 }
   0xf   : > { %s211_s18 = sor.u32 %s210_s13, %s209_s16  ;;  %p306_p10 = pnand %p8198_p7, %p305_p9 }
  0x10   : > { %p212_p11 = scmp.eq.s32.totalorder %s211_s18, 0 }
  0x11   : > { %309 = sbr.rel (%p306_p10) target bundleno = 2214 (0x8a6), region = 48 }
  0x12   : > { %s9962_s19 = scalar_select %p212_p11, %s9827_s26, %s214_s17  }
  0x16   : > { %p364_p12 = scmp.lt.s32.totalorder %s9835_s28, 1  ;;  %s8202_s20 = sshll.u32 %s9831_s27, 7  ;;  %v9849_v0 = vmov 0   ;;  %vm4763_vm0 = vcmask 1043456  }
  0x17   : > { %9752 = vset.pattern.permute.xlu2 %v9849_v0  ;;  %9751 = vset.pattern.permute.xlu1 %v9849_v0  ;;  %p372_p13 = scmp.lt.s32.totalorder %s8202_s20, 255 }
  0x18   : > { %9750 = vset.pattern.permute.xlu0 %v9849_v0  ;;  %s9967_s21 = scalar_select %p364_p12, %s9835_s28, 1 }
  0x19   : > { %s15493_s20 = smov (!%p372_p13, %s8202_s20), 255 }
  0x1a   : > { %s8203_s22 = sshll.u32 %s9967_s21, 8  ;;  %s9626_s17 = sshll.u32 %s9967_s21, 9 }
  0x1b   : > { %s375_s23 = sadd.s32 %s8203_s22, %s15493_s20  ;;  %s10003_s22 = scalar_lea.vmem %s14444_s0, %s9626_s17 }
  0x1c   : > { %s9970_s9 = sshll.u32 %s375_s23, 3  ;;  %v415_v22 = vld [vmem:[%s10003_s22 + $0x78] sm:$0xff]  ;;  %v414_v23 = vld [vmem:[%s10003_s22 + $0x70] sm:$0xff]  ;;  %v413_v27 = vld [vmem:[%s10003_s22 + $0x68] sm:$0xff]  ;;  %s9621_s20 = sshll.u32 %s9831_s27, 4 }
  0x1d   : > { %s9976_s16 = scalar_lea.vmem %s14445_s1, %s9970_s9  ;;  %9627 = vmatpush.msra.mxu3 %v415_v22  ;;  %2773 = vmatpush.msra.mxu0 %v415_v22  ;;  %v412_v28 = vld [vmem:[%s10003_s22 + $0x60] sm:$0xff]  ;;  %v10013_v29 = vld [vmem:[%s10003_s22 + $0xf8] sm:$0xff]  ;;  %v10021_v32 = vld [vmem:[%s10003_s22 + $0xf0] sm:$0xff]  ;;  %s12372_s23 = scalar_lea.vmem %s14446_s2, %s9970_s9 }
  0x1e   : > { %v562_v1 = vld [vmem:[%s9976_s16 + $0x310] sm:$0xff]  ;;  %v561_v2 = vld [vmem:[%s9976_s16 + $0x308] sm:$0xff]  ;;  %v560_v3 = vld [vmem:[%s9976_s16 + $0x300] sm:$0xff]  ;;  %3174 = vmatpush.msra.mxu1 %v10013_v29  ;;  %s12537_s17 = scalar_lea.vmem %s14447_s3, %s9970_s9  ;;  %s361_s9 = sand.u32 1, %s9823_s25  }
  0x1f   : > { %1148 = vperm.xlu2 %9752, %v562_v1   ;;  %1145 = vperm.xlu1 %9751, %v561_v2   ;;  %v466_v4 = vld [vmem:[%s9976_s16 + $0x10] sm:$0xff]  ;;  %v465_v5 = vld [vmem:[%s9976_s16 + $0x8] sm:$0xff]  ;;  %v464_v6 = vld [vmem:[%s9976_s16] sm:$0xff]  ;;  %s8199_s18 = sshll.u32 %s361_s9, 7  ;;  %s9773_s27 = scalar_lea.hbm %s14451_s7, 512 }
  0x20   : > { %1142 = vperm.xlu0 %9750, %v560_v3   ;;  %v564_v7 = vld [vmem:[%s9976_s16 + $0x320] sm:$0xff]  ;;  %v467_v8 = vld [vmem:[%s9976_s16 + $0x18] sm:$0xff]  ;;  %v469_v10 = vld [vmem:[%s9976_s16 + $0x28] sm:$0xff]  ;;  %9628 = vmatpush.msra.mxu3 %v414_v23 }
  0x21   : > { %v563_v9 = vld [vmem:[%s9976_s16 + $0x318] sm:$0xff]  ;;  %v565_v11 = vld [vmem:[%s9976_s16 + $0x328] sm:$0xff]  ;;  %v468_v12 = vld [vmem:[%s9976_s16 + $0x20] sm:$0xff]  ;;  %2774 = vmatpush.msra.mxu0 %v414_v23  ;;  %3175 = vmatpush.msra.mxu1 %v10021_v32 }
  0x22   : > { %v567_v13 = vld [vmem:[%s9976_s16 + $0x338] sm:$0xff]  ;;  %v470_v14 = vld [vmem:[%s9976_s16 + $0x30] sm:$0xff]  ;;  %v472_v16 = vld [vmem:[%s9976_s16 + $0x40] sm:$0xff]  ;;  %9629 = vmatpush.msra.mxu3 %v413_v27 }
  0x23   : > { %v566_v15 = vld [vmem:[%s9976_s16 + $0x330] sm:$0xff]  ;;  %v568_v17 = vld [vmem:[%s9976_s16 + $0x340] sm:$0xff]  ;;  %v471_v18 = vld [vmem:[%s9976_s16 + $0x38] sm:$0xff]  ;;  %2775 = vmatpush.msra.mxu0 %v413_v27 }
  0x24   : > { %v570_v19 = vld [vmem:[%s9976_s16 + $0x350] sm:$0xff]  ;;  %v473_v20 = vld [vmem:[%s9976_s16 + $0x48] sm:$0xff]  ;;  %v475_v24 = vld [vmem:[%s9976_s16 + $0x58] sm:$0xff]  ;;  %9630 = vmatpush.msra.mxu3 %v412_v28 }
  0x25   : > { %v569_v21 = vld [vmem:[%s9976_s16 + $0x348] sm:$0xff]  ;;  %v571_v25 = vld [vmem:[%s9976_s16 + $0x358] sm:$0xff]  ;;  %v474_v26 = vld [vmem:[%s9976_s16 + $0x50] sm:$0xff]  ;;  %2776 = vmatpush.msra.mxu0 %v412_v28 }
  0x26   : > { %v411_v30 = vld [vmem:[%s10003_s22 + $0x58] sm:$0xff]  ;;  %v10025_v33 = vld [vmem:[%s10003_s22 + $0x170] sm:$0xff]  ;;  %v573_v34 = vld [vmem:[%s9976_s16 + $0x368] sm:$0xff] }
  0x27   : > { %860 = vperm.xlu2 %9752, %v466_v4   ;;  %857 = vperm.xlu1 %9751, %v465_v5   ;;  %v10018_v31 = vld [vmem:[%s10003_s22 + $0x178] sm:$0xff]  ;;  %v476_v35 = vld [vmem:[%s9976_s16 + $0x60] sm:$0xff]  ;;  %v410_v37 = vld [vmem:[%s10003_s22 + $0x50] sm:$0xff] }
  0x28   : > { %854 = vperm.xlu0 %9750, %v464_v6   ;;  %3575 = vmatpush.msra.mxu2 %v10018_v31  ;;  %v572_v36 = vld [vmem:[%s9976_s16 + $0x360] sm:$0xff]  ;;  %v409_v38 = vld [vmem:[%s10003_s22 + $0x48] sm:$0xff]  ;;  %v10050_v44 = vld [vmem:[%s10003_s22 + $0xd8] sm:$0xff] }
  0x29   : > { %9631 = vmatpush.msra.mxu3 %v411_v30  ;;  %2777 = vmatpush.msra.mxu0 %v411_v30  ;;  %v10035_v39 = vld [vmem:[%s10003_s22 + $0xe8] sm:$0xff]  ;;  %v408_v41 = vld [vmem:[%s10003_s22 + $0x40] sm:$0xff]  ;;  %v10053_v45 = vld [vmem:[%s10003_s22 + $0x158] sm:$0xff] }
  0x2a   : > { %3576 = vmatpush.msra.mxu2 %v10025_v33  ;;  %v10038_v40 = vld [vmem:[%s10003_s22 + $0x168] sm:$0xff]  ;;  %3176 = vmatpush.msra.mxu1 %v10035_v39  ;;  %v10044_v42 = vld [vmem:[%s10003_s22 + $0xe0] sm:$0xff]  ;;  %v407_v46 = vld [vmem:[%s10003_s22 + $0x38] sm:$0xff] }
  0x2b   : > { %9632 = vmatpush.msra.mxu3 %v410_v37  ;;  %v10047_v43 = vld [vmem:[%s10003_s22 + $0x160] sm:$0xff]  ;;  %2778 = vmatpush.msra.mxu0 %v410_v37  ;;  %v478_v47 = vld [vmem:[%s9976_s16 + $0x70] sm:$0xff]  ;;  %v477_v49 = vld [vmem:[%s9976_s16 + $0x68] sm:$0xff] }
  0x2c   : > { %3577 = vmatpush.msra.mxu2 %v10038_v40  ;;  %3177 = vmatpush.msra.mxu1 %v10044_v42  ;;  %v574_v48 = vld [vmem:[%s9976_s16 + $0x370] sm:$0xff]  ;;  %v405_v53 = vld [vmem:[%s10003_s22 + $0x28] sm:$0xff]  ;;  %v404_v56 = vld [vmem:[%s10003_s22 + $0x20] sm:$0xff] }
  0x2d   : > { %9633 = vmatpush.msra.mxu3 %v409_v38  ;;  %2779 = vmatpush.msra.mxu0 %v409_v38  ;;  %v406_v50 = vld [vmem:[%s10003_s22 + $0x30] sm:$0xff]  ;;  %v10072_v54 = vld [vmem:[%s10003_s22 + $0xc8] sm:$0xff]  ;;  %v10081_v57 = vld [vmem:[%s10003_s22 + $0xc0] sm:$0xff] }
  0x2e   : > { %3578 = vmatpush.msra.mxu2 %v10047_v43  ;;  %3178 = vmatpush.msra.mxu1 %v10050_v44  ;;  %v10065_v51 = vld [vmem:[%s10003_s22 + $0xd0] sm:$0xff]  ;;  %v10075_v55 = vld [vmem:[%s10003_s22 + $0x148] sm:$0xff]  ;;  %v10084_v58 = vld [vmem:[%s10003_s22 + $0x140] sm:$0xff] }
  0x2f   : > { %1154 = vperm.xlu2 %9752, %v564_v7   ;;  %863 = vperm.xlu1 %9751, %v467_v8   ;;  %v10068_v52 = vld [vmem:[%s10003_s22 + $0x150] sm:$0xff]  ;;  %v403_v59 = vld [vmem:[%s10003_s22 + $0x18] sm:$0xff]  ;;  %v576_v60 = vld [vmem:[%s9976_s16 + $0x380] sm:$0xff] }
  0x30   : > { %1151 = vperm.xlu0 %9750, %v563_v9   ;;  %9634 = vmatpush.msra.mxu3 %v408_v41  ;;  %v479_v61 = vld [vmem:[%s9976_s16 + $0x78] sm:$0xff]  ;;  %v402_v1 = vld [vmem:[%s10003_s22 + $0x10] sm:$0xff]  ;;  %v401_v4 = vld [vmem:[%s10003_s22 + $0x8] sm:$0xff] }
  0x31   : > { %3579 = vmatpush.msra.mxu2 %v10053_v45  ;;  %2780 = vmatpush.msra.mxu0 %v408_v41  ;;  %v575_v62 = vld [vmem:[%s9976_s16 + $0x378] sm:$0xff]  ;;  %v10102_v2 = vld [vmem:[%s10003_s22 + $0xb0] sm:$0xff]  ;;  %v10111_v5 = vld [vmem:[%s10003_s22 + $0xa8] sm:$0xff] }
  0x32   : > { %9635 = vmatpush.msra.mxu3 %v407_v46  ;;  %3179 = vmatpush.msra.mxu1 %v10065_v51  ;;  %v10095_v63 = vld [vmem:[%s10003_s22 + $0xb8] sm:$0xff]  ;;  %v10106_v3 = vld [vmem:[%s10003_s22 + $0x130] sm:$0xff]  ;;  %v10115_v6 = vld [vmem:[%s10003_s22 + $0x128] sm:$0xff] }
  0x33   : > { %3580 = vmatpush.msra.mxu2 %v10068_v52  ;;  %2781 = vmatpush.msra.mxu0 %v407_v46  ;;  %v10098_v0 = vld [vmem:[%s10003_s22 + $0x138] sm:$0xff]  ;;  %v400_v7 = vld [vmem:[%s10003_s22] sm:$0xff]  ;;  %v481_v9 = vld [vmem:[%s9976_s16 + $0x88] sm:$0xff] }
  0x34   : > { %9636 = vmatpush.msra.mxu3 %v406_v50  ;;  %3180 = vmatpush.msra.mxu1 %v10072_v54  ;;  %v10120_v8 = vld [vmem:[%s10003_s22 + $0xa0] sm:$0xff]  ;;  %v483_v27 = vld [vmem:[%s9976_s16 + $0x98] sm:$0xff]  ;;  %v582_v28 = vld [vmem:[%s9976_s16 + $0x3b0] sm:$0xff] }
  0x35   : > { %3581 = vmatpush.msra.mxu2 %v10075_v55  ;;  %2782 = vmatpush.msra.mxu0 %v406_v50  ;;  %v416_v22 = vld [vmem:[%s10003_s22 + $0x80] sm:$0xff]  ;;  %v581_v30 = vld [vmem:[%s9976_s16 + $0x3a8] sm:$0xff]  ;;  %v487_v37 = vld [vmem:[%s9976_s16 + $0xb8] sm:$0xff] }
  0x36   : > { %9637 = vmatpush.msra.mxu3 %v405_v53  ;;  %3181 = vmatpush.msra.mxu1 %v10081_v57  ;;  %v4377_v23 = vld [vmem:[%s14448_s4] sm:$0xf]  ;;  %v583_v38 = vld [vmem:[%s9976_s16 + $0x3b8] sm:$0xff] }
  0x37   : > { %869 = vperm.xlu2 %9752, %v469_v10   ;;  %1157 = vperm.xlu1 %9751, %v565_v11   ;;  %v577_v10 = vld [vmem:[%s9976_s16 + $0x388] sm:$0xff]  ;;  %v480_v11 = vld [vmem:[%s9976_s16 + $0x80] sm:$0xff] }
  0x38   : > { %866 = vperm.xlu0 %9750, %v468_v12   ;;  %9638 = vmatpush.msra.mxu3 %v404_v56  ;;  %v10128_v12 = vld [vmem:[%s10003_s22 + $0x120] sm:$0xff] }
  0x39   : > { %3582 = vmatpush.msra.mxu2 %v10084_v58  ;;  %2783 = vmatpush.msra.mxu0 %v405_v53  ;;  %v490_v53 = vld [vmem:[%s9976_s16 + $0xd0] sm:$0xff] }
  0x3a   : > { %9639 = vmatpush.msra.mxu3 %v403_v59  ;;  %3182 = vmatpush.msra.mxu1 %v10095_v63 }
  0x3b   : > { %3583 = vmatpush.msra.mxu2 %v10098_v0  ;;  %2784 = vmatpush.msra.mxu0 %v404_v56 }
  0x3c   : > { %9640 = vmatpush.msra.mxu3 %v402_v1  ;;  %3183 = vmatpush.msra.mxu1 %v10102_v2 }
  0x3d   : > { %3584 = vmatpush.msra.mxu2 %v10106_v3  ;;  %2785 = vmatpush.msra.mxu0 %v403_v59 }
  0x3e   : > { %9641 = vmatpush.msra.mxu3 %v401_v4  ;;  %3184 = vmatpush.msra.mxu1 %v10111_v5 }
  0x3f   : > { %1163 = vperm.xlu2 %9752, %v567_v13   ;;  %872 = vperm.xlu1 %9751, %v470_v14   ;;  %v10133_v13 = vld [vmem:[%s10003_s22 + $0x98] sm:$0xff] }
  0x40   : > { %1160 = vperm.xlu0 %9750, %v566_v15   ;;  %3585 = vmatpush.msra.mxu2 %v10115_v6  ;;  %v10136_v14 = vld [vmem:[%s10003_s22 + $0x118] sm:$0xff]  ;;  %v418_v15 = vld [vmem:[%s10003_s22 + $0x90] sm:$0xff] }
  0x41   : > { %9642 = vmatpush.msra.mxu3 %v400_v7  ;;  %3185 = vmatpush.msra.mxu1 %v10120_v8 }
  0x42   : > { %3586 = vmatpush.msra.mxu2 %v10128_v12  ;;  %2786 = vmatpush.msra.mxu0 %v402_v1 }
  0x43   : > { %9643 = vmatpush.msrb.mxu3 %v10013_v29  ;;  %3186 = vmatpush.msra.mxu1 %v10133_v13  ;;  %v485_v29 = vld [vmem:[%s9976_s16 + $0xa8] sm:$0xff] }
  0x44   : > { %3587 = vmatpush.msra.mxu2 %v10136_v14  ;;  %2787 = vmatpush.msra.mxu0 %v401_v4  ;;  %v496_v4 = vld [vmem:[%s9976_s16 + $0x100] sm:$0xff] }
  0x45   : > { %9644 = vmatpush.msrb.mxu3 %v10021_v32  ;;  %3187 = vmatpush.msra.mxu1 %v418_v15  ;;  %v848_v32 = vlaneseq }
  0x46   : > { %2788 = vmatpush.msra.mxu0 %v400_v7 }
  0x47   : > { %878 = vperm.xlu2 %9752, %v472_v16   ;;  %1166 = vperm.xlu1 %9751, %v568_v17   ;;  %v10142_v16 = vld [vmem:[%s10003_s22 + $0x110] sm:$0xff]  ;;  %v417_v17 = vld [vmem:[%s10003_s22 + $0x88] sm:$0xff] }
  0x48   : > { %875 = vperm.xlu0 %9750, %v471_v18   ;;  %v10148_v18 = vld [vmem:[%s10003_s22 + $0x108] sm:$0xff]  ;;  %3588 = vmatpush.msra.mxu2 %v10142_v16 }
  0x49   : > { %9645 = vmatpush.msrb.mxu3 %v10035_v39  ;;  %3188 = vmatpush.msra.mxu1 %v417_v17  ;;  %v486_v39 = vld [vmem:[%s9976_s16 + $0xb0] sm:$0xff] }
  0x4a   : > { %3589 = vmatpush.msra.mxu2 %v10148_v18  ;;  %9235 = vmatpush.msk.msrb.mxu0 %vm4763_vm0, %v4377_v23  ;;  %v509_v23 = vld [vmem:[%s9976_s16 + $0x168] sm:$0xff] }
  0x4b   : > { %3189 = vmatpush.msra.mxu1 %v416_v22  ;;  %9646 = vmatpush.msrb.mxu3 %v10044_v42 }
  0x4d   : > { %9647 = vmatpush.msrb.mxu3 %v10050_v44 }
  0x4f   : > { %1172 = vperm.xlu2 %9752, %v570_v19   ;;  %881 = vperm.xlu1 %9751, %v473_v20   ;;  %v579_v19 = vld [vmem:[%s9976_s16 + $0x398] sm:$0xff]  ;;  %v482_v20 = vld [vmem:[%s9976_s16 + $0x90] sm:$0xff] }
  0x50   : > { %1169 = vperm.xlu0 %9750, %v569_v21   ;;  %v578_v21 = vld [vmem:[%s9976_s16 + $0x390] sm:$0xff]  ;;  %9648 = vmatpush.msrb.mxu3 %v10065_v51 }
  0x52   : > { %9649 = vmatpush.msrb.mxu3 %v10072_v54 }
  0x54   : > { %9650 = vmatpush.msrb.mxu3 %v10081_v57 }
  0x56   : > { %9651 = vmatpush.msrb.mxu3 %v10095_v63  ;;  %v494_v63 = vld [vmem:[%s9976_s16 + $0xf0] sm:$0xff] }
  0x57   : > { %887 = vperm.xlu2 %9752, %v475_v24   ;;  %1175 = vperm.xlu1 %9751, %v571_v25   ;;  %v10161_v24 = vld [vmem:[%s10003_s22 + $0x100] sm:$0xff] }
  0x58   : > { %884 = vperm.xlu0 %9750, %v474_v26   ;;  %3590 = vmatpush.msra.mxu2 %v10161_v24  ;;  %v484_v25 = vld [vmem:[%s9976_s16 + $0xa0] sm:$0xff] }
  0x59   : > { %v580_v26 = vld [vmem:[%s9976_s16 + $0x3a0] sm:$0xff]  ;;  %9652 = vmatpush.msrb.mxu3 %v10102_v2 }
  0x5b   : > { %9653 = vmatpush.msrb.mxu3 %v10111_v5  ;;  %v495_v5 = vld [vmem:[%s9976_s16 + $0xf8] sm:$0xff] }
  0x5d   : > { %9654 = vmatpush.msrb.mxu3 %v10120_v8  ;;  %v500_v8 = vld [vmem:[%s9976_s16 + $0x120] sm:$0xff] }
  0x5f   : > { %1181 = vperm.xlu2 %9752, %v573_v34   ;;  %890 = vperm.xlu1 %9751, %v476_v35   ;;  %v10178_v34 = vand.u32 127, %v848_v32 }
  0x60   : > { %1178 = vperm.xlu0 %9750, %v572_v36   ;;  %v14559_v36 = vmov 1.0   ;;  %9655 = vmatpush.msrb.mxu3 %v10133_v13  ;;  %v503_v13 = vld [vmem:[%s9976_s16 + $0x138] sm:$0xff] }
  0x61   : > { %v10193_v42 = vadd.s32 256, %v10178_v34  ;;  %v10198_v44 = vadd.s32 128, %v10178_v34 }
  0x62   : > { %9656 = vmatpush.msrb.mxu3 %v418_v15  ;;  %v501_v15 = vld [vmem:[%s9976_s16 + $0x128] sm:$0xff] }
  0x64   : > { %9657 = vmatpush.msrb.mxu3 %v417_v17 }
  0x66   : > { %9658 = vmatpush.msrb.mxu3 %v416_v22 }
  0x67   : > { %896 = vperm.xlu2 %9752, %v478_v47   ;;  %1184 = vperm.xlu1 %9751, %v574_v48   ;;  %v585_v47 = vld [vmem:[%s9976_s16 + $0x3c8] sm:$0xff]  ;;  %v488_v48 = vld [vmem:[%s9976_s16 + $0xc0] sm:$0xff] }
  0x68   : > { %893 = vperm.xlu0 %9750, %v477_v49   ;;  %v584_v49 = vld [vmem:[%s9976_s16 + $0x3c0] sm:$0xff] }
  0x6f   : > { %1190 = vperm.xlu2 %9752, %v576_v60   ;;  %899 = vperm.xlu1 %9751, %v479_v61  }
  0x70   : > { %1187 = vperm.xlu0 %9750, %v575_v62   ;;  %v591_v62 = vld [vmem:[%s9976_s16 + $0x3f8] sm:$0xff] }
  0x77   : > { %905 = vperm.xlu2 %9752, %v481_v9   ;;  %1193 = vperm.xlu1 %9751, %v577_v10   ;;  %v499_v9 = vld [vmem:[%s9976_s16 + $0x118] sm:$0xff]  ;;  %v498_v10 = vld [vmem:[%s9976_s16 + $0x110] sm:$0xff] }
  0x78   : > { %902 = vperm.xlu0 %9750, %v480_v11  }
  0x79   : > { %v10215_v50 = vpop.permute.xlu2 %1148 }
  0x7a   : > { %14586 = vst [vmem:[#allocation8_spill] sm:$0xff] %v10215_v50  ;;  %vm1629_vm6 = vcmp.eq.s32.totalorder %v10215_v50, %v10178_v34 }
  0x7f   : > { %1199 = vperm.xlu2 %9752, %v579_v19   ;;  %908 = vperm.xlu1 %9751, %v482_v20   ;;  %v505_v19 = vld [vmem:[%s9976_s16 + $0x148] sm:$0xff]  ;;  %v504_v20 = vld [vmem:[%s9976_s16 + $0x140] sm:$0xff] }
  0x80   : > { %1196 = vperm.xlu0 %9750, %v578_v21  }
  0x81   : > { %v10237_v54 = vpop.permute.xlu2 %860 }
  0x82   : > { %14588 = vst [vmem:[#allocation10_spill] sm:$0xff] %v10237_v54  ;;  %vm1245_vm10 = vcmp.eq.s32.totalorder %v10237_v54, %v10178_v34  ;;  %vm1246_vm12 = vcmp.eq.s32.totalorder %v10237_v54, %v10198_v44  ;;  %vm1247_vm13 = vcmp.eq.s32.totalorder %v10237_v54, %v10193_v42 }
  0x87   : > { %914 = vperm.xlu2 %9752, %v484_v25   ;;  %1202 = vperm.xlu1 %9751, %v580_v26   ;;  %v507_v25 = vld [vmem:[%s9976_s16 + $0x158] sm:$0xff] }
  0x88   : > { %911 = vperm.xlu0 %9750, %v483_v27  }
  0x89   : > { %v10262_v59 = vpop.permute.xlu2 %1154 }
  0x8a   : > { %14591 = vst [vmem:[#allocation13_spill] sm:$0xff] %v10262_v59  ;;  %vm1637_vm15 = vcmp.eq.s32.totalorder %v10262_v59, %v10178_v34 }
  0x8f   : > { %1208 = vperm.xlu2 %9752, %v582_v28   ;;  %917 = vperm.xlu1 %9751, %v485_v29   ;;  %v512_v28 = vld [vmem:[%s9976_s16 + $0x180] sm:$0xff]  ;;  %v511_v29 = vld [vmem:[%s9976_s16 + $0x178] sm:$0xff] }
  0x90   : > { %1205 = vperm.xlu0 %9750, %v581_v30   ;;  %v510_v30 = vld [vmem:[%s9976_s16 + $0x170] sm:$0xff] }
  0x91   : > { %v10190_v41 = vpop.permute.xlu1 %1145  ;;  %v10303_v1 = vpop.permute.xlu2 %869 }
  0x92   : > { %v10180_v35 = vpop.permute.xlu0 %1142  ;;  %14584 = vst [vmem:[#allocation6_spill] sm:$0xff] %v10190_v41  ;;  %vm1625_vm2 = vcmp.eq.s32.totalorder %v10190_v41, %v10178_v34 }
  0x93   : > { %14583 = vst [vmem:[#allocation5_spill] sm:$0xff] %v10180_v35  ;;  %vm1621_vm1 = vcmp.eq.s32.totalorder %v10180_v35, %v10178_v34 }
  0x94   : > { %8819 = vmatmul.msk.f32.vlgmr.msra.gmra.mxu3 %vm1621_vm1, %v14559_v36  ;;  %14594 = vst [vmem:[#allocation16_spill] sm:$0xff] %v10303_v1 }
  0x95   : > { %9659 = vmatpush.msra.mxu3 %v10018_v31  ;;  %v586_v31 = vld [vmem:[%s9976_s16 + $0x3d0] sm:$0xff] }
  0x97   : > { %923 = vperm.xlu2 %9752, %v487_v37   ;;  %1211 = vperm.xlu1 %9751, %v583_v38   ;;  %v515_v38 = vld [vmem:[%s9976_s16 + $0x198] sm:$0xff] }
  0x98   : > { %920 = vperm.xlu0 %9750, %v486_v39   ;;  %9660 = vmatpush.msra.mxu3 %v10025_v33  ;;  %v489_v33 = vld [vmem:[%s9976_s16 + $0xc8] sm:$0xff]  ;;  %v514_v39 = vld [vmem:[%s9976_s16 + $0x190] sm:$0xff] }
  0x99   : > { %v10217_v51 = vpop.permute.xlu1 %857  ;;  %v10328_v7 = vpop.permute.xlu2 %1163 }
  0x9a   : > { %v10200_v46 = vpop.permute.xlu0 %854  ;;  %14587 = vst [vmem:[#allocation9_spill] sm:$0xff] %v10217_v51  ;;  %vm1241_vm7 = vcmp.eq.s32.totalorder %v10217_v51, %v10178_v34  ;;  %vm1242_vm8 = vcmp.eq.s32.totalorder %v10217_v51, %v10198_v44  ;;  %vm1243_vm9 = vcmp.eq.s32.totalorder %v10217_v51, %v10193_v42  ;;  %9661 = vmatpush.msra.mxu3 %v10038_v40  ;;  %v588_v40 = vld [vmem:[%s9976_s16 + $0x3e0] sm:$0xff] }
  0x9b   : > { %14585 = vst [vmem:[#allocation7_spill] sm:$0xff] %v10200_v46  ;;  %vm1237_vm3 = vcmp.eq.s32.totalorder %v10200_v46, %v10178_v34  ;;  %vm1238_vm4 = vcmp.eq.s32.totalorder %v10200_v46, %v10198_v44  ;;  %vm1239_vm5 = vcmp.eq.s32.totalorder %v10200_v46, %v10193_v42 }
  0x9c   : > { %8723 = vmatmul.msk.f32.vlgmr.msra.gmra.mxu0 %vm1237_vm3, %v14559_v36  ;;  %8820 = vmatmul.msk.f32.gmra.mxu3 %vm1625_vm2, %v14559_v36  ;;  %14597 = vst [vmem:[#allocation19_spill] sm:$0xff] %v10328_v7 }
  0x9d   : > { %8851 = vmatmul.msk.f32.vlgmr.msra.gmra.mxu1 %vm1238_vm4, %v14559_v36  ;;  %8979 = vmatmul.msk.f32.vlgmr.msra.gmra.mxu2 %vm1239_vm5, %v14559_v36 }
  0x9e   : > { %9662 = vmatpush.msra.mxu3 %v10047_v43  ;;  %v491_v43 = vld [vmem:[%s9976_s16 + $0xd8] sm:$0xff] }
  0x9f   : > { %1217 = vperm.xlu2 %9752, %v585_v47   ;;  %926 = vperm.xlu1 %9751, %v488_v48   ;;  %v513_v47 = vld [vmem:[%s9976_s16 + $0x188] sm:$0xff]  ;;  %v6084_v48 = vld [vmem:[%s14450_s6] sm:$0xff] }
  0xa0   : > { %1214 = vperm.xlu0 %9750, %v584_v49   ;;  %9663 = vmatpush.msra.mxu3 %v10053_v45  ;;  %v587_v45 = vld [vmem:[%s9976_s16 + $0x3d8] sm:$0xff] }
  0xa1   : > { %v10258_v57 = vpop.permute.xlu1 %863  ;;  %6485 = vmatpush.msrb.mxu2 %v6084_v48 }
  0xa2   : > { %v10239_v56 = vpop.permute.xlu0 %1151  ;;  %14590 = vst [vmem:[#allocation12_spill] sm:$0xff] %v10258_v57  ;;  %9664 = vmatpush.msra.mxu3 %v10068_v52  ;;  %vm1249_vm14 = vcmp.eq.s32.totalorder %v10258_v57, %v10178_v34  ;;  %vm1250_vm0 = vcmp.eq.s32.totalorder %v10258_v57, %v10198_v44  ;;  %vm1251_vm1 = vcmp.eq.s32.totalorder %v10258_v57, %v10193_v42  ;;  %v493_v52 = vld [vmem:[%s9976_s16 + $0xe8] sm:$0xff] }
  0xa3   : > { %14589 = vst [vmem:[#allocation11_spill] sm:$0xff] %v10239_v56  ;;  %vm1633_vm11 = vcmp.eq.s32.totalorder %v10239_v56, %v10178_v34 }
  0xa4   : > { %8724 = vmatmul.msk.f32.gmra.mxu0 %vm1241_vm7, %v14559_v36  ;;  %8821 = vmatmul.msk.f32.gmra.mxu3 %vm1629_vm6, %v14559_v36  ;;  %vm1257_vm6 = vcmp.eq.s32.totalorder %v10303_v1, %v10178_v34 }
  0xa5   : > { %8852 = vmatmul.msk.f32.gmra.mxu1 %vm1242_vm8, %v14559_v36  ;;  %8980 = vmatmul.msk.f32.gmra.mxu2 %vm1243_vm9, %v14559_v36  ;;  %vm1258_vm8 = vcmp.eq.s32.totalorder %v10303_v1, %v10198_v44  ;;  %vm1259_vm9 = vcmp.eq.s32.totalorder %v10303_v1, %v10193_v42 }
  0xa6   : > { %9665 = vmatpush.msra.mxu3 %v10075_v55  ;;  %v589_v55 = vld [vmem:[%s9976_s16 + $0x3e8] sm:$0xff] }
  0xa7   : > { %932 = vperm.xlu2 %9752, %v490_v53   ;;  %1220 = vperm.xlu1 %9751, %v586_v31   ;;  %v518_v31 = vld [vmem:[%s9976_s16 + $0x1b0] sm:$0xff] }
  0xa8   : > { %929 = vperm.xlu0 %9750, %v489_v33   ;;  %9666 = vmatpush.msra.mxu3 %v10084_v58  ;;  %v492_v58 = vld [vmem:[%s9976_s16 + $0xe0] sm:$0xff]  ;;  %v517_v33 = vld [vmem:[%s9976_s16 + $0x1a8] sm:$0xff] }
  0xa9   : > { %v10283_v61 = vpop.permute.xlu1 %1157 }
  0xaa   : > { %v10280_v60 = vpop.permute.xlu0 %866  ;;  %9667 = vmatpush.msra.mxu3 %v10098_v0  ;;  %14593 = vst [vmem:[#allocation15_spill] sm:$0xff] %v10283_v61  ;;  %vm1641_vm3 = vcmp.eq.s32.totalorder %v10283_v61, %v10178_v34  ;;  %v590_v0 = vld [vmem:[%s9976_s16 + $0x3f0] sm:$0xff] }
  0xab   : > { %14592 = vst [vmem:[#allocation14_spill] sm:$0xff] %v10280_v60  ;;  %vm1253_vm2 = vcmp.eq.s32.totalorder %v10280_v60, %v10178_v34  ;;  %vm1254_vm4 = vcmp.eq.s32.totalorder %v10280_v60, %v10198_v44  ;;  %vm1255_vm5 = vcmp.eq.s32.totalorder %v10280_v60, %v10193_v42 }
  0xac   : > { %8725 = vmatmul.msk.f32.gmra.mxu0 %vm1245_vm10, %v14559_v36  ;;  %8822 = vmatmul.msk.f32.gmra.mxu3 %vm1633_vm11, %v14559_v36  ;;  %vm1649_vm11 = vcmp.eq.s32.totalorder %v10328_v7, %v10178_v34 }
  0xad   : > { %8853 = vmatmul.msk.f32.gmra.mxu1 %vm1246_vm12, %v14559_v36  ;;  %8981 = vmatmul.msk.f32.gmra.mxu2 %vm1247_vm13, %v14559_v36 }
  0xae   : > { %9668 = vmatpush.msra.mxu3 %v10106_v3  ;;  %v497_v3 = vld [vmem:[%s9976_s16 + $0x108] sm:$0xff] }
  0xaf   : > { %1226 = vperm.xlu2 %9752, %v588_v40   ;;  %935 = vperm.xlu1 %9751, %v491_v43   ;;  %v516_v40 = vld [vmem:[%s9976_s16 + $0x1a0] sm:$0xff]  ;;  %v5297_v43 = vld [vmem:[%s14449_s5 + $0x8] sm:$0xff] }
  0xb0   : > { %1223 = vperm.xlu0 %9750, %v587_v45   ;;  %9669 = vmatpush.msra.mxu3 %v10115_v6 }
  0xb1   : > { %v10324_v6 = vpop.permute.xlu1 %872  ;;  %5697 = vmatpush.msrb.mxu1 %v5297_v43 }
  0xb2   : > { %9670 = vmatpush.msra.mxu3 %v10128_v12  ;;  %v10305_v2 = vpop.permute.xlu0 %1160  ;;  %14596 = vst [vmem:[#allocation18_spill] sm:$0xff] %v10324_v6  ;;  %vm1261_vm10 = vcmp.eq.s32.totalorder %v10324_v6, %v10178_v34  ;;  %vm1262_vm12 = vcmp.eq.s32.totalorder %v10324_v6, %v10198_v44  ;;  %vm1263_vm13 = vcmp.eq.s32.totalorder %v10324_v6, %v10193_v42 }
  0xb3   : > { %14595 = vst [vmem:[#allocation17_spill] sm:$0xff] %v10305_v2  ;;  %vm1645_vm7 = vcmp.eq.s32.totalorder %v10305_v2, %v10178_v34 }
  0xb4   : > { %8726 = vmatmul.msk.f32.gmra.mxu0 %vm1249_vm14, %v14559_v36  ;;  %8823 = vmatmul.msk.f32.gmra.mxu3 %vm1637_vm15, %v14559_v36 }
  0xb5   : > { %8854 = vmatmul.msk.f32.gmra.mxu1 %vm1250_vm0, %v14559_v36  ;;  %8982 = vmatmul.msk.f32.gmra.mxu2 %vm1251_vm1, %v14559_v36 }
  0xb6   : > { %9671 = vmatpush.msra.mxu3 %v10136_v14  ;;  %v502_v14 = vld [vmem:[%s9976_s16 + $0x130] sm:$0xff] }
  0xb7   : > { %941 = vperm.xlu2 %9752, %v493_v52   ;;  %1229 = vperm.xlu1 %9751, %v589_v55   ;;  %v521_v55 = vld [vmem:[%s9976_s16 + $0x1c8] sm:$0xff] }
  0xb8   : > { %938 = vperm.xlu0 %9750, %v492_v58   ;;  %9672 = vmatpush.msra.mxu3 %v10142_v16  ;;  %v10364_v16 = vpop.permute.xlu2 %878  ;;  %v520_v58 = vld [vmem:[%s9976_s16 + $0x1c0] sm:$0xff] }
  0xb9   : > { %v10347_v12 = vpop.permute.xlu1 %1166  ;;  %14600 = vst [vmem:[#allocation22_spill] sm:$0xff] %v10364_v16 }
  0xba   : > { %9673 = vmatpush.msra.mxu3 %v10148_v18  ;;  %v10345_v11 = vpop.permute.xlu0 %875  ;;  %14599 = vst [vmem:[#allocation21_spill] sm:$0xff] %v10347_v12  ;;  %vm1653_vm15 = vcmp.eq.s32.totalorder %v10347_v12, %v10178_v34  ;;  %v506_v18 = vld [vmem:[%s9976_s16 + $0x150] sm:$0xff] }
  0xbb   : > { %14598 = vst [vmem:[#allocation20_spill] sm:$0xff] %v10345_v11  ;;  %vm1265_vm14 = vcmp.eq.s32.totalorder %v10345_v11, %v10178_v34  ;;  %vm1266_vm0 = vcmp.eq.s32.totalorder %v10345_v11, %v10198_v44  ;;  %vm1267_vm1 = vcmp.eq.s32.totalorder %v10345_v11, %v10193_v42 }
  0xbc   : > { %8727 = vmatmul.msk.f32.gmra.mxu0 %vm1253_vm2, %v14559_v36  ;;  %8824 = vmatmul.msk.f32.gmra.mxu3 %vm1641_vm3, %v14559_v36  ;;  %vm1269_vm2 = vcmp.eq.s32.totalorder %v10364_v16, %v10178_v34 }
  0xbd   : > { %8855 = vmatmul.msk.f32.gmra.mxu1 %vm1254_vm4, %v14559_v36  ;;  %8983 = vmatmul.msk.f32.gmra.mxu2 %vm1255_vm5, %v14559_v36  ;;  %vm1270_vm4 = vcmp.eq.s32.totalorder %v10364_v16, %v10198_v44  ;;  %vm1271_vm5 = vcmp.eq.s32.totalorder %v10364_v16, %v10193_v42 }
  0xbe   : > { %9674 = vmatpush.msra.mxu3 %v10161_v24  ;;  %v508_v24 = vld [vmem:[%s9976_s16 + $0x160] sm:$0xff] }
  0xbf   : > { %1235 = vperm.xlu2 %9752, %v591_v62   ;;  %944 = vperm.xlu1 %9751, %v494_v63   ;;  %v519_v62 = vld [vmem:[%s9976_s16 + $0x1b8] sm:$0xff] }
  0xc0   : > { %1232 = vperm.xlu0 %9750, %v590_v0   ;;  %v10385_v22 = vpop.permute.xlu2 %1172 }
  0xc1   : > { %v10383_v21 = vpop.permute.xlu1 %881  ;;  %14603 = vst [vmem:[#allocation25_spill] sm:$0xff] %v10385_v22 }
  0xc2   : > { %v10366_v17 = vpop.permute.xlu0 %1169  ;;  %14602 = vst [vmem:[#allocation24_spill] sm:$0xff] %v10383_v21 }
  0xc3   : > { %14601 = vst [vmem:[#allocation23_spill] sm:$0xff] %v10366_v17  ;;  %vm1657_vm3 = vcmp.eq.s32.totalorder %v10366_v17, %v10178_v34 }
  0xc4   : > { %8728 = vmatmul.msk.f32.gmra.mxu0 %vm1257_vm6, %v14559_v36  ;;  %8825 = vmatmul.msk.f32.gmra.mxu3 %vm1645_vm7, %v14559_v36  ;;  %vm1273_vm6 = vcmp.eq.s32.totalorder %v10383_v21, %v10178_v34  ;;  %vm1661_vm7 = vcmp.eq.s32.totalorder %v10385_v22, %v10178_v34 }
  0xc5   : > { %8856 = vmatmul.msk.f32.gmra.mxu1 %vm1258_vm8, %v14559_v36  ;;  %8984 = vmatmul.msk.f32.gmra.mxu2 %vm1259_vm9, %v14559_v36  ;;  %vm1274_vm8 = vcmp.eq.s32.totalorder %v10383_v21, %v10198_v44  ;;  %vm1275_vm9 = vcmp.eq.s32.totalorder %v10383_v21, %v10193_v42 }
  0xc7   : > { %953 = vperm.xlu2 %9752, %v497_v3   ;;  %950 = vperm.xlu1 %9751, %v496_v4   ;;  %v524_v3 = vld [vmem:[%s9976_s16 + $0x1e0] sm:$0xff]  ;;  %v523_v4 = vld [vmem:[%s9976_s16 + $0x1d8] sm:$0xff] }
  0xc8   : > { %947 = vperm.xlu0 %9750, %v495_v5   ;;  %v10421_v32 = vpop.permute.xlu2 %887  ;;  %v522_v5 = vld [vmem:[%s9976_s16 + $0x1d0] sm:$0xff] }
  0xc9   : > { %v10404_v27 = vpop.permute.xlu1 %1175  ;;  %14606 = vst [vmem:[#allocation28_spill] sm:$0xff] %v10421_v32 }
  0xca   : > { %v10402_v26 = vpop.permute.xlu0 %884  ;;  %14605 = vst [vmem:[#allocation27_spill] sm:$0xff] %v10404_v27 }
  0xcb   : > { %14604 = vst [vmem:[#allocation26_spill] sm:$0xff] %v10402_v26 }
  0xcc   : > { %8729 = vmatmul.msk.f32.gmra.mxu0 %vm1261_vm10, %v14559_v36  ;;  %8826 = vmatmul.msk.f32.gmra.mxu3 %vm1649_vm11, %v14559_v36  ;;  %vm1277_vm10 = vcmp.eq.s32.totalorder %v10402_v26, %v10178_v34  ;;  %vm1665_vm11 = vcmp.eq.s32.totalorder %v10404_v27, %v10178_v34 }
  0xcd   : > { %8857 = vmatmul.msk.f32.gmra.mxu1 %vm1262_vm12, %v14559_v36  ;;  %8985 = vmatmul.msk.f32.gmra.mxu2 %vm1263_vm13, %v14559_v36  ;;  %vm1278_vm12 = vcmp.eq.s32.totalorder %v10402_v26, %v10198_v44  ;;  %vm1279_vm13 = vcmp.eq.s32.totalorder %v10402_v26, %v10193_v42 }
  0xcf   : > { %962 = vperm.xlu2 %9752, %v500_v8   ;;  %959 = vperm.xlu1 %9751, %v499_v9  }
  0xd0   : > { %956 = vperm.xlu0 %9750, %v498_v10   ;;  %v10445_v53 = vpop.permute.xlu2 %1181  ;;  %v527_v10 = vld [vmem:[%s9976_s16 + $0x1f8] sm:$0xff] }
  0xd1   : > { %v10443_v49 = vpop.permute.xlu1 %890  ;;  %14609 = vst [vmem:[#allocation31_spill] sm:$0xff] %v10445_v53 }
  0xd2   : > { %v10423_v37 = vpop.permute.xlu0 %1178  ;;  %14608 = vst [vmem:[#allocation30_spill] sm:$0xff] %v10443_v49 }
  0xd3   : > { %14607 = vst [vmem:[#allocation29_spill] sm:$0xff] %v10423_v37 }
  0xd4   : > { %8730 = vmatmul.msk.f32.gmra.mxu0 %vm1265_vm14, %v14559_v36  ;;  %8827 = vmatmul.msk.f32.gmra.mxu3 %vm1653_vm15, %v14559_v36  ;;  %vm1281_vm14 = vcmp.eq.s32.totalorder %v10421_v32, %v10178_v34  ;;  %vm1669_vm15 = vcmp.eq.s32.totalorder %v10423_v37, %v10178_v34 }
  0xd5   : > { %8858 = vmatmul.msk.f32.gmra.mxu1 %vm1266_vm0, %v14559_v36  ;;  %8986 = vmatmul.msk.f32.gmra.mxu2 %vm1267_vm1, %v14559_v36  ;;  %vm1282_vm0 = vcmp.eq.s32.totalorder %v10421_v32, %v10198_v44  ;;  %vm1283_vm1 = vcmp.eq.s32.totalorder %v10421_v32, %v10193_v42 }
  0xd7   : > { %971 = vperm.xlu2 %9752, %v503_v13   ;;  %968 = vperm.xlu1 %9751, %v502_v14   ;;  %v526_v13 = vld [vmem:[%s9976_s16 + $0x1f0] sm:$0xff]  ;;  %v525_v14 = vld [vmem:[%s9976_s16 + $0x1e8] sm:$0xff] }
  0xd8   : > { %965 = vperm.xlu0 %9750, %v501_v15   ;;  %v10484_v63 = vpop.permute.xlu2 %896 }
  0xd9   : > { %v10467_v52 = vpop.permute.xlu1 %1184  ;;  %14612 = vst [vmem:[#allocation34_spill] sm:$0xff] %v10484_v63 }
  0xda   : > { %v10465_v45 = vpop.permute.xlu0 %893  ;;  %14611 = vst [vmem:[#allocation33_spill] sm:$0xff] %v10467_v52 }
  0xdb   : > { %14610 = vst [vmem:[#allocation32_spill] sm:$0xff] %v10465_v45 }
  0xdc   : > { %8731 = vmatmul.msk.f32.gmra.mxu0 %vm1269_vm2, %v14559_v36  ;;  %8828 = vmatmul.msk.f32.gmra.mxu3 %vm1657_vm3, %v14559_v36  ;;  %vm1285_vm2 = vcmp.eq.s32.totalorder %v10443_v49, %v10178_v34  ;;  %vm1673_vm3 = vcmp.eq.s32.totalorder %v10445_v53, %v10178_v34 }
  0xdd   : > { %8859 = vmatmul.msk.f32.gmra.mxu1 %vm1270_vm4, %v14559_v36  ;;  %8987 = vmatmul.msk.f32.gmra.mxu2 %vm1271_vm5, %v14559_v36  ;;  %vm1286_vm4 = vcmp.eq.s32.totalorder %v10443_v49, %v10198_v44  ;;  %vm1287_vm5 = vcmp.eq.s32.totalorder %v10443_v49, %v10193_v42 }
  0xdf   : > { %980 = vperm.xlu2 %9752, %v506_v18   ;;  %977 = vperm.xlu1 %9751, %v505_v19  }
  0xe0   : > { %974 = vperm.xlu0 %9750, %v504_v20   ;;  %v10505_v9 = vpop.permute.xlu2 %1190 }
  0xe1   : > { %v10503_v8 = vpop.permute.xlu1 %899  ;;  %14615 = vst [vmem:[#allocation37_spill] sm:$0xff] %v10505_v9 }
  0xe2   : > { %v10486_v0 = vpop.permute.xlu0 %1187  ;;  %14614 = vst [vmem:[#allocation36_spill] sm:$0xff] %v10503_v8 }
  0xe3   : > { %14613 = vst [vmem:[#allocation35_spill] sm:$0xff] %v10486_v0 }
  0xe4   : > { %8732 = vmatmul.msk.f32.gmra.mxu0 %vm1273_vm6, %v14559_v36  ;;  %8829 = vmatmul.msk.f32.gmra.mxu3 %vm1661_vm7, %v14559_v36  ;;  %vm1289_vm6 = vcmp.eq.s32.totalorder %v10465_v45, %v10178_v34  ;;  %vm1677_vm7 = vcmp.eq.s32.totalorder %v10467_v52, %v10178_v34 }
  0xe5   : > { %8860 = vmatmul.msk.f32.gmra.mxu1 %vm1274_vm8, %v14559_v36  ;;  %8988 = vmatmul.msk.f32.gmra.mxu2 %vm1275_vm9, %v14559_v36  ;;  %vm1290_vm8 = vcmp.eq.s32.totalorder %v10465_v45, %v10198_v44  ;;  %vm1291_vm9 = vcmp.eq.s32.totalorder %v10465_v45, %v10193_v42 }
  0xe7   : > { %989 = vperm.xlu2 %9752, %v509_v23   ;;  %986 = vperm.xlu1 %9751, %v508_v24   ;;  %v530_v24 = vld [vmem:[%s9976_s16 + $0x210] sm:$0xff] }
  0xe8   : > { %983 = vperm.xlu0 %9750, %v507_v25   ;;  %v529_v25 = vld [vmem:[%s9976_s16 + $0x208] sm:$0xff] }
  0xe9   : > { %v10526_v19 = vpop.permute.xlu1 %1193 }
  0xea   : > { %v10522_v15 = vpop.permute.xlu0 %902  ;;  %14617 = vst [vmem:[#allocation39_spill] sm:$0xff] %v10526_v19 }
  0xeb   : > { %14616 = vst [vmem:[#allocation38_spill] sm:$0xff] %v10522_v15 }
  0xec   : > { %8733 = vmatmul.msk.f32.gmra.mxu0 %vm1277_vm10, %v14559_v36  ;;  %8830 = vmatmul.msk.f32.gmra.mxu3 %vm1665_vm11, %v14559_v36  ;;  %vm1293_vm10 = vcmp.eq.s32.totalorder %v10484_v63, %v10178_v34  ;;  %vm1681_vm11 = vcmp.eq.s32.totalorder %v10486_v0, %v10178_v34 }
  0xed   : > { %8861 = vmatmul.msk.f32.gmra.mxu1 %vm1278_vm12, %v14559_v36  ;;  %8989 = vmatmul.msk.f32.gmra.mxu2 %vm1279_vm13, %v14559_v36  ;;  %vm1294_vm12 = vcmp.eq.s32.totalorder %v10484_v63, %v10198_v44  ;;  %vm1295_vm13 = vcmp.eq.s32.totalorder %v10484_v63, %v10193_v42 }
  0xef   : > { %998 = vperm.xlu2 %9752, %v512_v28   ;;  %995 = vperm.xlu1 %9751, %v511_v29   ;;  %v528_v28 = vld [vmem:[%s9976_s16 + $0x200] sm:$0xff]  ;;  %v10547_v29 = vpop.permute.xlu2 %905 }
  0xf0   : > { %992 = vperm.xlu0 %9750, %v510_v30   ;;  %14620 = vst [vmem:[#allocation42_spill] sm:$0xff] %v10547_v29 }
  0xf1   : > { %v10574_v43 = vpop.permute.xlu1 %908 }
  0xf2   : > { %14625 = vst [vmem:[#allocation47_spill] sm:$0xff] %v10574_v43 }
  0xf4   : > { %8734 = vmatmul.msk.f32.gmra.mxu0 %vm1281_vm14, %v14559_v36  ;;  %8831 = vmatmul.msk.f32.gmra.mxu3 %vm1669_vm15, %v14559_v36  ;;  %vm1297_vm14 = vcmp.eq.s32.totalorder %v10503_v8, %v10178_v34  ;;  %vm1685_vm15 = vcmp.eq.s32.totalorder %v10505_v9, %v10178_v34 }
  0xf5   : > { %8862 = vmatmul.msk.f32.gmra.mxu1 %vm1282_vm0, %v14559_v36  ;;  %8990 = vmatmul.msk.f32.gmra.mxu2 %vm1283_vm1, %v14559_v36  ;;  %vm1298_vm0 = vcmp.eq.s32.totalorder %v10503_v8, %v10198_v44  ;;  %vm1299_vm1 = vcmp.eq.s32.totalorder %v10503_v8, %v10193_v42 }
  0xf7   : > { %1007 = vperm.xlu2 %9752, %v515_v38   ;;  %1004 = vperm.xlu1 %9751, %v514_v39   ;;  %v10551_v38 = vpop.permute.xlu0 %1196 }
  0xf8   : > { %1001 = vperm.xlu0 %9750, %v513_v47   ;;  %14621 = vst [vmem:[#allocation43_spill] sm:$0xff] %v10551_v38 }
  0xfc   : > { %8735 = vmatmul.msk.f32.gmra.mxu0 %vm1285_vm2, %v14559_v36  ;;  %8832 = vmatmul.msk.f32.gmra.mxu3 %vm1673_vm3, %v14559_v36  ;;  %vm1301_vm2 = vcmp.eq.s32.totalorder %v10522_v15, %v10178_v34  ;;  %vm1689_vm3 = vcmp.eq.s32.totalorder %v10526_v19, %v10178_v34 }
  0xfd   : > { %8863 = vmatmul.msk.f32.gmra.mxu1 %vm1286_vm4, %v14559_v36  ;;  %8991 = vmatmul.msk.f32.gmra.mxu2 %vm1287_vm5, %v14559_v36  ;;  %vm1302_vm4 = vcmp.eq.s32.totalorder %v10522_v15, %v10198_v44  ;;  %vm1303_vm5 = vcmp.eq.s32.totalorder %v10522_v15, %v10193_v42 }
  0xff   : > { %1016 = vperm.xlu2 %9752, %v518_v31   ;;  %1013 = vperm.xlu1 %9751, %v517_v33   ;;  %v533_v31 = vld [vmem:[%s9976_s16 + $0x228] sm:$0xff]  ;;  %v532_v33 = vld [vmem:[%s9976_s16 + $0x220] sm:$0xff] }
 0x100   : > { %1010 = vperm.xlu0 %9750, %v516_v40   ;;  %v531_v40 = vld [vmem:[%s9976_s16 + $0x218] sm:$0xff] }
 0x104   : > { %8736 = vmatmul.msk.f32.gmra.mxu0 %vm1289_vm6, %v14559_v36  ;;  %8833 = vmatmul.msk.f32.gmra.mxu3 %vm1677_vm7, %v14559_v36  ;;  %vm1305_vm6 = vcmp.eq.s32.totalorder %v10547_v29, %v10178_v34  ;;  %vm1693_vm7 = vcmp.eq.s32.totalorder %v10551_v38, %v10178_v34 }
 0x105   : > { %8864 = vmatmul.msk.f32.gmra.mxu1 %vm1290_vm8, %v14559_v36  ;;  %8992 = vmatmul.msk.f32.gmra.mxu2 %vm1291_vm9, %v14559_v36  ;;  %vm1306_vm8 = vcmp.eq.s32.totalorder %v10547_v29, %v10198_v44  ;;  %vm1307_vm9 = vcmp.eq.s32.totalorder %v10547_v29, %v10193_v42 }
 0x107   : > { %1025 = vperm.xlu2 %9752, %v521_v55   ;;  %1022 = vperm.xlu1 %9751, %v520_v58   ;;  %v10578_v58 = vpop.permute.xlu2 %1199 }
 0x108   : > { %1019 = vperm.xlu0 %9750, %v519_v62   ;;  %14626 = vst [vmem:[#allocation48_spill] sm:$0xff] %v10578_v58 }
 0x10c   : > { %8737 = vmatmul.msk.f32.gmra.mxu0 %vm1293_vm10, %v14559_v36  ;;  %8834 = vmatmul.msk.f32.gmra.mxu3 %vm1681_vm11, %v14559_v36  ;;  %vm1309_vm10 = vcmp.eq.s32.totalorder %v10574_v43, %v10178_v34  ;;  %vm1697_vm11 = vcmp.eq.s32.totalorder %v10578_v58, %v10178_v34 }
 0x10d   : > { %8865 = vmatmul.msk.f32.gmra.mxu1 %vm1294_vm12, %v14559_v36  ;;  %8993 = vmatmul.msk.f32.gmra.mxu2 %vm1295_vm13, %v14559_v36  ;;  %vm1310_vm12 = vcmp.eq.s32.totalorder %v10574_v43, %v10198_v44  ;;  %vm1311_vm13 = vcmp.eq.s32.totalorder %v10574_v43, %v10193_v42 }
 0x10f   : > { %1034 = vperm.xlu2 %9752, %v524_v3   ;;  %1031 = vperm.xlu1 %9751, %v523_v4  }
 0x110   : > { %1028 = vperm.xlu0 %9750, %v522_v5   ;;  %v536_v5 = vld [vmem:[%s9976_s16 + $0x240] sm:$0xff] }
 0x114   : > { %8738 = vmatmul.msk.f32.gmra.mxu0 %vm1297_vm14, %v14559_v36  ;;  %8835 = vmatmul.msk.f32.gmra.mxu3 %vm1685_vm15, %v14559_v36 }
 0x115   : > { %8866 = vmatmul.msk.f32.gmra.mxu1 %vm1298_vm0, %v14559_v36  ;;  %8994 = vmatmul.msk.f32.gmra.mxu2 %vm1299_vm1, %v14559_v36 }
 0x117   : > { %v10524_v18 = vpop.f32.mrf.mxu3  ;;  %1043 = vperm.xlu2 %9752, %v527_v10   ;;  %1040 = vperm.xlu1 %9751, %v526_v13   ;;  %v535_v10 = vld [vmem:[%s9976_s16 + $0x238] sm:$0xff]  ;;  %v534_v13 = vld [vmem:[%s9976_s16 + $0x230] sm:$0xff] }
 0x118   : > { %1037 = vperm.xlu0 %9750, %v525_v14   ;;  %v10601_v14 = vpop.permute.xlu0 %911 }
 0x119   : > { %v10528_v20 = vpop.f32.mrf.mxu0  ;;  %14630 = vst [vmem:[#allocation52_spill] sm:$0xff] %v10601_v14  ;;  %vm1313_vm14 = vcmp.eq.s32.totalorder %v10601_v14, %v10178_v34  ;;  %vm1314_vm0 = vcmp.eq.s32.totalorder %v10601_v14, %v10198_v44  ;;  %vm1315_vm1 = vcmp.eq.s32.totalorder %v10601_v14, %v10193_v42 }
 0x11a   : > { %14618 = vst [vmem:[#allocation40_spill] sm:$0xff] %v10528_v20  ;;  %v10530_v23 = vpop.f32.mrf.mxu1 }
 0x11b   : > { %14619 = vst [vmem:[#allocation41_spill] sm:$0xff] %v10530_v23 }
 0x11c   : > { %8739 = vmatmul.msk.f32.gmra.mxu0 %vm1301_vm2, %v14559_v36  ;;  %8836 = vmatmul.msk.f32.gmra.mxu3 %vm1689_vm3, %v14559_v36 }
 0x11d   : > { %8867 = vmatmul.msk.f32.gmra.mxu1 %vm1302_vm4, %v14559_v36  ;;  %8995 = vmatmul.msk.f32.gmra.mxu2 %vm1303_vm5, %v14559_v36 }
 0x11f   : > { %v10549_v30 = vpop.f32.mrf.mxu3  ;;  %1052 = vperm.xlu2 %9752, %v530_v24   ;;  %1049 = vperm.xlu1 %9751, %v529_v25   ;;  %v10605_v25 = vpop.permute.xlu1 %1202 }
 0x120   : > { %v10553_v39 = vpop.f32.mrf.mxu2  ;;  %1046 = vperm.xlu0 %9750, %v528_v28   ;;  %14631 = vst [vmem:[#allocation53_spill] sm:$0xff] %v10605_v25  ;;  %vm1701_vm15 = vcmp.eq.s32.totalorder %v10605_v25, %v10178_v34 }
 0x121   : > { %14622 = vst [vmem:[#allocation44_spill] sm:$0xff] %v10553_v39  ;;  %v10555_v47 = vpop.f32.mrf.mxu0 }
 0x122   : > { %14623 = vst [vmem:[#allocation45_spill] sm:$0xff] %v10555_v47  ;;  %v10557_v48 = vpop.f32.mrf.mxu1 }
 0x123   : > { %14624 = vst [vmem:[#allocation46_spill] sm:$0xff] %v10557_v48 }
 0x124   : > { %8740 = vmatmul.msk.f32.gmra.mxu0 %vm1305_vm6, %v14559_v36  ;;  %8837 = vmatmul.msk.f32.gmra.mxu3 %vm1693_vm7, %v14559_v36 }
 0x125   : > { %8868 = vmatmul.msk.f32.gmra.mxu1 %vm1306_vm8, %v14559_v36  ;;  %8996 = vmatmul.msk.f32.gmra.mxu2 %vm1307_vm9, %v14559_v36 }
 0x127   : > { %v10576_v55 = vpop.f32.mrf.mxu3  ;;  %1061 = vperm.xlu2 %9752, %v533_v31   ;;  %1058 = vperm.xlu1 %9751, %v532_v33  }
 0x128   : > { %v10580_v62 = vpop.f32.mrf.mxu2  ;;  %1055 = vperm.xlu0 %9750, %v531_v40   ;;  %v539_v40 = vld [vmem:[%s9976_s16 + $0x258] sm:$0xff] }
 0x129   : > { %14627 = vst [vmem:[#allocation49_spill] sm:$0xff] %v10580_v62  ;;  %v10582_v3 = vpop.f32.mrf.mxu0 }
 0x12a   : > { %14628 = vst [vmem:[#allocation50_spill] sm:$0xff] %v10582_v3  ;;  %v10584_v4 = vpop.f32.mrf.mxu1 }
 0x12b   : > { %14629 = vst [vmem:[#allocation51_spill] sm:$0xff] %v10584_v4 }
 0x12c   : > { %8741 = vmatmul.msk.f32.gmra.mxu0 %vm1309_vm10, %v14559_v36  ;;  %8838 = vmatmul.msk.f32.gmra.mxu3 %vm1697_vm11, %v14559_v36 }
 0x12d   : > { %8869 = vmatmul.msk.f32.gmra.mxu1 %vm1310_vm12, %v14559_v36  ;;  %8997 = vmatmul.msk.f32.gmra.mxu2 %vm1311_vm13, %v14559_v36 }
 0x12f   : > { %v10603_v24 = vpop.f32.mrf.mxu3  ;;  %1070 = vperm.xlu2 %9752, %v536_v5   ;;  %1067 = vperm.xlu1 %9751, %v535_v10   ;;  %v538_v5 = vld [vmem:[%s9976_s16 + $0x250] sm:$0xff]  ;;  %v537_v10 = vld [vmem:[%s9976_s16 + $0x248] sm:$0xff] }
 0x130   : > { %v10607_v28 = vpop.f32.mrf.mxu2  ;;  %1064 = vperm.xlu0 %9750, %v534_v13   ;;  %v10628_v13 = vpop.permute.xlu2 %914 }
 0x131   : > { %14632 = vst [vmem:[#allocation54_spill] sm:$0xff] %v10607_v28  ;;  %v10609_v31 = vpop.f32.mrf.mxu0  ;;  %vm1317_vm2 = vcmp.eq.s32.totalorder %v10628_v13, %v10178_v34  ;;  %vm1318_vm4 = vcmp.eq.s32.totalorder %v10628_v13, %v10198_v44  ;;  %vm1319_vm5 = vcmp.eq.s32.totalorder %v10628_v13, %v10193_v42 }
 0x132   : > { %14633 = vst [vmem:[#allocation55_spill] sm:$0xff] %v10609_v31  ;;  %v10611_v33 = vpop.f32.mrf.mxu1  ;;  %v10632_v31 = vpop.permute.xlu0 %1205 }
 0x133   : > { %14634 = vst [vmem:[#allocation56_spill] sm:$0xff] %v10611_v33  ;;  %vm1705_vm3 = vcmp.eq.s32.totalorder %v10632_v31, %v10178_v34 }
 0x134   : > { %8742 = vmatmul.msk.f32.gmra.mxu0 %vm1313_vm14, %v14559_v36  ;;  %8839 = vmatmul.msk.f32.gmra.mxu3 %vm1701_vm15, %v14559_v36  ;;  %14635 = vst [vmem:[#allocation57_spill] sm:$0xff] %v10628_v13 }
 0x135   : > { %8870 = vmatmul.msk.f32.gmra.mxu1 %vm1314_vm0, %v14559_v36  ;;  %8998 = vmatmul.msk.f32.gmra.mxu2 %vm1315_vm1, %v14559_v36  ;;  %14636 = vst [vmem:[#allocation58_spill] sm:$0xff] %v10632_v31 }
 0x137   : > { %v10630_v33 = vpop.f32.mrf.mxu3  ;;  %1079 = vperm.xlu2 %9752, %v539_v40   ;;  %1076 = vperm.xlu1 %9751, %v538_v5   ;;  %v542_v40 = vld [vmem:[%s9976_s16 + $0x270] sm:$0xff]  ;;  %v541_v5 = vld [vmem:[%s9976_s16 + $0x268] sm:$0xff] }
 0x138   : > { %v10634_v28 = vpop.f32.mrf.mxu2  ;;  %1073 = vperm.xlu0 %9750, %v537_v10   ;;  %v540_v10 = vld [vmem:[%s9976_s16 + $0x260] sm:$0xff] }
 0x139   : > { %14637 = vst [vmem:[#allocation59_spill] sm:$0xff] %v10634_v28  ;;  %v10636_v14 = vpop.f32.mrf.mxu0  ;;  %v10659_v28 = vpop.permute.xlu2 %1208 }
 0x13a   : > { %14638 = vst [vmem:[#allocation60_spill] sm:$0xff] %v10636_v14  ;;  %v10638_v4 = vpop.f32.mrf.mxu1  ;;  %vm1709_vm7 = vcmp.eq.s32.totalorder %v10659_v28, %v10178_v34 }
 0x13b   : > { %14639 = vst [vmem:[#allocation61_spill] sm:$0xff] %v10638_v4  ;;  %v10655_v4 = vpop.permute.xlu1 %917 }
 0x13c   : > { %8743 = vmatmul.msk.f32.gmra.mxu0 %vm1317_vm2, %v14559_v36  ;;  %8840 = vmatmul.msk.f32.gmra.mxu3 %vm1705_vm3, %v14559_v36  ;;  %14640 = vst [vmem:[#allocation62_spill] sm:$0xff] %v10655_v4  ;;  %vm1321_vm6 = vcmp.eq.s32.totalorder %v10655_v4, %v10178_v34  ;;  %vm1322_vm8 = vcmp.eq.s32.totalorder %v10655_v4, %v10198_v44 }
 0x13d   : > { %8871 = vmatmul.msk.f32.gmra.mxu1 %vm1318_vm4, %v14559_v36  ;;  %8999 = vmatmul.msk.f32.gmra.mxu2 %vm1319_vm5, %v14559_v36  ;;  %14641 = vst [vmem:[#allocation63_spill] sm:$0xff] %v10659_v28  ;;  %vm1323_vm9 = vcmp.eq.s32.totalorder %v10655_v4, %v10193_v42 }
 0x13f   : > { %v10657_v14 = vpop.f32.mrf.mxu3  ;;  %1088 = vperm.xlu2 %9752, %v542_v40   ;;  %1085 = vperm.xlu1 %9751, %v541_v5   ;;  %v545_v40 = vld [vmem:[%s9976_s16 + $0x288] sm:$0xff]  ;;  %v544_v5 = vld [vmem:[%s9976_s16 + $0x280] sm:$0xff] }
 0x140   : > { %v10661_v3 = vpop.f32.mrf.mxu2  ;;  %1082 = vperm.xlu0 %9750, %v540_v10   ;;  %v543_v10 = vld [vmem:[%s9976_s16 + $0x278] sm:$0xff] }
 0x141   : > { %14642 = vst [vmem:[#allocation64_spill] sm:$0xff] %v10661_v3  ;;  %v10663_v13 = vpop.f32.mrf.mxu0 }
 0x142   : > { %14643 = vst [vmem:[#allocation65_spill] sm:$0xff] %v10663_v13  ;;  %v10665_v43 = vpop.f32.mrf.mxu1 }
 0x143   : > { %14644 = vst [vmem:[#allocation66_spill] sm:$0xff] %v10665_v43  ;;  %v10682_v43 = vpop.permute.xlu0 %920  ;;  %v10686_v3 = vpop.permute.xlu1 %1211 }
 0x144   : > { %8744 = vmatmul.msk.f32.gmra.mxu0 %vm1321_vm6, %v14559_v36  ;;  %8841 = vmatmul.msk.f32.gmra.mxu3 %vm1709_vm7, %v14559_v36  ;;  %14645 = vst [vmem:[#allocation67_spill] sm:$0xff] %v10682_v43  ;;  %vm1325_vm10 = vcmp.eq.s32.totalorder %v10682_v43, %v10178_v34  ;;  %vm1713_vm11 = vcmp.eq.s32.totalorder %v10686_v3, %v10178_v34 }
 0x145   : > { %8872 = vmatmul.msk.f32.gmra.mxu1 %vm1322_vm8, %v14559_v36  ;;  %9000 = vmatmul.msk.f32.gmra.mxu2 %vm1323_vm9, %v14559_v36  ;;  %14646 = vst [vmem:[#allocation68_spill] sm:$0xff] %v10686_v3  ;;  %vm1326_vm12 = vcmp.eq.s32.totalorder %v10682_v43, %v10198_v44  ;;  %vm1327_vm13 = vcmp.eq.s32.totalorder %v10682_v43, %v10193_v42 }
 0x147   : > { %v10684_v13 = vpop.f32.mrf.mxu3  ;;  %1097 = vperm.xlu2 %9752, %v545_v40   ;;  %1094 = vperm.xlu1 %9751, %v544_v5   ;;  %v548_v40 = vld [vmem:[%s9976_s16 + $0x2a0] sm:$0xff]  ;;  %v547_v5 = vld [vmem:[%s9976_s16 + $0x298] sm:$0xff] }
 0x148   : > { %v10688_v62 = vpop.f32.mrf.mxu2  ;;  %1091 = vperm.xlu0 %9750, %v543_v10   ;;  %v546_v10 = vld [vmem:[%s9976_s16 + $0x290] sm:$0xff] }
 0x149   : > { %14647 = vst [vmem:[#allocation69_spill] sm:$0xff] %v10688_v62  ;;  %v10690_v4 = vpop.f32.mrf.mxu0 }
 0x14a   : > { %14648 = vst [vmem:[#allocation70_spill] sm:$0xff] %v10690_v4  ;;  %v10692_v48 = vpop.f32.mrf.mxu1 }
 0x14b   : > { %14649 = vst [vmem:[#allocation71_spill] sm:$0xff] %v10692_v48  ;;  %v10709_v48 = vpop.permute.xlu2 %923  ;;  %v10713_v62 = vpop.permute.xlu0 %1214 }
 0x14c   : > { %8745 = vmatmul.msk.f32.gmra.mxu0 %vm1325_vm10, %v14559_v36  ;;  %8842 = vmatmul.msk.f32.gmra.mxu3 %vm1713_vm11, %v14559_v36  ;;  %14650 = vst [vmem:[#allocation72_spill] sm:$0xff] %v10709_v48  ;;  %vm1329_vm14 = vcmp.eq.s32.totalorder %v10709_v48, %v10178_v34  ;;  %vm1717_vm15 = vcmp.eq.s32.totalorder %v10713_v62, %v10178_v34 }
 0x14d   : > { %8873 = vmatmul.msk.f32.gmra.mxu1 %vm1326_vm12, %v14559_v36  ;;  %9001 = vmatmul.msk.f32.gmra.mxu2 %vm1327_vm13, %v14559_v36  ;;  %14651 = vst [vmem:[#allocation73_spill] sm:$0xff] %v10713_v62  ;;  %vm1330_vm0 = vcmp.eq.s32.totalorder %v10709_v48, %v10198_v44  ;;  %vm1331_vm1 = vcmp.eq.s32.totalorder %v10709_v48, %v10193_v42 }
 0x14f   : > { %v10711_v4 = vpop.f32.mrf.mxu3  ;;  %1106 = vperm.xlu2 %9752, %v548_v40   ;;  %1103 = vperm.xlu1 %9751, %v547_v5   ;;  %v551_v40 = vld [vmem:[%s9976_s16 + $0x2b8] sm:$0xff]  ;;  %v550_v5 = vld [vmem:[%s9976_s16 + $0x2b0] sm:$0xff] }
 0x150   : > { %v10715_v47 = vpop.f32.mrf.mxu2  ;;  %1100 = vperm.xlu0 %9750, %v546_v10   ;;  %v549_v10 = vld [vmem:[%s9976_s16 + $0x2a8] sm:$0xff] }
 0x151   : > { %14652 = vst [vmem:[#allocation74_spill] sm:$0xff] %v10715_v47  ;;  %v10717_v43 = vpop.f32.mrf.mxu0 }
 0x152   : > { %14653 = vst [vmem:[#allocation75_spill] sm:$0xff] %v10717_v43  ;;  %v10719_v29 = vpop.f32.mrf.mxu1 }
 0x153   : > { %14654 = vst [vmem:[#allocation76_spill] sm:$0xff] %v10719_v29  ;;  %v10736_v29 = vpop.permute.xlu1 %926  ;;  %v10740_v47 = vpop.permute.xlu2 %1217 }
 0x154   : > { %8746 = vmatmul.msk.f32.gmra.mxu0 %vm1329_vm14, %v14559_v36  ;;  %8843 = vmatmul.msk.f32.gmra.mxu3 %vm1717_vm15, %v14559_v36  ;;  %14655 = vst [vmem:[#allocation77_spill] sm:$0xff] %v10736_v29  ;;  %vm1333_vm2 = vcmp.eq.s32.totalorder %v10736_v29, %v10178_v34  ;;  %vm1721_vm3 = vcmp.eq.s32.totalorder %v10740_v47, %v10178_v34 }
 0x155   : > { %8874 = vmatmul.msk.f32.gmra.mxu1 %vm1330_vm0, %v14559_v36  ;;  %9002 = vmatmul.msk.f32.gmra.mxu2 %vm1331_vm1, %v14559_v36  ;;  %14656 = vst [vmem:[#allocation78_spill] sm:$0xff] %v10740_v47  ;;  %vm1334_vm4 = vcmp.eq.s32.totalorder %v10736_v29, %v10198_v44  ;;  %vm1335_vm5 = vcmp.eq.s32.totalorder %v10736_v29, %v10193_v42 }
 0x157   : > { %v10738_v43 = vpop.f32.mrf.mxu3  ;;  %1115 = vperm.xlu2 %9752, %v551_v40   ;;  %1112 = vperm.xlu1 %9751, %v550_v5   ;;  %v554_v40 = vld [vmem:[%s9976_s16 + $0x2d0] sm:$0xff]  ;;  %v553_v5 = vld [vmem:[%s9976_s16 + $0x2c8] sm:$0xff] }
 0x158   : > { %v10742_v39 = vpop.f32.mrf.mxu2  ;;  %1109 = vperm.xlu0 %9750, %v549_v10   ;;  %v552_v10 = vld [vmem:[%s9976_s16 + $0x2c0] sm:$0xff] }
 0x159   : > { %14657 = vst [vmem:[#allocation79_spill] sm:$0xff] %v10742_v39  ;;  %v10744_v48 = vpop.f32.mrf.mxu0 }
 0x15a   : > { %14658 = vst [vmem:[#allocation80_spill] sm:$0xff] %v10744_v48  ;;  %v10746_v23 = vpop.f32.mrf.mxu1 }
 0x15b   : > { %14659 = vst [vmem:[#allocation81_spill] sm:$0xff] %v10746_v23  ;;  %v10763_v23 = vpop.permute.xlu0 %929  ;;  %v10767_v39 = vpop.permute.xlu1 %1220 }
 0x15c   : > { %8747 = vmatmul.msk.f32.gmra.mxu0 %vm1333_vm2, %v14559_v36  ;;  %8844 = vmatmul.msk.f32.gmra.mxu3 %vm1721_vm3, %v14559_v36  ;;  %14660 = vst [vmem:[#allocation82_spill] sm:$0xff] %v10763_v23  ;;  %vm1337_vm6 = vcmp.eq.s32.totalorder %v10763_v23, %v10178_v34  ;;  %vm1725_vm7 = vcmp.eq.s32.totalorder %v10767_v39, %v10178_v34 }
 0x15d   : > { %8875 = vmatmul.msk.f32.gmra.mxu1 %vm1334_vm4, %v14559_v36  ;;  %9003 = vmatmul.msk.f32.gmra.mxu2 %vm1335_vm5, %v14559_v36  ;;  %14661 = vst [vmem:[#allocation83_spill] sm:$0xff] %v10767_v39  ;;  %vm1338_vm8 = vcmp.eq.s32.totalorder %v10763_v23, %v10198_v44  ;;  %vm1339_vm9 = vcmp.eq.s32.totalorder %v10763_v23, %v10193_v42 }
 0x15f   : > { %v10765_v48 = vpop.f32.mrf.mxu3  ;;  %1124 = vperm.xlu2 %9752, %v554_v40   ;;  %1121 = vperm.xlu1 %9751, %v553_v5   ;;  %v557_v40 = vld [vmem:[%s9976_s16 + $0x2e8] sm:$0xff]  ;;  %v556_v5 = vld [vmem:[%s9976_s16 + $0x2e0] sm:$0xff] }
 0x160   : > { %v10769_v20 = vpop.f32.mrf.mxu2  ;;  %1118 = vperm.xlu0 %9750, %v552_v10   ;;  %v555_v10 = vld [vmem:[%s9976_s16 + $0x2d8] sm:$0xff] }
 0x161   : > { %14662 = vst [vmem:[#allocation84_spill] sm:$0xff] %v10769_v20  ;;  %v10771_v29 = vpop.f32.mrf.mxu0 }
 0x162   : > { %14663 = vst [vmem:[#allocation85_spill] sm:$0xff] %v10771_v29  ;;  %v10773_v15 = vpop.f32.mrf.mxu1 }
 0x163   : > { %14664 = vst [vmem:[#allocation86_spill] sm:$0xff] %v10773_v15  ;;  %v10790_v15 = vpop.permute.xlu2 %932  ;;  %v10794_v20 = vpop.permute.xlu0 %1223 }
 0x164   : > { %8748 = vmatmul.msk.f32.gmra.mxu0 %vm1337_vm6, %v14559_v36  ;;  %8845 = vmatmul.msk.f32.gmra.mxu3 %vm1725_vm7, %v14559_v36  ;;  %14665 = vst [vmem:[#allocation87_spill] sm:$0xff] %v10790_v15  ;;  %vm1341_vm10 = vcmp.eq.s32.totalorder %v10790_v15, %v10178_v34  ;;  %vm1729_vm11 = vcmp.eq.s32.totalorder %v10794_v20, %v10178_v34 }
 0x165   : > { %8876 = vmatmul.msk.f32.gmra.mxu1 %vm1338_vm8, %v14559_v36  ;;  %9004 = vmatmul.msk.f32.gmra.mxu2 %vm1339_vm9, %v14559_v36  ;;  %14666 = vst [vmem:[#allocation88_spill] sm:$0xff] %v10794_v20  ;;  %vm1342_vm12 = vcmp.eq.s32.totalorder %v10790_v15, %v10198_v44  ;;  %vm1343_vm13 = vcmp.eq.s32.totalorder %v10790_v15, %v10193_v42 }
 0x167   : > { %v10792_v29 = vpop.f32.mrf.mxu3  ;;  %1133 = vperm.xlu2 %9752, %v557_v40   ;;  %1130 = vperm.xlu1 %9751, %v556_v5   ;;  %v559_v40 = vld [vmem:[%s9976_s16 + $0x2f8] sm:$0xff]  ;;  %v558_v5 = vld [vmem:[%s9976_s16 + $0x2f0] sm:$0xff]  ;;  %s12988_s16 = scalar_lea.vmem [#allocation2], %s8199_s18  ;;  %s8047_s18 = scalar_lea.sflag [#allocation3], %s361_s9 }
 0x168   : > { %v10796_v8 = vpop.f32.mrf.mxu2  ;;  %1127 = vperm.xlu0 %9750, %v555_v10   ;;  %v10816_v10 = vpop.permute.xlu1 %935  ;;  %s8061_s13 = sshll.u32 %s12988_s16, 4  ;;  %s8062_s13 = int_to_ptr.vmem [resolvable:$true] %s8061_s13 }
 0x169   : > { %14667 = vst [vmem:[#allocation89_spill] sm:$0xff] %v10796_v8  ;;  %v10798_v23 = vpop.f32.mrf.mxu0  ;;  %vm1345_vm14 = vcmp.eq.s32.totalorder %v10816_v10, %v10178_v34  ;;  %vm1346_vm0 = vcmp.eq.s32.totalorder %v10816_v10, %v10198_v44  ;;  %vm1347_vm1 = vcmp.eq.s32.totalorder %v10816_v10, %v10193_v42 }
 0x16a   : > { %14668 = vst [vmem:[#allocation90_spill] sm:$0xff] %v10798_v23  ;;  %v10800_v63 = vpop.f32.mrf.mxu1 }
 0x16b   : > { %14669 = vst [vmem:[#allocation91_spill] sm:$0xff] %v10800_v63  ;;  %v10820_v23 = vpop.permute.xlu2 %1226 }
 0x16c   : > { %8749 = vmatmul.msk.f32.gmra.mxu0 %vm1341_vm10, %v14559_v36  ;;  %8846 = vmatmul.msk.f32.gmra.mxu3 %vm1729_vm11, %v14559_v36  ;;  %14670 = vst [vmem:[#allocation92_spill] sm:$0xff] %v10816_v10  ;;  %vm1733_vm15 = vcmp.eq.s32.totalorder %v10820_v23, %v10178_v34 }
 0x16d   : > { %8877 = vmatmul.msk.f32.gmra.mxu1 %vm1342_vm12, %v14559_v36  ;;  %9005 = vmatmul.msk.f32.gmra.mxu2 %vm1343_vm13, %v14559_v36  ;;  %14672 = vst [vmem:[#allocation94_spill] sm:$0xff] %v10820_v23 }
 0x16f   : > { %v10818_v63 = vpop.f32.mrf.mxu3  ;;  %1139 = vperm.xlu1 %9751, %v559_v40   ;;  %v10840_v40 = vpop.permute.xlu0 %938 }
 0x170   : > { %14671 = vst [vmem:[#allocation93_spill] sm:$0xff] %v10818_v63  ;;  %v10822_v8 = vpop.f32.mrf.mxu2  ;;  %1136 = vperm.xlu0 %9750, %v558_v5   ;;  %vm1349_vm2 = vcmp.eq.s32.totalorder %v10840_v40, %v10178_v34  ;;  %vm1350_vm4 = vcmp.eq.s32.totalorder %v10840_v40, %v10198_v44  ;;  %vm1351_vm5 = vcmp.eq.s32.totalorder %v10840_v40, %v10193_v42 }
 0x171   : > { %14673 = vst [vmem:[#allocation95_spill] sm:$0xff] %v10822_v8  ;;  %v10824_v45 = vpop.f32.mrf.mxu0 }
 0x172   : > { %14674 = vst [vmem:[#allocation96_spill] sm:$0xff] %v10824_v45  ;;  %v10826_v49 = vpop.f32.mrf.mxu1 }
 0x173   : > { %14675 = vst [vmem:[#allocation97_spill] sm:$0xff] %v10826_v49  ;;  %v10844_v49 = vpop.permute.xlu1 %1229 }
 0x174   : > { %8750 = vmatmul.msk.f32.gmra.mxu0 %vm1345_vm14, %v14559_v36  ;;  %8847 = vmatmul.msk.f32.gmra.mxu3 %vm1733_vm15, %v14559_v36  ;;  %14676 = vst [vmem:[#allocation98_spill] sm:$0xff] %v10840_v40  ;;  %vm1737_vm3 = vcmp.eq.s32.totalorder %v10844_v49, %v10178_v34  ;;  %vm1622_vm15 = vcmp.eq.s32.totalorder %v10180_v35, %v10198_v44 }
 0x175   : > { %8878 = vmatmul.msk.f32.gmra.mxu1 %vm1346_vm0, %v14559_v36  ;;  %9006 = vmatmul.msk.f32.gmra.mxu2 %vm1347_vm1, %v14559_v36  ;;  %14678 = vst [vmem:[#allocation100_spill] sm:$0xff] %v10844_v49 }
 0x177   : > { %v10842_v5 = vpop.f32.mrf.mxu3 }
 0x178   : > { %14677 = vst [vmem:[#allocation99_spill] sm:$0xff] %v10842_v5  ;;  %v10846_v45 = vpop.f32.mrf.mxu2 }
 0x179   : > { %14679 = vst [vmem:[#allocation101_spill] sm:$0xff] %v10846_v45  ;;  %v10848_v8 = vpop.f32.mrf.mxu0  ;;  %v10862_v45 = vpop.permute.xlu2 %941 }
 0x17a   : > { %14680 = vst [vmem:[#allocation102_spill] sm:$0xff] %v10848_v8  ;;  %v10850_v15 = vpop.f32.mrf.mxu1  ;;  %v10868_v8 = vpop.permute.xlu0 %1232  ;;  %vm1353_vm6 = vcmp.eq.s32.totalorder %v10862_v45, %v10178_v34  ;;  %vm1354_vm8 = vcmp.eq.s32.totalorder %v10862_v45, %v10198_v44  ;;  %vm1355_vm9 = vcmp.eq.s32.totalorder %v10862_v45, %v10193_v42 }
 0x17b   : > { %14681 = vst [vmem:[#allocation103_spill] sm:$0xff] %v10850_v15  ;;  %vm1741_vm7 = vcmp.eq.s32.totalorder %v10868_v8, %v10178_v34 }
 0x17c   : > { %8751 = vmatmul.msk.f32.gmra.mxu0 %vm1349_vm2, %v14559_v36  ;;  %8848 = vmatmul.msk.f32.gmra.mxu3 %vm1737_vm3, %v14559_v36  ;;  %14682 = vst [vmem:[#allocation104_spill] sm:$0xff] %v10862_v45  ;;  %vm1626_vm3 = vcmp.eq.s32.totalorder %v10190_v41, %v10198_v44 }
 0x17d   : > { %8879 = vmatmul.msk.f32.gmra.mxu1 %vm1350_vm4, %v14559_v36  ;;  %9007 = vmatmul.msk.f32.gmra.mxu2 %vm1351_vm5, %v14559_v36  ;;  %14684 = vst [vmem:[#allocation106_spill] sm:$0xff] %v10868_v8 }
 0x17f   : > { %v10866_v15 = vpop.f32.mrf.mxu3 }
 0x180   : > { %14683 = vst [vmem:[#allocation105_spill] sm:$0xff] %v10866_v15  ;;  %v10870_v10 = vpop.f32.mrf.mxu2 }
 0x181   : > { %14685 = vst [vmem:[#allocation107_spill] sm:$0xff] %v10870_v10  ;;  %v10872_v32 = vpop.f32.mrf.mxu0  ;;  %v10892_v10 = vpop.permute.xlu1 %944 }
 0x182   : > { %14686 = vst [vmem:[#allocation108_spill] sm:$0xff] %v10872_v32  ;;  %v10874_v26 = vpop.f32.mrf.mxu1  ;;  %vm1357_vm10 = vcmp.eq.s32.totalorder %v10892_v10, %v10178_v34  ;;  %vm1358_vm12 = vcmp.eq.s32.totalorder %v10892_v10, %v10198_v44  ;;  %vm1359_vm13 = vcmp.eq.s32.totalorder %v10892_v10, %v10193_v42 }
 0x183   : > { %14687 = vst [vmem:[#allocation109_spill] sm:$0xff] %v10874_v26  ;;  %v10888_v26 = vpop.permute.xlu2 %1235 }
 0x184   : > { %8752 = vmatmul.msk.f32.gmra.mxu0 %vm1353_vm6, %v14559_v36  ;;  %8849 = vmatmul.msk.f32.gmra.mxu3 %vm1741_vm7, %v14559_v36  ;;  %14688 = vst [vmem:[#allocation110_spill] sm:$0xff] %v10888_v26  ;;  %vm1745_vm11 = vcmp.eq.s32.totalorder %v10888_v26, %v10178_v34  ;;  %vm1630_vm7 = vcmp.eq.s32.totalorder %v10215_v50, %v10198_v44 }
 0x185   : > { %8880 = vmatmul.msk.f32.gmra.mxu1 %vm1354_vm8, %v14559_v36  ;;  %9008 = vmatmul.msk.f32.gmra.mxu2 %vm1355_vm9, %v14559_v36  ;;  %14690 = vst [vmem:[#allocation112_spill] sm:$0xff] %v10892_v10 }
 0x187   : > { %v10890_v32 = vpop.f32.mrf.mxu3 }
 0x188   : > { %14689 = vst [vmem:[#allocation111_spill] sm:$0xff] %v10890_v32  ;;  %v10894_v40 = vpop.f32.mrf.mxu2 }
 0x189   : > { %14691 = vst [vmem:[#allocation113_spill] sm:$0xff] %v10894_v40  ;;  %v10896_v21 = vpop.f32.mrf.mxu0 }
 0x18a   : > { %14692 = vst [vmem:[#allocation114_spill] sm:$0xff] %v10896_v21  ;;  %v10898_v16 = vpop.f32.mrf.mxu1  ;;  %v10914_v21 = vpop.permute.xlu0 %947 }
 0x18b   : > { %14693 = vst [vmem:[#allocation115_spill] sm:$0xff] %v10898_v16  ;;  %vm1361_vm14 = vcmp.eq.s32.totalorder %v10914_v21, %v10178_v34  ;;  %vm1362_vm0 = vcmp.eq.s32.totalorder %v10914_v21, %v10198_v44  ;;  %vm1363_vm1 = vcmp.eq.s32.totalorder %v10914_v21, %v10193_v42 }
 0x18c   : > { %8753 = vmatmul.msk.f32.gmra.mxu0 %vm1357_vm10, %v14559_v36  ;;  %8850 = vmatmul.msk.f32.gmra.mxu3 %vm1745_vm11, %v14559_v36  ;;  %14695 = vst [vmem:[#allocation117_spill] sm:$0xff] %v10914_v21  ;;  %vm1634_vm11 = vcmp.eq.s32.totalorder %v10239_v56, %v10198_v44 }
 0x18d   : > { %8881 = vmatmul.msk.f32.gmra.mxu1 %vm1358_vm12, %v14559_v36  ;;  %9009 = vmatmul.msk.f32.gmra.mxu2 %vm1359_vm13, %v14559_v36 }
 0x18f   : > { %v10912_v16 = vpop.f32.mrf.mxu3 }
 0x190   : > { %14694 = vst [vmem:[#allocation116_spill] sm:$0xff] %v10912_v16  ;;  %v10916_v40 = vpop.f32.mrf.mxu2 }
 0x191   : > { %14696 = vst [vmem:[#allocation118_spill] sm:$0xff] %v10916_v40  ;;  %v10918_v45 = vpop.f32.mrf.mxu0 }
 0x192   : > { %14697 = vst [vmem:[#allocation119_spill] sm:$0xff] %v10918_v45  ;;  %v10920_v11 = vpop.f32.mrf.mxu1  ;;  %v10936_v45 = vpop.permute.xlu1 %950 }
 0x193   : > { %14698 = vst [vmem:[#allocation120_spill] sm:$0xff] %v10920_v11  ;;  %vm1365_vm2 = vcmp.eq.s32.totalorder %v10936_v45, %v10178_v34  ;;  %vm1366_vm4 = vcmp.eq.s32.totalorder %v10936_v45, %v10198_v44  ;;  %vm1367_vm5 = vcmp.eq.s32.totalorder %v10936_v45, %v10193_v42 }
 0x194   : > { %8754 = vmatmul.msk.f32.gmra.mxu0 %vm1361_vm14, %v14559_v36  ;;  %8947 = vmatmul.msk.f32.vlgmr.msrb.gmra.mxu3 %vm1622_vm15, %v14559_v36  ;;  %14700 = vst [vmem:[#allocation122_spill] sm:$0xff] %v10936_v45  ;;  %vm1638_vm15 = vcmp.eq.s32.totalorder %v10262_v59, %v10198_v44 }
 0x195   : > { %8882 = vmatmul.msk.f32.gmra.mxu1 %vm1362_vm0, %v14559_v36  ;;  %9010 = vmatmul.msk.f32.gmra.mxu2 %vm1363_vm1, %v14559_v36 }
 0x197   : > { %v10934_v11 = vpop.f32.mrf.mxu3 }
 0x198   : > { %14699 = vst [vmem:[#allocation121_spill] sm:$0xff] %v10934_v11  ;;  %v10938_v40 = vpop.f32.mrf.mxu2 }
 0x199   : > { %14701 = vst [vmem:[#allocation123_spill] sm:$0xff] %v10938_v40  ;;  %v10940_v10 = vpop.f32.mrf.mxu0 }
 0x19a   : > { %14702 = vst [vmem:[#allocation124_spill] sm:$0xff] %v10940_v10  ;;  %v10942_v6 = vpop.f32.mrf.mxu1  ;;  %v10958_v10 = vpop.permute.xlu2 %953 }
 0x19b   : > { %14703 = vst [vmem:[#allocation125_spill] sm:$0xff] %v10942_v6  ;;  %vm1369_vm6 = vcmp.eq.s32.totalorder %v10958_v10, %v10178_v34  ;;  %vm1370_vm8 = vcmp.eq.s32.totalorder %v10958_v10, %v10198_v44  ;;  %vm1371_vm9 = vcmp.eq.s32.totalorder %v10958_v10, %v10193_v42 }
 0x19c   : > { %8755 = vmatmul.msk.f32.gmra.mxu0 %vm1365_vm2, %v14559_v36  ;;  %8948 = vmatmul.msk.f32.gmra.mxu3 %vm1626_vm3, %v14559_v36  ;;  %14705 = vst [vmem:[#allocation127_spill] sm:$0xff] %v10958_v10  ;;  %vm1642_vm3 = vcmp.eq.s32.totalorder %v10283_v61, %v10198_v44 }
 0x19d   : > { %8883 = vmatmul.msk.f32.gmra.mxu1 %vm1366_vm4, %v14559_v36  ;;  %9011 = vmatmul.msk.f32.gmra.mxu2 %vm1367_vm5, %v14559_v36 }
 0x19f   : > { %v10956_v6 = vpop.f32.mrf.mxu3 }
 0x1a0   : > { %14704 = vst [vmem:[#allocation126_spill] sm:$0xff] %v10956_v6  ;;  %v10960_v40 = vpop.f32.mrf.mxu2 }
 0x1a1   : > { %14706 = vst [vmem:[#allocation128_spill] sm:$0xff] %v10960_v40  ;;  %v10962_v21 = vpop.f32.mrf.mxu0 }
 0x1a2   : > { %14707 = vst [vmem:[#allocation129_spill] sm:$0xff] %v10962_v21  ;;  %v10964_v1 = vpop.f32.mrf.mxu1  ;;  %v10980_v21 = vpop.permute.xlu0 %956 }
 0x1a3   : > { %14708 = vst [vmem:[#allocation130_spill] sm:$0xff] %v10964_v1  ;;  %vm1373_vm10 = vcmp.eq.s32.totalorder %v10980_v21, %v10178_v34  ;;  %vm1374_vm12 = vcmp.eq.s32.totalorder %v10980_v21, %v10198_v44  ;;  %vm1375_vm13 = vcmp.eq.s32.totalorder %v10980_v21, %v10193_v42 }
 0x1a4   : > { %8756 = vmatmul.msk.f32.gmra.mxu0 %vm1369_vm6, %v14559_v36  ;;  %8949 = vmatmul.msk.f32.gmra.mxu3 %vm1630_vm7, %v14559_v36  ;;  %14710 = vst [vmem:[#allocation132_spill] sm:$0xff] %v10980_v21  ;;  %vm1646_vm7 = vcmp.eq.s32.totalorder %v10305_v2, %v10198_v44 }
 0x1a5   : > { %8884 = vmatmul.msk.f32.gmra.mxu1 %vm1370_vm8, %v14559_v36  ;;  %9012 = vmatmul.msk.f32.gmra.mxu2 %vm1371_vm9, %v14559_v36 }
 0x1a7   : > { %v10978_v1 = vpop.f32.mrf.mxu3 }
 0x1a8   : > { %14709 = vst [vmem:[#allocation131_spill] sm:$0xff] %v10978_v1  ;;  %v10982_v40 = vpop.f32.mrf.mxu2 }
 0x1a9   : > { %14711 = vst [vmem:[#allocation133_spill] sm:$0xff] %v10982_v40  ;;  %v10984_v45 = vpop.f32.mrf.mxu0 }
 0x1aa   : > { %14712 = vst [vmem:[#allocation134_spill] sm:$0xff] %v10984_v45  ;;  %v10986_v60 = vpop.f32.mrf.mxu1  ;;  %v11002_v45 = vpop.permute.xlu1 %959 }
 0x1ab   : > { %14713 = vst [vmem:[#allocation135_spill] sm:$0xff] %v10986_v60  ;;  %vm1377_vm14 = vcmp.eq.s32.totalorder %v11002_v45, %v10178_v34  ;;  %vm1378_vm0 = vcmp.eq.s32.totalorder %v11002_v45, %v10198_v44  ;;  %vm1379_vm1 = vcmp.eq.s32.totalorder %v11002_v45, %v10193_v42 }
 0x1ac   : > { %8757 = vmatmul.msk.f32.gmra.mxu0 %vm1373_vm10, %v14559_v36  ;;  %8950 = vmatmul.msk.f32.gmra.mxu3 %vm1634_vm11, %v14559_v36  ;;  %14715 = vst [vmem:[#allocation137_spill] sm:$0xff] %v11002_v45  ;;  %vm1650_vm11 = vcmp.eq.s32.totalorder %v10328_v7, %v10198_v44 }
 0x1ad   : > { %8885 = vmatmul.msk.f32.gmra.mxu1 %vm1374_vm12, %v14559_v36  ;;  %9013 = vmatmul.msk.f32.gmra.mxu2 %vm1375_vm13, %v14559_v36 }
 0x1af   : > { %v11000_v60 = vpop.f32.mrf.mxu3 }
 0x1b0   : > { %14714 = vst [vmem:[#allocation136_spill] sm:$0xff] %v11000_v60  ;;  %v11004_v40 = vpop.f32.mrf.mxu2 }
 0x1b1   : > { %14716 = vst [vmem:[#allocation138_spill] sm:$0xff] %v11004_v40  ;;  %v11006_v10 = vpop.f32.mrf.mxu0 }
 0x1b2   : > { %14717 = vst [vmem:[#allocation139_spill] sm:$0xff] %v11006_v10  ;;  %v11008_v57 = vpop.f32.mrf.mxu1  ;;  %v11024_v10 = vpop.permute.xlu2 %962 }
 0x1b3   : > { %14718 = vst [vmem:[#allocation140_spill] sm:$0xff] %v11008_v57  ;;  %vm1381_vm2 = vcmp.eq.s32.totalorder %v11024_v10, %v10178_v34  ;;  %vm1382_vm4 = vcmp.eq.s32.totalorder %v11024_v10, %v10198_v44  ;;  %vm1383_vm5 = vcmp.eq.s32.totalorder %v11024_v10, %v10193_v42 }
 0x1b4   : > { %8758 = vmatmul.msk.f32.gmra.mxu0 %vm1377_vm14, %v14559_v36  ;;  %8951 = vmatmul.msk.f32.gmra.mxu3 %vm1638_vm15, %v14559_v36  ;;  %14720 = vst [vmem:[#allocation142_spill] sm:$0xff] %v11024_v10  ;;  %vm1654_vm15 = vcmp.eq.s32.totalorder %v10347_v12, %v10198_v44 }
 0x1b5   : > { %8886 = vmatmul.msk.f32.gmra.mxu1 %vm1378_vm0, %v14559_v36  ;;  %9014 = vmatmul.msk.f32.gmra.mxu2 %vm1379_vm1, %v14559_v36 }
 0x1b7   : > { %v11022_v57 = vpop.f32.mrf.mxu3 }
 0x1b8   : > { %14719 = vst [vmem:[#allocation141_spill] sm:$0xff] %v11022_v57  ;;  %v11026_v40 = vpop.f32.mrf.mxu2 }
 0x1b9   : > { %14721 = vst [vmem:[#allocation143_spill] sm:$0xff] %v11026_v40  ;;  %v11028_v21 = vpop.f32.mrf.mxu0 }
 0x1ba   : > { %14722 = vst [vmem:[#allocation144_spill] sm:$0xff] %v11028_v21  ;;  %v11030_v60 = vpop.f32.mrf.mxu1  ;;  %v11046_v21 = vpop.permute.xlu0 %965 }
 0x1bb   : > { %14723 = vst [vmem:[#allocation145_spill] sm:$0xff] %v11030_v60  ;;  %vm1385_vm6 = vcmp.eq.s32.totalorder %v11046_v21, %v10178_v34  ;;  %vm1386_vm8 = vcmp.eq.s32.totalorder %v11046_v21, %v10198_v44  ;;  %vm1387_vm9 = vcmp.eq.s32.totalorder %v11046_v21, %v10193_v42 }
 0x1bc   : > { %8759 = vmatmul.msk.f32.gmra.mxu0 %vm1381_vm2, %v14559_v36  ;;  %8952 = vmatmul.msk.f32.gmra.mxu3 %vm1642_vm3, %v14559_v36  ;;  %14725 = vst [vmem:[#allocation147_spill] sm:$0xff] %v11046_v21  ;;  %vm1658_vm3 = vcmp.eq.s32.totalorder %v10366_v17, %v10198_v44 }
 0x1bd   : > { %8887 = vmatmul.msk.f32.gmra.mxu1 %vm1382_vm4, %v14559_v36  ;;  %9015 = vmatmul.msk.f32.gmra.mxu2 %vm1383_vm5, %v14559_v36 }
 0x1bf   : > { %v11044_v60 = vpop.f32.mrf.mxu3 }
 0x1c0   : > { %14724 = vst [vmem:[#allocation146_spill] sm:$0xff] %v11044_v60  ;;  %v11048_v40 = vpop.f32.mrf.mxu2 }
 0x1c1   : > { %14726 = vst [vmem:[#allocation148_spill] sm:$0xff] %v11048_v40  ;;  %v11050_v45 = vpop.f32.mrf.mxu0 }
 0x1c2   : > { %14727 = vst [vmem:[#allocation149_spill] sm:$0xff] %v11050_v45  ;;  %v11052_v57 = vpop.f32.mrf.mxu1  ;;  %v11068_v45 = vpop.permute.xlu1 %968 }
 0x1c3   : > { %14728 = vst [vmem:[#allocation150_spill] sm:$0xff] %v11052_v57  ;;  %vm1389_vm10 = vcmp.eq.s32.totalorder %v11068_v45, %v10178_v34  ;;  %vm1390_vm12 = vcmp.eq.s32.totalorder %v11068_v45, %v10198_v44  ;;  %vm1391_vm13 = vcmp.eq.s32.totalorder %v11068_v45, %v10193_v42 }
 0x1c4   : > { %8760 = vmatmul.msk.f32.gmra.mxu0 %vm1385_vm6, %v14559_v36  ;;  %8953 = vmatmul.msk.f32.gmra.mxu3 %vm1646_vm7, %v14559_v36  ;;  %14730 = vst [vmem:[#allocation152_spill] sm:$0xff] %v11068_v45  ;;  %vm1662_vm7 = vcmp.eq.s32.totalorder %v10385_v22, %v10198_v44 }
 0x1c5   : > { %8888 = vmatmul.msk.f32.gmra.mxu1 %vm1386_vm8, %v14559_v36  ;;  %9016 = vmatmul.msk.f32.gmra.mxu2 %vm1387_vm9, %v14559_v36 }
 0x1c7   : > { %v11066_v57 = vpop.f32.mrf.mxu3 }
 0x1c8   : > { %14729 = vst [vmem:[#allocation151_spill] sm:$0xff] %v11066_v57  ;;  %v11070_v40 = vpop.f32.mrf.mxu2 }
 0x1c9   : > { %14731 = vst [vmem:[#allocation153_spill] sm:$0xff] %v11070_v40  ;;  %v11072_v10 = vpop.f32.mrf.mxu0 }
 0x1ca   : > { %14732 = vst [vmem:[#allocation154_spill] sm:$0xff] %v11072_v10  ;;  %v11074_v60 = vpop.f32.mrf.mxu1  ;;  %v11090_v10 = vpop.permute.xlu2 %971 }
 0x1cb   : > { %14733 = vst [vmem:[#allocation155_spill] sm:$0xff] %v11074_v60  ;;  %vm1393_vm14 = vcmp.eq.s32.totalorder %v11090_v10, %v10178_v34  ;;  %vm1394_vm0 = vcmp.eq.s32.totalorder %v11090_v10, %v10198_v44  ;;  %vm1395_vm1 = vcmp.eq.s32.totalorder %v11090_v10, %v10193_v42 }
 0x1cc   : > { %8761 = vmatmul.msk.f32.gmra.mxu0 %vm1389_vm10, %v14559_v36  ;;  %8954 = vmatmul.msk.f32.gmra.mxu3 %vm1650_vm11, %v14559_v36  ;;  %14735 = vst [vmem:[#allocation157_spill] sm:$0xff] %v11090_v10  ;;  %vm1666_vm11 = vcmp.eq.s32.totalorder %v10404_v27, %v10198_v44 }
 0x1cd   : > { %8889 = vmatmul.msk.f32.gmra.mxu1 %vm1390_vm12, %v14559_v36  ;;  %9017 = vmatmul.msk.f32.gmra.mxu2 %vm1391_vm13, %v14559_v36 }
 0x1cf   : > { %v11088_v60 = vpop.f32.mrf.mxu3 }
 0x1d0   : > { %14734 = vst [vmem:[#allocation156_spill] sm:$0xff] %v11088_v60  ;;  %v11092_v40 = vpop.f32.mrf.mxu2 }
 0x1d1   : > { %14736 = vst [vmem:[#allocation158_spill] sm:$0xff] %v11092_v40  ;;  %v11094_v21 = vpop.f32.mrf.mxu0 }
 0x1d2   : > { %14737 = vst [vmem:[#allocation159_spill] sm:$0xff] %v11094_v21  ;;  %v11096_v57 = vpop.f32.mrf.mxu1  ;;  %v11112_v21 = vpop.permute.xlu0 %974 }
 0x1d3   : > { %14738 = vst [vmem:[#allocation160_spill] sm:$0xff] %v11096_v57  ;;  %vm1397_vm2 = vcmp.eq.s32.totalorder %v11112_v21, %v10178_v34  ;;  %vm1398_vm4 = vcmp.eq.s32.totalorder %v11112_v21, %v10198_v44  ;;  %vm1399_vm5 = vcmp.eq.s32.totalorder %v11112_v21, %v10193_v42 }
 0x1d4   : > { %8762 = vmatmul.msk.f32.gmra.mxu0 %vm1393_vm14, %v14559_v36  ;;  %8955 = vmatmul.msk.f32.gmra.mxu3 %vm1654_vm15, %v14559_v36  ;;  %14740 = vst [vmem:[#allocation162_spill] sm:$0xff] %v11112_v21  ;;  %vm1670_vm15 = vcmp.eq.s32.totalorder %v10423_v37, %v10198_v44 }
 0x1d5   : > { %8890 = vmatmul.msk.f32.gmra.mxu1 %vm1394_vm0, %v14559_v36  ;;  %9018 = vmatmul.msk.f32.gmra.mxu2 %vm1395_vm1, %v14559_v36 }
 0x1d7   : > { %v11110_v57 = vpop.f32.mrf.mxu3 }
 0x1d8   : > { %14739 = vst [vmem:[#allocation161_spill] sm:$0xff] %v11110_v57  ;;  %v11114_v40 = vpop.f32.mrf.mxu2 }
 0x1d9   : > { %14741 = vst [vmem:[#allocation163_spill] sm:$0xff] %v11114_v40  ;;  %v11116_v45 = vpop.f32.mrf.mxu0 }
 0x1da   : > { %14742 = vst [vmem:[#allocation164_spill] sm:$0xff] %v11116_v45  ;;  %v11118_v60 = vpop.f32.mrf.mxu1  ;;  %v11134_v45 = vpop.permute.xlu1 %977 }
 0x1db   : > { %14743 = vst [vmem:[#allocation165_spill] sm:$0xff] %v11118_v60  ;;  %vm1401_vm6 = vcmp.eq.s32.totalorder %v11134_v45, %v10178_v34  ;;  %vm1402_vm8 = vcmp.eq.s32.totalorder %v11134_v45, %v10198_v44  ;;  %vm1403_vm9 = vcmp.eq.s32.totalorder %v11134_v45, %v10193_v42 }
 0x1dc   : > { %8763 = vmatmul.msk.f32.gmra.mxu0 %vm1397_vm2, %v14559_v36  ;;  %8956 = vmatmul.msk.f32.gmra.mxu3 %vm1658_vm3, %v14559_v36  ;;  %14745 = vst [vmem:[#allocation167_spill] sm:$0xff] %v11134_v45  ;;  %vm1674_vm3 = vcmp.eq.s32.totalorder %v10445_v53, %v10198_v44 }
 0x1dd   : > { %8891 = vmatmul.msk.f32.gmra.mxu1 %vm1398_vm4, %v14559_v36  ;;  %9019 = vmatmul.msk.f32.gmra.mxu2 %vm1399_vm5, %v14559_v36 }
 0x1df   : > { %v11132_v60 = vpop.f32.mrf.mxu3 }
 0x1e0   : > { %14744 = vst [vmem:[#allocation166_spill] sm:$0xff] %v11132_v60  ;;  %v11136_v40 = vpop.f32.mrf.mxu2 }
 0x1e1   : > { %14746 = vst [vmem:[#allocation168_spill] sm:$0xff] %v11136_v40  ;;  %v11138_v10 = vpop.f32.mrf.mxu0 }
 0x1e2   : > { %14747 = vst [vmem:[#allocation169_spill] sm:$0xff] %v11138_v10  ;;  %v11140_v57 = vpop.f32.mrf.mxu1  ;;  %v11156_v10 = vpop.permute.xlu2 %980 }
 0x1e3   : > { %14748 = vst [vmem:[#allocation170_spill] sm:$0xff] %v11140_v57  ;;  %vm1405_vm10 = vcmp.eq.s32.totalorder %v11156_v10, %v10178_v34  ;;  %vm1406_vm12 = vcmp.eq.s32.totalorder %v11156_v10, %v10198_v44  ;;  %vm1407_vm13 = vcmp.eq.s32.totalorder %v11156_v10, %v10193_v42 }
 0x1e4   : > { %8764 = vmatmul.msk.f32.gmra.mxu0 %vm1401_vm6, %v14559_v36  ;;  %8957 = vmatmul.msk.f32.gmra.mxu3 %vm1662_vm7, %v14559_v36  ;;  %14750 = vst [vmem:[#allocation172_spill] sm:$0xff] %v11156_v10  ;;  %vm1678_vm7 = vcmp.eq.s32.totalorder %v10467_v52, %v10198_v44 }
 0x1e5   : > { %8892 = vmatmul.msk.f32.gmra.mxu1 %vm1402_vm8, %v14559_v36  ;;  %9020 = vmatmul.msk.f32.gmra.mxu2 %vm1403_vm9, %v14559_v36 }
 0x1e7   : > { %v11154_v57 = vpop.f32.mrf.mxu3 }
 0x1e8   : > { %14749 = vst [vmem:[#allocation171_spill] sm:$0xff] %v11154_v57  ;;  %v11158_v40 = vpop.f32.mrf.mxu2 }
 0x1e9   : > { %14751 = vst [vmem:[#allocation173_spill] sm:$0xff] %v11158_v40  ;;  %v11160_v21 = vpop.f32.mrf.mxu0 }
 0x1ea   : > { %14752 = vst [vmem:[#allocation174_spill] sm:$0xff] %v11160_v21  ;;  %v11162_v60 = vpop.f32.mrf.mxu1  ;;  %v11178_v21 = vpop.permute.xlu0 %983 }
 0x1eb   : > { %14753 = vst [vmem:[#allocation175_spill] sm:$0xff] %v11162_v60  ;;  %vm1409_vm14 = vcmp.eq.s32.totalorder %v11178_v21, %v10178_v34  ;;  %vm1410_vm0 = vcmp.eq.s32.totalorder %v11178_v21, %v10198_v44  ;;  %vm1411_vm1 = vcmp.eq.s32.totalorder %v11178_v21, %v10193_v42 }
 0x1ec   : > { %8765 = vmatmul.msk.f32.gmra.mxu0 %vm1405_vm10, %v14559_v36  ;;  %8958 = vmatmul.msk.f32.gmra.mxu3 %vm1666_vm11, %v14559_v36  ;;  %14755 = vst [vmem:[#allocation177_spill] sm:$0xff] %v11178_v21  ;;  %vm1682_vm11 = vcmp.eq.s32.totalorder %v10486_v0, %v10198_v44 }
 0x1ed   : > { %8893 = vmatmul.msk.f32.gmra.mxu1 %vm1406_vm12, %v14559_v36  ;;  %9021 = vmatmul.msk.f32.gmra.mxu2 %vm1407_vm13, %v14559_v36 }
 0x1ef   : > { %v11176_v60 = vpop.f32.mrf.mxu3 }
 0x1f0   : > { %14754 = vst [vmem:[#allocation176_spill] sm:$0xff] %v11176_v60  ;;  %v11180_v40 = vpop.f32.mrf.mxu2 }
 0x1f1   : > { %14756 = vst [vmem:[#allocation178_spill] sm:$0xff] %v11180_v40  ;;  %v11182_v45 = vpop.f32.mrf.mxu0 }
 0x1f2   : > { %14757 = vst [vmem:[#allocation179_spill] sm:$0xff] %v11182_v45  ;;  %v11184_v57 = vpop.f32.mrf.mxu1  ;;  %v11200_v45 = vpop.permute.xlu1 %986 }
 0x1f3   : > { %14758 = vst [vmem:[#allocation180_spill] sm:$0xff] %v11184_v57  ;;  %vm1413_vm2 = vcmp.eq.s32.totalorder %v11200_v45, %v10178_v34  ;;  %vm1414_vm4 = vcmp.eq.s32.totalorder %v11200_v45, %v10198_v44  ;;  %vm1415_vm5 = vcmp.eq.s32.totalorder %v11200_v45, %v10193_v42 }
 0x1f4   : > { %8766 = vmatmul.msk.f32.gmra.mxu0 %vm1409_vm14, %v14559_v36  ;;  %8959 = vmatmul.msk.f32.gmra.mxu3 %vm1670_vm15, %v14559_v36  ;;  %14760 = vst [vmem:[#allocation182_spill] sm:$0xff] %v11200_v45  ;;  %vm1686_vm15 = vcmp.eq.s32.totalorder %v10505_v9, %v10198_v44 }
 0x1f5   : > { %8894 = vmatmul.msk.f32.gmra.mxu1 %vm1410_vm0, %v14559_v36  ;;  %9022 = vmatmul.msk.f32.gmra.mxu2 %vm1411_vm1, %v14559_v36 }
 0x1f7   : > { %v11198_v57 = vpop.f32.mrf.mxu3 }
 0x1f8   : > { %14759 = vst [vmem:[#allocation181_spill] sm:$0xff] %v11198_v57  ;;  %v11202_v40 = vpop.f32.mrf.mxu2 }
 0x1f9   : > { %14761 = vst [vmem:[#allocation183_spill] sm:$0xff] %v11202_v40  ;;  %v11204_v10 = vpop.f32.mrf.mxu0 }
 0x1fa   : > { %14762 = vst [vmem:[#allocation184_spill] sm:$0xff] %v11204_v10  ;;  %v11206_v60 = vpop.f32.mrf.mxu1  ;;  %v11222_v10 = vpop.permute.xlu2 %989 }
 0x1fb   : > { %14763 = vst [vmem:[#allocation185_spill] sm:$0xff] %v11206_v60  ;;  %vm1417_vm6 = vcmp.eq.s32.totalorder %v11222_v10, %v10178_v34  ;;  %vm1418_vm8 = vcmp.eq.s32.totalorder %v11222_v10, %v10198_v44  ;;  %vm1419_vm9 = vcmp.eq.s32.totalorder %v11222_v10, %v10193_v42 }
 0x1fc   : > { %8767 = vmatmul.msk.f32.gmra.mxu0 %vm1413_vm2, %v14559_v36  ;;  %8960 = vmatmul.msk.f32.gmra.mxu3 %vm1674_vm3, %v14559_v36  ;;  %14765 = vst [vmem:[#allocation187_spill] sm:$0xff] %v11222_v10  ;;  %vm1690_vm3 = vcmp.eq.s32.totalorder %v10526_v19, %v10198_v44 }
 0x1fd   : > { %8895 = vmatmul.msk.f32.gmra.mxu1 %vm1414_vm4, %v14559_v36  ;;  %9023 = vmatmul.msk.f32.gmra.mxu2 %vm1415_vm5, %v14559_v36 }
 0x1ff   : > { %v11220_v60 = vpop.f32.mrf.mxu3 }
 0x200   : > { %14764 = vst [vmem:[#allocation186_spill] sm:$0xff] %v11220_v60  ;;  %v11224_v40 = vpop.f32.mrf.mxu2 }
 0x201   : > { %14766 = vst [vmem:[#allocation188_spill] sm:$0xff] %v11224_v40  ;;  %v11226_v21 = vpop.f32.mrf.mxu0 }
 0x202   : > { %14767 = vst [vmem:[#allocation189_spill] sm:$0xff] %v11226_v21  ;;  %v11228_v57 = vpop.f32.mrf.mxu1  ;;  %v11244_v21 = vpop.permute.xlu0 %992 }
 0x203   : > { %14768 = vst [vmem:[#allocation190_spill] sm:$0xff] %v11228_v57  ;;  %vm1421_vm10 = vcmp.eq.s32.totalorder %v11244_v21, %v10178_v34  ;;  %vm1422_vm12 = vcmp.eq.s32.totalorder %v11244_v21, %v10198_v44  ;;  %vm1423_vm13 = vcmp.eq.s32.totalorder %v11244_v21, %v10193_v42 }
 0x204   : > { %8768 = vmatmul.msk.f32.gmra.mxu0 %vm1417_vm6, %v14559_v36  ;;  %8961 = vmatmul.msk.f32.gmra.mxu3 %vm1678_vm7, %v14559_v36  ;;  %14770 = vst [vmem:[#allocation192_spill] sm:$0xff] %v11244_v21  ;;  %vm1694_vm7 = vcmp.eq.s32.totalorder %v10551_v38, %v10198_v44 }
 0x205   : > { %8896 = vmatmul.msk.f32.gmra.mxu1 %vm1418_vm8, %v14559_v36  ;;  %9024 = vmatmul.msk.f32.gmra.mxu2 %vm1419_vm9, %v14559_v36 }
 0x207   : > { %v11242_v57 = vpop.f32.mrf.mxu3 }
 0x208   : > { %14769 = vst [vmem:[#allocation191_spill] sm:$0xff] %v11242_v57  ;;  %v11246_v40 = vpop.f32.mrf.mxu2 }
 0x209   : > { %14771 = vst [vmem:[#allocation193_spill] sm:$0xff] %v11246_v40  ;;  %v11248_v45 = vpop.f32.mrf.mxu0 }
 0x20a   : > { %14772 = vst [vmem:[#allocation194_spill] sm:$0xff] %v11248_v45  ;;  %v11250_v60 = vpop.f32.mrf.mxu1  ;;  %v11266_v45 = vpop.permute.xlu1 %995 }
 0x20b   : > { %14773 = vst [vmem:[#allocation195_spill] sm:$0xff] %v11250_v60  ;;  %vm1425_vm14 = vcmp.eq.s32.totalorder %v11266_v45, %v10178_v34  ;;  %vm1426_vm0 = vcmp.eq.s32.totalorder %v11266_v45, %v10198_v44  ;;  %vm1427_vm1 = vcmp.eq.s32.totalorder %v11266_v45, %v10193_v42 }
 0x20c   : > { %8769 = vmatmul.msk.f32.gmra.mxu0 %vm1421_vm10, %v14559_v36  ;;  %8962 = vmatmul.msk.f32.gmra.mxu3 %vm1682_vm11, %v14559_v36  ;;  %14775 = vst [vmem:[#allocation197_spill] sm:$0xff] %v11266_v45  ;;  %vm1698_vm11 = vcmp.eq.s32.totalorder %v10578_v58, %v10198_v44 }
 0x20d   : > { %8897 = vmatmul.msk.f32.gmra.mxu1 %vm1422_vm12, %v14559_v36  ;;  %9025 = vmatmul.msk.f32.gmra.mxu2 %vm1423_vm13, %v14559_v36 }
 0x20f   : > { %v11264_v60 = vpop.f32.mrf.mxu3 }
 0x210   : > { %14774 = vst [vmem:[#allocation196_spill] sm:$0xff] %v11264_v60  ;;  %v11268_v40 = vpop.f32.mrf.mxu2 }
 0x211   : > { %14776 = vst [vmem:[#allocation198_spill] sm:$0xff] %v11268_v40  ;;  %v11270_v10 = vpop.f32.mrf.mxu0 }
 0x212   : > { %14777 = vst [vmem:[#allocation199_spill] sm:$0xff] %v11270_v10  ;;  %v11272_v57 = vpop.f32.mrf.mxu1  ;;  %v11288_v10 = vpop.permute.xlu2 %998 }
 0x213   : > { %14778 = vst [vmem:[#allocation200_spill] sm:$0xff] %v11272_v57  ;;  %vm1429_vm2 = vcmp.eq.s32.totalorder %v11288_v10, %v10178_v34  ;;  %vm1430_vm4 = vcmp.eq.s32.totalorder %v11288_v10, %v10198_v44  ;;  %vm1431_vm5 = vcmp.eq.s32.totalorder %v11288_v10, %v10193_v42 }
 0x214   : > { %8770 = vmatmul.msk.f32.gmra.mxu0 %vm1425_vm14, %v14559_v36  ;;  %8963 = vmatmul.msk.f32.gmra.mxu3 %vm1686_vm15, %v14559_v36  ;;  %14779 = vst [vmem:[#allocation201_spill] sm:$0xff] %v11288_v10  ;;  %vm1702_vm15 = vcmp.eq.s32.totalorder %v10605_v25, %v10198_v44 }
 0x215   : > { %8898 = vmatmul.msk.f32.gmra.mxu1 %vm1426_vm0, %v14559_v36  ;;  %9026 = vmatmul.msk.f32.gmra.mxu2 %vm1427_vm1, %v14559_v36 }
 0x217   : > { %v11286_v57 = vpop.f32.mrf.mxu3 }
 0x218   : > { %v11290_v40 = vpop.f32.mrf.mxu2 }
 0x219   : > { %14780 = vst [vmem:[#allocation202_spill] sm:$0xff] %v11290_v40  ;;  %v11292_v21 = vpop.f32.mrf.mxu0 }
 0x21a   : > { %14781 = vst [vmem:[#allocation203_spill] sm:$0xff] %v11292_v21  ;;  %v11294_v60 = vpop.f32.mrf.mxu1  ;;  %v11310_v21 = vpop.permute.xlu0 %1001 }
 0x21b   : > { %14782 = vst [vmem:[#allocation204_spill] sm:$0xff] %v11294_v60  ;;  %vm1433_vm6 = vcmp.eq.s32.totalorder %v11310_v21, %v10178_v34  ;;  %vm1434_vm8 = vcmp.eq.s32.totalorder %v11310_v21, %v10198_v44  ;;  %vm1435_vm9 = vcmp.eq.s32.totalorder %v11310_v21, %v10193_v42 }
 0x21c   : > { %8771 = vmatmul.msk.f32.gmra.mxu0 %vm1429_vm2, %v14559_v36  ;;  %8964 = vmatmul.msk.f32.gmra.mxu3 %vm1690_vm3, %v14559_v36  ;;  %14783 = vst [vmem:[#allocation205_spill] sm:$0xff] %v11310_v21  ;;  %vm1706_vm3 = vcmp.eq.s32.totalorder %v10632_v31, %v10198_v44 }
 0x21d   : > { %8899 = vmatmul.msk.f32.gmra.mxu1 %vm1430_vm4, %v14559_v36  ;;  %9027 = vmatmul.msk.f32.gmra.mxu2 %vm1431_vm5, %v14559_v36 }
 0x21f   : > { %v11308_v60 = vpop.f32.mrf.mxu3 }
 0x220   : > { %v11312_v40 = vpop.f32.mrf.mxu2 }
 0x221   : > { %14784 = vst [vmem:[#allocation206_spill] sm:$0xff] %v11312_v40  ;;  %v11314_v45 = vpop.f32.mrf.mxu0 }
 0x222   : > { %14785 = vst [vmem:[#allocation207_spill] sm:$0xff] %v11314_v45  ;;  %v11316_v1 = vpop.f32.mrf.mxu1  ;;  %v11332_v45 = vpop.permute.xlu1 %1004 }
 0x223   : > { %14786 = vst [vmem:[#allocation208_spill] sm:$0xff] %v11316_v1  ;;  %vm1437_vm10 = vcmp.eq.s32.totalorder %v11332_v45, %v10178_v34  ;;  %vm1438_vm12 = vcmp.eq.s32.totalorder %v11332_v45, %v10198_v44  ;;  %vm1439_vm13 = vcmp.eq.s32.totalorder %v11332_v45, %v10193_v42 }
 0x224   : > { %8772 = vmatmul.msk.f32.gmra.mxu0 %vm1433_vm6, %v14559_v36  ;;  %8965 = vmatmul.msk.f32.gmra.mxu3 %vm1694_vm7, %v14559_v36  ;;  %14787 = vst [vmem:[#allocation209_spill] sm:$0xff] %v11332_v45  ;;  %vm1710_vm7 = vcmp.eq.s32.totalorder %v10659_v28, %v10198_v44 }
 0x225   : > { %8900 = vmatmul.msk.f32.gmra.mxu1 %vm1434_vm8, %v14559_v36  ;;  %9028 = vmatmul.msk.f32.gmra.mxu2 %vm1435_vm9, %v14559_v36 }
 0x227   : > { %v11330_v1 = vpop.f32.mrf.mxu3 }
 0x228   : > { %v11334_v40 = vpop.f32.mrf.mxu2 }
 0x229   : > { %14788 = vst [vmem:[#allocation210_spill] sm:$0xff] %v11334_v40  ;;  %v11336_v10 = vpop.f32.mrf.mxu0 }
 0x22a   : > { %14789 = vst [vmem:[#allocation211_spill] sm:$0xff] %v11336_v10  ;;  %v11338_v54 = vpop.f32.mrf.mxu1  ;;  %v11354_v10 = vpop.permute.xlu2 %1007 }
 0x22b   : > { %14790 = vst [vmem:[#allocation212_spill] sm:$0xff] %v11338_v54  ;;  %vm1441_vm14 = vcmp.eq.s32.totalorder %v11354_v10, %v10178_v34  ;;  %vm1442_vm0 = vcmp.eq.s32.totalorder %v11354_v10, %v10198_v44  ;;  %vm1443_vm1 = vcmp.eq.s32.totalorder %v11354_v10, %v10193_v42 }
 0x22c   : > { %8773 = vmatmul.msk.f32.gmra.mxu0 %vm1437_vm10, %v14559_v36  ;;  %8966 = vmatmul.msk.f32.gmra.mxu3 %vm1698_vm11, %v14559_v36  ;;  %14791 = vst [vmem:[#allocation213_spill] sm:$0xff] %v11354_v10  ;;  %vm1714_vm11 = vcmp.eq.s32.totalorder %v10686_v3, %v10198_v44 }
 0x22d   : > { %8901 = vmatmul.msk.f32.gmra.mxu1 %vm1438_vm12, %v14559_v36  ;;  %9029 = vmatmul.msk.f32.gmra.mxu2 %vm1439_vm13, %v14559_v36 }
 0x22f   : > { %v11352_v54 = vpop.f32.mrf.mxu3 }
 0x230   : > { %v11356_v40 = vpop.f32.mrf.mxu2 }
 0x231   : > { %14792 = vst [vmem:[#allocation214_spill] sm:$0xff] %v11356_v40  ;;  %v11358_v21 = vpop.f32.mrf.mxu0 }
 0x232   : > { %14793 = vst [vmem:[#allocation215_spill] sm:$0xff] %v11358_v21  ;;  %v11360_v6 = vpop.f32.mrf.mxu1  ;;  %v11376_v21 = vpop.permute.xlu0 %1010 }
 0x233   : > { %14794 = vst [vmem:[#allocation216_spill] sm:$0xff] %v11360_v6  ;;  %vm1445_vm2 = vcmp.eq.s32.totalorder %v11376_v21, %v10178_v34  ;;  %vm1446_vm4 = vcmp.eq.s32.totalorder %v11376_v21, %v10198_v44  ;;  %vm1447_vm5 = vcmp.eq.s32.totalorder %v11376_v21, %v10193_v42 }
 0x234   : > { %8774 = vmatmul.msk.f32.gmra.mxu0 %vm1441_vm14, %v14559_v36  ;;  %8967 = vmatmul.msk.f32.gmra.mxu3 %vm1702_vm15, %v14559_v36  ;;  %14795 = vst [vmem:[#allocation217_spill] sm:$0xff] %v11376_v21  ;;  %vm1718_vm15 = vcmp.eq.s32.totalorder %v10713_v62, %v10198_v44 }
 0x235   : > { %8902 = vmatmul.msk.f32.gmra.mxu1 %vm1442_vm0, %v14559_v36  ;;  %9030 = vmatmul.msk.f32.gmra.mxu2 %vm1443_vm1, %v14559_v36 }
 0x237   : > { %v11374_v6 = vpop.f32.mrf.mxu3 }
 0x238   : > { %v11378_v40 = vpop.f32.mrf.mxu2 }
 0x239   : > { %14796 = vst [vmem:[#allocation218_spill] sm:$0xff] %v11378_v40  ;;  %v11380_v45 = vpop.f32.mrf.mxu0 }
 0x23a   : > { %14797 = vst [vmem:[#allocation219_spill] sm:$0xff] %v11380_v45  ;;  %v11382_v51 = vpop.f32.mrf.mxu1  ;;  %v11398_v45 = vpop.permute.xlu1 %1013 }
 0x23b   : > { %14798 = vst [vmem:[#allocation220_spill] sm:$0xff] %v11382_v51  ;;  %vm1449_vm6 = vcmp.eq.s32.totalorder %v11398_v45, %v10178_v34  ;;  %vm1450_vm8 = vcmp.eq.s32.totalorder %v11398_v45, %v10198_v44  ;;  %vm1451_vm9 = vcmp.eq.s32.totalorder %v11398_v45, %v10193_v42 }
 0x23c   : > { %8775 = vmatmul.msk.f32.gmra.mxu0 %vm1445_vm2, %v14559_v36  ;;  %8968 = vmatmul.msk.f32.gmra.mxu3 %vm1706_vm3, %v14559_v36  ;;  %14799 = vst [vmem:[#allocation221_spill] sm:$0xff] %v11398_v45  ;;  %vm1722_vm3 = vcmp.eq.s32.totalorder %v10740_v47, %v10198_v44 }
 0x23d   : > { %8903 = vmatmul.msk.f32.gmra.mxu1 %vm1446_vm4, %v14559_v36  ;;  %9031 = vmatmul.msk.f32.gmra.mxu2 %vm1447_vm5, %v14559_v36 }
 0x23f   : > { %v11396_v51 = vpop.f32.mrf.mxu3 }
 0x240   : > { %v11400_v40 = vpop.f32.mrf.mxu2 }
 0x241   : > { %14800 = vst [vmem:[#allocation222_spill] sm:$0xff] %v11400_v40  ;;  %v11402_v10 = vpop.f32.mrf.mxu0 }
 0x242   : > { %14801 = vst [vmem:[#allocation223_spill] sm:$0xff] %v11402_v10  ;;  %v11404_v11 = vpop.f32.mrf.mxu1  ;;  %v11420_v10 = vpop.permute.xlu2 %1016 }
 0x243   : > { %14802 = vst [vmem:[#allocation224_spill] sm:$0xff] %v11404_v11  ;;  %vm1453_vm10 = vcmp.eq.s32.totalorder %v11420_v10, %v10178_v34  ;;  %vm1454_vm12 = vcmp.eq.s32.totalorder %v11420_v10, %v10198_v44  ;;  %vm1455_vm13 = vcmp.eq.s32.totalorder %v11420_v10, %v10193_v42 }
 0x244   : > { %8776 = vmatmul.msk.f32.gmra.mxu0 %vm1449_vm6, %v14559_v36  ;;  %8969 = vmatmul.msk.f32.gmra.mxu3 %vm1710_vm7, %v14559_v36  ;;  %14803 = vst [vmem:[#allocation225_spill] sm:$0xff] %v11420_v10  ;;  %vm1726_vm7 = vcmp.eq.s32.totalorder %v10767_v39, %v10198_v44 }
 0x245   : > { %8904 = vmatmul.msk.f32.gmra.mxu1 %vm1450_vm8, %v14559_v36  ;;  %9032 = vmatmul.msk.f32.gmra.mxu2 %vm1451_vm9, %v14559_v36 }
 0x247   : > { %v11418_v11 = vpop.f32.mrf.mxu3 }
 0x248   : > { %v11422_v40 = vpop.f32.mrf.mxu2 }
 0x249   : > { %14804 = vst [vmem:[#allocation226_spill] sm:$0xff] %v11422_v40  ;;  %v11424_v21 = vpop.f32.mrf.mxu0 }
 0x24a   : > { %14805 = vst [vmem:[#allocation227_spill] sm:$0xff] %v11424_v21  ;;  %v11426_v46 = vpop.f32.mrf.mxu1  ;;  %v11442_v21 = vpop.permute.xlu0 %1019 }
 0x24b   : > { %14806 = vst [vmem:[#allocation228_spill] sm:$0xff] %v11426_v46  ;;  %vm1457_vm14 = vcmp.eq.s32.totalorder %v11442_v21, %v10178_v34  ;;  %vm1458_vm0 = vcmp.eq.s32.totalorder %v11442_v21, %v10198_v44  ;;  %vm1459_vm1 = vcmp.eq.s32.totalorder %v11442_v21, %v10193_v42 }
 0x24c   : > { %8777 = vmatmul.msk.f32.gmra.mxu0 %vm1453_vm10, %v14559_v36  ;;  %8970 = vmatmul.msk.f32.gmra.mxu3 %vm1714_vm11, %v14559_v36  ;;  %14807 = vst [vmem:[#allocation229_spill] sm:$0xff] %v11442_v21  ;;  %vm1730_vm11 = vcmp.eq.s32.totalorder %v10794_v20, %v10198_v44 }
 0x24d   : > { %8905 = vmatmul.msk.f32.gmra.mxu1 %vm1454_vm12, %v14559_v36  ;;  %9033 = vmatmul.msk.f32.gmra.mxu2 %vm1455_vm13, %v14559_v36 }
 0x24f   : > { %v11440_v46 = vpop.f32.mrf.mxu3 }
 0x250   : > { %v11444_v40 = vpop.f32.mrf.mxu2 }
 0x251   : > { %14808 = vst [vmem:[#allocation230_spill] sm:$0xff] %v11444_v40  ;;  %v11446_v45 = vpop.f32.mrf.mxu0  ;;  %v11464_v40 = vpop.permute.xlu1 %1022 }
 0x252   : > { %14809 = vst [vmem:[#allocation231_spill] sm:$0xff] %v11446_v45  ;;  %v11458_v10 = vpop.f32.mrf.mxu1  ;;  %vm1461_vm2 = vcmp.eq.s32.totalorder %v11464_v40, %v10178_v34  ;;  %vm1462_vm4 = vcmp.eq.s32.totalorder %v11464_v40, %v10198_v44  ;;  %vm1463_vm5 = vcmp.eq.s32.totalorder %v11464_v40, %v10193_v42 }
 0x253   : > { %14810 = vst [vmem:[#allocation232_spill] sm:$0xff] %v11458_v10  ;;  %v11486_v10 = vpop.permute.xlu2 %1025 }
 0x254   : > { %8778 = vmatmul.msk.f32.gmra.mxu0 %vm1457_vm14, %v14559_v36  ;;  %8971 = vmatmul.msk.f32.gmra.mxu3 %vm1718_vm15, %v14559_v36  ;;  %14811 = vst [vmem:[#allocation233_spill] sm:$0xff] %v11464_v40  ;;  %vm1465_vm6 = vcmp.eq.s32.totalorder %v11486_v10, %v10178_v34  ;;  %vm1466_vm8 = vcmp.eq.s32.totalorder %v11486_v10, %v10198_v44 }
 0x255   : > { %8906 = vmatmul.msk.f32.gmra.mxu1 %vm1458_vm0, %v14559_v36  ;;  %9034 = vmatmul.msk.f32.gmra.mxu2 %vm1459_vm1, %v14559_v36  ;;  %14815 = vst [vmem:[#allocation237_spill] sm:$0xff] %v11486_v10  ;;  %vm1467_vm9 = vcmp.eq.s32.totalorder %v11486_v10, %v10193_v42  ;;  %vm1734_vm15 = vcmp.eq.s32.totalorder %v10820_v23, %v10198_v44 }
 0x257   : > { %v11462_v45 = vpop.f32.mrf.mxu3 }
 0x258   : > { %v11466_v16 = vpop.f32.mrf.mxu2 }
 0x259   : > { %14812 = vst [vmem:[#allocation234_spill] sm:$0xff] %v11466_v16  ;;  %v11468_v32 = vpop.f32.mrf.mxu0 }
 0x25a   : > { %14813 = vst [vmem:[#allocation235_spill] sm:$0xff] %v11468_v32  ;;  %v11482_v32 = vpop.f32.mrf.mxu1 }
 0x25b   : > { %14814 = vst [vmem:[#allocation236_spill] sm:$0xff] %v11482_v32 }
 0x25c   : > { %8779 = vmatmul.msk.f32.gmra.mxu0 %vm1461_vm2, %v14559_v36  ;;  %8972 = vmatmul.msk.f32.gmra.mxu3 %vm1722_vm3, %v14559_v36  ;;  %vm1738_vm3 = vcmp.eq.s32.totalorder %v10844_v49, %v10198_v44 }
 0x25d   : > { %8907 = vmatmul.msk.f32.gmra.mxu1 %vm1462_vm4, %v14559_v36  ;;  %9035 = vmatmul.msk.f32.gmra.mxu2 %vm1463_vm5, %v14559_v36 }
 0x25f   : > { %v11484_v16 = vpop.f32.mrf.mxu3 }
 0x260   : > { %v11488_v21 = vpop.f32.mrf.mxu2 }
 0x261   : > { %14816 = vst [vmem:[#allocation238_spill] sm:$0xff] %v11488_v21  ;;  %v11490_v15 = vpop.f32.mrf.mxu0  ;;  %v11506_v21 = vpop.permute.xlu0 %1028 }
 0x262   : > { %14817 = vst [vmem:[#allocation239_spill] sm:$0xff] %v11490_v15  ;;  %v11510_v40 = vpop.f32.mrf.mxu1  ;;  %vm1469_vm10 = vcmp.eq.s32.totalorder %v11506_v21, %v10178_v34  ;;  %vm1470_vm12 = vcmp.eq.s32.totalorder %v11506_v21, %v10198_v44  ;;  %vm1471_vm13 = vcmp.eq.s32.totalorder %v11506_v21, %v10193_v42 }
 0x263   : > { %14818 = vst [vmem:[#allocation240_spill] sm:$0xff] %v11506_v21 }
 0x264   : > { %8780 = vmatmul.msk.f32.gmra.mxu0 %vm1465_vm6, %v14559_v36  ;;  %8973 = vmatmul.msk.f32.gmra.mxu3 %vm1726_vm7, %v14559_v36  ;;  %14820 = vst [vmem:[#allocation242_spill] sm:$0xff] %v11510_v40  ;;  %vm1742_vm7 = vcmp.eq.s32.totalorder %v10868_v8, %v10198_v44 }
 0x265   : > { %8908 = vmatmul.msk.f32.gmra.mxu1 %vm1466_vm8, %v14559_v36  ;;  %9036 = vmatmul.msk.f32.gmra.mxu2 %vm1467_vm9, %v14559_v36 }
 0x267   : > { %v11504_v15 = vpop.f32.mrf.mxu3 }
 0x268   : > { %v11508_v32 = vpop.f32.mrf.mxu2 }
 0x269   : > { %14819 = vst [vmem:[#allocation241_spill] sm:$0xff] %v11508_v32  ;;  %v11512_v5 = vpop.f32.mrf.mxu0  ;;  %v11528_v32 = vpop.permute.xlu1 %1031 }
 0x26a   : > { %14821 = vst [vmem:[#allocation243_spill] sm:$0xff] %v11512_v5  ;;  %v11534_v63 = vpop.f32.mrf.mxu1  ;;  %vm1473_vm14 = vcmp.eq.s32.totalorder %v11528_v32, %v10178_v34  ;;  %vm1474_vm0 = vcmp.eq.s32.totalorder %v11528_v32, %v10198_v44  ;;  %vm1475_vm1 = vcmp.eq.s32.totalorder %v11528_v32, %v10193_v42 }
 0x26b   : > { %14822 = vst [vmem:[#allocation244_spill] sm:$0xff] %v11528_v32  ;;  %v11576_v32 = vpop.permute.xlu0 %1037 }
 0x26c   : > { %8781 = vmatmul.msk.f32.gmra.mxu0 %vm1469_vm10, %v14559_v36  ;;  %8974 = vmatmul.msk.f32.gmra.mxu3 %vm1730_vm11, %v14559_v36  ;;  %14825 = vst [vmem:[#allocation247_spill] sm:$0xff] %v11534_v63  ;;  %v11551_v63 = vpop.permute.xlu2 %1034  ;;  %vm1481_vm6 = vcmp.eq.s32.totalorder %v11576_v32, %v10178_v34  ;;  %vm1482_vm8 = vcmp.eq.s32.totalorder %v11576_v32, %v10198_v44 }
 0x26d   : > { %8909 = vmatmul.msk.f32.gmra.mxu1 %vm1470_vm12, %v14559_v36  ;;  %9037 = vmatmul.msk.f32.gmra.mxu2 %vm1471_vm13, %v14559_v36  ;;  %14827 = vst [vmem:[#allocation249_spill] sm:$0xff] %v11551_v63  ;;  %vm1477_vm2 = vcmp.eq.s32.totalorder %v11551_v63, %v10178_v34  ;;  %vm1478_vm4 = vcmp.eq.s32.totalorder %v11551_v63, %v10198_v44 }
 0x26e   : > { %vm1479_vm5 = vcmp.eq.s32.totalorder %v11551_v63, %v10193_v42  ;;  %14831 = vst [vmem:[#allocation253_spill] sm:$0xff] %v11576_v32  ;;  %vm1483_vm9 = vcmp.eq.s32.totalorder %v11576_v32, %v10193_v42  ;;  %vm1746_vm11 = vcmp.eq.s32.totalorder %v10888_v26, %v10198_v44 }
 0x26f   : > { %v11526_v5 = vpop.f32.mrf.mxu3 }
 0x270   : > { %v11530_v40 = vpop.f32.mrf.mxu2 }
 0x271   : > { %14823 = vst [vmem:[#allocation245_spill] sm:$0xff] %v11530_v40  ;;  %v11532_v10 = vpop.f32.mrf.mxu0  ;;  %v11599_v63 = vpop.permute.xlu1 %1040 }
 0x272   : > { %14824 = vst [vmem:[#allocation246_spill] sm:$0xff] %v11532_v10  ;;  %v463_v10 = vld [vmem:[%s10003_s22 + $0x1f8] sm:$0xff]  ;;  %vm1485_vm10 = vcmp.eq.s32.totalorder %v11599_v63, %v10178_v34  ;;  %vm1486_vm12 = vcmp.eq.s32.totalorder %v11599_v63, %v10198_v44  ;;  %vm1487_vm13 = vcmp.eq.s32.totalorder %v11599_v63, %v10193_v42 }
 0x273   : > { %3976 = vmatpush.msrb.mxu3 %v463_v10  ;;  %v11567_v10 = vpop.f32.mrf.mxu1  ;;  %14835 = vst [vmem:[#allocation257_spill] sm:$0xff] %v11599_v63 }
 0x274   : > { %8782 = vmatmul.msk.f32.gmra.mxu0 %vm1473_vm14, %v14559_v36  ;;  %8975 = vmatmul.msk.f32.gmra.mxu3 %vm1734_vm15, %v14559_v36  ;;  %14830 = vst [vmem:[#allocation252_spill] sm:$0xff] %v11567_v10  ;;  %vm1623_vm14 = vcmp.eq.s32.totalorder %v10180_v35, %v10193_v42 }
 0x275   : > { %8910 = vmatmul.msk.f32.gmra.mxu1 %vm1474_vm0, %v14559_v36  ;;  %9038 = vmatmul.msk.f32.gmra.mxu2 %vm1475_vm1, %v14559_v36 }
 0x277   : > { %v11549_v40 = vpop.f32.mrf.mxu3 }
 0x278   : > { %14826 = vst [vmem:[#allocation248_spill] sm:$0xff] %v11549_v40  ;;  %v11553_v21 = vpop.f32.mrf.mxu2 }
 0x279   : > { %14828 = vst [vmem:[#allocation250_spill] sm:$0xff] %v11553_v21  ;;  %v11555_v23 = vpop.f32.mrf.mxu0 }
 0x27a   : > { %14829 = vst [vmem:[#allocation251_spill] sm:$0xff] %v11555_v23  ;;  %v5296_v23 = vld [vmem:[%s14449_s5] sm:$0xff] }
 0x27b   : > { %5698 = vmatpush.msrb.mxu1 %v5296_v23  ;;  %v462_v23 = vld [vmem:[%s10003_s22 + $0x1f0] sm:$0xff] }
 0x27c   : > { %8783 = vmatmul.msk.f32.gmra.mxu0 %vm1477_vm2, %v14559_v36  ;;  %8976 = vmatmul.msk.f32.gmra.mxu3 %vm1738_vm3, %v14559_v36  ;;  %vm1627_vm3 = vcmp.eq.s32.totalorder %v10190_v41, %v10193_v42 }
 0x27d   : > { %8911 = vmatmul.msk.f32.gmra.mxu1 %vm1478_vm4, %v14559_v36  ;;  %9039 = vmatmul.msk.f32.gmra.mxu2 %vm1479_vm5, %v14559_v36 }
 0x27e   : > { %3977 = vmatpush.msrb.mxu3 %v462_v23 }
 0x27f   : > { %v11574_v21 = vpop.f32.mrf.mxu3 }
 0x280   : > { %v11578_v49 = vpop.f32.mrf.mxu2 }
 0x281   : > { %14832 = vst [vmem:[#allocation254_spill] sm:$0xff] %v11578_v49  ;;  %v11580_v40 = vpop.f32.mrf.mxu0 }
 0x282   : > { %14833 = vst [vmem:[#allocation255_spill] sm:$0xff] %v11580_v40  ;;  %v11595_v40 = vpop.f32.mrf.mxu1 }
 0x283   : > { %14834 = vst [vmem:[#allocation256_spill] sm:$0xff] %v11595_v40 }
 0x284   : > { %8784 = vmatmul.msk.f32.gmra.mxu0 %vm1481_vm6, %v14559_v36  ;;  %8977 = vmatmul.msk.f32.gmra.mxu3 %vm1742_vm7, %v14559_v36  ;;  %vm1631_vm7 = vcmp.eq.s32.totalorder %v10215_v50, %v10193_v42 }
 0x285   : > { %8912 = vmatmul.msk.f32.gmra.mxu1 %vm1482_vm8, %v14559_v36  ;;  %9040 = vmatmul.msk.f32.gmra.mxu2 %vm1483_vm9, %v14559_v36 }
 0x287   : > { %v11597_v49 = vpop.f32.mrf.mxu3 }
 0x288   : > { %v11601_v10 = vpop.f32.mrf.mxu2 }
 0x289   : > { %14836 = vst [vmem:[#allocation258_spill] sm:$0xff] %v11601_v10  ;;  %v11603_v8 = vpop.f32.mrf.mxu0 }
 0x28a   : > { %14837 = vst [vmem:[#allocation259_spill] sm:$0xff] %v11603_v8  ;;  %v11619_v8 = vpop.permute.xlu2 %1043  ;;  %v11623_v32 = vpop.f32.mrf.mxu1 }
 0x28b   : > { %14839 = vst [vmem:[#allocation261_spill] sm:$0xff] %v11619_v8  ;;  %vm1489_vm15 = vcmp.eq.s32.totalorder %v11619_v8, %v10178_v34  ;;  %vm1490_vm0 = vcmp.eq.s32.totalorder %v11619_v8, %v10198_v44  ;;  %vm1491_vm1 = vcmp.eq.s32.totalorder %v11619_v8, %v10193_v42 }
 0x28c   : > { %8785 = vmatmul.msk.f32.gmra.mxu0 %vm1485_vm10, %v14559_v36  ;;  %8978 = vmatmul.msk.f32.gmra.mxu3 %vm1746_vm11, %v14559_v36  ;;  %14841 = vst [vmem:[#allocation263_spill] sm:$0xff] %v11623_v32  ;;  %vm1635_vm11 = vcmp.eq.s32.totalorder %v10239_v56, %v10193_v42 }
 0x28d   : > { %8913 = vmatmul.msk.f32.gmra.mxu1 %vm1486_vm12, %v14559_v36  ;;  %9041 = vmatmul.msk.f32.gmra.mxu2 %vm1487_vm13, %v14559_v36 }
 0x28f   : > { %v11617_v23 = vpop.f32.mrf.mxu3 }
 0x290   : > { %14838 = vst [vmem:[#allocation260_spill] sm:$0xff] %v11617_v23  ;;  %v11621_v10 = vpop.f32.mrf.mxu2 }
 0x291   : > { %14840 = vst [vmem:[#allocation262_spill] sm:$0xff] %v11621_v10  ;;  %v11625_v40 = vpop.f32.mrf.mxu0  ;;  %v11642_v10 = vpop.permute.xlu0 %1046 }
 0x292   : > { %14842 = vst [vmem:[#allocation264_spill] sm:$0xff] %v11625_v40  ;;  %v461_v40 = vld [vmem:[%s10003_s22 + $0x1e8] sm:$0xff]  ;;  %v11648_v23 = vpop.f32.mrf.mxu1  ;;  %vm1493_vm2 = vcmp.eq.s32.totalorder %v11642_v10, %v10178_v34  ;;  %vm1494_vm4 = vcmp.eq.s32.totalorder %v11642_v10, %v10198_v44  ;;  %vm1495_vm5 = vcmp.eq.s32.totalorder %v11642_v10, %v10193_v42  ;;  %v11687_v50 = vpop.permute.xlu2 %1052 }
 0x293   : > { %3978 = vmatpush.msrb.mxu3 %v461_v40  ;;  %14843 = vst [vmem:[#allocation265_spill] sm:$0xff] %v11642_v10  ;;  %vm1501_vm10 = vcmp.eq.s32.totalorder %v11687_v50, %v10178_v34  ;;  %vm1502_vm12 = vcmp.eq.s32.totalorder %v11687_v50, %v10198_v44  ;;  %vm1503_vm13 = vcmp.eq.s32.totalorder %v11687_v50, %v10193_v42 }
 0x294   : > { %8786 = vmatmul.msk.f32.gmra.mxu0 %vm1489_vm15, %v14559_v36  ;;  %9075 = vmatmul.msk.f32.vlgmr.msra.gmra.mxu3 %vm1623_vm14, %v14559_v36  ;;  %14846 = vst [vmem:[#allocation268_spill] sm:$0xff] %v11648_v23  ;;  %vm1639_vm15 = vcmp.eq.s32.totalorder %v10262_v59, %v10193_v42 }
 0x295   : > { %8914 = vmatmul.msk.f32.gmra.mxu1 %vm1490_vm0, %v14559_v36  ;;  %9042 = vmatmul.msk.f32.gmra.mxu2 %vm1491_vm1, %v14559_v36  ;;  %14851 = vst [vmem:[#allocation273_spill] sm:$0xff] %v11687_v50 }
 0x297   : > { %v11640_v35 = vpop.f32.mrf.mxu3 }
 0x298   : > { %v11644_v63 = vpop.f32.mrf.mxu2 }
 0x299   : > { %14844 = vst [vmem:[#allocation266_spill] sm:$0xff] %v11644_v63  ;;  %v11646_v32 = vpop.f32.mrf.mxu0  ;;  %v11709_v56 = vpop.permute.xlu0 %1055 }
 0x29a   : > { %14845 = vst [vmem:[#allocation267_spill] sm:$0xff] %v11646_v32  ;;  %v11664_v32 = vpop.permute.xlu1 %1049  ;;  %v11680_v10 = vpop.f32.mrf.mxu1  ;;  %vm1505_vm14 = vcmp.eq.s32.totalorder %v11709_v56, %v10178_v34  ;;  %vm1506_vm0 = vcmp.eq.s32.totalorder %v11709_v56, %v10198_v44  ;;  %vm1507_vm1 = vcmp.eq.s32.totalorder %v11709_v56, %v10193_v42 }
 0x29b   : > { %14847 = vst [vmem:[#allocation269_spill] sm:$0xff] %v11664_v32  ;;  %vm1497_vm6 = vcmp.eq.s32.totalorder %v11664_v32, %v10178_v34  ;;  %vm1498_vm8 = vcmp.eq.s32.totalorder %v11664_v32, %v10198_v44  ;;  %vm1499_vm9 = vcmp.eq.s32.totalorder %v11664_v32, %v10193_v42 }
 0x29c   : > { %8787 = vmatmul.msk.f32.gmra.mxu0 %vm1493_vm2, %v14559_v36  ;;  %9076 = vmatmul.msk.f32.gmra.mxu3 %vm1627_vm3, %v14559_v36  ;;  %14850 = vst [vmem:[#allocation272_spill] sm:$0xff] %v11680_v10  ;;  %vm1643_vm3 = vcmp.eq.s32.totalorder %v10283_v61, %v10193_v42 }
 0x29d   : > { %8915 = vmatmul.msk.f32.gmra.mxu1 %vm1494_vm4, %v14559_v36  ;;  %9043 = vmatmul.msk.f32.gmra.mxu2 %vm1495_vm5, %v14559_v36  ;;  %14855 = vst [vmem:[#allocation277_spill] sm:$0xff] %v11709_v56 }
 0x29f   : > { %v11662_v40 = vpop.f32.mrf.mxu3 }
 0x2a0   : > { %v11666_v41 = vpop.f32.mrf.mxu2 }
 0x2a1   : > { %14848 = vst [vmem:[#allocation270_spill] sm:$0xff] %v11666_v41  ;;  %v11668_v63 = vpop.f32.mrf.mxu0 }
 0x2a2   : > { %14849 = vst [vmem:[#allocation271_spill] sm:$0xff] %v11668_v63  ;;  %v460_v63 = vld [vmem:[%s10003_s22 + $0x1e0] sm:$0xff]  ;;  %v11730_v50 = vpop.permute.xlu1 %1058 }
 0x2a3   : > { %3979 = vmatpush.msrb.mxu3 %v460_v63  ;;  %v11705_v63 = vpop.f32.mrf.mxu1  ;;  %14858 = vst [vmem:[#allocation280_spill] sm:$0xff] %v11730_v50  ;;  %vm1509_vm2 = vcmp.eq.s32.totalorder %v11730_v50, %v10178_v34  ;;  %vm1510_vm4 = vcmp.eq.s32.totalorder %v11730_v50, %v10198_v44  ;;  %vm1511_vm5 = vcmp.eq.s32.totalorder %v11730_v50, %v10193_v42 }
 0x2a4   : > { %8788 = vmatmul.msk.f32.gmra.mxu0 %vm1497_vm6, %v14559_v36  ;;  %9077 = vmatmul.msk.f32.gmra.mxu3 %vm1631_vm7, %v14559_v36  ;;  %14854 = vst [vmem:[#allocation276_spill] sm:$0xff] %v11705_v63  ;;  %vm1647_vm7 = vcmp.eq.s32.totalorder %v10305_v2, %v10193_v42  ;;  %v11775_v2 = vpop.permute.xlu0 %1064 }
 0x2a5   : > { %8916 = vmatmul.msk.f32.gmra.mxu1 %vm1498_vm8, %v14559_v36  ;;  %9044 = vmatmul.msk.f32.gmra.mxu2 %vm1499_vm9, %v14559_v36  ;;  %14866 = vst [vmem:[#allocation288_spill] sm:$0xff] %v11775_v2 }
 0x2a7   : > { %v11685_v41 = vpop.f32.mrf.mxu3 }
 0x2a8   : > { %v11689_v8 = vpop.f32.mrf.mxu2 }
 0x2a9   : > { %14852 = vst [vmem:[#allocation274_spill] sm:$0xff] %v11689_v8  ;;  %v11691_v23 = vpop.f32.mrf.mxu0 }
 0x2aa   : > { %14853 = vst [vmem:[#allocation275_spill] sm:$0xff] %v11691_v23 }
 0x2ab   : > { %v11732_v59 = vpop.f32.mrf.mxu1 }
 0x2ac   : > { %8789 = vmatmul.msk.f32.gmra.mxu0 %vm1501_vm10, %v14559_v36  ;;  %9078 = vmatmul.msk.f32.gmra.mxu3 %vm1635_vm11, %v14559_v36  ;;  %14859 = vst [vmem:[#allocation281_spill] sm:$0xff] %v11732_v59  ;;  %vm1517_vm10 = vcmp.eq.s32.totalorder %v11775_v2, %v10178_v34  ;;  %vm1651_vm11 = vcmp.eq.s32.totalorder %v10328_v7, %v10193_v42 }
 0x2ad   : > { %8917 = vmatmul.msk.f32.gmra.mxu1 %vm1502_vm12, %v14559_v36  ;;  %9045 = vmatmul.msk.f32.gmra.mxu2 %vm1503_vm13, %v14559_v36  ;;  %vm1518_vm12 = vcmp.eq.s32.totalorder %v11775_v2, %v10198_v44  ;;  %vm1519_vm13 = vcmp.eq.s32.totalorder %v11775_v2, %v10193_v42 }
 0x2af   : > { %v11707_v23 = vpop.f32.mrf.mxu3 }
 0x2b0   : > { %v11711_v8 = vpop.f32.mrf.mxu2 }
 0x2b1   : > { %14856 = vst [vmem:[#allocation278_spill] sm:$0xff] %v11711_v8  ;;  %v11713_v32 = vpop.f32.mrf.mxu0 }
 0x2b2   : > { %14857 = vst [vmem:[#allocation279_spill] sm:$0xff] %v11713_v32  ;;  %v459_v32 = vld [vmem:[%s10003_s22 + $0x1d8] sm:$0xff] }
 0x2b3   : > { %3980 = vmatpush.msrb.mxu3 %v459_v32 }
 0x2b4   : > { %8790 = vmatmul.msk.f32.gmra.mxu0 %vm1505_vm14, %v14559_v36  ;;  %9079 = vmatmul.msk.f32.gmra.mxu3 %vm1639_vm15, %v14559_v36  ;;  %vm1655_vm15 = vcmp.eq.s32.totalorder %v10347_v12, %v10193_v42 }
 0x2b5   : > { %8918 = vmatmul.msk.f32.gmra.mxu1 %vm1506_vm0, %v14559_v36  ;;  %9046 = vmatmul.msk.f32.gmra.mxu2 %vm1507_vm1, %v14559_v36 }
 0x2b7   : > { %v11728_v8 = vpop.f32.mrf.mxu3 }
 0x2b8   : > { %v11736_v10 = vpop.f32.mrf.mxu2 }
 0x2b9   : > { %v11734_v63 = vpop.f32.mrf.mxu0  ;;  %14861 = vst [vmem:[#allocation283_spill] sm:$0xff] %v11736_v10  ;;  %v11756_v10 = vpop.f32.mrf.mxu1 }
 0x2ba   : > { %14860 = vst [vmem:[#allocation282_spill] sm:$0xff] %v11734_v63  ;;  %v11752_v63 = vpop.permute.xlu2 %1061 }
 0x2bb   : > { %14862 = vst [vmem:[#allocation284_spill] sm:$0xff] %v11752_v63  ;;  %vm1513_vm6 = vcmp.eq.s32.totalorder %v11752_v63, %v10178_v34  ;;  %vm1514_vm8 = vcmp.eq.s32.totalorder %v11752_v63, %v10198_v44  ;;  %vm1515_vm9 = vcmp.eq.s32.totalorder %v11752_v63, %v10193_v42  ;;  %v11797_v63 = vpop.permute.xlu1 %1067 }
 0x2bc   : > { %8791 = vmatmul.msk.f32.gmra.mxu0 %vm1509_vm2, %v14559_v36  ;;  %9080 = vmatmul.msk.f32.gmra.mxu3 %vm1643_vm3, %v14559_v36  ;;  %14864 = vst [vmem:[#allocation286_spill] sm:$0xff] %v11756_v10  ;;  %vm1521_vm14 = vcmp.eq.s32.totalorder %v11797_v63, %v10178_v34  ;;  %vm1522_vm0 = vcmp.eq.s32.totalorder %v11797_v63, %v10198_v44 }
 0x2bd   : > { %8919 = vmatmul.msk.f32.gmra.mxu1 %vm1510_vm4, %v14559_v36  ;;  %9047 = vmatmul.msk.f32.gmra.mxu2 %vm1511_vm5, %v14559_v36  ;;  %14870 = vst [vmem:[#allocation292_spill] sm:$0xff] %v11797_v63  ;;  %vm1523_vm1 = vcmp.eq.s32.totalorder %v11797_v63, %v10193_v42  ;;  %vm1659_vm3 = vcmp.eq.s32.totalorder %v10366_v17, %v10193_v42 }
 0x2bf   : > { %v11750_v32 = vpop.f32.mrf.mxu3 }
 0x2c0   : > { %v11762_v50 = vpop.f32.mrf.mxu2 }
 0x2c1   : > { %v11754_v61 = vpop.f32.mrf.mxu0  ;;  %14865 = vst [vmem:[#allocation287_spill] sm:$0xff] %v11762_v50 }
 0x2c2   : > { %14863 = vst [vmem:[#allocation285_spill] sm:$0xff] %v11754_v61  ;;  %v458_v61 = vld [vmem:[%s10003_s22 + $0x1d0] sm:$0xff]  ;;  %v11818_v12 = vpop.permute.xlu2 %1070 }
 0x2c3   : > { %3981 = vmatpush.msrb.mxu3 %v458_v61  ;;  %v11789_v61 = vpop.f32.mrf.mxu1  ;;  %14873 = vst [vmem:[#allocation295_spill] sm:$0xff] %v11818_v12  ;;  %vm1525_vm2 = vcmp.eq.s32.totalorder %v11818_v12, %v10178_v34  ;;  %vm1526_vm4 = vcmp.eq.s32.totalorder %v11818_v12, %v10198_v44  ;;  %vm1527_vm5 = vcmp.eq.s32.totalorder %v11818_v12, %v10193_v42 }
 0x2c4   : > { %8792 = vmatmul.msk.f32.gmra.mxu0 %vm1513_vm6, %v14559_v36  ;;  %9081 = vmatmul.msk.f32.gmra.mxu3 %vm1647_vm7, %v14559_v36  ;;  %14868 = vst [vmem:[#allocation290_spill] sm:$0xff] %v11789_v61  ;;  %vm1663_vm7 = vcmp.eq.s32.totalorder %v10385_v22, %v10193_v42 }
 0x2c5   : > { %8920 = vmatmul.msk.f32.gmra.mxu1 %vm1514_vm8, %v14559_v36  ;;  %9048 = vmatmul.msk.f32.gmra.mxu2 %vm1515_vm9, %v14559_v36 }
 0x2c7   : > { %v11773_v56 = vpop.f32.mrf.mxu3 }
 0x2c9   : > { %v11777_v50 = vpop.f32.mrf.mxu0 }
 0x2ca   : > { %14867 = vst [vmem:[#allocation289_spill] sm:$0xff] %v11777_v50  ;;  %v11793_v50 = vpop.f32.mrf.mxu2 }
 0x2cb   : > { %14869 = vst [vmem:[#allocation291_spill] sm:$0xff] %v11793_v50  ;;  %v11814_v2 = vpop.f32.mrf.mxu1 }
 0x2cc   : > { %8793 = vmatmul.msk.f32.gmra.mxu0 %vm1517_vm10, %v14559_v36  ;;  %9082 = vmatmul.msk.f32.gmra.mxu3 %vm1651_vm11, %v14559_v36  ;;  %14872 = vst [vmem:[#allocation294_spill] sm:$0xff] %v11814_v2  ;;  %vm1667_vm11 = vcmp.eq.s32.totalorder %v10404_v27, %v10193_v42  ;;  %v11883_v27 = vpop.permute.xlu2 %1079 }
 0x2cd   : > { %8921 = vmatmul.msk.f32.gmra.mxu1 %vm1518_vm12, %v14559_v36  ;;  %9049 = vmatmul.msk.f32.gmra.mxu2 %vm1519_vm13, %v14559_v36  ;;  %14884 = vst [vmem:[#allocation306_spill] sm:$0xff] %v11883_v27 }
 0x2cf   : > { %v11795_v7 = vpop.f32.mrf.mxu3 }
 0x2d1   : > { %v11799_v10 = vpop.f32.mrf.mxu0 }
 0x2d2   : > { %14871 = vst [vmem:[#allocation293_spill] sm:$0xff] %v11799_v10  ;;  %v457_v10 = vld [vmem:[%s10003_s22 + $0x1c8] sm:$0xff]  ;;  %v11820_v61 = vpop.f32.mrf.mxu2 }
 0x2d3   : > { %3982 = vmatpush.msrb.mxu3 %v457_v10  ;;  %14874 = vst [vmem:[#allocation296_spill] sm:$0xff] %v11820_v61  ;;  %v11840_v17 = vpop.f32.mrf.mxu1 }
 0x2d4   : > { %8794 = vmatmul.msk.f32.gmra.mxu0 %vm1521_vm14, %v14559_v36  ;;  %9083 = vmatmul.msk.f32.gmra.mxu3 %vm1655_vm15, %v14559_v36  ;;  %14877 = vst [vmem:[#allocation299_spill] sm:$0xff] %v11840_v17  ;;  %vm1537_vm14 = vcmp.eq.s32.totalorder %v11883_v27, %v10178_v34  ;;  %vm1671_vm15 = vcmp.eq.s32.totalorder %v10423_v37, %v10193_v42 }
 0x2d5   : > { %8922 = vmatmul.msk.f32.gmra.mxu1 %vm1522_vm0, %v14559_v36  ;;  %9050 = vmatmul.msk.f32.gmra.mxu2 %vm1523_vm1, %v14559_v36  ;;  %vm1538_vm0 = vcmp.eq.s32.totalorder %v11883_v27, %v10198_v44  ;;  %vm1539_vm1 = vcmp.eq.s32.totalorder %v11883_v27, %v10193_v42 }
 0x2d7   : > { %v11816_v50 = vpop.f32.mrf.mxu3 }
 0x2d9   : > { %v11822_v59 = vpop.f32.mrf.mxu0 }
 0x2da   : > { %14875 = vst [vmem:[#allocation297_spill] sm:$0xff] %v11822_v59  ;;  %v11838_v59 = vpop.permute.xlu0 %1073  ;;  %v11844_v61 = vpop.f32.mrf.mxu2 }
 0x2db   : > { %14876 = vst [vmem:[#allocation298_spill] sm:$0xff] %v11838_v59  ;;  %vm1529_vm6 = vcmp.eq.s32.totalorder %v11838_v59, %v10178_v34  ;;  %vm1530_vm8 = vcmp.eq.s32.totalorder %v11838_v59, %v10198_v44  ;;  %vm1531_vm9 = vcmp.eq.s32.totalorder %v11838_v59, %v10193_v42  ;;  %v11865_v17 = vpop.f32.mrf.mxu1 }
 0x2dc   : > { %8795 = vmatmul.msk.f32.gmra.mxu0 %vm1525_vm2, %v14559_v36  ;;  %9084 = vmatmul.msk.f32.gmra.mxu3 %vm1659_vm3, %v14559_v36  ;;  %14879 = vst [vmem:[#allocation301_spill] sm:$0xff] %v11844_v61  ;;  %v11861_v61 = vpop.permute.xlu1 %1076  ;;  %vm1675_vm3 = vcmp.eq.s32.totalorder %v10445_v53, %v10193_v42 }
 0x2dd   : > { %8923 = vmatmul.msk.f32.gmra.mxu1 %vm1526_vm4, %v14559_v36  ;;  %9051 = vmatmul.msk.f32.gmra.mxu2 %vm1527_vm5, %v14559_v36  ;;  %14880 = vst [vmem:[#allocation302_spill] sm:$0xff] %v11861_v61  ;;  %vm1533_vm10 = vcmp.eq.s32.totalorder %v11861_v61, %v10178_v34  ;;  %vm1534_vm12 = vcmp.eq.s32.totalorder %v11861_v61, %v10198_v44 }
 0x2de   : > { %14882 = vst [vmem:[#allocation304_spill] sm:$0xff] %v11865_v17  ;;  %vm1535_vm13 = vcmp.eq.s32.totalorder %v11861_v61, %v10193_v42 }
 0x2df   : > { %v11836_v10 = vpop.f32.mrf.mxu3 }
 0x2e1   : > { %v11842_v63 = vpop.f32.mrf.mxu0 }
 0x2e2   : > { %14878 = vst [vmem:[#allocation300_spill] sm:$0xff] %v11842_v63  ;;  %v456_v63 = vld [vmem:[%s10003_s22 + $0x1c0] sm:$0xff]  ;;  %v11871_v59 = vpop.f32.mrf.mxu2  ;;  %v11906_v17 = vpop.permute.xlu0 %1082 }
 0x2e3   : > { %3983 = vmatpush.msrb.mxu3 %v456_v63  ;;  %14883 = vst [vmem:[#allocation305_spill] sm:$0xff] %v11871_v59  ;;  %v11897_v61 = vpop.f32.mrf.mxu1  ;;  %vm1541_vm2 = vcmp.eq.s32.totalorder %v11906_v17, %v10178_v34  ;;  %vm1542_vm4 = vcmp.eq.s32.totalorder %v11906_v17, %v10198_v44  ;;  %vm1543_vm5 = vcmp.eq.s32.totalorder %v11906_v17, %v10193_v42 }
 0x2e4   : > { %8796 = vmatmul.msk.f32.gmra.mxu0 %vm1529_vm6, %v14559_v36  ;;  %9085 = vmatmul.msk.f32.gmra.mxu3 %vm1663_vm7, %v14559_v36  ;;  %14886 = vst [vmem:[#allocation308_spill] sm:$0xff] %v11897_v61  ;;  %v11926_v53 = vpop.permute.xlu1 %1085  ;;  %vm1679_vm7 = vcmp.eq.s32.totalorder %v10467_v52, %v10193_v42 }
 0x2e5   : > { %8924 = vmatmul.msk.f32.gmra.mxu1 %vm1530_vm8, %v14559_v36  ;;  %9052 = vmatmul.msk.f32.gmra.mxu2 %vm1531_vm9, %v14559_v36  ;;  %14888 = vst [vmem:[#allocation310_spill] sm:$0xff] %v11906_v17  ;;  %vm1545_vm6 = vcmp.eq.s32.totalorder %v11926_v53, %v10178_v34  ;;  %vm1546_vm8 = vcmp.eq.s32.totalorder %v11926_v53, %v10198_v44 }
 0x2e6   : > { %14891 = vst [vmem:[#allocation313_spill] sm:$0xff] %v11926_v53  ;;  %vm1547_vm9 = vcmp.eq.s32.totalorder %v11926_v53, %v10193_v42 }
 0x2e7   : > { %v11859_v12 = vpop.f32.mrf.mxu3 }
 0x2e9   : > { %v11863_v22 = vpop.f32.mrf.mxu0 }
 0x2ea   : > { %14881 = vst [vmem:[#allocation303_spill] sm:$0xff] %v11863_v22  ;;  %v11902_v59 = vpop.f32.mrf.mxu2 }
 0x2eb   : > { %14887 = vst [vmem:[#allocation309_spill] sm:$0xff] %v11902_v59 }
 0x2ec   : > { %8797 = vmatmul.msk.f32.gmra.mxu0 %vm1533_vm10, %v14559_v36  ;;  %9086 = vmatmul.msk.f32.gmra.mxu3 %vm1667_vm11, %v14559_v36  ;;  %vm1683_vm11 = vcmp.eq.s32.totalorder %v10486_v0, %v10193_v42 }
 0x2ed   : > { %8925 = vmatmul.msk.f32.gmra.mxu1 %vm1534_vm12, %v14559_v36  ;;  %9053 = vmatmul.msk.f32.gmra.mxu2 %vm1535_vm13, %v14559_v36 }
 0x2ef   : > { %v11881_v63 = vpop.f32.mrf.mxu3 }
 0x2f1   : > { %v11885_v22 = vpop.f32.mrf.mxu0 }
 0x2f2   : > { %14885 = vst [vmem:[#allocation307_spill] sm:$0xff] %v11885_v22  ;;  %v455_v22 = vld [vmem:[%s10003_s22 + $0x1b8] sm:$0xff]  ;;  %v11928_v27 = vpop.f32.mrf.mxu2 }
 0x2f3   : > { %3984 = vmatpush.msrb.mxu3 %v455_v22  ;;  %v11922_v22 = vpop.f32.mrf.mxu1  ;;  %14892 = vst [vmem:[#allocation314_spill] sm:$0xff] %v11928_v27  ;;  %v11947_v27 = vpop.permute.xlu2 %1088 }
 0x2f4   : > { %8798 = vmatmul.msk.f32.gmra.mxu0 %vm1537_vm14, %v14559_v36  ;;  %9087 = vmatmul.msk.f32.gmra.mxu3 %vm1671_vm15, %v14559_v36  ;;  %14890 = vst [vmem:[#allocation312_spill] sm:$0xff] %v11922_v22  ;;  %vm1549_vm10 = vcmp.eq.s32.totalorder %v11947_v27, %v10178_v34  ;;  %vm1550_vm12 = vcmp.eq.s32.totalorder %v11947_v27, %v10198_v44 }
 0x2f5   : > { %8926 = vmatmul.msk.f32.gmra.mxu1 %vm1538_vm0, %v14559_v36  ;;  %9054 = vmatmul.msk.f32.gmra.mxu2 %vm1539_vm1, %v14559_v36  ;;  %14894 = vst [vmem:[#allocation316_spill] sm:$0xff] %v11947_v27  ;;  %vm1551_vm13 = vcmp.eq.s32.totalorder %v11947_v27, %v10193_v42  ;;  %vm1687_vm15 = vcmp.eq.s32.totalorder %v10505_v9, %v10193_v42 }
 0x2f6   : > { %v3480_v9 = vadd.f32 %v11286_v57, %v10524_v18 }
 0x2f7   : > { %v11904_v37 = vpop.f32.mrf.mxu3 }
 0x2f9   : > { %v11908_v2 = vpop.f32.mrf.mxu0 }
 0x2fa   : > { %14889 = vst [vmem:[#allocation311_spill] sm:$0xff] %v11908_v2  ;;  %v11953_v61 = vpop.f32.mrf.mxu2 }
 0x2fb   : > { %v11949_v52 = vpop.f32.mrf.mxu1  ;;  %14897 = vst [vmem:[#allocation319_spill] sm:$0xff] %v11953_v61  ;;  %v11992_v61 = vpop.permute.xlu1 %1094 }
 0x2fc   : > { %8799 = vmatmul.msk.f32.gmra.mxu0 %vm1541_vm2, %v14559_v36  ;;  %9088 = vmatmul.msk.f32.gmra.mxu3 %vm1675_vm3, %v14559_v36  ;;  %14895 = vst [vmem:[#allocation317_spill] sm:$0xff] %v11949_v52  ;;  %vm1557_vm2 = vcmp.eq.s32.totalorder %v11992_v61, %v10178_v34  ;;  %vm1691_vm3 = vcmp.eq.s32.totalorder %v10526_v19, %v10193_v42  ;;  %v12016_v18 = vpop.permute.xlu2 %1097 }
 0x2fd   : > { %8927 = vmatmul.msk.f32.gmra.mxu1 %vm1542_vm4, %v14559_v36  ;;  %9055 = vmatmul.msk.f32.gmra.mxu2 %vm1543_vm5, %v14559_v36  ;;  %vm1558_vm4 = vcmp.eq.s32.totalorder %v11992_v61, %v10198_v44  ;;  %vm1559_vm5 = vcmp.eq.s32.totalorder %v11992_v61, %v10193_v42  ;;  %14902 = vst [vmem:[#allocation324_spill] sm:$0xff] %v12016_v18 }
 0x2ff   : > { %v11924_v2 = vpop.f32.mrf.mxu3 }
 0x301   : > { %v11930_v59 = vpop.f32.mrf.mxu0 }
 0x302   : > { %14893 = vst [vmem:[#allocation315_spill] sm:$0xff] %v11930_v59  ;;  %v454_v59 = vld [vmem:[%s10003_s22 + $0x1b0] sm:$0xff]  ;;  %v11979_v27 = vpop.f32.mrf.mxu2 }
 0x303   : > { %3985 = vmatpush.msrb.mxu3 %v454_v59  ;;  %v11973_v53 = vpop.f32.mrf.mxu1  ;;  %14900 = vst [vmem:[#allocation322_spill] sm:$0xff] %v11979_v27 }
 0x304   : > { %8800 = vmatmul.msk.f32.gmra.mxu0 %vm1545_vm6, %v14559_v36  ;;  %9089 = vmatmul.msk.f32.gmra.mxu3 %vm1679_vm7, %v14559_v36  ;;  %14899 = vst [vmem:[#allocation321_spill] sm:$0xff] %v11973_v53  ;;  %vm1561_vm6 = vcmp.eq.s32.totalorder %v12016_v18, %v10178_v34  ;;  %vm1695_vm7 = vcmp.eq.s32.totalorder %v10551_v38, %v10193_v42 }
 0x305   : > { %8928 = vmatmul.msk.f32.gmra.mxu1 %vm1546_vm8, %v14559_v36  ;;  %9056 = vmatmul.msk.f32.gmra.mxu2 %vm1547_vm9, %v14559_v36  ;;  %vm1562_vm8 = vcmp.eq.s32.totalorder %v12016_v18, %v10198_v44  ;;  %vm1563_vm9 = vcmp.eq.s32.totalorder %v12016_v18, %v10193_v42 }
 0x307   : > { %v11945_v17 = vpop.f32.mrf.mxu3 }
 0x309   : > { %v11951_v22 = vpop.f32.mrf.mxu0 }
 0x30a   : > { %14896 = vst [vmem:[#allocation318_spill] sm:$0xff] %v11951_v22  ;;  %v11969_v22 = vpop.permute.xlu0 %1091 }
 0x30b   : > { %vm1553_vm14 = vcmp.eq.s32.totalorder %v11969_v22, %v10178_v34  ;;  %vm1554_vm0 = vcmp.eq.s32.totalorder %v11969_v22, %v10198_v44  ;;  %vm1555_vm1 = vcmp.eq.s32.totalorder %v11969_v22, %v10193_v42  ;;  %v12008_v57 = vpop.f32.mrf.mxu1 }
 0x30c   : > { %8801 = vmatmul.msk.f32.gmra.mxu0 %vm1549_vm10, %v14559_v36  ;;  %9090 = vmatmul.msk.f32.gmra.mxu3 %vm1683_vm11, %v14559_v36  ;;  %vm1699_vm11 = vcmp.eq.s32.totalorder %v10578_v58, %v10193_v42 }
 0x30d   : > { %8929 = vmatmul.msk.f32.gmra.mxu1 %vm1550_vm12, %v14559_v36  ;;  %9057 = vmatmul.msk.f32.gmra.mxu2 %vm1551_vm13, %v14559_v36 }
 0x30f   : > { %v11967_v59 = vpop.f32.mrf.mxu3 }
 0x311   : > { %v11971_v0 = vpop.f32.mrf.mxu0 }
 0x312   : > { %14898 = vst [vmem:[#allocation320_spill] sm:$0xff] %v11971_v0  ;;  %v453_v0 = vld [vmem:[%s10003_s22 + $0x1a8] sm:$0xff]  ;;  %v12039_v38 = vpop.permute.xlu0 %1100 }
 0x313   : > { %3986 = vmatpush.msrb.mxu3 %v453_v0  ;;  %v12014_v0 = vpop.f32.mrf.mxu2  ;;  %vm1565_vm10 = vcmp.eq.s32.totalorder %v12039_v38, %v10178_v34  ;;  %vm1566_vm12 = vcmp.eq.s32.totalorder %v12039_v38, %v10198_v44  ;;  %vm1567_vm13 = vcmp.eq.s32.totalorder %v12039_v38, %v10193_v42 }
 0x314   : > { %8802 = vmatmul.msk.f32.gmra.mxu0 %vm1553_vm14, %v14559_v36  ;;  %9091 = vmatmul.msk.f32.gmra.mxu3 %vm1687_vm15, %v14559_v36  ;;  %vm1703_vm15 = vcmp.eq.s32.totalorder %v10605_v25, %v10193_v42 }
 0x315   : > { %8930 = vmatmul.msk.f32.gmra.mxu1 %vm1554_vm0, %v14559_v36  ;;  %9058 = vmatmul.msk.f32.gmra.mxu2 %vm1555_vm1, %v14559_v36 }
 0x317   : > { %v3880_v27 = vpop.f32.mrf.mxu3 }
 0x318   : > { %v11994_v53 = vadd.f32 %v3880_v27, %v3480_v9  ;;  %v3483_v27 = vadd.f32 %v11308_v60, %v10549_v30  ;;  %v452_v60 = vld [vmem:[%s10003_s22 + $0x1a0] sm:$0xff]  ;;  %v3486_v30 = vadd.f32 %v11330_v1, %v10576_v55  ;;  %v3489_v1 = vadd.f32 %v11352_v54, %v10603_v24  ;;  %v451_v54 = vld [vmem:[%s10003_s22 + $0x198] sm:$0xff] }
 0x319   : > { %v11996_v52 = vpop.f32.mrf.mxu0  ;;  %3987 = vmatpush.msrb.mxu3 %v452_v60  ;;  %v12061_v60 = vpop.permute.xlu1 %1103  ;;  %v3492_v24 = vadd.f32 %v11374_v6, %v10630_v33  ;;  %v3495_v6 = vadd.f32 %v11396_v51, %v10657_v14  ;;  %v450_v14 = vld [vmem:[%s10003_s22 + $0x190] sm:$0xff] }
 0x31a   : > { %14901 = vst [vmem:[#allocation323_spill] sm:$0xff] %v11994_v53  ;;  %vm1569_vm14 = vcmp.eq.s32.totalorder %v12061_v60, %v10178_v34  ;;  %vm1570_vm0 = vcmp.eq.s32.totalorder %v12061_v60, %v10198_v44  ;;  %vm1571_vm1 = vcmp.eq.s32.totalorder %v12061_v60, %v10193_v42 }
 0x31b   : > { %14906 = vst [vmem:[#allocation328_spill] sm:$0xff] %v12061_v60  ;;  %3988 = vmatpush.msrb.mxu3 %v451_v54  ;;  %v14910_v60 = vmov 1.0   ;;  %v12110_v54 = vpop.permute.xlu0 %1109 }
 0x31c   : > { %8803 = vmatmul.msk.f32.gmra.mxu0 %vm1557_vm2, %v14559_v36  ;;  %9092 = vmatmul.msk.f32.gmra.mxu3 %vm1691_vm3, %v14559_v36  ;;  %vm1707_vm3 = vcmp.eq.s32.totalorder %v10632_v31, %v10193_v42  ;;  %14911 = vst [vmem:[#allocation332_spill] sm:$0xff] %v12110_v54 }
 0x31d   : > { %8931 = vmatmul.msk.f32.gmra.mxu1 %vm1558_vm4, %v14559_v36  ;;  %9059 = vmatmul.msk.f32.gmra.mxu2 %vm1559_vm5, %v14559_v36 }
 0x31e   : > { %3989 = vmatpush.msrb.mxu3 %v450_v14 }
 0x31f   : > { %v3883_v9 = vpop.f32.mrf.mxu3 }
 0x320   : > { %v12018_v19 = vadd.f32 %v3883_v9, %v3483_v27  ;;  %v12037_v27 = vpop.f32.mrf.mxu1 }
 0x321   : > { %v12020_v53 = vpop.f32.mrf.mxu0 }
 0x322   : > { %14903 = vst [vmem:[#allocation325_spill] sm:$0xff] %v12018_v19  ;;  %v12041_v19 = vpop.f32.mrf.mxu2 }
 0x323   : > { %14904 = vst [vmem:[#allocation326_spill] sm:$0xff] %v12020_v53 }
 0x324   : > { %8804 = vmatmul.msk.f32.gmra.mxu0 %vm1561_vm6, %v14559_v36  ;;  %9093 = vmatmul.msk.f32.gmra.mxu3 %vm1695_vm7, %v14559_v36  ;;  %vm1577_vm6 = vcmp.eq.s32.totalorder %v12110_v54, %v10178_v34  ;;  %vm1711_vm7 = vcmp.eq.s32.totalorder %v10659_v28, %v10193_v42 }
 0x325   : > { %8932 = vmatmul.msk.f32.gmra.mxu1 %vm1562_vm8, %v14559_v36  ;;  %9060 = vmatmul.msk.f32.gmra.mxu2 %vm1563_vm9, %v14559_v36  ;;  %vm1578_vm8 = vcmp.eq.s32.totalorder %v12110_v54, %v10198_v44  ;;  %vm1579_vm9 = vcmp.eq.s32.totalorder %v12110_v54, %v10193_v42 }
 0x327   : > { %v3886_v9 = vpop.f32.mrf.mxu3 }
 0x328   : > { %v12043_v53 = vadd.f32 %v3886_v9, %v3486_v30  ;;  %v12065_v9 = vpop.f32.mrf.mxu1 }
 0x329   : > { %v12045_v18 = vpop.f32.mrf.mxu0 }
 0x32a   : > { %14905 = vst [vmem:[#allocation327_spill] sm:$0xff] %v12043_v53  ;;  %v12069_v53 = vpop.f32.mrf.mxu2 }
 0x32c   : > { %8805 = vmatmul.msk.f32.gmra.mxu0 %vm1565_vm10, %v14559_v36  ;;  %9094 = vmatmul.msk.f32.gmra.mxu3 %vm1699_vm11, %v14559_v36  ;;  %vm1715_vm11 = vcmp.eq.s32.totalorder %v10686_v3, %v10193_v42 }
 0x32d   : > { %8933 = vmatmul.msk.f32.gmra.mxu1 %vm1566_vm12, %v14559_v36  ;;  %9061 = vmatmul.msk.f32.gmra.mxu2 %vm1567_vm13, %v14559_v36 }
 0x32f   : > { %v3889_v55 = vpop.f32.mrf.mxu3 }
 0x330   : > { %v12063_v30 = vadd.f32 %v3889_v55, %v3489_v1  ;;  %v12086_v55 = vpop.permute.xlu2 %1106 }
 0x331   : > { %v12067_v58 = vpop.f32.mrf.mxu0  ;;  %vm1573_vm2 = vcmp.eq.s32.totalorder %v12086_v55, %v10178_v34  ;;  %vm1574_vm4 = vcmp.eq.s32.totalorder %v12086_v55, %v10198_v44  ;;  %vm1575_vm5 = vcmp.eq.s32.totalorder %v12086_v55, %v10193_v42 }
 0x332   : > { %14907 = vst [vmem:[#allocation329_spill] sm:$0xff] %v12063_v30 }
 0x333   : > { %14908 = vst [vmem:[#allocation330_spill] sm:$0xff] %v12067_v58  ;;  %v12092_v58 = vpop.f32.mrf.mxu1 }
 0x334   : > { %8806 = vmatmul.msk.f32.gmra.mxu0 %vm1569_vm14, %v14559_v36  ;;  %9095 = vmatmul.msk.f32.gmra.mxu3 %vm1703_vm15, %v14559_v36  ;;  %vm1719_vm15 = vcmp.eq.s32.totalorder %v10713_v62, %v10193_v42 }
 0x335   : > { %8934 = vmatmul.msk.f32.gmra.mxu1 %vm1570_vm0, %v14559_v36  ;;  %9062 = vmatmul.msk.f32.gmra.mxu2 %vm1571_vm1, %v14559_v36  ;;  %v12098_v36 = vpop.f32.mrf.mxu2 }
 0x337   : > { %v3892_v1 = vpop.f32.mrf.mxu3 }
 0x338   : > { %v12088_v25 = vadd.f32 %v3892_v1, %v3492_v24  ;;  %v12157_v14 = vpop.permute.xlu2 %1115 }
 0x339   : > { %v12090_v30 = vpop.f32.mrf.mxu0  ;;  %14917 = vst [vmem:[#allocation338_spill] sm:$0xff] %v12157_v14  ;;  %vm1585_vm14 = vcmp.eq.s32.totalorder %v12157_v14, %v10178_v34  ;;  %vm1586_vm0 = vcmp.eq.s32.totalorder %v12157_v14, %v10198_v44  ;;  %vm1587_vm1 = vcmp.eq.s32.totalorder %v12157_v14, %v10193_v42 }
 0x33a   : > { %14909 = vst [vmem:[#allocation331_spill] sm:$0xff] %v12088_v25 }
 0x33b   : > { %v12126_v51 = vpop.f32.mrf.mxu1 }
 0x33c   : > { %8807 = vmatmul.msk.f32.gmra.mxu0 %vm1573_vm2, %v14910_v60  ;;  %9096 = vmatmul.msk.f32.gmra.mxu3 %vm1707_vm3, %v14910_v60  ;;  %vm1723_vm3 = vcmp.eq.s32.totalorder %v10740_v47, %v10193_v42 }
 0x33d   : > { %8935 = vmatmul.msk.f32.gmra.mxu1 %vm1574_vm4, %v14910_v60  ;;  %9063 = vmatmul.msk.f32.gmra.mxu2 %vm1575_vm5, %v14910_v60 }
 0x33f   : > { %v3895_v33 = vpop.f32.mrf.mxu3 }
 0x340   : > { %v12112_v24 = vadd.f32 %v3895_v33, %v3495_v6  ;;  %v3498_v6 = vadd.f32 %v11418_v11, %v10684_v13  ;;  %v12133_v33 = vpop.f32.mrf.mxu2  ;;  %v3501_v11 = vadd.f32 %v11440_v46, %v10711_v4  ;;  %v449_v46 = vld [vmem:[%s10003_s22 + $0x188] sm:$0xff]  ;;  %v3504_v4 = vadd.f32 %v11462_v45, %v10738_v43 }
 0x341   : > { %v12114_v1 = vpop.f32.mrf.mxu0  ;;  %3990 = vmatpush.msrb.mxu3 %v449_v46  ;;  %v3507_v45 = vadd.f32 %v11484_v16, %v10765_v48  ;;  %v448_v16 = vld [vmem:[%s10003_s22 + $0x180] sm:$0xff]  ;;  %v3510_v48 = vadd.f32 %v11504_v15, %v10792_v29  ;;  %s9622_s22 = sshll.u32 %s9835_s28, 5 }
 0x342   : > { %14912 = vst [vmem:[#allocation333_spill] sm:$0xff] %v12112_v24  ;;  %v12135_v24 = vpop.permute.xlu1 %1112  ;;  %v14929_v29 = vld [vmem:[#allocation93_spill] sm:$0xff]  ;;  %s8058_s21 = sadd.s32 %s9622_s22, %s9621_s20 }
 0x343   : > { %14913 = vst [vmem:[#allocation334_spill] sm:$0xff] %v12114_v1  ;;  %vm1581_vm10 = vcmp.eq.s32.totalorder %v12135_v24, %v10178_v34  ;;  %vm1582_vm12 = vcmp.eq.s32.totalorder %v12135_v24, %v10198_v44  ;;  %vm1583_vm13 = vcmp.eq.s32.totalorder %v12135_v24, %v10193_v42  ;;  %3991 = vmatpush.msrb.mxu3 %v448_v16 }
 0x344   : > { %8808 = vmatmul.msk.f32.gmra.mxu0 %vm1577_vm6, %v14910_v60  ;;  %9097 = vmatmul.msk.f32.gmra.mxu3 %vm1711_vm7, %v14910_v60  ;;  %14914 = vst [vmem:[#allocation335_spill] sm:$0xff] %v12135_v24  ;;  %vm1727_vm7 = vcmp.eq.s32.totalorder %v10767_v39, %v10193_v42  ;;  %v3513_v16 = vadd.f32 %v11526_v5, %v14929_v29  ;;  %v14935_v5 = vld [vmem:[#allocation99_spill] sm:$0xff]  ;;  %v14936_v29 = vld [vmem:[#allocation248_spill] sm:$0xff] }
 0x345   : > { %8936 = vmatmul.msk.f32.gmra.mxu1 %vm1578_vm8, %v14910_v60  ;;  %9064 = vmatmul.msk.f32.gmra.mxu2 %vm1579_vm9, %v14910_v60 }
 0x347   : > { %v3898_v28 = vpop.f32.mrf.mxu3 }
 0x348   : > { %v12137_v31 = vadd.f32 %v3898_v28, %v3498_v6  ;;  %v12155_v28 = vpop.f32.mrf.mxu1  ;;  %v12159_v6 = vpop.f32.mrf.mxu2 }
 0x349   : > { %v12139_v25 = vpop.f32.mrf.mxu0 }
 0x34a   : > { %14915 = vst [vmem:[#allocation336_spill] sm:$0xff] %v12137_v31  ;;  %v12204_v46 = vpop.permute.xlu1 %1121 }
 0x34b   : > { %14916 = vst [vmem:[#allocation337_spill] sm:$0xff] %v12139_v25  ;;  %vm1593_vm6 = vcmp.eq.s32.totalorder %v12204_v46, %v10178_v34  ;;  %vm1594_vm8 = vcmp.eq.s32.totalorder %v12204_v46, %v10198_v44  ;;  %vm1595_vm9 = vcmp.eq.s32.totalorder %v12204_v46, %v10193_v42 }
 0x34c   : > { %8809 = vmatmul.msk.f32.gmra.mxu0 %vm1581_vm10, %v14910_v60  ;;  %9098 = vmatmul.msk.f32.gmra.mxu3 %vm1715_vm11, %v14910_v60  ;;  %14923 = vst [vmem:[#allocation344_spill] sm:$0xff] %v12204_v46  ;;  %vm1731_vm11 = vcmp.eq.s32.totalorder %v10794_v20, %v10193_v42 }
 0x34d   : > { %8937 = vmatmul.msk.f32.gmra.mxu1 %vm1582_vm12, %v14910_v60  ;;  %9065 = vmatmul.msk.f32.gmra.mxu2 %vm1583_vm13, %v14910_v60 }
 0x34f   : > { %v3901_v13 = vpop.f32.mrf.mxu3 }
 0x350   : > { %v12161_v3 = vadd.f32 %v3901_v13, %v3501_v11  ;;  %v12180_v13 = vpop.permute.xlu0 %1118  ;;  %v12188_v14 = vpop.f32.mrf.mxu2 }
 0x351   : > { %v12163_v31 = vpop.f32.mrf.mxu0  ;;  %14920 = vst [vmem:[#allocation341_spill] sm:$0xff] %v12180_v13  ;;  %vm1589_vm2 = vcmp.eq.s32.totalorder %v12180_v13, %v10178_v34  ;;  %vm1590_vm4 = vcmp.eq.s32.totalorder %v12180_v13, %v10198_v44  ;;  %vm1591_vm5 = vcmp.eq.s32.totalorder %v12180_v13, %v10193_v42 }
 0x352   : > { %14918 = vst [vmem:[#allocation339_spill] sm:$0xff] %v12161_v3  ;;  %v12184_v3 = vpop.f32.mrf.mxu1 }
 0x353   : > { %14919 = vst [vmem:[#allocation340_spill] sm:$0xff] %v12163_v31 }
 0x354   : > { %8810 = vmatmul.msk.f32.gmra.mxu0 %vm1585_vm14, %v14910_v60  ;;  %9099 = vmatmul.msk.f32.gmra.mxu3 %vm1719_vm15, %v14910_v60 }
 0x355   : > { %8938 = vmatmul.msk.f32.gmra.mxu1 %vm1586_vm0, %v14910_v60  ;;  %9066 = vmatmul.msk.f32.gmra.mxu2 %vm1587_vm1, %v14910_v60 }
 0x357   : > { %v3904_v11 = vpop.f32.mrf.mxu3 }
 0x358   : > { %v12182_v62 = vadd.f32 %v3904_v11, %v3504_v4  ;;  %v12253_v20 = vpop.permute.xlu0 %1127 }
 0x359   : > { %v12186_v31 = vpop.f32.mrf.mxu0  ;;  %14931 = vst [vmem:[#allocation350_spill] sm:$0xff] %v12253_v20  ;;  %vm1601_vm14 = vcmp.eq.s32.totalorder %v12253_v20, %v10178_v34  ;;  %vm1602_vm0 = vcmp.eq.s32.totalorder %v12253_v20, %v10198_v44  ;;  %vm1603_vm1 = vcmp.eq.s32.totalorder %v12253_v20, %v10193_v42  ;;  %v14941_v20 = vld [vmem:[#allocation100_spill] sm:$0xff] }
 0x35a   : > { %14921 = vst [vmem:[#allocation342_spill] sm:$0xff] %v12182_v62  ;;  %v12210_v47 = vpop.f32.mrf.mxu1  ;;  %v12216_v62 = vpop.f32.mrf.mxu2 }
 0x35b   : > { %14922 = vst [vmem:[#allocation343_spill] sm:$0xff] %v12186_v31 }
 0x35c   : > { %8811 = vmatmul.msk.f32.gmra.mxu0 %vm1589_vm2, %v14910_v60  ;;  %9100 = vmatmul.msk.f32.gmra.mxu3 %vm1723_vm3, %v14910_v60  ;;  %vm1739_vm3 = vcmp.eq.s32.totalorder %v14941_v20, %v10193_v42 }
 0x35d   : > { %8939 = vmatmul.msk.f32.gmra.mxu1 %vm1590_vm4, %v14910_v60  ;;  %9067 = vmatmul.msk.f32.gmra.mxu2 %vm1591_vm5, %v14910_v60 }
 0x35f   : > { %v3907_v43 = vpop.f32.mrf.mxu3 }
 0x360   : > { %v12206_v4 = vadd.f32 %v3907_v43, %v3507_v45  ;;  %v12229_v43 = vpop.permute.xlu2 %1124 }
 0x361   : > { %v12208_v11 = vpop.f32.mrf.mxu0  ;;  %14926 = vst [vmem:[#allocation347_spill] sm:$0xff] %v12229_v43  ;;  %vm1597_vm10 = vcmp.eq.s32.totalorder %v12229_v43, %v10178_v34  ;;  %vm1598_vm12 = vcmp.eq.s32.totalorder %v12229_v43, %v10198_v44  ;;  %vm1599_vm13 = vcmp.eq.s32.totalorder %v12229_v43, %v10193_v42  ;;  %v14934_v43 = vld [vmem:[#allocation94_spill] sm:$0xff] }
 0x362   : > { %14924 = vst [vmem:[#allocation345_spill] sm:$0xff] %v12206_v4  ;;  %v12245_v15 = vpop.f32.mrf.mxu1  ;;  %vm1735_vm15 = vcmp.eq.s32.totalorder %v14934_v43, %v10193_v42 }
 0x363   : > { %14925 = vst [vmem:[#allocation346_spill] sm:$0xff] %v12208_v11 }
 0x364   : > { %8812 = vmatmul.msk.f32.gmra.mxu0 %vm1593_vm6, %v14910_v60  ;;  %9101 = vmatmul.msk.f32.gmra.mxu3 %vm1727_vm7, %v14910_v60 }
 0x365   : > { %8940 = vmatmul.msk.f32.gmra.mxu1 %vm1594_vm8, %v14910_v60  ;;  %9068 = vmatmul.msk.f32.gmra.mxu2 %vm1595_vm9, %v14910_v60 }
 0x367   : > { %v3910_v45 = vpop.f32.mrf.mxu3 }
 0x368   : > { %v12231_v39 = vadd.f32 %v3910_v45, %v3510_v48  ;;  %v12251_v48 = vpop.f32.mrf.mxu2 }
 0x369   : > { %v12233_v4 = vpop.f32.mrf.mxu0  ;;  %14930 = vst [vmem:[#allocation93_spill] sm:$0xff] %v12251_v48 }
 0x36a   : > { %14927 = vst [vmem:[#allocation348_spill] sm:$0xff] %v12231_v39 }
 0x36b   : > { %14928 = vst [vmem:[#allocation349_spill] sm:$0xff] %v12233_v4 }
 0x36c   : > { %8813 = vmatmul.msk.f32.gmra.mxu0 %vm1597_vm10, %v14910_v60  ;;  %9102 = vmatmul.msk.f32.gmra.mxu3 %vm1731_vm11, %v14910_v60  ;;  %vm1747_vm11 = vcmp.eq.s32.totalorder %v10888_v26, %v10193_v42 }
 0x36d   : > { %8941 = vmatmul.msk.f32.gmra.mxu1 %vm1598_vm12, %v14910_v60  ;;  %9069 = vmatmul.msk.f32.gmra.mxu2 %vm1599_vm13, %v14910_v60 }
 0x36f   : > { %v3913_v45 = vpop.f32.mrf.mxu3 }
 0x370   : > { %v12255_v39 = vadd.f32 %v3913_v45, %v3513_v16  ;;  %v3516_v16 = vadd.f32 %v14936_v29, %v14935_v5  ;;  %v12273_v45 = vpop.f32.mrf.mxu1 }
 0x371   : > { %v12257_v4 = vpop.f32.mrf.mxu0 }
 0x372   : > { %14932 = vst [vmem:[#allocation351_spill] sm:$0xff] %v12255_v39  ;;  %v12275_v39 = vpop.permute.xlu1 %1130 }
 0x373   : > { %14933 = vst [vmem:[#allocation352_spill] sm:$0xff] %v12257_v4  ;;  %v12277_v4 = vpop.f32.mrf.mxu2  ;;  %vm1605_vm2 = vcmp.eq.s32.totalorder %v12275_v39, %v10178_v34  ;;  %vm1606_vm4 = vcmp.eq.s32.totalorder %v12275_v39, %v10198_v44  ;;  %vm1607_vm5 = vcmp.eq.s32.totalorder %v12275_v39, %v10193_v42 }
 0x374   : > { %8814 = vmatmul.msk.f32.gmra.mxu0 %vm1601_vm14, %v14910_v60  ;;  %9103 = vmatmul.msk.f32.gmra.mxu3 %vm1735_vm15, %v14910_v60  ;;  %14937 = vst [vmem:[#allocation99_spill] sm:$0xff] %v12275_v39  ;;  %v14948_v39 = vld [vmem:[#allocation106_spill] sm:$0xff] }
 0x375   : > { %8942 = vmatmul.msk.f32.gmra.mxu1 %vm1602_vm0, %v14910_v60  ;;  %9070 = vmatmul.msk.f32.gmra.mxu2 %vm1603_vm1, %v14910_v60  ;;  %14938 = vst [vmem:[#allocation248_spill] sm:$0xff] %v12277_v4  ;;  %vm1743_vm7 = vcmp.eq.s32.totalorder %v14948_v39, %v10193_v42 }
 0x377   : > { %v3916_v43 = vpop.f32.mrf.mxu3 }
 0x378   : > { %v12279_v11 = vadd.f32 %v3916_v43, %v3516_v16  ;;  %v14942_v43 = vld [vmem:[#allocation105_spill] sm:$0xff]  ;;  %v12297_v16 = vpop.permute.xlu2 %1133 }
 0x379   : > { %v12281_v46 = vpop.f32.mrf.mxu0  ;;  %v3519_v5 = vadd.f32 %v11574_v21, %v14942_v43  ;;  %14943 = vst [vmem:[#allocation105_spill] sm:$0xff] %v12297_v16  ;;  %vm1609_vm6 = vcmp.eq.s32.totalorder %v12297_v16, %v10178_v34  ;;  %vm1610_vm8 = vcmp.eq.s32.totalorder %v12297_v16, %v10198_v44  ;;  %vm1611_vm9 = vcmp.eq.s32.totalorder %v12297_v16, %v10193_v42  ;;  %v14949_v21 = vld [vmem:[#allocation111_spill] sm:$0xff] }
 0x37a   : > { %14939 = vst [vmem:[#allocation353_spill] sm:$0xff] %v12279_v11  ;;  %v12301_v11 = vpop.f32.mrf.mxu1  ;;  %v3522_v43 = vadd.f32 %v11597_v49, %v14949_v21  ;;  %v14955_v49 = vld [vmem:[#allocation116_spill] sm:$0xff]  ;;  %v12345_v26 = vpop.permute.xlu1 %1139 }
 0x37b   : > { %14940 = vst [vmem:[#allocation354_spill] sm:$0xff] %v12281_v46  ;;  %v12305_v31 = vpop.f32.mrf.mxu2  ;;  %v14956_v21 = vld [vmem:[#allocation260_spill] sm:$0xff]  ;;  %vm1617_vm15 = vcmp.eq.s32.totalorder %v12345_v26, %v10178_v34  ;;  %vm1618_vm0 = vcmp.eq.s32.totalorder %v12345_v26, %v10198_v44  ;;  %vm1619_vm1 = vcmp.eq.s32.totalorder %v12345_v26, %v10193_v42 }
 0x37c   : > { %8815 = vmatmul.msk.f32.gmra.mxu0 %vm1605_vm2, %v14910_v60  ;;  %9104 = vmatmul.msk.f32.gmra.mxu3 %vm1739_vm3, %v14910_v60  ;;  %14945 = vst [vmem:[#allocation356_spill] sm:$0xff] %v12301_v11  ;;  %vm4378_vm2 = vcmask 31744  }
 0x37d   : > { %8943 = vmatmul.msk.f32.gmra.mxu1 %vm1606_vm4, %v14910_v60  ;;  %9071 = vmatmul.msk.f32.gmra.mxu2 %vm1607_vm5, %v14910_v60  ;;  %14947 = vst [vmem:[#allocation358_spill] sm:$0xff] %v12305_v31 }
 0x37e   : > { %14957 = vst [vmem:[#allocation116_spill] sm:$0xff] %v12345_v26 }
 0x37f   : > { %v3919_v29 = vpop.f32.mrf.mxu3 }
 0x380   : > { %v12299_v20 = vadd.f32 %v3919_v29, %v3519_v5  ;;  %v12321_v29 = vpop.permute.xlu0 %1136 }
 0x381   : > { %v12303_v46 = vpop.f32.mrf.mxu0  ;;  %14950 = vst [vmem:[#allocation111_spill] sm:$0xff] %v12321_v29  ;;  %vm1613_vm10 = vcmp.eq.s32.totalorder %v12321_v29, %v10178_v34  ;;  %vm1614_vm12 = vcmp.eq.s32.totalorder %v12321_v29, %v10198_v44  ;;  %vm1615_vm13 = vcmp.eq.s32.totalorder %v12321_v29, %v10193_v42  ;;  %v14960_v29 = vld [vmem:[#allocation7_spill] sm:$0xff] }
 0x382   : > { %14944 = vst [vmem:[#allocation355_spill] sm:$0xff] %v12299_v20 }
 0x383   : > { %14946 = vst [vmem:[#allocation357_spill] sm:$0xff] %v12303_v46  ;;  %v12327_v46 = vpop.f32.mrf.mxu1  ;;  %v12333_v16 = vpop.f32.mrf.mxu2 }
 0x384   : > { %8816 = vmatmul.msk.f32.gmra.mxu0 %vm1609_vm6, %v14910_v60  ;;  %9105 = vmatmul.msk.f32.gmra.mxu3 %vm1743_vm7, %v14910_v60  ;;  %14953 = vst [vmem:[#allocation361_spill] sm:$0xff] %v12327_v46 }
 0x385   : > { %8944 = vmatmul.msk.f32.gmra.mxu1 %vm1610_vm8, %v14910_v60  ;;  %9072 = vmatmul.msk.f32.gmra.mxu2 %vm1611_vm9, %v14910_v60  ;;  %14954 = vst [vmem:[#allocation362_spill] sm:$0xff] %v12333_v16 }
 0x387   : > { %v3922_v5 = vpop.f32.mrf.mxu3 }
 0x388   : > { %v12323_v39 = vadd.f32 %v3922_v5, %v3522_v43  ;;  %v3525_v43 = vadd.f32 %v14956_v21, %v14955_v49 }
 0x389   : > { %v12325_v20 = vpop.f32.mrf.mxu0 }
 0x38a   : > { %14951 = vst [vmem:[#allocation359_spill] sm:$0xff] %v12323_v39 }
 0x38b   : > { %14952 = vst [vmem:[#allocation360_spill] sm:$0xff] %v12325_v20  ;;  %v12350_v20 = vadd.s32 384, %v10178_v34  ;;  %v12364_v49 = vpop.f32.mrf.mxu1  ;;  %v14962_v34 = vld [vmem:[#allocation121_spill] sm:$0xff] }
 0x38c   : > { %8817 = vmatmul.msk.f32.gmra.mxu0 %vm1613_vm10, %v14910_v60  ;;  %9106 = vmatmul.msk.f32.gmra.mxu3 %vm1747_vm11, %v14910_v60  ;;  %14961 = vst [vmem:[#allocation7_spill] sm:$0xff] %v12364_v49  ;;  %v3528_v44 = vadd.f32 %v11640_v35, %v14962_v34 }
 0x38d   : > { %8945 = vmatmul.msk.f32.gmra.mxu1 %vm1614_vm12, %v14910_v60  ;;  %9073 = vmatmul.msk.f32.gmra.mxu2 %vm1615_vm13, %v14910_v60  ;;  %vm1240_vm14 = vcmp.eq.s32.totalorder %v14960_v29, %v12350_v20  ;;  %v12376_v29 = vpop.f32.mrf.mxu2 }
 0x38e   : > { %14963 = vst [vmem:[#allocation121_spill] sm:$0xff] %v12376_v29 }
 0x38f   : > { %v3925_v5 = vpop.f32.mrf.mxu3 }
 0x390   : > { %v12347_v39 = vadd.f32 %v3925_v5, %v3525_v43  ;;  %v592_v5 = vld [vmem:[%s12372_s23] sm:$0xff] }
 0x391   : > { %v12352_v16 = vpop.f32.mrf.mxu0 }
 0x392   : > { %14958 = vst [vmem:[#allocation260_spill] sm:$0xff] %v12347_v39  ;;  %v14966_v39 = vld [vmem:[#allocation9_spill] sm:$0xff] }
 0x393   : > { %14959 = vst [vmem:[#allocation363_spill] sm:$0xff] %v12352_v16  ;;  %vm1244_vm3 = vcmp.eq.s32.totalorder %v14966_v39, %v12350_v20  ;;  %v14967_v16 = vld [vmem:[#allocation126_spill] sm:$0xff]  ;;  %v14972_v39 = vld [vmem:[#allocation131_spill] sm:$0xff] }
 0x394   : > { %8818 = vmatmul.msk.f32.gmra.mxu0 %vm1617_vm15, %v14910_v60  ;;  %9107 = vmatmul.msk.f32.vlgmr.msrb.gmra.mxu3 %vm1240_vm14, %v14910_v60  ;;  %v3531_v35 = vadd.f32 %v11662_v40, %v14967_v16  ;;  %vm6085_vm15 = vcmask 64512  }
 0x395   : > { %8946 = vmatmul.msk.f32.gmra.mxu1 %vm1618_vm0, %v14910_v60  ;;  %9074 = vmatmul.msk.f32.gmra.mxu2 %vm1619_vm1, %v14910_v60  ;;  %v12389_v26 = vpop.f32.mrf.mxu2 }
 0x396   : > { %14968 = vst [vmem:[#allocation9_spill] sm:$0xff] %v12389_v26 }
 0x397   : > { %v3928_v42 = vpop.f32.mrf.mxu3 }
 0x398   : > { %v12378_v21 = vadd.f32 %v3928_v42, %v3528_v44 }
 0x399   : > { %v12380_v43 = vpop.f32.mrf.mxu0 }
 0x39a   : > { %14964 = vst [vmem:[#allocation364_spill] sm:$0xff] %v12378_v21  ;;  %v593_v21 = vld [vmem:[%s12372_s23 + $0x8] sm:$0xff] }
 0x39b   : > { %14965 = vst [vmem:[#allocation365_spill] sm:$0xff] %v12380_v43  ;;  %v14971_v43 = vld [vmem:[#allocation10_spill] sm:$0xff] }
 0x39c   : > { %9108 = vmatmul.msk.f32.gmra.mxu3 %vm1244_vm3, %v14910_v60  ;;  %9236 = vmatmul.msk.f32.vlgmr.msrb.gmra.mxu0 %vm4378_vm2, %v592_v5  ;;  %vm1248_vm4 = vcmp.eq.s32.totalorder %v14971_v43, %v12350_v20  ;;  %v3534_v5 = vadd.f32 %v11685_v41, %v14972_v39  ;;  %v12411_v43 = vpop.f32.mrf.mxu1 }
 0x39f   : > { %v3931_v34 = vpop.f32.mrf.mxu3 }
 0x3a0   : > { %v12391_v44 = vadd.f32 %v3931_v34, %v3531_v35  ;;  %v594_v35 = vld [vmem:[%s12372_s23 + $0x10] sm:$0xff]  ;;  %v12407_v34 = vpop.f32.mrf.mxu2 }
 0x3a1   : > { %v12393_v42 = vpop.f32.mrf.mxu0  ;;  %14975 = vst [vmem:[#allocation367_spill] sm:$0xff] %v12407_v34 }
 0x3a2   : > { %14969 = vst [vmem:[#allocation126_spill] sm:$0xff] %v12391_v44  ;;  %v14976_v44 = vld [vmem:[#allocation12_spill] sm:$0xff] }
 0x3a3   : > { %14970 = vst [vmem:[#allocation366_spill] sm:$0xff] %v12393_v42  ;;  %vm1252_vm5 = vcmp.eq.s32.totalorder %v14976_v44, %v12350_v20  ;;  %v14983_v42 = vld [vmem:[#allocation141_spill] sm:$0xff] }
 0x3a4   : > { %9109 = vmatmul.msk.f32.gmra.mxu3 %vm1248_vm4, %v14910_v60  ;;  %9237 = vmatmul.msk.f32.gmra.mxu0 %vm4378_vm2, %v593_v21  ;;  %14977 = vst [vmem:[#allocation12_spill] sm:$0xff] %v12411_v43  ;;  %v14978_v21 = vld [vmem:[#allocation136_spill] sm:$0xff] }
 0x3a5   : > { %v3537_v41 = vadd.f32 %v11707_v23, %v14978_v21  ;;  %v12430_v23 = vpop.f32.mrf.mxu1 }
 0x3a6   : > { %14984 = vst [vmem:[#allocation141_spill] sm:$0xff] %v12430_v23 }
 0x3a7   : > { %v3934_v40 = vpop.f32.mrf.mxu3 }
 0x3a8   : > { %v12402_v16 = vadd.f32 %v3934_v40, %v3534_v5  ;;  %v12424_v44 = vpop.f32.mrf.mxu2 }
 0x3a9   : > { %v12404_v26 = vpop.f32.mrf.mxu0 }
 0x3aa   : > { %14973 = vst [vmem:[#allocation10_spill] sm:$0xff] %v12402_v16  ;;  %v595_v16 = vld [vmem:[%s12372_s23 + $0x18] sm:$0xff] }
 0x3ab   : > { %14974 = vst [vmem:[#allocation131_spill] sm:$0xff] %v12404_v26  ;;  %v14981_v26 = vld [vmem:[#allocation14_spill] sm:$0xff] }
 0x3ac   : > { %9110 = vmatmul.msk.f32.gmra.mxu3 %vm1252_vm5, %v14910_v60  ;;  %9238 = vmatmul.msk.f32.gmra.mxu0 %vm4378_vm2, %v594_v35  ;;  %vm1256_vm6 = vcmp.eq.s32.totalorder %v14981_v26, %v12350_v20  ;;  %14982 = vst [vmem:[#allocation14_spill] sm:$0xff] %v12424_v44  ;;  %v3540_v35 = vadd.f32 %v11728_v8, %v14983_v42  ;;  %v14987_v26 = vld [vmem:[#allocation16_spill] sm:$0xff]  ;;  %vm5298_vm5 = vcmask 130048  }
 0x3ad   : > { %vm1260_vm7 = vcmp.eq.s32.totalorder %v14987_v26, %v12350_v20  ;;  %v12445_v44 = vpop.f32.mrf.mxu1  ;;  %v14993_v26 = vld [vmem:[#allocation18_spill] sm:$0xff] }
 0x3ae   : > { %vm1264_vm8 = vcmp.eq.s32.totalorder %v14993_v26, %v12350_v20  ;;  %v14999_v26 = vld [vmem:[#allocation20_spill] sm:$0xff] }
 0x3af   : > { %v3937_v39 = vpop.f32.mrf.mxu3  ;;  %vm1268_vm9 = vcmp.eq.s32.totalorder %v14999_v26, %v12350_v20 }
 0x3b0   : > { %v12417_v5 = vadd.f32 %v3937_v39, %v3537_v41  ;;  %v12443_v8 = vpop.f32.mrf.mxu2 }
 0x3b1   : > { %v12419_v40 = vpop.f32.mrf.mxu0  ;;  %14989 = vst [vmem:[#allocation16_spill] sm:$0xff] %v12443_v8 }
 0x3b2   : > { %14979 = vst [vmem:[#allocation136_spill] sm:$0xff] %v12417_v5  ;;  %v596_v5 = vld [vmem:[%s12372_s23 + $0x20] sm:$0xff] }
 0x3b3   : > { %14980 = vst [vmem:[#allocation368_spill] sm:$0xff] %v12419_v40 }
 0x3b4   : > { %9111 = vmatmul.msk.f32.gmra.mxu3 %vm1256_vm6, %v14910_v60  ;;  %9239 = vmatmul.msk.f32.gmra.mxu0 %vm4378_vm2, %v595_v16  ;;  %v14988_v16 = vld [vmem:[#allocation146_spill] sm:$0xff] }
 0x3b5   : > { %v3543_v40 = vadd.f32 %v11750_v32, %v14988_v16  ;;  %14990 = vst [vmem:[#allocation146_spill] sm:$0xff] %v12445_v44 }
 0x3b7   : > { %v3940_v21 = vpop.f32.mrf.mxu3 }
 0x3b8   : > { %v12432_v41 = vadd.f32 %v3940_v21, %v3540_v35 }
 0x3b9   : > { %v12434_v39 = vpop.f32.mrf.mxu0 }
 0x3ba   : > { %14985 = vst [vmem:[#allocation369_spill] sm:$0xff] %v12432_v41  ;;  %v597_v41 = vld [vmem:[%s12372_s23 + $0x28] sm:$0xff] }
 0x3bb   : > { %14986 = vst [vmem:[#allocation370_spill] sm:$0xff] %v12434_v39  ;;  %v12458_v39 = vpop.f32.mrf.mxu2 }
 0x3bc   : > { %9112 = vmatmul.msk.f32.gmra.mxu3 %vm1260_vm7, %v14910_v60  ;;  %9240 = vmatmul.msk.f32.gmra.mxu0 %vm4378_vm2, %v596_v5  ;;  %v14994_v5 = vld [vmem:[#allocation151_spill] sm:$0xff]  ;;  %14995 = vst [vmem:[#allocation18_spill] sm:$0xff] %v12458_v39  ;;  %v15138_v39 = vld [vmem:[#allocation125_spill] sm:$0xff] }
 0x3bd   : > { %v3546_v32 = vadd.f32 %v11773_v56, %v14994_v5 }
 0x3bf   : > { %v3943_v42 = vpop.f32.mrf.mxu3 }
 0x3c0   : > { %v12447_v35 = vadd.f32 %v3943_v42, %v3543_v40  ;;  %v598_v42 = vld [vmem:[%s12372_s23 + $0x30] sm:$0xff] }
 0x3c1   : > { %v12449_v21 = vpop.f32.mrf.mxu0 }
 0x3c2   : > { %14991 = vst [vmem:[#allocation371_spill] sm:$0xff] %v12447_v35  ;;  %v12465_v35 = vpop.f32.mrf.mxu1 }
 0x3c3   : > { %14992 = vst [vmem:[#allocation372_spill] sm:$0xff] %v12449_v21 }
 0x3c4   : > { %9113 = vmatmul.msk.f32.gmra.mxu3 %vm1264_vm8, %v14910_v60  ;;  %9241 = vmatmul.msk.f32.gmra.mxu0 %vm4378_vm2, %v597_v41  ;;  %14998 = vst [vmem:[#allocation374_spill] sm:$0xff] %v12465_v35  ;;  %v15000_v41 = vld [vmem:[#allocation156_spill] sm:$0xff] }
 0x3c5   : > { %v3549_v56 = vadd.f32 %v11795_v7, %v15000_v41 }
 0x3c7   : > { %v3946_v16 = vpop.f32.mrf.mxu3 }
 0x3c8   : > { %v12460_v8 = vadd.f32 %v3946_v16, %v3546_v32  ;;  %v599_v16 = vld [vmem:[%s12372_s23 + $0x38] sm:$0xff] }
 0x3c9   : > { %v12462_v40 = vpop.f32.mrf.mxu0 }
 0x3ca   : > { %14996 = vst [vmem:[#allocation151_spill] sm:$0xff] %v12460_v8  ;;  %v12478_v8 = vpop.f32.mrf.mxu2  ;;  %v12482_v26 = vpop.f32.mrf.mxu1 }
 0x3cb   : > { %14997 = vst [vmem:[#allocation373_spill] sm:$0xff] %v12462_v40  ;;  %v15004_v40 = vld [vmem:[#allocation22_spill] sm:$0xff] }
 0x3cc   : > { %9114 = vmatmul.msk.f32.gmra.mxu3 %vm1268_vm9, %v14910_v60  ;;  %9242 = vmatmul.msk.f32.gmra.mxu0 %vm4378_vm2, %v598_v42  ;;  %15003 = vst [vmem:[#allocation375_spill] sm:$0xff] %v12478_v8  ;;  %vm1272_vm10 = vcmp.eq.s32.totalorder %v15004_v40, %v12350_v20  ;;  %v15006_v42 = vld [vmem:[#allocation161_spill] sm:$0xff]  ;;  %v15011_v8 = vld [vmem:[#allocation166_spill] sm:$0xff] }
 0x3cd   : > { %15005 = vst [vmem:[#allocation22_spill] sm:$0xff] %v12482_v26  ;;  %v3552_v7 = vadd.f32 %v11816_v50, %v15006_v42 }
 0x3cf   : > { %v3949_v5 = vpop.f32.mrf.mxu3 }
 0x3d0   : > { %v12473_v21 = vadd.f32 %v3949_v5, %v3549_v56 }
 0x3d1   : > { %v12475_v32 = vpop.f32.mrf.mxu0 }
 0x3d2   : > { %15001 = vst [vmem:[#allocation20_spill] sm:$0xff] %v12473_v21  ;;  %v600_v21 = vld [vmem:[%s12372_s23 + $0x40] sm:$0xff]  ;;  %v12495_v40 = vpop.f32.mrf.mxu2  ;;  %v12501_v50 = vpop.f32.mrf.mxu1 }
 0x3d3   : > { %15002 = vst [vmem:[#allocation156_spill] sm:$0xff] %v12475_v32  ;;  %v15009_v32 = vld [vmem:[#allocation24_spill] sm:$0xff] }
 0x3d4   : > { %9115 = vmatmul.msk.f32.gmra.mxu3 %vm1272_vm10, %v14910_v60  ;;  %9243 = vmatmul.msk.f32.gmra.mxu0 %vm4378_vm2, %v599_v16  ;;  %vm1276_vm11 = vcmp.eq.s32.totalorder %v15009_v32, %v12350_v20  ;;  %15010 = vst [vmem:[#allocation24_spill] sm:$0xff] %v12495_v40  ;;  %v3555_v16 = vadd.f32 %v11836_v10, %v15011_v8  ;;  %v15015_v32 = vld [vmem:[#allocation26_spill] sm:$0xff] }
 0x3d5   : > { %15012 = vst [vmem:[#allocation166_spill] sm:$0xff] %v12501_v50  ;;  %vm1280_vm12 = vcmp.eq.s32.totalorder %v15015_v32, %v12350_v20  ;;  %v15021_v32 = vld [vmem:[#allocation28_spill] sm:$0xff] }
 0x3d6   : > { %vm1284_vm13 = vcmp.eq.s32.totalorder %v15021_v32, %v12350_v20 }
 0x3d7   : > { %v3952_v41 = vpop.f32.mrf.mxu3 }
 0x3d8   : > { %v12488_v56 = vadd.f32 %v3952_v41, %v3552_v7 }
 0x3d9   : > { %v12490_v5 = vpop.f32.mrf.mxu0 }
 0x3da   : > { %15007 = vst [vmem:[#allocation161_spill] sm:$0xff] %v12488_v56  ;;  %v601_v56 = vld [vmem:[%s12372_s23 + $0x48] sm:$0xff]  ;;  %v12514_v10 = vpop.f32.mrf.mxu2 }
 0x3db   : > { %15008 = vst [vmem:[#allocation376_spill] sm:$0xff] %v12490_v5 }
 0x3dc   : > { %9116 = vmatmul.msk.f32.gmra.mxu3 %vm1276_vm11, %v14910_v60  ;;  %9244 = vmatmul.msk.f32.gmra.mxu0 %vm4378_vm2, %v600_v21  ;;  %v15016_v21 = vld [vmem:[#allocation171_spill] sm:$0xff]  ;;  %15017 = vst [vmem:[#allocation26_spill] sm:$0xff] %v12514_v10 }
 0x3dd   : > { %v3558_v5 = vadd.f32 %v11859_v12, %v15016_v21 }
 0x3df   : > { %v3955_v42 = vpop.f32.mrf.mxu3 }
 0x3e0   : > { %v12503_v7 = vadd.f32 %v3955_v42, %v3555_v16  ;;  %v12516_v16 = vpop.f32.mrf.mxu1 }
 0x3e1   : > { %v12505_v41 = vpop.f32.mrf.mxu0  ;;  %15018 = vst [vmem:[#allocation171_spill] sm:$0xff] %v12516_v16 }
 0x3e2   : > { %15013 = vst [vmem:[#allocation377_spill] sm:$0xff] %v12503_v7  ;;  %v12529_v10 = vpop.f32.mrf.mxu2 }
 0x3e3   : > { %15014 = vst [vmem:[#allocation378_spill] sm:$0xff] %v12505_v41  ;;  %v602_v41 = vld [vmem:[%s12372_s23 + $0x50] sm:$0xff] }
 0x3e4   : > { %9117 = vmatmul.msk.f32.gmra.mxu3 %vm1280_vm12, %v14910_v60  ;;  %9245 = vmatmul.msk.f32.gmra.mxu0 %vm4378_vm2, %v601_v56  ;;  %v15022_v56 = vld [vmem:[#allocation176_spill] sm:$0xff]  ;;  %15023 = vst [vmem:[#allocation28_spill] sm:$0xff] %v12529_v10  ;;  %v15051_v10 = vld [vmem:[#allocation41_spill] sm:$0xff] }
 0x3e5   : > { %v3561_v12 = vadd.f32 %v11881_v63, %v15022_v56  ;;  %v720_v63 = vld [vmem:[%s12537_s17] sm:$0xff] }
 0x3e6   : > { %9492 = vmatmul.msk.f32.vlgmr.msrb.gmra.mxu2 %vm6085_vm15, %v720_v63  ;;  %v15028_v56 = vld [vmem:[#allocation181_spill] sm:$0xff]  ;;  %v15034_v63 = vld [vmem:[#allocation186_spill] sm:$0xff] }
 0x3e7   : > { %v3958_v8 = vpop.f32.mrf.mxu3 }
 0x3e8   : > { %v12518_v42 = vadd.f32 %v3958_v8, %v3558_v5  ;;  %v603_v8 = vld [vmem:[%s12372_s23 + $0x58] sm:$0xff]  ;;  %v12542_v32 = vpop.f32.mrf.mxu1 }
 0x3e9   : > { %v12520_v7 = vpop.f32.mrf.mxu0  ;;  %15026 = vst [vmem:[#allocation382_spill] sm:$0xff] %v12542_v32  ;;  %v15133_v32 = vld [vmem:[#allocation120_spill] sm:$0xff] }
 0x3ea   : > { %15019 = vst [vmem:[#allocation379_spill] sm:$0xff] %v12518_v42 }
 0x3eb   : > { %15020 = vst [vmem:[#allocation380_spill] sm:$0xff] %v12520_v7  ;;  %v15032_v7 = vld [vmem:[#allocation32_spill] sm:$0xff] }
 0x3ec   : > { %9118 = vmatmul.msk.f32.gmra.mxu3 %vm1284_vm13, %v14910_v60  ;;  %9246 = vmatmul.msk.f32.gmra.mxu0 %vm4378_vm2, %v602_v41  ;;  %v15027_v41 = vld [vmem:[#allocation30_spill] sm:$0xff]  ;;  %vm1292_vm0 = vcmp.eq.s32.totalorder %v15032_v7, %v12350_v20 }
 0x3ed   : > { %vm1288_vm14 = vcmp.eq.s32.totalorder %v15027_v41, %v12350_v20  ;;  %v12557_v41 = vpop.f32.mrf.mxu2  ;;  %v15037_v7 = vld [vmem:[#allocation34_spill] sm:$0xff] }
 0x3ee   : > { %15031 = vst [vmem:[#allocation383_spill] sm:$0xff] %v12557_v41  ;;  %vm1296_vm1 = vcmp.eq.s32.totalorder %v15037_v7, %v12350_v20  ;;  %v606_v7 = vld [vmem:[%s12372_s23 + $0x70] sm:$0xff] }
 0x3ef   : > { %v3961_v21 = vpop.f32.mrf.mxu3 }
 0x3f0   : > { %v12531_v40 = vadd.f32 %v3961_v21, %v3561_v12  ;;  %v3564_v12 = vadd.f32 %v11904_v37, %v15028_v56  ;;  %v721_v37 = vld [vmem:[%s12537_s17 + $0x8] sm:$0xff]  ;;  %v3567_v56 = vadd.f32 %v11924_v2, %v15034_v63  ;;  %v722_v2 = vld [vmem:[%s12537_s17 + $0x10] sm:$0xff] }
 0x3f1   : > { %v12539_v5 = vpop.f32.mrf.mxu0  ;;  %9493 = vmatmul.msk.f32.gmra.mxu2 %vm6085_vm15, %v721_v37 }
 0x3f2   : > { %15024 = vst [vmem:[#allocation176_spill] sm:$0xff] %v12531_v40 }
 0x3f3   : > { %15025 = vst [vmem:[#allocation381_spill] sm:$0xff] %v12539_v5  ;;  %v604_v5 = vld [vmem:[%s12372_s23 + $0x60] sm:$0xff] }
 0x3f4   : > { %9119 = vmatmul.msk.f32.gmra.mxu3 %vm1288_vm14, %v14910_v60  ;;  %9247 = vmatmul.msk.f32.gmra.mxu0 %vm4378_vm2, %v603_v8  ;;  %v12561_v8 = vpop.f32.mrf.mxu1 }
 0x3f5   : > { %15033 = vst [vmem:[#allocation32_spill] sm:$0xff] %v12561_v8  ;;  %v12576_v41 = vpop.f32.mrf.mxu2 }
 0x3f6   : > { %15038 = vst [vmem:[#allocation34_spill] sm:$0xff] %v12576_v41  ;;  %v15049_v41 = vld [vmem:[#allocation38_spill] sm:$0xff] }
 0x3f7   : > { %v3964_v21 = vpop.f32.mrf.mxu3  ;;  %vm1304_vm4 = vcmp.eq.s32.totalorder %v15049_v41, %v12350_v20  ;;  %v608_v41 = vld [vmem:[%s12372_s23 + $0x80] sm:$0xff] }
 0x3f8   : > { %v12552_v40 = vadd.f32 %v3964_v21, %v3564_v12 }
 0x3f9   : > { %v12554_v42 = vpop.f32.mrf.mxu0  ;;  %9494 = vmatmul.msk.f32.gmra.mxu2 %vm6085_vm15, %v722_v2 }
 0x3fa   : > { %15029 = vst [vmem:[#allocation30_spill] sm:$0xff] %v12552_v40 }
 0x3fb   : > { %15030 = vst [vmem:[#allocation181_spill] sm:$0xff] %v12554_v42  ;;  %v605_v42 = vld [vmem:[%s12372_s23 + $0x68] sm:$0xff] }
 0x3fc   : > { %9120 = vmatmul.msk.f32.gmra.mxu3 %vm1292_vm0, %v14910_v60  ;;  %9248 = vmatmul.msk.f32.gmra.mxu0 %vm4378_vm2, %v604_v5  ;;  %v15039_v5 = vld [vmem:[#allocation191_spill] sm:$0xff]  ;;  %v12583_v63 = vpop.f32.mrf.mxu1 }
 0x3fd   : > { %v3570_v37 = vadd.f32 %v11945_v17, %v15039_v5  ;;  %15040 = vst [vmem:[#allocation191_spill] sm:$0xff] %v12583_v63  ;;  %v723_v17 = vld [vmem:[%s12537_s17 + $0x18] sm:$0xff]  ;;  %v12598_v2 = vpop.f32.mrf.mxu2 }
 0x3ff   : > { %v3967_v12 = vpop.f32.mrf.mxu3 }
 0x400   : > { %v12569_v21 = vadd.f32 %v3967_v12, %v3567_v56 }
 0x401   : > { %v12571_v40 = vpop.f32.mrf.mxu0  ;;  %9495 = vmatmul.msk.f32.gmra.mxu2 %vm6085_vm15, %v723_v17  ;;  %v15052_v17 = vld [vmem:[#allocation44_spill] sm:$0xff] }
 0x402   : > { %15035 = vst [vmem:[#allocation186_spill] sm:$0xff] %v12569_v21 }
 0x403   : > { %15036 = vst [vmem:[#allocation384_spill] sm:$0xff] %v12571_v40  ;;  %v15043_v40 = vld [vmem:[#allocation36_spill] sm:$0xff] }
 0x404   : > { %9121 = vmatmul.msk.f32.gmra.mxu3 %vm1296_vm1, %v14910_v60  ;;  %9249 = vmatmul.msk.f32.gmra.mxu0 %vm4378_vm2, %v605_v42  ;;  %vm1300_vm3 = vcmp.eq.s32.totalorder %v15043_v40, %v12350_v20  ;;  %v15044_v42 = vld [vmem:[#allocation196_spill] sm:$0xff]  ;;  %15045 = vst [vmem:[#allocation36_spill] sm:$0xff] %v12598_v2 }
 0x405   : > { %v3573_v5 = vadd.f32 %v11967_v59, %v15044_v42  ;;  %v724_v59 = vld [vmem:[%s12537_s17 + $0x20] sm:$0xff] }
 0x407   : > { %v3970_v56 = vpop.f32.mrf.mxu3 }
 0x408   : > { %v12586_v12 = vadd.f32 %v3970_v56, %v3570_v37  ;;  %v12601_v56 = vpop.f32.mrf.mxu1 }
 0x409   : > { %v12588_v21 = vpop.f32.mrf.mxu0  ;;  %15046 = vst [vmem:[#allocation196_spill] sm:$0xff] %v12601_v56  ;;  %9496 = vmatmul.msk.f32.gmra.mxu2 %vm6085_vm15, %v724_v59  ;;  %v15057_v56 = vld [vmem:[#allocation46_spill] sm:$0xff]  ;;  %v15058_v59 = vld [vmem:[#allocation49_spill] sm:$0xff] }
 0x40a   : > { %15041 = vst [vmem:[#allocation385_spill] sm:$0xff] %v12586_v12 }
 0x40b   : > { %15042 = vst [vmem:[#allocation386_spill] sm:$0xff] %v12588_v21  ;;  %v607_v21 = vld [vmem:[%s12372_s23 + $0x78] sm:$0xff] }
 0x40c   : > { %9122 = vmatmul.msk.f32.gmra.mxu3 %vm1300_vm3, %v14910_v60  ;;  %9250 = vmatmul.msk.f32.gmra.mxu0 %vm4378_vm2, %v606_v7  ;;  %v15050_v7 = vld [vmem:[#allocation40_spill] sm:$0xff] }
 0x40d   : > { %v3192_v63 = vadd.f32 %v15051_v10, %v15050_v7  ;;  %v15055_v7 = vld [vmem:[#allocation42_spill] sm:$0xff] }
 0x40e   : > { %vm1308_vm6 = vcmp.eq.s32.totalorder %v15055_v7, %v12350_v20 }
 0x40f   : > { %v3973_v37 = vpop.f32.mrf.mxu3  ;;  %v3593_v42 = vadd.f32 %v15052_v17, %v3192_v63  ;;  %v725_v63 = vld [vmem:[%s12537_s17 + $0x28] sm:$0xff] }
 0x410   : > { %v12603_v12 = vadd.f32 %v3973_v37, %v3573_v5  ;;  %v12617_v37 = vpop.f32.mrf.mxu2  ;;  %v12620_v2 = vpop.f32.mrf.mxu1 }
 0x411   : > { %v12605_v40 = vpop.f32.mrf.mxu0  ;;  %15053 = vst [vmem:[#allocation38_spill] sm:$0xff] %v12617_v37  ;;  %9497 = vmatmul.msk.f32.gmra.mxu2 %vm6085_vm15, %v725_v63  ;;  %v15062_v37 = vld [vmem:[#allocation51_spill] sm:$0xff]  ;;  %v15064_v63 = vld [vmem:[#allocation54_spill] sm:$0xff] }
 0x412   : > { %15047 = vst [vmem:[#allocation387_spill] sm:$0xff] %v12603_v12 }
 0x413   : > { %15048 = vst [vmem:[#allocation388_spill] sm:$0xff] %v12605_v40 }
 0x414   : > { %9123 = vmatmul.msk.f32.gmra.mxu3 %vm1304_vm4, %v14910_v60  ;;  %9251 = vmatmul.msk.f32.gmra.mxu0 %vm4378_vm2, %v607_v21  ;;  %15054 = vst [vmem:[#allocation40_spill] sm:$0xff] %v12620_v2  ;;  %v15056_v21 = vld [vmem:[#allocation45_spill] sm:$0xff] }
 0x415   : > { %v3195_v8 = vadd.f32 %v15057_v56, %v15056_v21  ;;  %v15060_v21 = vld [vmem:[#allocation47_spill] sm:$0xff] }
 0x416   : > { %vm1312_vm7 = vcmp.eq.s32.totalorder %v15060_v21, %v12350_v20  ;;  %v15065_v21 = vld [vmem:[#allocation52_spill] sm:$0xff] }
 0x417   : > { %v3993_v5 = vpop.f32.mrf.mxu3  ;;  %v3596_v17 = vadd.f32 %v15058_v59, %v3195_v8  ;;  %v726_v8 = vld [vmem:[%s12537_s17 + $0x30] sm:$0xff]  ;;  %vm1316_vm8 = vcmp.eq.s32.totalorder %v15065_v21, %v12350_v20  ;;  %v15071_v21 = vld [vmem:[#allocation57_spill] sm:$0xff] }
 0x418   : > { %v3994_v12 = vadd.f32 %v3993_v5, %v3593_v42  ;;  %v609_v5 = vld [vmem:[%s12372_s23 + $0x88] sm:$0xff]  ;;  %v12633_v7 = vpop.f32.mrf.mxu2  ;;  %v12639_v2 = vpop.f32.mrf.mxu1  ;;  %vm1320_vm9 = vcmp.eq.s32.totalorder %v15071_v21, %v12350_v20  ;;  %v612_v21 = vld [vmem:[%s12372_s23 + $0xa0] sm:$0xff] }
 0x419   : > { %v4784_v40 = vpop.f32.mrf.mxu0  ;;  %15059 = vst [vmem:[#allocation41_spill] sm:$0xff] %v12633_v7  ;;  %9498 = vmatmul.msk.f32.gmra.mxu2 %vm6085_vm15, %v726_v8  ;;  %v15067_v7 = vld [vmem:[#allocation56_spill] sm:$0xff] }
 0x41a   : > { %v5168_v10 = vmul.f32 %v4784_v40, %v3994_v12  ;;  %15063 = vst [vmem:[#allocation44_spill] sm:$0xff] %v12639_v2 }
 0x41c   : > { %9124 = vmatmul.msk.f32.gmra.mxu3 %vm1308_vm6, %v14910_v60  ;;  %9252 = vmatmul.msk.f32.gmra.mxu0 %vm4378_vm2, %v608_v41  ;;  %v15061_v41 = vld [vmem:[#allocation50_spill] sm:$0xff] }
 0x41d   : > { %9364 = vmatmul.msk.f32.vlgmr.msrb.gmra.mxu1 %vm5298_vm5, %v5168_v10  ;;  %v3198_v10 = vadd.f32 %v15062_v37, %v15061_v41  ;;  %v15066_v41 = vld [vmem:[#allocation55_spill] sm:$0xff] }
 0x41f   : > { %v3996_v12 = vpop.f32.mrf.mxu3  ;;  %v3599_v59 = vadd.f32 %v15064_v63, %v3198_v10  ;;  %v15069_v10 = vld [vmem:[#allocation59_spill] sm:$0xff] }
 0x420   : > { %v3997_v40 = vadd.f32 %v3996_v12, %v3596_v17  ;;  %v12652_v2 = vpop.f32.mrf.mxu2  ;;  %v12659_v63 = vpop.f32.mrf.mxu1 }
 0x421   : > { %v4787_v42 = vpop.f32.mrf.mxu0  ;;  %15068 = vst [vmem:[#allocation42_spill] sm:$0xff] %v12652_v2 }
 0x422   : > { %v5169_v56 = vmul.f32 %v4787_v42, %v3997_v40  ;;  %v610_v42 = vld [vmem:[%s12372_s23 + $0x90] sm:$0xff]  ;;  %15070 = vst [vmem:[#allocation45_spill] sm:$0xff] %v12659_v63 }
 0x424   : > { %9125 = vmatmul.msk.f32.gmra.mxu3 %vm1312_vm7, %v14910_v60  ;;  %9253 = vmatmul.msk.f32.gmra.mxu0 %vm4378_vm2, %v609_v5  ;;  %v3201_v5 = vadd.f32 %v15067_v7, %v15066_v41  ;;  %v611_v7 = vld [vmem:[%s12372_s23 + $0x98] sm:$0xff]  ;;  %v15073_v41 = vld [vmem:[#allocation61_spill] sm:$0xff] }
 0x425   : > { %9365 = vmatmul.msk.f32.gmra.mxu1 %vm5298_vm5, %v5169_v56  ;;  %v727_v56 = vld [vmem:[%s12537_s17 + $0x38] sm:$0xff] }
 0x426   : > { %v3602_v8 = vadd.f32 %v15069_v10, %v3201_v5  ;;  %9499 = vmatmul.msk.f32.gmra.mxu2 %vm6085_vm15, %v727_v56  ;;  %v15074_v5 = vld [vmem:[#allocation64_spill] sm:$0xff] }
 0x427   : > { %v3999_v17 = vpop.f32.mrf.mxu3 }
 0x428   : > { %v4000_v12 = vadd.f32 %v3999_v17, %v3599_v59  ;;  %v12672_v10 = vpop.f32.mrf.mxu2 }
 0x429   : > { %v4790_v40 = vpop.f32.mrf.mxu0  ;;  %15075 = vst [vmem:[#allocation46_spill] sm:$0xff] %v12672_v10  ;;  %v15085_v10 = vld [vmem:[#allocation71_spill] sm:$0xff] }
 0x42a   : > { %v5170_v37 = vmul.f32 %v4790_v40, %v4000_v12 }
 0x42c   : > { %9126 = vmatmul.msk.f32.gmra.mxu3 %vm1316_vm8, %v14910_v60  ;;  %9254 = vmatmul.msk.f32.gmra.mxu0 %vm4378_vm2, %v610_v42  ;;  %v15072_v42 = vld [vmem:[#allocation60_spill] sm:$0xff] }
 0x42d   : > { %9366 = vmatmul.msk.f32.gmra.mxu1 %vm5298_vm5, %v5170_v37  ;;  %v3204_v2 = vadd.f32 %v15073_v41, %v15072_v42  ;;  %v728_v37 = vld [vmem:[%s12537_s17 + $0x40] sm:$0xff]  ;;  %v15079_v41 = vld [vmem:[#allocation66_spill] sm:$0xff] }
 0x42e   : > { %9500 = vmatmul.msk.f32.gmra.mxu2 %vm6085_vm15, %v728_v37  ;;  %v15080_v37 = vld [vmem:[#allocation69_spill] sm:$0xff] }
 0x42f   : > { %v4002_v59 = vpop.f32.mrf.mxu3  ;;  %v3605_v56 = vadd.f32 %v15074_v5, %v3204_v2  ;;  %v729_v2 = vld [vmem:[%s12537_s17 + $0x48] sm:$0xff] }
 0x430   : > { %v4003_v17 = vadd.f32 %v4002_v59, %v3602_v8  ;;  %v12675_v59 = vpop.f32.mrf.mxu1 }
 0x431   : > { %v4793_v12 = vpop.f32.mrf.mxu0  ;;  %15076 = vst [vmem:[#allocation49_spill] sm:$0xff] %v12675_v59 }
 0x432   : > { %v5171_v40 = vmul.f32 %v4793_v12, %v4003_v17 }
 0x434   : > { %9127 = vmatmul.msk.f32.gmra.mxu3 %vm1320_vm9, %v14910_v60  ;;  %9255 = vmatmul.msk.f32.gmra.mxu0 %vm4378_vm2, %v611_v7  ;;  %v15077_v7 = vld [vmem:[#allocation62_spill] sm:$0xff] }
 0x435   : > { %9367 = vmatmul.msk.f32.gmra.mxu1 %vm5298_vm5, %v5171_v40  ;;  %vm1324_vm10 = vcmp.eq.s32.totalorder %v15077_v7, %v12350_v20  ;;  %v15078_v40 = vld [vmem:[#allocation65_spill] sm:$0xff]  ;;  %v613_v7 = vld [vmem:[%s12372_s23 + $0xa8] sm:$0xff] }
 0x436   : > { %v3207_v63 = vadd.f32 %v15079_v41, %v15078_v40  ;;  %9501 = vmatmul.msk.f32.gmra.mxu2 %vm6085_vm15, %v729_v2  ;;  %v15086_v2 = vld [vmem:[#allocation74_spill] sm:$0xff] }
 0x437   : > { %v4005_v8 = vpop.f32.mrf.mxu3 }
 0x438   : > { %v4006_v17 = vadd.f32 %v4005_v8, %v3605_v56  ;;  %v3608_v5 = vadd.f32 %v15080_v37, %v3207_v63  ;;  %v12688_v8 = vpop.f32.mrf.mxu2  ;;  %v12691_v40 = vpop.f32.mrf.mxu1  ;;  %v730_v63 = vld [vmem:[%s12537_s17 + $0x50] sm:$0xff] }
 0x439   : > { %v4796_v12 = vpop.f32.mrf.mxu0  ;;  %15081 = vst [vmem:[#allocation47_spill] sm:$0xff] %v12688_v8  ;;  %v15090_v8 = vld [vmem:[#allocation76_spill] sm:$0xff] }
 0x43a   : > { %v5172_v42 = vmul.f32 %v4796_v12, %v4006_v17  ;;  %15082 = vst [vmem:[#allocation50_spill] sm:$0xff] %v12691_v40 }
 0x43c   : > { %9128 = vmatmul.msk.f32.gmra.mxu3 %vm1324_vm10, %v14910_v60  ;;  %9256 = vmatmul.msk.f32.gmra.mxu0 %vm4378_vm2, %v612_v21  ;;  %v15083_v21 = vld [vmem:[#allocation67_spill] sm:$0xff] }
 0x43d   : > { %9368 = vmatmul.msk.f32.gmra.mxu1 %vm5298_vm5, %v5172_v42  ;;  %vm1328_vm11 = vcmp.eq.s32.totalorder %v15083_v21, %v12350_v20  ;;  %v15084_v42 = vld [vmem:[#allocation70_spill] sm:$0xff] }
 0x43e   : > { %v3210_v59 = vadd.f32 %v15085_v10, %v15084_v42  ;;  %9502 = vmatmul.msk.f32.gmra.mxu2 %vm6085_vm15, %v730_v63  ;;  %v15088_v42 = vld [vmem:[#allocation72_spill] sm:$0xff]  ;;  %v15092_v63 = vld [vmem:[#allocation79_spill] sm:$0xff] }
 0x43f   : > { %v4008_v56 = vpop.f32.mrf.mxu3  ;;  %vm1332_vm12 = vcmp.eq.s32.totalorder %v15088_v42, %v12350_v20  ;;  %v15093_v42 = vld [vmem:[#allocation77_spill] sm:$0xff] }
 0x440   : > { %v4009_v17 = vadd.f32 %v4008_v56, %v3608_v5  ;;  %v3611_v37 = vadd.f32 %v15086_v2, %v3210_v59  ;;  %v12704_v21 = vpop.f32.mrf.mxu2  ;;  %v12710_v40 = vpop.f32.mrf.mxu1  ;;  %v731_v59 = vld [vmem:[%s12537_s17 + $0x58] sm:$0xff]  ;;  %vm1336_vm13 = vcmp.eq.s32.totalorder %v15093_v42, %v12350_v20  ;;  %v15099_v42 = vld [vmem:[#allocation82_spill] sm:$0xff] }
 0x441   : > { %v4799_v12 = vpop.f32.mrf.mxu0  ;;  %15087 = vst [vmem:[#allocation51_spill] sm:$0xff] %v12704_v21  ;;  %v15095_v21 = vld [vmem:[#allocation81_spill] sm:$0xff]  ;;  %vm1340_vm14 = vcmp.eq.s32.totalorder %v15099_v42, %v12350_v20  ;;  %v617_v42 = vld [vmem:[%s12372_s23 + $0xc8] sm:$0xff] }
 0x442   : > { %v5173_v41 = vmul.f32 %v4799_v12, %v4009_v17  ;;  %v614_v12 = vld [vmem:[%s12372_s23 + $0xb0] sm:$0xff]  ;;  %15091 = vst [vmem:[#allocation54_spill] sm:$0xff] %v12710_v40 }
 0x444   : > { %9129 = vmatmul.msk.f32.gmra.mxu3 %vm1328_vm11, %v14910_v60  ;;  %9257 = vmatmul.msk.f32.gmra.mxu0 %vm4378_vm2, %v613_v7  ;;  %v15089_v7 = vld [vmem:[#allocation75_spill] sm:$0xff] }
 0x445   : > { %9369 = vmatmul.msk.f32.gmra.mxu1 %vm5298_vm5, %v5173_v41  ;;  %v3213_v41 = vadd.f32 %v15090_v8, %v15089_v7  ;;  %v15094_v7 = vld [vmem:[#allocation80_spill] sm:$0xff] }
 0x446   : > { %9503 = vmatmul.msk.f32.gmra.mxu2 %vm6085_vm15, %v731_v59 }
 0x447   : > { %v4011_v5 = vpop.f32.mrf.mxu3  ;;  %v3614_v2 = vadd.f32 %v15092_v63, %v3213_v41  ;;  %v15097_v41 = vld [vmem:[#allocation84_spill] sm:$0xff] }
 0x448   : > { %v4012_v56 = vadd.f32 %v4011_v5, %v3611_v37  ;;  %v12723_v40 = vpop.f32.mrf.mxu2  ;;  %v12730_v63 = vpop.f32.mrf.mxu1 }
 0x449   : > { %v4802_v17 = vpop.f32.mrf.mxu0  ;;  %15096 = vst [vmem:[#allocation52_spill] sm:$0xff] %v12723_v40 }
 0x44a   : > { %v5174_v10 = vmul.f32 %v4802_v17, %v4012_v56  ;;  %v615_v17 = vld [vmem:[%s12372_s23 + $0xb8] sm:$0xff]  ;;  %15098 = vst [vmem:[#allocation55_spill] sm:$0xff] %v12730_v63 }
 0x44c   : > { %9130 = vmatmul.msk.f32.gmra.mxu3 %vm1332_vm12, %v14910_v60  ;;  %9258 = vmatmul.msk.f32.gmra.mxu0 %vm4378_vm2, %v614_v12  ;;  %v3216_v12 = vadd.f32 %v15095_v21, %v15094_v7  ;;  %v616_v21 = vld [vmem:[%s12372_s23 + $0xc0] sm:$0xff]  ;;  %v15101_v7 = vld [vmem:[#allocation86_spill] sm:$0xff] }
 0x44d   : > { %9370 = vmatmul.msk.f32.gmra.mxu1 %vm5298_vm5, %v5174_v10  ;;  %v732_v10 = vld [vmem:[%s12537_s17 + $0x60] sm:$0xff] }
 0x44e   : > { %v3617_v59 = vadd.f32 %v15097_v41, %v3216_v12  ;;  %9504 = vmatmul.msk.f32.gmra.mxu2 %vm6085_vm15, %v732_v10  ;;  %v15102_v12 = vld [vmem:[#allocation89_spill] sm:$0xff] }
 0x44f   : > { %v4014_v37 = vpop.f32.mrf.mxu3 }
 0x450   : > { %v4015_v5 = vadd.f32 %v4014_v37, %v3614_v2  ;;  %v12743_v41 = vpop.f32.mrf.mxu2 }
 0x451   : > { %v4805_v56 = vpop.f32.mrf.mxu0  ;;  %15103 = vst [vmem:[#allocation56_spill] sm:$0xff] %v12743_v41  ;;  %v15113_v41 = vld [vmem:[#allocation97_spill] sm:$0xff] }
 0x452   : > { %v5175_v8 = vmul.f32 %v4805_v56, %v4015_v5 }
 0x454   : > { %9131 = vmatmul.msk.f32.gmra.mxu3 %vm1336_vm13, %v14910_v60  ;;  %9259 = vmatmul.msk.f32.gmra.mxu0 %vm4378_vm2, %v615_v17  ;;  %v15100_v17 = vld [vmem:[#allocation85_spill] sm:$0xff] }
 0x455   : > { %9371 = vmatmul.msk.f32.gmra.mxu1 %vm5298_vm5, %v5175_v8  ;;  %v3219_v40 = vadd.f32 %v15101_v7, %v15100_v17  ;;  %v733_v8 = vld [vmem:[%s12537_s17 + $0x68] sm:$0xff]  ;;  %v15107_v7 = vld [vmem:[#allocation91_spill] sm:$0xff] }
 0x456   : > { %9505 = vmatmul.msk.f32.gmra.mxu2 %vm6085_vm15, %v733_v8  ;;  %v15108_v8 = vld [vmem:[#allocation95_spill] sm:$0xff] }
 0x457   : > { %v4017_v2 = vpop.f32.mrf.mxu3  ;;  %v3620_v10 = vadd.f32 %v15102_v12, %v3219_v40  ;;  %v734_v40 = vld [vmem:[%s12537_s17 + $0x70] sm:$0xff] }
 0x458   : > { %v4018_v37 = vadd.f32 %v4017_v2, %v3617_v59  ;;  %v12746_v2 = vpop.f32.mrf.mxu1 }
 0x459   : > { %v4808_v5 = vpop.f32.mrf.mxu0  ;;  %15104 = vst [vmem:[#allocation59_spill] sm:$0xff] %v12746_v2 }
 0x45a   : > { %v5176_v56 = vmul.f32 %v4808_v5, %v4018_v37 }
 0x45c   : > { %9132 = vmatmul.msk.f32.gmra.mxu3 %vm1340_vm14, %v14910_v60  ;;  %9260 = vmatmul.msk.f32.gmra.mxu0 %vm4378_vm2, %v616_v21  ;;  %v15105_v21 = vld [vmem:[#allocation87_spill] sm:$0xff] }
 0x45d   : > { %9372 = vmatmul.msk.f32.gmra.mxu1 %vm5298_vm5, %v5176_v56  ;;  %vm1344_vm0 = vcmp.eq.s32.totalorder %v15105_v21, %v12350_v20  ;;  %v15106_v56 = vld [vmem:[#allocation90_spill] sm:$0xff]  ;;  %v618_v21 = vld [vmem:[%s12372_s23 + $0xd0] sm:$0xff] }
 0x45e   : > { %v3222_v63 = vadd.f32 %v15107_v7, %v15106_v56  ;;  %9506 = vmatmul.msk.f32.gmra.mxu2 %vm6085_vm15, %v734_v40  ;;  %v15114_v40 = vld [vmem:[#allocation101_spill] sm:$0xff] }
 0x45f   : > { %v4020_v59 = vpop.f32.mrf.mxu3 }
 0x460   : > { %v4021_v37 = vadd.f32 %v4020_v59, %v3620_v10  ;;  %v3623_v12 = vadd.f32 %v15108_v8, %v3222_v63  ;;  %v12759_v59 = vpop.f32.mrf.mxu2  ;;  %v12762_v56 = vpop.f32.mrf.mxu1  ;;  %v735_v63 = vld [vmem:[%s12537_s17 + $0x78] sm:$0xff] }
 0x461   : > { %v4811_v5 = vpop.f32.mrf.mxu0  ;;  %15109 = vst [vmem:[#allocation57_spill] sm:$0xff] %v12759_v59  ;;  %v15118_v59 = vld [vmem:[#allocation103_spill] sm:$0xff] }
 0x462   : > { %v5177_v17 = vmul.f32 %v4811_v5, %v4021_v37  ;;  %15110 = vst [vmem:[#allocation60_spill] sm:$0xff] %v12762_v56 }
 0x464   : > { %9133 = vmatmul.msk.f32.gmra.mxu3 %vm1344_vm0, %v14910_v60  ;;  %9261 = vmatmul.msk.f32.gmra.mxu0 %vm4378_vm2, %v617_v42  ;;  %v15111_v42 = vld [vmem:[#allocation92_spill] sm:$0xff] }
 0x465   : > { %9373 = vmatmul.msk.f32.gmra.mxu1 %vm5298_vm5, %v5177_v17  ;;  %vm1348_vm1 = vcmp.eq.s32.totalorder %v15111_v42, %v12350_v20  ;;  %v15112_v17 = vld [vmem:[#allocation96_spill] sm:$0xff] }
 0x466   : > { %v3225_v2 = vadd.f32 %v15113_v41, %v15112_v17  ;;  %9507 = vmatmul.msk.f32.gmra.mxu2 %vm6085_vm15, %v735_v63  ;;  %v15116_v17 = vld [vmem:[#allocation98_spill] sm:$0xff]  ;;  %v15120_v63 = vld [vmem:[#allocation107_spill] sm:$0xff] }
 0x467   : > { %v4023_v10 = vpop.f32.mrf.mxu3  ;;  %vm1352_vm3 = vcmp.eq.s32.totalorder %v15116_v17, %v12350_v20 }
 0x468   : > { %v4024_v37 = vadd.f32 %v4023_v10, %v3623_v12  ;;  %v3626_v8 = vadd.f32 %v15114_v40, %v3225_v2  ;;  %v12775_v42 = vpop.f32.mrf.mxu2  ;;  %v12781_v56 = vpop.f32.mrf.mxu1  ;;  %v736_v2 = vld [vmem:[%s12537_s17 + $0x80] sm:$0xff] }
 0x469   : > { %v4814_v5 = vpop.f32.mrf.mxu0  ;;  %15115 = vst [vmem:[#allocation61_spill] sm:$0xff] %v12775_v42  ;;  %v15123_v42 = vld [vmem:[#allocation109_spill] sm:$0xff] }
 0x46a   : > { %v5178_v7 = vmul.f32 %v4814_v5, %v4024_v37  ;;  %v619_v5 = vld [vmem:[%s12372_s23 + $0xd8] sm:$0xff]  ;;  %15119 = vst [vmem:[#allocation64_spill] sm:$0xff] %v12781_v56  ;;  %v15128_v56 = vld [vmem:[#allocation115_spill] sm:$0xff] }
 0x46c   : > { %9134 = vmatmul.msk.f32.gmra.mxu3 %vm1348_vm1, %v14910_v60  ;;  %9262 = vmatmul.msk.f32.gmra.mxu0 %vm4378_vm2, %v618_v21  ;;  %v15117_v21 = vld [vmem:[#allocation102_spill] sm:$0xff] }
 0x46d   : > { %9374 = vmatmul.msk.f32.gmra.mxu1 %vm5298_vm5, %v5178_v7  ;;  %v3228_v7 = vadd.f32 %v15118_v59, %v15117_v21  ;;  %v15121_v21 = vld [vmem:[#allocation104_spill] sm:$0xff] }
 0x46e   : > { %9508 = vmatmul.msk.f32.gmra.mxu2 %vm6085_vm15, %v736_v2  ;;  %vm1356_vm4 = vcmp.eq.s32.totalorder %v15121_v21, %v12350_v20  ;;  %v621_v21 = vld [vmem:[%s12372_s23 + $0xe8] sm:$0xff] }
 0x46f   : > { %v4026_v12 = vpop.f32.mrf.mxu3  ;;  %v3629_v40 = vadd.f32 %v15120_v63, %v3228_v7  ;;  %v15124_v7 = vld [vmem:[#allocation113_spill] sm:$0xff] }
 0x470   : > { %v4027_v10 = vadd.f32 %v4026_v12, %v3626_v8  ;;  %v12790_v17 = vpop.f32.mrf.mxu2  ;;  %v12800_v63 = vpop.f32.mrf.mxu1 }
 0x471   : > { %v4817_v37 = vpop.f32.mrf.mxu0  ;;  %15125 = vst [vmem:[#allocation62_spill] sm:$0xff] %v12800_v63  ;;  %v622_v63 = vld [vmem:[%s12372_s23 + $0xf0] sm:$0xff] }
 0x472   : > { %v5179_v41 = vmul.f32 %v4817_v37, %v4027_v10  ;;  %v620_v37 = vld [vmem:[%s12372_s23 + $0xe0] sm:$0xff] }
 0x474   : > { %9135 = vmatmul.msk.f32.gmra.mxu3 %vm1352_vm3, %v14910_v60  ;;  %9263 = vmatmul.msk.f32.gmra.mxu0 %vm4378_vm2, %v619_v5  ;;  %v15122_v5 = vld [vmem:[#allocation108_spill] sm:$0xff]  ;;  %vm7895_vm3 = vcmask 1041409  }
 0x475   : > { %9375 = vmatmul.msk.f32.gmra.mxu1 %vm5298_vm5, %v5179_v41  ;;  %v3231_v41 = vadd.f32 %v15123_v42, %v15122_v5  ;;  %v15126_v5 = vld [vmem:[#allocation112_spill] sm:$0xff] }
 0x476   : > { %vm1360_vm6 = vcmp.eq.s32.totalorder %v15126_v5, %v12350_v20 }
 0x477   : > { %v4029_v8 = vpop.f32.mrf.mxu3  ;;  %v3632_v2 = vadd.f32 %v15124_v7, %v3231_v41  ;;  %v15129_v7 = vld [vmem:[#allocation118_spill] sm:$0xff] }
 0x478   : > { %v4030_v12 = vadd.f32 %v4029_v8, %v3629_v40  ;;  %v737_v8 = vld [vmem:[%s12537_s17 + $0x88] sm:$0xff] }
 0x479   : > { %v4820_v10 = vpop.f32.mrf.mxu0  ;;  %9509 = vmatmul.msk.f32.gmra.mxu2 %vm6085_vm15, %v737_v8  ;;  %v738_v8 = vld [vmem:[%s12537_s17 + $0x90] sm:$0xff] }
 0x47a   : > { %v5180_v59 = vmul.f32 %v4820_v10, %v4030_v12 }
 0x47c   : > { %9136 = vmatmul.msk.f32.gmra.mxu3 %vm1356_vm4, %v14910_v60  ;;  %9264 = vmatmul.msk.f32.gmra.mxu0 %vm4378_vm2, %v620_v37  ;;  %v12807_v37 = vpop.f32.mrf.mxu2  ;;  %vm7897_vm4 = vcmask 1042434  }
 0x47d   : > { %9376 = vmatmul.msk.f32.gmra.mxu1 %vm5298_vm5, %v5180_v59  ;;  %v15127_v59 = vld [vmem:[#allocation114_spill] sm:$0xff] }
 0x47e   : > { %v3234_v41 = vadd.f32 %v15128_v56, %v15127_v59  ;;  %v15131_v59 = vld [vmem:[#allocation117_spill] sm:$0xff] }
 0x47f   : > { %v4032_v40 = vpop.f32.mrf.mxu3  ;;  %vm1364_vm7 = vcmp.eq.s32.totalorder %v15131_v59, %v12350_v20  ;;  %v623_v59 = vld [vmem:[%s12372_s23 + $0xf8] sm:$0xff] }
 0x480   : > { %v4033_v12 = vadd.f32 %v4032_v40, %v3632_v2  ;;  %v3635_v2 = vadd.f32 %v15129_v7, %v3234_v41  ;;  %v15134_v7 = vld [vmem:[#allocation123_spill] sm:$0xff] }
 0x481   : > { %v4823_v10 = vpop.f32.mrf.mxu0  ;;  %9510 = vmatmul.msk.f32.gmra.mxu2 %vm6085_vm15, %v738_v8  ;;  %v739_v8 = vld [vmem:[%s12537_s17 + $0x98] sm:$0xff] }
 0x482   : > { %v5181_v42 = vmul.f32 %v4823_v10, %v4033_v12  ;;  %v12816_v12 = vpop.f32.mrf.mxu1 }
 0x483   : > { %15130 = vst [vmem:[#allocation65_spill] sm:$0xff] %v12816_v12 }
 0x484   : > { %9137 = vmatmul.msk.f32.gmra.mxu3 %vm1360_vm6, %v14910_v60  ;;  %9265 = vmatmul.msk.f32.gmra.mxu0 %vm4378_vm2, %v621_v21  ;;  %v12822_v21 = vpop.f32.mrf.mxu2  ;;  %vm7899_vm6 = vcmask 1043459  }
 0x485   : > { %9377 = vmatmul.msk.f32.gmra.mxu1 %vm5298_vm5, %v5181_v42  ;;  %v15132_v42 = vld [vmem:[#allocation119_spill] sm:$0xff] }
 0x486   : > { %v3237_v41 = vadd.f32 %v15133_v32, %v15132_v42  ;;  %v15136_v42 = vld [vmem:[#allocation122_spill] sm:$0xff] }
 0x487   : > { %v4035_v40 = vpop.f32.mrf.mxu3  ;;  %vm1368_vm8 = vcmp.eq.s32.totalorder %v15136_v42, %v12350_v20  ;;  %v624_v42 = vld [vmem:[%s12372_s23 + $0x100] sm:$0xff] }
 0x488   : > { %v4036_v10 = vadd.f32 %v4035_v40, %v3635_v2  ;;  %v3638_v2 = vadd.f32 %v15134_v7, %v3237_v41  ;;  %v15139_v7 = vld [vmem:[#allocation128_spill] sm:$0xff] }
 0x489   : > { %v4826_v5 = vpop.f32.mrf.mxu0  ;;  %9511 = vmatmul.msk.f32.gmra.mxu2 %vm6085_vm15, %v739_v8  ;;  %v740_v8 = vld [vmem:[%s12537_s17 + $0xa0] sm:$0xff] }
 0x48a   : > { %v5182_v56 = vmul.f32 %v4826_v5, %v4036_v10  ;;  %v12833_v12 = vpop.f32.mrf.mxu1 }
 0x48b   : > { %15135 = vst [vmem:[#allocation66_spill] sm:$0xff] %v12833_v12 }
 0x48c   : > { %9138 = vmatmul.msk.f32.gmra.mxu3 %vm1364_vm7, %v14910_v60  ;;  %9266 = vmatmul.msk.f32.gmra.mxu0 %vm4378_vm2, %v622_v63  ;;  %v12837_v63 = vpop.f32.mrf.mxu2 }
 0x48d   : > { %9378 = vmatmul.msk.f32.gmra.mxu1 %vm5298_vm5, %v5182_v56  ;;  %v15137_v56 = vld [vmem:[#allocation124_spill] sm:$0xff] }
 0x48e   : > { %v3240_v41 = vadd.f32 %v15138_v39, %v15137_v56  ;;  %v15140_v39 = vld [vmem:[#allocation127_spill] sm:$0xff]  ;;  %v15142_v56 = vld [vmem:[#allocation130_spill] sm:$0xff] }
 0x48f   : > { %v4038_v40 = vpop.f32.mrf.mxu3  ;;  %vm1372_vm9 = vcmp.eq.s32.totalorder %v15140_v39, %v12350_v20  ;;  %v625_v39 = vld [vmem:[%s12372_s23 + $0x108] sm:$0xff] }
 0x490   : > { %v4039_v10 = vadd.f32 %v4038_v40, %v3638_v2  ;;  %v3641_v2 = vadd.f32 %v15139_v7, %v3240_v41  ;;  %v15143_v7 = vld [vmem:[#allocation133_spill] sm:$0xff] }
 0x491   : > { %v4829_v5 = vpop.f32.mrf.mxu0  ;;  %9512 = vmatmul.msk.f32.gmra.mxu2 %vm6085_vm15, %v740_v8  ;;  %v741_v8 = vld [vmem:[%s12537_s17 + $0xa8] sm:$0xff] }
 0x492   : > { %v5183_v32 = vmul.f32 %v4829_v5, %v4039_v10 }
 0x494   : > { %9139 = vmatmul.msk.f32.gmra.mxu3 %vm1368_vm8, %v14910_v60  ;;  %9267 = vmatmul.msk.f32.gmra.mxu0 %vm4378_vm2, %v623_v59  ;;  %v12852_v59 = vpop.f32.mrf.mxu2  ;;  %vm7901_vm8 = vcmask 1044484  }
 0x495   : > { %9379 = vmatmul.msk.f32.gmra.mxu1 %vm5298_vm5, %v5183_v32  ;;  %v15141_v32 = vld [vmem:[#allocation129_spill] sm:$0xff] }
 0x496   : > { %v3243_v41 = vadd.f32 %v15142_v56, %v15141_v32  ;;  %v15144_v32 = vld [vmem:[#allocation132_spill] sm:$0xff] }
 0x497   : > { %v4041_v40 = vpop.f32.mrf.mxu3  ;;  %vm1376_vm10 = vcmp.eq.s32.totalorder %v15144_v32, %v12350_v20 }
 0x498   : > { %v4042_v10 = vadd.f32 %v4041_v40, %v3641_v2  ;;  %v3644_v2 = vadd.f32 %v15143_v7, %v3243_v41  ;;  %v15147_v41 = vld [vmem:[#allocation138_spill] sm:$0xff] }
 0x499   : > { %v4832_v5 = vpop.f32.mrf.mxu0  ;;  %9513 = vmatmul.msk.f32.gmra.mxu2 %vm6085_vm15, %v741_v8 }
 0x49a   : > { %v5184_v12 = vmul.f32 %v4832_v5, %v4042_v10  ;;  %v12848_v16 = vpop.f32.mrf.mxu1 }
 0x49c   : > { %9140 = vmatmul.msk.f32.gmra.mxu3 %vm1372_vm9, %v14910_v60  ;;  %9268 = vmatmul.msk.f32.gmra.mxu0 %vm4378_vm2, %v624_v42  ;;  %v12865_v56 = vpop.f32.mrf.mxu2  ;;  %v15145_v42 = vld [vmem:[#allocation134_spill] sm:$0xff]  ;;  %vm7903_vm9 = vcmask 1045509  }
 0x49d   : > { %9380 = vmatmul.msk.f32.gmra.mxu1 %vm5298_vm5, %v5184_v12  ;;  %v15146_v12 = vld [vmem:[#allocation135_spill] sm:$0xff] }
 0x49e   : > { %v3246_v34 = vadd.f32 %v15146_v12, %v15145_v42  ;;  %v15148_v42 = vld [vmem:[#allocation137_spill] sm:$0xff] }
 0x49f   : > { %v4044_v40 = vpop.f32.mrf.mxu3  ;;  %vm1380_vm11 = vcmp.eq.s32.totalorder %v15148_v42, %v12350_v20 }
 0x4a0   : > { %v4045_v10 = vadd.f32 %v4044_v40, %v3644_v2  ;;  %v3647_v7 = vadd.f32 %v15147_v41, %v3246_v34  ;;  %v742_v40 = vld [vmem:[%s12537_s17 + $0xb0] sm:$0xff] }
 0x4a1   : > { %v4835_v5 = vpop.f32.mrf.mxu0  ;;  %9514 = vmatmul.msk.f32.gmra.mxu2 %vm6085_vm15, %v742_v40  ;;  %v15151_v34 = vld [vmem:[#allocation143_spill] sm:$0xff] }
 0x4a2   : > { %v5185_v50 = vmul.f32 %v4835_v5, %v4045_v10  ;;  %v5703_v26 = vpop.f32.mrf.mxu1  ;;  %v626_v5 = vld [vmem:[%s12372_s23 + $0x110] sm:$0xff] }
 0x4a4   : > { %9141 = vmatmul.msk.f32.gmra.mxu3 %vm1376_vm10, %v14910_v60  ;;  %9269 = vmatmul.msk.f32.gmra.mxu0 %vm4378_vm2, %v625_v39  ;;  %v12878_v12 = vpop.f32.mrf.mxu2  ;;  %v15149_v39 = vld [vmem:[#allocation139_spill] sm:$0xff]  ;;  %vm7905_vm10 = vcmask 1046534  }
 0x4a5   : > { %9381 = vmatmul.msk.f32.gmra.mxu1 %vm5298_vm5, %v5185_v50  ;;  %v15150_v50 = vld [vmem:[#allocation140_spill] sm:$0xff] }
 0x4a6   : > { %v3249_v44 = vadd.f32 %v15150_v50, %v15149_v39  ;;  %v15152_v39 = vld [vmem:[#allocation142_spill] sm:$0xff] }
 0x4a7   : > { %v4047_v2 = vpop.f32.mrf.mxu3  ;;  %vm1384_vm12 = vcmp.eq.s32.totalorder %v15152_v39, %v12350_v20 }
 0x4a8   : > { %v4048_v8 = vadd.f32 %v4047_v2, %v3647_v7  ;;  %v3650_v41 = vadd.f32 %v15151_v34, %v3249_v44  ;;  %v743_v2 = vld [vmem:[%s12537_s17 + $0xb8] sm:$0xff] }
 0x4a9   : > { %v4838_v10 = vpop.f32.mrf.mxu0  ;;  %9515 = vmatmul.msk.f32.gmra.mxu2 %vm6085_vm15, %v743_v2  ;;  %v15155_v44 = vld [vmem:[#allocation148_spill] sm:$0xff] }
 0x4aa   : > { %v5186_v32 = vmul.f32 %v4838_v10, %v4048_v8  ;;  %v5706_v35 = vpop.f32.mrf.mxu1  ;;  %v627_v10 = vld [vmem:[%s12372_s23 + $0x118] sm:$0xff] }
 0x4ac   : > { %9142 = vmatmul.msk.f32.gmra.mxu3 %vm1380_vm11, %v14910_v60  ;;  %9270 = vmatmul.msk.f32.gmra.mxu0 %vm4378_vm2, %v626_v5  ;;  %v12891_v50 = vpop.f32.mrf.mxu2  ;;  %v15153_v5 = vld [vmem:[#allocation144_spill] sm:$0xff]  ;;  %vm7907_vm11 = vcmask 1047559  }
 0x4ad   : > { %9382 = vmatmul.msk.f32.gmra.mxu1 %vm5298_vm5, %v5186_v32  ;;  %v15154_v32 = vld [vmem:[#allocation145_spill] sm:$0xff] }
 0x4ae   : > { %v3252_v23 = vadd.f32 %v15154_v32, %v15153_v5  ;;  %v15156_v5 = vld [vmem:[#allocation147_spill] sm:$0xff] }
 0x4af   : > { %v4050_v7 = vpop.f32.mrf.mxu3  ;;  %vm1388_vm13 = vcmp.eq.s32.totalorder %v15156_v5, %v12350_v20  ;;  %v6871_v5 = vmul.f32 %v12790_v17, %v12848_v16 }
 0x4b0   : > { %v4051_v40 = vadd.f32 %v4050_v7, %v3650_v41  ;;  %v3653_v34 = vadd.f32 %v15155_v44, %v3252_v23  ;;  %v744_v7 = vld [vmem:[%s12537_s17 + $0xc0] sm:$0xff] }
 0x4b1   : > { %v4841_v8 = vpop.f32.mrf.mxu0  ;;  %9516 = vmatmul.msk.f32.gmra.mxu2 %vm6085_vm15, %v744_v7  ;;  %v15159_v23 = vld [vmem:[#allocation153_spill] sm:$0xff]  ;;  %v745_v7 = vld [vmem:[%s12537_s17 + $0xc8] sm:$0xff] }
 0x4b2   : > { %v5187_v42 = vmul.f32 %v4841_v8, %v4051_v40  ;;  %v5709_v29 = vpop.f32.mrf.mxu1  ;;  %v628_v8 = vld [vmem:[%s12372_s23 + $0x120] sm:$0xff] }
 0x4b4   : > { %9143 = vmatmul.msk.f32.gmra.mxu3 %vm1384_vm12, %v14910_v60  ;;  %9271 = vmatmul.msk.f32.gmra.mxu0 %vm4378_vm2, %v627_v10  ;;  %v12904_v32 = vpop.f32.mrf.mxu2  ;;  %v15157_v10 = vld [vmem:[#allocation149_spill] sm:$0xff] }
 0x4b5   : > { %9383 = vmatmul.msk.f32.gmra.mxu1 %vm5298_vm5, %v5187_v42  ;;  %v15158_v42 = vld [vmem:[#allocation150_spill] sm:$0xff] }
 0x4b6   : > { %v3255_v13 = vadd.f32 %v15158_v42, %v15157_v10  ;;  %v6874_v10 = vmul.f32 %v12837_v63, %v5709_v29  ;;  %v6999_v29 = vrot.slane %v6871_v5, 4  ;;  %v15163_v63 = vld [vmem:[#allocation158_spill] sm:$0xff] }
 0x4b7   : > { %v4053_v41 = vpop.f32.mrf.mxu3 }
 0x4b8   : > { %v4054_v2 = vadd.f32 %v4053_v41, %v3653_v34  ;;  %v3656_v44 = vadd.f32 %v15159_v23, %v3255_v13  ;;  %v6872_v34 = vmul.f32 %v12807_v37, %v5703_v26 }
 0x4b9   : > { %v4844_v40 = vpop.f32.mrf.mxu0  ;;  %9517 = vmatmul.msk.f32.gmra.mxu2 %vm6085_vm15, %v745_v7 }
 0x4ba   : > { %v5188_v39 = vmul.f32 %v4844_v40, %v4054_v2  ;;  %v5712_v43 = vpop.f32.mrf.mxu1  ;;  %v6873_v2 = vmul.f32 %v12822_v21, %v5706_v35  ;;  %v7005_v23 = vrot.slane %v6872_v34, 4  ;;  %v15160_v35 = vld [vmem:[#allocation152_spill] sm:$0xff]  ;;  %v15161_v21 = vld [vmem:[#allocation154_spill] sm:$0xff] }
 0x4bb   : > { %vm1392_vm14 = vcmp.eq.s32.totalorder %v15160_v35, %v12350_v20 }
 0x4bc   : > { %9144 = vmatmul.msk.f32.gmra.mxu3 %vm1388_vm13, %v14910_v60  ;;  %9272 = vmatmul.msk.f32.gmra.mxu0 %vm4378_vm2, %v628_v8  ;;  %v629_v8 = vld [vmem:[%s12372_s23 + $0x128] sm:$0xff]  ;;  %v12924_v37 = vpop.f32.mrf.mxu2  ;;  %v7011_v17 = vrot.slane %v6873_v2, 4 }
 0x4bd   : > { %9384 = vmatmul.msk.f32.gmra.mxu1 %vm5298_vm5, %v5188_v39  ;;  %v6875_v39 = vmul.f32 %v12852_v59, %v5712_v43  ;;  %v7017_v43 = vrot.slane %v6874_v10, 4 }
 0x4bf   : > { %v4056_v41 = vpop.f32.mrf.mxu3 }
 0x4c0   : > { %v4057_v40 = vadd.f32 %v4056_v41, %v3656_v44  ;;  %v15162_v44 = vld [vmem:[#allocation155_spill] sm:$0xff]  ;;  %v7006_v41 = vadd.f32 %v7005_v23, %v6872_v34  ;;  %v15164_v34 = vld [vmem:[#allocation157_spill] sm:$0xff] }
 0x4c1   : > { %v4847_v42 = vpop.f32.mrf.mxu0  ;;  %v3258_v16 = vadd.f32 %v15162_v44, %v15161_v21  ;;  %v7000_v21 = vadd.f32 %v6999_v29, %v6871_v5  ;;  %v7018_v44 = vadd.f32 %v7017_v43, %v6874_v10  ;;  %vm1396_vm0 = vcmp.eq.s32.totalorder %v15164_v34, %v12350_v20 }
 0x4c2   : > { %v5189_v31 = vmul.f32 %v4847_v42, %v4057_v40  ;;  %v5715_v13 = vpop.f32.mrf.mxu1  ;;  %v746_v42 = vld [vmem:[%s12537_s17 + $0xd0] sm:$0xff]  ;;  %v7007_v24 = vrot.slane %v7006_v41, 2 }
 0x4c3   : > { %v6876_v26 = vmul.f32 %v12865_v56, %v5715_v13  ;;  %v3659_v59 = vadd.f32 %v15163_v63, %v3258_v16  ;;  %v7023_v56 = vrot.slane %v6875_v39, 4  ;;  %v7012_v13 = vadd.f32 %v7011_v17, %v6873_v2  ;;  %9518 = vmatmul.msk.f32.gmra.mxu2 %vm6085_vm15, %v746_v42  ;;  %v15165_v2 = vld [vmem:[#allocation159_spill] sm:$0xff]  ;;  %v15166_v17 = vld [vmem:[#allocation160_spill] sm:$0xff] }
 0x4c4   : > { %9145 = vmatmul.msk.f32.gmra.mxu3 %vm1392_vm14, %v14910_v60  ;;  %9273 = vmatmul.msk.f32.gmra.mxu0 %vm4378_vm2, %v629_v8  ;;  %v630_v8 = vld [vmem:[%s12372_s23 + $0x130] sm:$0xff]  ;;  %v12938_v23 = vpop.f32.mrf.mxu2  ;;  %v3261_v63 = vadd.f32 %v15166_v17, %v15165_v2  ;;  %v7019_v10 = vrot.slane %v7018_v44, 2  ;;  %v7008_v29 = vadd.f32 %v7007_v24, %v7006_v41  ;;  %v631_v17 = vld [vmem:[%s12372_s23 + $0x138] sm:$0xff]  ;;  %v15168_v41 = vld [vmem:[#allocation162_spill] sm:$0xff] }
 0x4c5   : > { %9385 = vmatmul.msk.f32.gmra.mxu1 %vm5298_vm5, %v5189_v31  ;;  %v7029_v7 = vrot.slane %v6876_v26, 4  ;;  %v7024_v4 = vadd.f32 %v7023_v56, %v6875_v39  ;;  %v7013_v5 = vrot.slane %v7012_v13, 2  ;;  %vm1400_vm1 = vcmp.eq.s32.totalorder %v15168_v41, %v12350_v20  ;;  %v632_v41 = vld [vmem:[%s12372_s23 + $0x140] sm:$0xff] }
 0x4c6   : > { %v7009_v1 = vrot.slane %v7008_v29, 1 }
 0x4c7   : > { %v4059_v40 = vpop.f32.mrf.mxu3  ;;  %v7030_v31 = vadd.f32 %v7029_v7, %v6876_v26  ;;  %v7025_v26 = vrot.slane %v7024_v4, 2  ;;  %v747_v7 = vld [vmem:[%s12537_s17 + $0xd8] sm:$0xff] }
 0x4c8   : > { %v4060_v35 = vadd.f32 %v4059_v40, %v3659_v59  ;;  %v7014_v40 = vadd.f32 %v7013_v5, %v7012_v13  ;;  %v15169_v13 = vld [vmem:[#allocation164_spill] sm:$0xff]  ;;  %v15170_v5 = vld [vmem:[#allocation165_spill] sm:$0xff] }
 0x4c9   : > { %v4850_v49 = vpop.f32.mrf.mxu0  ;;  %v7031_v43 = vrot.slane %v7030_v31, 2  ;;  %v7026_v48 = vadd.f32 %v7025_v26, %v7024_v4 }
 0x4ca   : > { %v5190_v46 = vmul.f32 %v4850_v49, %v4060_v35  ;;  %v5718_v25 = vpop.f32.mrf.mxu1  ;;  %v7001_v49 = vrot.slane %v7000_v21, 2 }
 0x4cb   : > { %v6877_v16 = vmul.f32 %v12878_v12, %v5718_v25  ;;  %v15167_v25 = vld [vmem:[#allocation163_spill] sm:$0xff]  ;;  %9519 = vmatmul.msk.f32.gmra.mxu2 %vm6085_vm15, %v747_v7  ;;  %v748_v7 = vld [vmem:[%s12537_s17 + $0xe0] sm:$0xff] }
 0x4cc   : > { %9146 = vmatmul.msk.f32.gmra.mxu3 %vm1396_vm0, %v14910_v60  ;;  %9274 = vmatmul.msk.f32.gmra.mxu0 %vm4378_vm2, %v630_v8  ;;  %v3662_v12 = vadd.f32 %v15167_v25, %v3261_v63  ;;  %v7002_v35 = vadd.f32 %v7001_v49, %v7000_v21  ;;  %v7020_v8 = vadd.f32 %v7019_v10, %v7018_v44  ;;  %v7015_v44 = vrot.slane %v7014_v40, 1 }
 0x4cd   : > { %v7035_v39 = vrot.slane %v6877_v16, 4  ;;  %9386 = vmatmul.msk.f32.gmra.mxu1 %vm5298_vm5, %v5190_v46  ;;  %v7032_v63 = vadd.f32 %v7031_v43, %v7030_v31  ;;  %v3264_v21 = vadd.f32 %v15170_v5, %v15169_v13  ;;  %v7027_v25 = vrot.slane %v7026_v48, 1  ;;  %v15172_v13 = vld [vmem:[#allocation167_spill] sm:$0xff] }
 0x4ce   : > { %v7003_v4 = vrot.slane %v7002_v35, 1  ;;  %v7021_v10 = vrot.slane %v7020_v8, 1  ;;  %vm1404_vm7 = vcmp.eq.s32.totalorder %v15172_v13, %v12350_v20  ;;  %v15179_v13 = vld [vmem:[#allocation178_spill] sm:$0xff] }
 0x4cf   : > { %v7036_v59 = vadd.f32 %v7035_v39, %v6877_v16  ;;  %v4062_v56 = vpop.f32.mrf.mxu3  ;;  %v12952_v16 = vpop.f32.mrf.mxu2  ;;  %v7033_v26 = vrot.slane %v7032_v63, 1 }
 0x4d0   : > { %v4063_v42 = vadd.f32 %v4062_v56, %v3662_v12  ;;  %v7010_v12 = vadd.f32 %v7009_v1, %v7008_v29  ;;  %v7028_v1 = vadd.f32 %v7027_v25, %v7026_v48 }
 0x4d1   : > { %v7037_v34 = vrot.slane %v7036_v59, 2  ;;  %v4853_v2 = vpop.f32.mrf.mxu0  ;;  %v7034_v5 = vadd.f32 %v7033_v26, %v7032_v63 }
 0x4d2   : > { %v5191_v11 = vmul.f32 %v4853_v2, %v4063_v42  ;;  %v5721_v46 = vpop.f32.mrf.mxu1  ;;  %v7004_v2 = vadd.f32 %v7003_v4, %v7002_v35 }
 0x4d3   : > { %v6878_v24 = vmul.f32 %v12891_v50, %v5721_v46  ;;  %v7038_v49 = vadd.f32 %v7037_v34, %v7036_v59  ;;  %v15171_v50 = vld [vmem:[#allocation168_spill] sm:$0xff]  ;;  %v7016_v59 = vadd.f32 %v7015_v44, %v7014_v40  ;;  %9520 = vmatmul.msk.f32.gmra.mxu2 %vm6085_vm15, %v748_v7  ;;  %v15174_v44 = vld [vmem:[#allocation170_spill] sm:$0xff] }
 0x4d4   : > { %9147 = vmatmul.msk.f32.gmra.mxu3 %vm1400_vm1, %v14910_v60  ;;  %9275 = vmatmul.msk.f32.gmra.mxu0 %vm4378_vm2, %v631_v17  ;;  %v3665_v39 = vadd.f32 %v15171_v50, %v3264_v21  ;;  %v7022_v17 = vadd.f32 %v7021_v10, %v7020_v8  ;;  %v7896_v40 = vsel %vm7895_vm3, %v7010_v12, %v7004_v2  ;;  %v15173_v8 = vld [vmem:[#allocation169_spill] sm:$0xff] }
 0x4d5   : > { %v7041_v31 = vrot.slane %v6878_v24, 4  ;;  %9387 = vmatmul.msk.f32.gmra.mxu1 %vm5298_vm5, %v5191_v11  ;;  %v7039_v42 = vrot.slane %v7038_v49, 1  ;;  %v3267_v4 = vadd.f32 %v15174_v44, %v15173_v8  ;;  %v7898_v10 = vsel %vm7897_vm4, %v7016_v59, %v7896_v40  ;;  %v15175_v50 = vld [vmem:[#allocation173_spill] sm:$0xff] }
 0x4d7   : > { %v7042_v43 = vadd.f32 %v7041_v31, %v6878_v24  ;;  %v4065_v56 = vpop.f32.mrf.mxu3  ;;  %v12969_v21 = vpop.f32.mrf.mxu2  ;;  %v7040_v48 = vadd.f32 %v7039_v42, %v7038_v49  ;;  %v7900_v31 = vsel %vm7899_vm6, %v7022_v17, %v7898_v10 }
 0x4d8   : > { %v4066_v34 = vadd.f32 %v4065_v56, %v3665_v39  ;;  %v3668_v39 = vadd.f32 %v15175_v50, %v3267_v4  ;;  %v7902_v25 = vsel %vm7901_vm8, %v7028_v1, %v7900_v31  ;;  %v15178_v1 = vld [vmem:[#allocation175_spill] sm:$0xff]  ;;  %v15180_v31 = vld [vmem:[#allocation177_spill] sm:$0xff] }
 0x4d9   : > { %v7043_v11 = vrot.slane %v7042_v43, 2  ;;  %v4856_v46 = vpop.f32.mrf.mxu0  ;;  %v7904_v49 = vsel %vm7903_vm9, %v7034_v5, %v7902_v25  ;;  %v634_v4 = vld [vmem:[%s12372_s23 + $0x150] sm:$0xff]  ;;  %vm1412_vm13 = vcmp.eq.s32.totalorder %v15180_v31, %v12350_v20 }
 0x4da   : > { %v5192_v29 = vmul.f32 %v4856_v46, %v4066_v34  ;;  %v12964_v24 = vpop.f32.mrf.mxu1  ;;  %v7906_v56 = vsel %vm7905_vm10, %v7040_v48, %v7904_v49  ;;  %v633_v34 = vld [vmem:[%s12372_s23 + $0x148] sm:$0xff]  ;;  %v15181_v50 = vld [vmem:[#allocation179_spill] sm:$0xff] }
 0x4db   : > { %v7044_v35 = vadd.f32 %v7043_v11, %v7042_v43  ;;  %v749_v43 = vld [vmem:[%s12537_s17 + $0xe8] sm:$0xff]  ;;  %v15176_v11 = vld [vmem:[#allocation172_spill] sm:$0xff]  ;;  %v15183_v49 = vld [vmem:[#allocation183_spill] sm:$0xff] }
 0x4dc   : > { %9148 = vmatmul.msk.f32.gmra.mxu3 %vm1404_vm7, %v14910_v60  ;;  %9276 = vmatmul.msk.f32.gmra.mxu0 %vm4378_vm2, %v632_v41  ;;  %vm1408_vm12 = vcmp.eq.s32.totalorder %v15176_v11, %v12350_v20  ;;  %v15177_v41 = vld [vmem:[#allocation174_spill] sm:$0xff] }
 0x4dd   : > { %v7045_v63 = vrot.slane %v7044_v35, 1  ;;  %9388 = vmatmul.msk.f32.gmra.mxu1 %vm5298_vm5, %v5192_v29  ;;  %9521 = vmatmul.msk.f32.gmra.mxu2 %vm6085_vm15, %v749_v43  ;;  %v3270_v29 = vadd.f32 %v15178_v1, %v15177_v41  ;;  %v751_v43 = vld [vmem:[%s12537_s17 + $0xf8] sm:$0xff]  ;;  %v15186_v1 = vld [vmem:[#allocation185_spill] sm:$0xff] }
 0x4de   : > { %v15185_v41 = vld [vmem:[#allocation184_spill] sm:$0xff] }
 0x4df   : > { %v7046_v12 = vadd.f32 %v7045_v63, %v7044_v35  ;;  %v4068_v26 = vpop.f32.mrf.mxu3  ;;  %v12993_v46 = vpop.f32.mrf.mxu2  ;;  %v3671_v40 = vadd.f32 %v15179_v13, %v3270_v29  ;;  %v750_v35 = vld [vmem:[%s12537_s17 + $0xf0] sm:$0xff]  ;;  %v3276_v29 = vadd.f32 %v15186_v1, %v15185_v41  ;;  %v15187_v13 = vld [vmem:[#allocation188_spill] sm:$0xff]  ;;  %v6879_v41 = vmul.f32 %v12904_v32, %v12964_v24 }
 0x4e0   : > { %v4069_v7 = vadd.f32 %v4068_v26, %v3668_v39  ;;  %v15182_v39 = vld [vmem:[#allocation180_spill] sm:$0xff] }
 0x4e1   : > { %v7908_v59 = vsel %vm7907_vm11, %v7046_v12, %v7906_v56  ;;  %v4859_v42 = vpop.f32.mrf.mxu0  ;;  %v3273_v25 = vadd.f32 %v15182_v39, %v15181_v50  ;;  %v15188_v50 = vld [vmem:[#allocation187_spill] sm:$0xff] }
 0x4e2   : > { %8030 = vst [vmem:[%s12988_s16] sm:$0xff] %v7908_v59  ;;  %v5193_v2 = vmul.f32 %v4859_v42, %v4069_v7  ;;  %v5727_v17 = vpop.f32.mrf.mxu1  ;;  %v635_v59 = vld [vmem:[%s12372_s23 + $0x158] sm:$0xff]  ;;  %vm1420_vm0 = vcmp.eq.s32.totalorder %v15188_v50, %v12350_v20 }
 0x4e3   : > { %v3674_v12 = vadd.f32 %v15183_v49, %v3273_v25  ;;  %v15189_v25 = vld [vmem:[#allocation189_spill] sm:$0xff]  ;;  %v15190_v49 = vld [vmem:[#allocation190_spill] sm:$0xff] }
 0x4e4   : > { %9149 = vmatmul.msk.f32.gmra.mxu3 %vm1408_vm12, %v14910_v60  ;;  %9277 = vmatmul.msk.f32.gmra.mxu0 %vm4378_vm2, %v633_v34 }
 0x4e5   : > { %9389 = vmatmul.msk.f32.gmra.mxu1 %vm5298_vm5, %v5193_v2  ;;  %9522 = vmatmul.msk.f32.gmra.mxu2 %vm6085_vm15, %v750_v35  ;;  %v15184_v2 = vld [vmem:[#allocation182_spill] sm:$0xff]  ;;  %v752_v35 = vld [vmem:[%s12537_s17 + $0x100] sm:$0xff] }
 0x4e6   : > { %vm1416_vm14 = vcmp.eq.s32.totalorder %v15184_v2, %v12350_v20 }
 0x4e7   : > { %v4071_v5 = vpop.f32.mrf.mxu3  ;;  %v13006_v63 = vpop.f32.mrf.mxu2 }
 0x4e8   : > { %v4072_v8 = vadd.f32 %v4071_v5, %v3671_v40  ;;  %v3677_v40 = vadd.f32 %v15187_v13, %v3276_v29  ;;  %v637_v13 = vld [vmem:[%s12372_s23 + $0x168] sm:$0xff] }
 0x4e9   : > { %v4862_v44 = vpop.f32.mrf.mxu0 }
 0x4ea   : > { %v5194_v10 = vmul.f32 %v4862_v44, %v4072_v8  ;;  %v5730_v48 = vpop.f32.mrf.mxu1 }
 0x4ec   : > { %9150 = vmatmul.msk.f32.gmra.mxu3 %vm1412_vm13, %v14910_v60  ;;  %9278 = vmatmul.msk.f32.gmra.mxu0 %vm4378_vm2, %v634_v4  ;;  %v636_v4 = vld [vmem:[%s12372_s23 + $0x160] sm:$0xff] }
 0x4ed   : > { %9390 = vmatmul.msk.f32.gmra.mxu1 %vm5298_vm5, %v5194_v10  ;;  %9523 = vmatmul.msk.f32.gmra.mxu2 %vm6085_vm15, %v751_v43 }
 0x4ef   : > { %v4074_v26 = vpop.f32.mrf.mxu3  ;;  %v13019_v11 = vpop.f32.mrf.mxu2 }
 0x4f0   : > { %v4075_v56 = vadd.f32 %v4074_v26, %v3674_v12  ;;  %v3279_v12 = vadd.f32 %v15190_v49, %v15189_v25  ;;  %v15191_v26 = vld [vmem:[#allocation193_spill] sm:$0xff]  ;;  %v754_v25 = vld [vmem:[%s12537_s17 + $0x110] sm:$0xff] }
 0x4f1   : > { %v4865_v7 = vpop.f32.mrf.mxu0 }
 0x4f2   : > { %v5195_v42 = vmul.f32 %v4865_v7, %v4075_v56  ;;  %v5733_v34 = vpop.f32.mrf.mxu1  ;;  %v3680_v43 = vadd.f32 %v15191_v26, %v3279_v12  ;;  %v6880_v56 = vmul.f32 %v12924_v37, %v5727_v17 }
 0x4f3   : > { %v6882_v1 = vmul.f32 %v12952_v16, %v5733_v34  ;;  %v7047_v16 = vrot.slane %v6879_v41, 4  ;;  %v15195_v34 = vld [vmem:[#allocation198_spill] sm:$0xff] }
 0x4f4   : > { %9151 = vmatmul.msk.f32.gmra.mxu3 %vm1416_vm14, %v14910_v60  ;;  %9279 = vmatmul.msk.f32.gmra.mxu0 %vm4378_vm2, %v635_v59  ;;  %v753_v59 = vld [vmem:[%s12537_s17 + $0x108] sm:$0xff] }
 0x4f5   : > { %9391 = vmatmul.msk.f32.gmra.mxu1 %vm5298_vm5, %v5195_v42  ;;  %9524 = vmatmul.msk.f32.gmra.mxu2 %vm6085_vm15, %v752_v35  ;;  %v6881_v42 = vmul.f32 %v12938_v23, %v5730_v48  ;;  %v15192_v23 = vld [vmem:[#allocation192_spill] sm:$0xff]  ;;  %v15193_v48 = vld [vmem:[#allocation194_spill] sm:$0xff]  ;;  %v7048_v26 = vadd.f32 %v7047_v16, %v6879_v41 }
 0x4f6   : > { %vm1424_vm1 = vcmp.eq.s32.totalorder %v15192_v23, %v12350_v20 }
 0x4f7   : > { %v4077_v5 = vpop.f32.mrf.mxu3  ;;  %v13032_v39 = vpop.f32.mrf.mxu2  ;;  %v7059_v24 = vrot.slane %v6881_v42, 4 }
 0x4f8   : > { %v4078_v8 = vadd.f32 %v4077_v5, %v3677_v40 }
 0x4f9   : > { %v4868_v44 = vpop.f32.mrf.mxu0  ;;  %v7060_v49 = vadd.f32 %v7059_v24, %v6881_v42  ;;  %v15197_v42 = vld [vmem:[#allocation199_spill] sm:$0xff] }
 0x4fa   : > { %v5196_v10 = vmul.f32 %v4868_v44, %v4078_v8  ;;  %v5736_v31 = vpop.f32.mrf.mxu1  ;;  %v7053_v8 = vrot.slane %v6880_v56, 4  ;;  %v15194_v44 = vld [vmem:[#allocation195_spill] sm:$0xff] }
 0x4fb   : > { %v6883_v40 = vmul.f32 %v12969_v21, %v5736_v31  ;;  %v3282_v32 = vadd.f32 %v15194_v44, %v15193_v48  ;;  %v7065_v21 = vrot.slane %v6882_v1, 4  ;;  %v15198_v48 = vld [vmem:[#allocation200_spill] sm:$0xff]  ;;  %v7061_v41 = vrot.slane %v7060_v49, 2 }
 0x4fc   : > { %9152 = vmatmul.msk.f32.gmra.mxu3 %vm1420_vm0, %v14910_v60  ;;  %9280 = vmatmul.msk.f32.gmra.mxu0 %vm4378_vm2, %v636_v4  ;;  %v3285_v44 = vadd.f32 %v15198_v48, %v15197_v42 }
 0x4fd   : > { %9392 = vmatmul.msk.f32.gmra.mxu1 %vm5298_vm5, %v5196_v10  ;;  %9525 = vmatmul.msk.f32.gmra.mxu2 %vm6085_vm15, %v753_v59  ;;  %v7071_v4 = vrot.slane %v6883_v40, 4  ;;  %v7054_v10 = vadd.f32 %v7053_v8, %v6880_v56  ;;  %v638_v59 = vld [vmem:[%s12372_s23 + $0x170] sm:$0xff]  ;;  %v15196_v56 = vld [vmem:[#allocation197_spill] sm:$0xff] }
 0x4fe   : > { %vm1428_vm7 = vcmp.eq.s32.totalorder %v15196_v56, %v12350_v20 }
 0x4ff   : > { %v4080_v7 = vpop.f32.mrf.mxu3  ;;  %v13052_v17 = vpop.f32.mrf.mxu2 }
 0x500   : > { %v4081_v2 = vadd.f32 %v4080_v7, %v3680_v43  ;;  %v7066_v43 = vadd.f32 %v7065_v21, %v6882_v1  ;;  %v7049_v1 = vrot.slane %v7048_v26, 2 }
 0x501   : > { %v4871_v29 = vpop.f32.mrf.mxu0 }
 0x502   : > { %v5197_v5 = vmul.f32 %v4871_v29, %v4081_v2  ;;  %v5739_v35 = vpop.f32.mrf.mxu1  ;;  %v7072_v2 = vadd.f32 %v7071_v4, %v6883_v40  ;;  %v7067_v40 = vrot.slane %v7066_v43, 2  ;;  %v755_v4 = vld [vmem:[%s12537_s17 + $0x118] sm:$0xff] }
 0x503   : > { %v6884_v37 = vmul.f32 %v12993_v46, %v5739_v35  ;;  %v3683_v46 = vadd.f32 %v15195_v34, %v3282_v32  ;;  %v7055_v35 = vrot.slane %v7054_v10, 2 }
 0x504   : > { %9153 = vmatmul.msk.f32.gmra.mxu3 %vm1424_vm1, %v14910_v60  ;;  %9281 = vmatmul.msk.f32.gmra.mxu0 %vm4378_vm2, %v637_v13  ;;  %v7073_v24 = vrot.slane %v7072_v2, 2 }
 0x505   : > { %9393 = vmatmul.msk.f32.gmra.mxu1 %vm5298_vm5, %v5197_v5  ;;  %v7077_v31 = vrot.slane %v6884_v37, 4  ;;  %9526 = vmatmul.msk.f32.gmra.mxu2 %vm6085_vm15, %v754_v25  ;;  %v7056_v16 = vadd.f32 %v7055_v35, %v7054_v10  ;;  %v7050_v25 = vadd.f32 %v7049_v1, %v7048_v26  ;;  %v15200_v35 = vld [vmem:[#allocation201_spill] sm:$0xff] }
 0x506   : > { %v7074_v56 = vadd.f32 %v7073_v24, %v7072_v2  ;;  %vm1432_vm12 = vcmp.eq.s32.totalorder %v15200_v35, %v12350_v20 }
 0x507   : > { %v4083_v50 = vpop.f32.mrf.mxu3  ;;  %v7078_v5 = vadd.f32 %v7077_v31, %v6884_v37  ;;  %v13066_v8 = vpop.f32.mrf.mxu2  ;;  %v7062_v31 = vadd.f32 %v7061_v41, %v7060_v49  ;;  %v7057_v48 = vrot.slane %v7056_v16, 1  ;;  %v15201_v49 = vld [vmem:[#allocation203_spill] sm:$0xff]  ;;  %v15202_v41 = vld [vmem:[#allocation204_spill] sm:$0xff]  ;;  %v7051_v2 = vrot.slane %v7050_v25, 1 }
 0x508   : > { %v4084_v12 = vadd.f32 %v4083_v50, %v3683_v46  ;;  %v3288_v26 = vadd.f32 %v15202_v41, %v15201_v49  ;;  %v640_v49 = vld [vmem:[%s12372_s23 + $0x180] sm:$0xff] }
 0x509   : > { %v4874_v7 = vpop.f32.mrf.mxu0  ;;  %v7079_v21 = vrot.slane %v7078_v5, 2 }
 0x50a   : > { %v5198_v29 = vmul.f32 %v4874_v7, %v4084_v12  ;;  %v5742_v13 = vpop.f32.mrf.mxu1  ;;  %v7068_v12 = vadd.f32 %v7067_v40, %v7066_v43  ;;  %v7063_v43 = vrot.slane %v7062_v31, 1 }
 0x50b   : > { %v6885_v23 = vmul.f32 %v13006_v63, %v5742_v13  ;;  %v15199_v63 = vld [vmem:[#allocation202_spill] sm:$0xff]  ;;  %v639_v13 = vld [vmem:[%s12372_s23 + $0x178] sm:$0xff] }
 0x50c   : > { %9154 = vmatmul.msk.f32.gmra.mxu3 %vm1428_vm7, %v14910_v60  ;;  %9282 = vmatmul.msk.f32.gmra.mxu0 %vm4378_vm2, %v638_v59  ;;  %v3686_v37 = vadd.f32 %v15199_v63, %v3285_v44  ;;  %v7080_v44 = vadd.f32 %v7079_v21, %v7078_v5  ;;  %v7069_v40 = vrot.slane %v7068_v12, 1  ;;  %v7075_v63 = vrot.slane %v7074_v56, 1 }
 0x50d   : > { %v7083_v32 = vrot.slane %v6885_v23, 4  ;;  %9394 = vmatmul.msk.f32.gmra.mxu1 %vm5298_vm5, %v5198_v29  ;;  %9527 = vmatmul.msk.f32.gmra.mxu2 %vm6085_vm15, %v755_v4  ;;  %v756_v4 = vld [vmem:[%s12537_s17 + $0x120] sm:$0xff] }
 0x50e   : > { %v7081_v24 = vrot.slane %v7080_v44, 1 }
 0x50f   : > { %v7084_v34 = vadd.f32 %v7083_v32, %v6885_v23  ;;  %v4086_v46 = vpop.f32.mrf.mxu3  ;;  %v13080_v23 = vpop.f32.mrf.mxu2 }
 0x510   : > { %v4087_v50 = vadd.f32 %v4086_v46, %v3686_v37  ;;  %v7058_v37 = vadd.f32 %v7057_v48, %v7056_v16  ;;  %v7082_v48 = vadd.f32 %v7081_v24, %v7080_v44 }
 0x511   : > { %v7085_v7 = vrot.slane %v7084_v34, 2  ;;  %v4877_v59 = vpop.f32.mrf.mxu0 }
 0x512   : > { %v5199_v42 = vmul.f32 %v4877_v59, %v4087_v50  ;;  %v5745_v29 = vpop.f32.mrf.mxu1  ;;  %v7064_v50 = vadd.f32 %v7063_v43, %v7062_v31  ;;  %v7052_v59 = vadd.f32 %v7051_v2, %v7050_v25  ;;  %v15205_v43 = vld [vmem:[#allocation207_spill] sm:$0xff]  ;;  %v15206_v25 = vld [vmem:[#allocation208_spill] sm:$0xff] }
 0x513   : > { %v6886_v10 = vmul.f32 %v13019_v11, %v5745_v29  ;;  %v7086_v1 = vadd.f32 %v7085_v7, %v7084_v34  ;;  %v15203_v11 = vld [vmem:[#allocation206_spill] sm:$0xff] }
 0x514   : > { %9155 = vmatmul.msk.f32.gmra.mxu3 %vm1432_vm12, %v14910_v60  ;;  %9283 = vmatmul.msk.f32.gmra.mxu0 %vm4378_vm2, %v639_v13  ;;  %v3689_v32 = vadd.f32 %v15203_v11, %v3288_v26  ;;  %v7070_v13 = vadd.f32 %v7069_v40, %v7068_v12  ;;  %v7909_v16 = vsel %vm7895_vm3, %v7058_v37, %v7052_v59  ;;  %v15204_v26 = vld [vmem:[#allocation205_spill] sm:$0xff] }
 0x515   : > { %v7089_v5 = vrot.slane %v6886_v10, 4  ;;  %9395 = vmatmul.msk.f32.gmra.mxu1 %vm5298_vm5, %v5199_v42  ;;  %v7087_v34 = vrot.slane %v7086_v1, 1  ;;  %9528 = vmatmul.msk.f32.gmra.mxu2 %vm6085_vm15, %v756_v4  ;;  %v7076_v42 = vadd.f32 %v7075_v63, %v7074_v56  ;;  %vm1436_vm13 = vcmp.eq.s32.totalorder %v15204_v26, %v12350_v20 }
 0x516   : > { %v3291_v12 = vadd.f32 %v15206_v25, %v15205_v43  ;;  %v7910_v2 = vsel %vm7897_vm4, %v7064_v50, %v7909_v16  ;;  %v642_v25 = vld [vmem:[%s12372_s23 + $0x190] sm:$0xff] }
 0x517   : > { %v7090_v21 = vadd.f32 %v7089_v5, %v6886_v10  ;;  %v4089_v46 = vpop.f32.mrf.mxu3  ;;  %v13096_v31 = vpop.f32.mrf.mxu2  ;;  %v7088_v40 = vadd.f32 %v7087_v34, %v7086_v1  ;;  %v7911_v56 = vsel %vm7899_vm6, %v7070_v13, %v7910_v2  ;;  %v15207_v5 = vld [vmem:[#allocation210_spill] sm:$0xff]  ;;  %v15208_v13 = vld [vmem:[#allocation209_spill] sm:$0xff] }
 0x518   : > { %v4090_v7 = vadd.f32 %v4089_v46, %v3689_v32  ;;  %v3692_v11 = vadd.f32 %v15207_v5, %v3291_v12  ;;  %v7912_v32 = vsel %vm7901_vm8, %v7076_v42, %v7911_v56  ;;  %v757_v1 = vld [vmem:[%s12537_s17 + $0x128] sm:$0xff]  ;;  %vm1440_vm14 = vcmp.eq.s32.totalorder %v15208_v13, %v12350_v20  ;;  %v15214_v5 = vld [vmem:[#allocation216_spill] sm:$0xff]  ;;  %v15217_v13 = vld [vmem:[#allocation219_spill] sm:$0xff] }
 0x519   : > { %v7091_v29 = vrot.slane %v7090_v21, 2  ;;  %v4880_v35 = vpop.f32.mrf.mxu0  ;;  %v7913_v63 = vsel %vm7903_vm9, %v7082_v48, %v7912_v32  ;;  %v641_v34 = vld [vmem:[%s12372_s23 + $0x188] sm:$0xff] }
 0x51a   : > { %v5200_v41 = vmul.f32 %v4880_v35, %v4090_v7  ;;  %v13091_v54 = vpop.f32.mrf.mxu1  ;;  %v15209_v35 = vld [vmem:[#allocation211_spill] sm:$0xff]  ;;  %v15215_v32 = vld [vmem:[#allocation218_spill] sm:$0xff] }
 0x51b   : > { %v7092_v10 = vadd.f32 %v7091_v29, %v7090_v21  ;;  %v7914_v21 = vsel %vm7905_vm10, %v7088_v40, %v7913_v63  ;;  %v15212_v40 = vld [vmem:[#allocation213_spill] sm:$0xff] }
 0x51c   : > { %9156 = vmatmul.msk.f32.gmra.mxu3 %vm1436_vm13, %v14910_v60  ;;  %9284 = vmatmul.msk.f32.gmra.mxu0 %vm4378_vm2, %v640_v49  ;;  %v15210_v49 = vld [vmem:[#allocation212_spill] sm:$0xff]  ;;  %vm1444_vm0 = vcmp.eq.s32.totalorder %v15212_v40, %v12350_v20  ;;  %v15220_v40 = vld [vmem:[#allocation221_spill] sm:$0xff] }
 0x51d   : > { %v7093_v44 = vrot.slane %v7092_v10, 1  ;;  %9396 = vmatmul.msk.f32.gmra.mxu1 %vm5298_vm5, %v5200_v41  ;;  %9529 = vmatmul.msk.f32.gmra.mxu2 %vm6085_vm15, %v757_v1  ;;  %v3294_v42 = vadd.f32 %v15210_v49, %v15209_v35  ;;  %v15211_v41 = vld [vmem:[#allocation214_spill] sm:$0xff]  ;;  %v15218_v35 = vld [vmem:[#allocation220_spill] sm:$0xff]  ;;  %vm1452_vm7 = vcmp.eq.s32.totalorder %v15220_v40, %v12350_v20  ;;  %v762_v40 = vld [vmem:[%s12537_s17 + $0x150] sm:$0xff] }
 0x51e   : > { %v3300_v49 = vadd.f32 %v15218_v35, %v15217_v13 }
 0x51f   : > { %v7094_v37 = vadd.f32 %v7093_v44, %v7092_v10  ;;  %v4092_v24 = vpop.f32.mrf.mxu3  ;;  %v13116_v29 = vpop.f32.mrf.mxu2  ;;  %v3695_v16 = vadd.f32 %v15211_v41, %v3294_v42  ;;  %v758_v10 = vld [vmem:[%s12537_s17 + $0x130] sm:$0xff]  ;;  %v15219_v42 = vld [vmem:[#allocation222_spill] sm:$0xff] }
 0x520   : > { %v4093_v46 = vadd.f32 %v4092_v24, %v3692_v11  ;;  %v15213_v44 = vld [vmem:[#allocation215_spill] sm:$0xff]  ;;  %v759_v24 = vld [vmem:[%s12537_s17 + $0x138] sm:$0xff]  ;;  %v3701_v41 = vadd.f32 %v15219_v42, %v3300_v49  ;;  %v645_v49 = vld [vmem:[%s12372_s23 + $0x1a8] sm:$0xff] }
 0x521   : > { %v7915_v4 = vsel %vm7907_vm11, %v7094_v37, %v7914_v21  ;;  %v4883_v50 = vpop.f32.mrf.mxu0  ;;  %v3297_v11 = vadd.f32 %v15214_v5, %v15213_v44  ;;  %v15221_v5 = vld [vmem:[#allocation223_spill] sm:$0xff] }
 0x522   : > { %8031 = vst [vmem:[%s12988_s16 + $0x8] sm:$0xff] %v7915_v4  ;;  %v5201_v7 = vmul.f32 %v4883_v50, %v4093_v46  ;;  %v5751_v59 = vpop.f32.mrf.mxu1  ;;  %v643_v46 = vld [vmem:[%s12372_s23 + $0x198] sm:$0xff] }
 0x523   : > { %v3698_v63 = vadd.f32 %v15215_v32, %v3297_v11  ;;  %v15222_v11 = vld [vmem:[#allocation224_spill] sm:$0xff] }
 0x524   : > { %9157 = vmatmul.msk.f32.gmra.mxu3 %vm1440_vm14, %v14910_v60  ;;  %9285 = vmatmul.msk.f32.gmra.mxu0 %vm4378_vm2, %v641_v34  ;;  %v15216_v34 = vld [vmem:[#allocation217_spill] sm:$0xff]  ;;  %v3303_v32 = vadd.f32 %v15222_v11, %v15221_v5 }
 0x525   : > { %9397 = vmatmul.msk.f32.gmra.mxu1 %vm5298_vm5, %v5201_v7  ;;  %9530 = vmatmul.msk.f32.gmra.mxu2 %vm6085_vm15, %v758_v10  ;;  %vm1448_vm1 = vcmp.eq.s32.totalorder %v15216_v34, %v12350_v20  ;;  %v6887_v34 = vmul.f32 %v13032_v39, %v13091_v54 }
 0x527   : > { %v4095_v48 = vpop.f32.mrf.mxu3  ;;  %v13129_v56 = vpop.f32.mrf.mxu2 }
 0x528   : > { %v4096_v26 = vadd.f32 %v4095_v48, %v3695_v16  ;;  %v760_v48 = vld [vmem:[%s12537_s17 + $0x140] sm:$0xff] }
 0x529   : > { %v4886_v43 = vpop.f32.mrf.mxu0 }
 0x52a   : > { %v5202_v12 = vmul.f32 %v4886_v43, %v4096_v26  ;;  %v5754_v2 = vpop.f32.mrf.mxu1  ;;  %v644_v43 = vld [vmem:[%s12372_s23 + $0x1a0] sm:$0xff] }
 0x52c   : > { %9158 = vmatmul.msk.f32.gmra.mxu3 %vm1444_vm0, %v14910_v60  ;;  %9286 = vmatmul.msk.f32.gmra.mxu0 %vm4378_vm2, %v642_v25 }
 0x52d   : > { %9398 = vmatmul.msk.f32.gmra.mxu1 %vm5298_vm5, %v5202_v12  ;;  %9531 = vmatmul.msk.f32.gmra.mxu2 %vm6085_vm15, %v759_v24  ;;  %v6888_v24 = vmul.f32 %v13052_v17, %v5751_v59 }
 0x52f   : > { %v4098_v37 = vpop.f32.mrf.mxu3  ;;  %v13142_v7 = vpop.f32.mrf.mxu2 }
 0x530   : > { %v4099_v1 = vadd.f32 %v4098_v37, %v3698_v63  ;;  %v15223_v63 = vld [vmem:[#allocation226_spill] sm:$0xff] }
 0x531   : > { %v4889_v21 = vpop.f32.mrf.mxu0  ;;  %v3704_v37 = vadd.f32 %v15223_v63, %v3303_v32 }
 0x532   : > { %v5203_v4 = vmul.f32 %v4889_v21, %v4099_v1  ;;  %v5757_v50 = vpop.f32.mrf.mxu1  ;;  %v761_v21 = vld [vmem:[%s12537_s17 + $0x148] sm:$0xff] }
 0x533   : > { %v6890_v13 = vmul.f32 %v13080_v23, %v5757_v50  ;;  %v7095_v23 = vrot.slane %v6887_v34, 4  ;;  %v15227_v50 = vld [vmem:[#allocation230_spill] sm:$0xff] }
 0x534   : > { %9159 = vmatmul.msk.f32.gmra.mxu3 %vm1448_vm1, %v14910_v60  ;;  %9287 = vmatmul.msk.f32.gmra.mxu0 %vm4378_vm2, %v643_v46  ;;  %v6889_v46 = vmul.f32 %v13066_v8, %v5754_v2  ;;  %v15224_v8 = vld [vmem:[#allocation225_spill] sm:$0xff]  ;;  %v15225_v2 = vld [vmem:[#allocation227_spill] sm:$0xff] }
 0x535   : > { %9399 = vmatmul.msk.f32.gmra.mxu1 %vm5298_vm5, %v5203_v4  ;;  %9532 = vmatmul.msk.f32.gmra.mxu2 %vm6085_vm15, %v760_v48  ;;  %v7101_v48 = vrot.slane %v6888_v24, 4  ;;  %vm1456_vm12 = vcmp.eq.s32.totalorder %v15224_v8, %v12350_v20  ;;  %v7096_v32 = vadd.f32 %v7095_v23, %v6887_v34  ;;  %v15230_v8 = vld [vmem:[#allocation232_spill] sm:$0xff] }
 0x536   : > { %v7107_v39 = vrot.slane %v6889_v46, 4 }
 0x537   : > { %v4101_v16 = vpop.f32.mrf.mxu3  ;;  %v13155_v44 = vpop.f32.mrf.mxu2 }
 0x538   : > { %v4102_v10 = vadd.f32 %v4101_v16, %v3701_v41  ;;  %v7108_v5 = vadd.f32 %v7107_v39, %v6889_v46  ;;  %v15229_v46 = vld [vmem:[#allocation231_spill] sm:$0xff] }
 0x539   : > { %v4892_v26 = vpop.f32.mrf.mxu0 }
 0x53a   : > { %v5204_v25 = vmul.f32 %v4892_v26, %v4102_v10  ;;  %v5760_v12 = vpop.f32.mrf.mxu1  ;;  %v15226_v10 = vld [vmem:[#allocation228_spill] sm:$0xff]  ;;  %v7109_v34 = vrot.slane %v7108_v5, 2 }
 0x53b   : > { %v6891_v42 = vmul.f32 %v13096_v31, %v5760_v12  ;;  %v3306_v54 = vadd.f32 %v15226_v10, %v15225_v2  ;;  %v7113_v31 = vrot.slane %v6890_v13, 4  ;;  %v3309_v2 = vadd.f32 %v15230_v8, %v15229_v46 }
 0x53c   : > { %9160 = vmatmul.msk.f32.gmra.mxu3 %vm1452_vm7, %v14910_v60  ;;  %9288 = vmatmul.msk.f32.gmra.mxu0 %vm4378_vm2, %v644_v43  ;;  %v7102_v43 = vadd.f32 %v7101_v48, %v6888_v24  ;;  %v15228_v24 = vld [vmem:[#allocation229_spill] sm:$0xff] }
 0x53d   : > { %9400 = vmatmul.msk.f32.gmra.mxu1 %vm5298_vm5, %v5204_v25  ;;  %9533 = vmatmul.msk.f32.gmra.mxu2 %vm6085_vm15, %v761_v21  ;;  %v7119_v26 = vrot.slane %v6891_v42, 4  ;;  %v7114_v63 = vadd.f32 %v7113_v31, %v6890_v13  ;;  %vm1460_vm13 = vcmp.eq.s32.totalorder %v15228_v24, %v12350_v20  ;;  %v7097_v13 = vrot.slane %v7096_v32, 2 }
 0x53f   : > { %v4104_v1 = vpop.f32.mrf.mxu3  ;;  %v13175_v59 = vpop.f32.mrf.mxu2  ;;  %v7120_v21 = vadd.f32 %v7119_v26, %v6891_v42  ;;  %v7115_v42 = vrot.slane %v7114_v63, 2  ;;  %v7110_v26 = vadd.f32 %v7109_v34, %v7108_v5  ;;  %v15233_v5 = vld [vmem:[#allocation235_spill] sm:$0xff] }
 0x540   : > { %v4105_v4 = vadd.f32 %v4104_v1, %v3704_v37  ;;  %v646_v1 = vld [vmem:[%s12372_s23 + $0x1b0] sm:$0xff] }
 0x541   : > { %v4895_v35 = vpop.f32.mrf.mxu0 }
 0x542   : > { %v5205_v41 = vmul.f32 %v4895_v35, %v4105_v4  ;;  %v5763_v16 = vpop.f32.mrf.mxu1 }
 0x543   : > { %v6892_v17 = vmul.f32 %v13116_v29, %v5763_v16  ;;  %v3707_v29 = vadd.f32 %v15227_v50, %v3306_v54  ;;  %v7121_v54 = vrot.slane %v7120_v21, 2 }
 0x544   : > { %9161 = vmatmul.msk.f32.gmra.mxu3 %vm1456_vm12, %v14910_v60  ;;  %9289 = vmatmul.msk.f32.gmra.mxu0 %vm4378_vm2, %v645_v49  ;;  %v7103_v49 = vrot.slane %v7102_v43, 2 }
 0x545   : > { %9401 = vmatmul.msk.f32.gmra.mxu1 %vm5298_vm5, %v5205_v41  ;;  %v7125_v25 = vrot.slane %v6892_v17, 4  ;;  %9534 = vmatmul.msk.f32.gmra.mxu2 %vm6085_vm15, %v762_v40  ;;  %v7116_v40 = vadd.f32 %v7115_v42, %v7114_v63  ;;  %v7111_v63 = vrot.slane %v7110_v26, 1 }
 0x546   : > { %v7104_v39 = vadd.f32 %v7103_v49, %v7102_v43  ;;  %v15232_v49 = vld [vmem:[#allocation233_spill] sm:$0xff] }
 0x547   : > { %v4107_v12 = vpop.f32.mrf.mxu3  ;;  %v7126_v41 = vadd.f32 %v7125_v25, %v6892_v17  ;;  %v13189_v48 = vpop.f32.mrf.mxu2  ;;  %vm1464_vm14 = vcmp.eq.s32.totalorder %v15232_v49, %v12350_v20  ;;  %v648_v49 = vld [vmem:[%s12372_s23 + $0x1c0] sm:$0xff] }
 0x548   : > { %v4108_v11 = vadd.f32 %v4107_v12, %v3707_v29  ;;  %v763_v29 = vld [vmem:[%s12537_s17 + $0x158] sm:$0xff]  ;;  %v7098_v12 = vadd.f32 %v7097_v13, %v7096_v32  ;;  %v7105_v46 = vrot.slane %v7104_v39, 1  ;;  %v7117_v13 = vrot.slane %v7116_v40, 1 }
 0x549   : > { %v4898_v37 = vpop.f32.mrf.mxu0  ;;  %v7127_v23 = vrot.slane %v7126_v41, 2 }
 0x54a   : > { %v5206_v4 = vmul.f32 %v4898_v37, %v4108_v11  ;;  %v5766_v35 = vpop.f32.mrf.mxu1 }
 0x54b   : > { %v6893_v16 = vmul.f32 %v13129_v56, %v5766_v35  ;;  %v15231_v56 = vld [vmem:[#allocation234_spill] sm:$0xff]  ;;  %v7122_v35 = vadd.f32 %v7121_v54, %v7120_v21  ;;  %v7128_v8 = vadd.f32 %v7127_v23, %v7126_v41  ;;  %v7099_v21 = vrot.slane %v7098_v12, 1 }
 0x54c   : > { %9162 = vmatmul.msk.f32.gmra.mxu3 %vm1460_vm13, %v14910_v60  ;;  %9290 = vmatmul.msk.f32.gmra.mxu0 %vm4378_vm2, %v646_v1  ;;  %v3710_v17 = vadd.f32 %v15231_v56, %v3309_v2  ;;  %v647_v1 = vld [vmem:[%s12372_s23 + $0x1b8] sm:$0xff]  ;;  %v7106_v56 = vadd.f32 %v7105_v46, %v7104_v39 }
 0x54d   : > { %v7131_v10 = vrot.slane %v6893_v16, 4  ;;  %9402 = vmatmul.msk.f32.gmra.mxu1 %vm5298_vm5, %v5206_v4  ;;  %9535 = vmatmul.msk.f32.gmra.mxu2 %vm6085_vm15, %v763_v29  ;;  %v15234_v2 = vld [vmem:[#allocation236_spill] sm:$0xff]  ;;  %v7112_v29 = vadd.f32 %v7111_v63, %v7110_v26  ;;  %v15237_v63 = vld [vmem:[#allocation239_spill] sm:$0xff] }
 0x54e   : > { %v3312_v32 = vadd.f32 %v15234_v2, %v15233_v5 }
 0x54f   : > { %v7132_v31 = vadd.f32 %v7131_v10, %v6893_v16  ;;  %v4110_v50 = vpop.f32.mrf.mxu3  ;;  %v13203_v16 = vpop.f32.mrf.mxu2  ;;  %v7123_v10 = vrot.slane %v7122_v35, 1 }
 0x550   : > { %v4111_v25 = vadd.f32 %v4110_v50, %v3710_v17  ;;  %v7129_v17 = vrot.slane %v7128_v8, 1  ;;  %v764_v50 = vld [vmem:[%s12537_s17 + $0x160] sm:$0xff] }
 0x551   : > { %v7133_v11 = vrot.slane %v7132_v31, 2  ;;  %v4901_v37 = vpop.f32.mrf.mxu0 }
 0x552   : > { %v5207_v24 = vmul.f32 %v4901_v37, %v4111_v25  ;;  %v5769_v4 = vpop.f32.mrf.mxu1  ;;  %v7118_v37 = vadd.f32 %v7117_v13, %v7116_v40  ;;  %v7130_v46 = vadd.f32 %v7129_v17, %v7128_v8 }
 0x553   : > { %v6894_v43 = vmul.f32 %v13142_v7, %v5769_v4  ;;  %v7134_v34 = vadd.f32 %v7133_v11, %v7132_v31  ;;  %v15235_v7 = vld [vmem:[#allocation238_spill] sm:$0xff]  ;;  %v7100_v11 = vadd.f32 %v7099_v21, %v7098_v12 }
 0x554   : > { %9163 = vmatmul.msk.f32.gmra.mxu3 %vm1464_vm14, %v14910_v60  ;;  %9291 = vmatmul.msk.f32.gmra.mxu0 %vm4378_vm2, %v647_v1  ;;  %v3713_v42 = vadd.f32 %v15235_v7, %v3312_v32  ;;  %v15236_v32 = vld [vmem:[#allocation237_spill] sm:$0xff]  ;;  %v15238_v12 = vld [vmem:[#allocation242_spill] sm:$0xff] }
 0x555   : > { %v7137_v41 = vrot.slane %v6894_v43, 4  ;;  %9403 = vmatmul.msk.f32.gmra.mxu1 %vm5298_vm5, %v5207_v24  ;;  %v7135_v31 = vrot.slane %v7134_v34, 1  ;;  %9536 = vmatmul.msk.f32.gmra.mxu2 %vm6085_vm15, %v764_v50  ;;  %v7124_v24 = vadd.f32 %v7123_v10, %v7122_v35  ;;  %v7916_v39 = vsel %vm7895_vm3, %v7106_v56, %v7100_v11 }
 0x556   : > { %vm1468_vm0 = vcmp.eq.s32.totalorder %v15236_v32, %v12350_v20  ;;  %v3315_v40 = vadd.f32 %v15238_v12, %v15237_v63  ;;  %v7917_v21 = vsel %vm7897_vm4, %v7112_v29, %v7916_v39  ;;  %v650_v12 = vld [vmem:[%s12372_s23 + $0x1d0] sm:$0xff] }
 0x557   : > { %v7138_v54 = vadd.f32 %v7137_v41, %v6894_v43  ;;  %v4113_v23 = vpop.f32.mrf.mxu3  ;;  %v13219_v26 = vpop.f32.mrf.mxu2  ;;  %v7136_v13 = vadd.f32 %v7135_v31, %v7134_v34  ;;  %v7918_v35 = vsel %vm7899_vm6, %v7118_v37, %v7917_v21  ;;  %v15239_v41 = vld [vmem:[#allocation241_spill] sm:$0xff]  ;;  %v765_v34 = vld [vmem:[%s12537_s17 + $0x168] sm:$0xff]  ;;  %v15240_v37 = vld [vmem:[#allocation240_spill] sm:$0xff] }
 0x558   : > { %v4114_v25 = vadd.f32 %v4113_v23, %v3713_v42  ;;  %v3716_v7 = vadd.f32 %v15239_v41, %v3315_v40  ;;  %v7919_v42 = vsel %vm7901_vm8, %v7124_v24, %v7918_v35  ;;  %v649_v31 = vld [vmem:[%s12372_s23 + $0x1c8] sm:$0xff]  ;;  %vm1472_vm1 = vcmp.eq.s32.totalorder %v15240_v37, %v12350_v20  ;;  %v15246_v41 = vld [vmem:[#allocation252_spill] sm:$0xff]  ;;  %v15249_v37 = vld [vmem:[#allocation251_spill] sm:$0xff] }
 0x559   : > { %v7139_v1 = vrot.slane %v7138_v54, 2  ;;  %v4904_v4 = vpop.f32.mrf.mxu0  ;;  %v7920_v10 = vsel %vm7903_vm9, %v7130_v46, %v7919_v42  ;;  %v15247_v42 = vld [vmem:[#allocation250_spill] sm:$0xff] }
 0x55a   : > { %v5208_v5 = vmul.f32 %v4904_v4, %v4114_v25  ;;  %v13214_v2 = vpop.f32.mrf.mxu1  ;;  %v15241_v4 = vld [vmem:[#allocation243_spill] sm:$0xff] }
 0x55b   : > { %v7140_v43 = vadd.f32 %v7139_v1, %v7138_v54  ;;  %v7921_v54 = vsel %vm7905_vm10, %v7136_v13, %v7920_v10  ;;  %v15244_v13 = vld [vmem:[#allocation244_spill] sm:$0xff] }
 0x55c   : > { %9164 = vmatmul.msk.f32.gmra.mxu3 %vm1468_vm0, %v14910_v60  ;;  %9292 = vmatmul.msk.f32.gmra.mxu0 %vm4378_vm2, %v648_v49  ;;  %v15242_v49 = vld [vmem:[#allocation247_spill] sm:$0xff]  ;;  %vm1476_vm7 = vcmp.eq.s32.totalorder %v15244_v13, %v12350_v20  ;;  %v15252_v13 = vld [vmem:[#allocation253_spill] sm:$0xff] }
 0x55d   : > { %v7141_v8 = vrot.slane %v7140_v43, 1  ;;  %9404 = vmatmul.msk.f32.gmra.mxu1 %vm5298_vm5, %v5208_v5  ;;  %9537 = vmatmul.msk.f32.gmra.mxu2 %vm6085_vm15, %v765_v34  ;;  %v3318_v24 = vadd.f32 %v15242_v49, %v15241_v4  ;;  %v15243_v5 = vld [vmem:[#allocation245_spill] sm:$0xff]  ;;  %v15250_v4 = vld [vmem:[#allocation256_spill] sm:$0xff]  ;;  %vm1484_vm13 = vcmp.eq.s32.totalorder %v15252_v13, %v12350_v20  ;;  %v770_v13 = vld [vmem:[%s12537_s17 + $0x190] sm:$0xff] }
 0x55e   : > { %v3324_v49 = vadd.f32 %v15250_v4, %v15249_v37 }
 0x55f   : > { %v7142_v56 = vadd.f32 %v7141_v8, %v7140_v43  ;;  %v4116_v17 = vpop.f32.mrf.mxu3  ;;  %v3719_v39 = vadd.f32 %v15243_v5, %v3318_v24  ;;  %v766_v43 = vld [vmem:[%s12537_s17 + $0x170] sm:$0xff]  ;;  %v15245_v8 = vld [vmem:[#allocation246_spill] sm:$0xff] }
 0x560   : > { %v4117_v23 = vadd.f32 %v4116_v17, %v3716_v7  ;;  %v13239_v1 = vpop.f32.mrf.mxu2  ;;  %v3321_v7 = vadd.f32 %v15246_v41, %v15245_v8  ;;  %v767_v17 = vld [vmem:[%s12537_s17 + $0x178] sm:$0xff]  ;;  %v15251_v24 = vld [vmem:[#allocation254_spill] sm:$0xff]  ;;  %v15253_v41 = vld [vmem:[#allocation255_spill] sm:$0xff] }
 0x561   : > { %v7922_v50 = vsel %vm7907_vm11, %v7142_v56, %v7921_v54  ;;  %v4907_v29 = vpop.f32.mrf.mxu0  ;;  %v3725_v5 = vadd.f32 %v15251_v24, %v3324_v49  ;;  %v653_v49 = vld [vmem:[%s12372_s23 + $0x1e8] sm:$0xff] }
 0x562   : > { %8032 = vst [vmem:[%s12988_s16 + $0x10] sm:$0xff] %v7922_v50  ;;  %v5209_v25 = vmul.f32 %v4907_v29, %v4117_v23  ;;  %v5775_v11 = vpop.f32.mrf.mxu1  ;;  %v3722_v10 = vadd.f32 %v15247_v42, %v3321_v7  ;;  %v651_v23 = vld [vmem:[%s12372_s23 + $0x1d8] sm:$0xff]  ;;  %v15254_v7 = vld [vmem:[#allocation263_spill] sm:$0xff] }
 0x563   : > { %v3327_v42 = vadd.f32 %v15254_v7, %v15253_v41 }
 0x564   : > { %9165 = vmatmul.msk.f32.gmra.mxu3 %vm1472_vm1, %v14910_v60  ;;  %9293 = vmatmul.msk.f32.gmra.mxu0 %vm4378_vm2, %v649_v31  ;;  %v15248_v31 = vld [vmem:[#allocation249_spill] sm:$0xff] }
 0x565   : > { %9405 = vmatmul.msk.f32.gmra.mxu1 %vm5298_vm5, %v5209_v25  ;;  %9538 = vmatmul.msk.f32.gmra.mxu2 %vm6085_vm15, %v766_v43  ;;  %vm1480_vm12 = vcmp.eq.s32.totalorder %v15248_v31, %v12350_v20  ;;  %v6895_v31 = vmul.f32 %v13155_v44, %v13214_v2 }
 0x567   : > { %v4119_v46 = vpop.f32.mrf.mxu3 }
 0x568   : > { %v4120_v32 = vadd.f32 %v4119_v46, %v3719_v39  ;;  %v13252_v35 = vpop.f32.mrf.mxu2  ;;  %v768_v46 = vld [vmem:[%s12537_s17 + $0x180] sm:$0xff] }
 0x569   : > { %v4910_v63 = vpop.f32.mrf.mxu0 }
 0x56a   : > { %v5210_v40 = vmul.f32 %v4910_v63, %v4120_v32  ;;  %v5778_v21 = vpop.f32.mrf.mxu1  ;;  %v652_v63 = vld [vmem:[%s12372_s23 + $0x1e0] sm:$0xff] }
 0x56c   : > { %9166 = vmatmul.msk.f32.gmra.mxu3 %vm1476_vm7, %v14910_v60  ;;  %9294 = vmatmul.msk.f32.gmra.mxu0 %vm4378_vm2, %v650_v12 }
 0x56d   : > { %9406 = vmatmul.msk.f32.gmra.mxu1 %vm5298_vm5, %v5210_v40  ;;  %9539 = vmatmul.msk.f32.gmra.mxu2 %vm6085_vm15, %v767_v17  ;;  %v6896_v17 = vmul.f32 %v13175_v59, %v5775_v11 }
 0x56f   : > { %v4122_v56 = vpop.f32.mrf.mxu3 }
 0x570   : > { %v4123_v34 = vadd.f32 %v4122_v56, %v3722_v10  ;;  %v13265_v25 = vpop.f32.mrf.mxu2  ;;  %v15255_v10 = vld [vmem:[#allocation258_spill] sm:$0xff] }
 0x571   : > { %v4913_v54 = vpop.f32.mrf.mxu0  ;;  %v3728_v56 = vadd.f32 %v15255_v10, %v3327_v42 }
 0x572   : > { %v5211_v50 = vmul.f32 %v4913_v54, %v4123_v34  ;;  %v5781_v29 = vpop.f32.mrf.mxu1  ;;  %v769_v54 = vld [vmem:[%s12537_s17 + $0x188] sm:$0xff] }
 0x573   : > { %v6898_v37 = vmul.f32 %v13203_v16, %v5781_v29  ;;  %v7143_v16 = vrot.slane %v6895_v31, 4  ;;  %v15259_v29 = vld [vmem:[#allocation262_spill] sm:$0xff] }
 0x574   : > { %9167 = vmatmul.msk.f32.gmra.mxu3 %vm1480_vm12, %v14910_v60  ;;  %9295 = vmatmul.msk.f32.gmra.mxu0 %vm4378_vm2, %v651_v23  ;;  %v6897_v23 = vmul.f32 %v13189_v48, %v5778_v21  ;;  %v15256_v48 = vld [vmem:[#allocation257_spill] sm:$0xff]  ;;  %v15257_v21 = vld [vmem:[#allocation259_spill] sm:$0xff] }
 0x575   : > { %9407 = vmatmul.msk.f32.gmra.mxu1 %vm5298_vm5, %v5211_v50  ;;  %9540 = vmatmul.msk.f32.gmra.mxu2 %vm6085_vm15, %v768_v46  ;;  %v7149_v46 = vrot.slane %v6896_v17, 4  ;;  %vm1488_vm14 = vcmp.eq.s32.totalorder %v15256_v48, %v12350_v20  ;;  %v7144_v42 = vadd.f32 %v7143_v16, %v6895_v31  ;;  %v15262_v48 = vld [vmem:[#allocation272_spill] sm:$0xff] }
 0x576   : > { %v7155_v2 = vrot.slane %v6897_v23, 4 }
 0x577   : > { %v4125_v39 = vpop.f32.mrf.mxu3 }
 0x578   : > { %v4126_v43 = vadd.f32 %v4125_v39, %v3725_v5  ;;  %v13278_v8 = vpop.f32.mrf.mxu2  ;;  %v7156_v41 = vadd.f32 %v7155_v2, %v6897_v23  ;;  %v15261_v23 = vld [vmem:[#allocation264_spill] sm:$0xff] }
 0x579   : > { %v4916_v32 = vpop.f32.mrf.mxu0 }
 0x57a   : > { %v5212_v12 = vmul.f32 %v4916_v32, %v4126_v43  ;;  %v5784_v40 = vpop.f32.mrf.mxu1  ;;  %v15258_v43 = vld [vmem:[#allocation268_spill] sm:$0xff]  ;;  %v7157_v31 = vrot.slane %v7156_v41, 2 }
 0x57b   : > { %v6899_v24 = vmul.f32 %v13219_v26, %v5784_v40  ;;  %v3330_v44 = vadd.f32 %v15258_v43, %v15257_v21  ;;  %v7161_v26 = vrot.slane %v6898_v37, 4  ;;  %v3333_v21 = vadd.f32 %v15262_v48, %v15261_v23 }
 0x57c   : > { %9168 = vmatmul.msk.f32.gmra.mxu3 %vm1484_vm13, %v14910_v60  ;;  %9296 = vmatmul.msk.f32.gmra.mxu0 %vm4378_vm2, %v652_v63  ;;  %v7150_v63 = vadd.f32 %v7149_v46, %v6896_v17  ;;  %v15260_v17 = vld [vmem:[#allocation261_spill] sm:$0xff] }
 0x57d   : > { %9408 = vmatmul.msk.f32.gmra.mxu1 %vm5298_vm5, %v5212_v12  ;;  %9541 = vmatmul.msk.f32.gmra.mxu2 %vm6085_vm15, %v769_v54  ;;  %v7167_v32 = vrot.slane %v6899_v24, 4  ;;  %v7162_v10 = vadd.f32 %v7161_v26, %v6898_v37  ;;  %vm1492_vm0 = vcmp.eq.s32.totalorder %v15260_v17, %v12350_v20  ;;  %v7145_v37 = vrot.slane %v7144_v42, 2 }
 0x57f   : > { %v4128_v34 = vpop.f32.mrf.mxu3  ;;  %v7168_v54 = vadd.f32 %v7167_v32, %v6899_v24  ;;  %v7163_v24 = vrot.slane %v7162_v10, 2  ;;  %v7158_v32 = vadd.f32 %v7157_v31, %v7156_v41  ;;  %v15265_v41 = vld [vmem:[#allocation267_spill] sm:$0xff] }
 0x580   : > { %v4129_v50 = vadd.f32 %v4128_v34, %v3728_v56  ;;  %v13298_v11 = vpop.f32.mrf.mxu2  ;;  %v654_v34 = vld [vmem:[%s12372_s23 + $0x1f0] sm:$0xff] }
 0x581   : > { %v4919_v4 = vpop.f32.mrf.mxu0 }
 0x582   : > { %v5213_v5 = vmul.f32 %v4919_v4, %v4129_v50  ;;  %v5787_v39 = vpop.f32.mrf.mxu1 }
 0x583   : > { %v6900_v59 = vmul.f32 %v13239_v1, %v5787_v39  ;;  %v3731_v1 = vadd.f32 %v15259_v29, %v3330_v44  ;;  %v7169_v44 = vrot.slane %v7168_v54, 2 }
 0x584   : > { %9169 = vmatmul.msk.f32.gmra.mxu3 %vm1488_vm14, %v14910_v60  ;;  %9297 = vmatmul.msk.f32.gmra.mxu0 %vm4378_vm2, %v653_v49  ;;  %v7151_v49 = vrot.slane %v7150_v63, 2 }
 0x585   : > { %9409 = vmatmul.msk.f32.gmra.mxu1 %vm5298_vm5, %v5213_v5  ;;  %v7173_v12 = vrot.slane %v6900_v59, 4  ;;  %9542 = vmatmul.msk.f32.gmra.mxu2 %vm6085_vm15, %v770_v13  ;;  %v7164_v13 = vadd.f32 %v7163_v24, %v7162_v10  ;;  %v7159_v10 = vrot.slane %v7158_v32, 1 }
 0x586   : > { %v7152_v2 = vadd.f32 %v7151_v49, %v7150_v63  ;;  %v15264_v49 = vld [vmem:[#allocation265_spill] sm:$0xff] }
 0x587   : > { %v4131_v40 = vpop.f32.mrf.mxu3  ;;  %v7174_v5 = vadd.f32 %v7173_v12, %v6900_v59  ;;  %vm1496_vm1 = vcmp.eq.s32.totalorder %v15264_v49, %v12350_v20  ;;  %v656_v49 = vld [vmem:[%s12372_s23 + $0x200] sm:$0xff] }
 0x588   : > { %v4132_v7 = vadd.f32 %v4131_v40, %v3731_v1  ;;  %v13312_v46 = vpop.f32.mrf.mxu2  ;;  %v771_v1 = vld [vmem:[%s12537_s17 + $0x198] sm:$0xff]  ;;  %v7146_v40 = vadd.f32 %v7145_v37, %v7144_v42  ;;  %v7153_v23 = vrot.slane %v7152_v2, 1  ;;  %v7165_v37 = vrot.slane %v7164_v13, 1 }
 0x589   : > { %v4922_v56 = vpop.f32.mrf.mxu0  ;;  %v7175_v16 = vrot.slane %v7174_v5, 2 }
 0x58a   : > { %v5214_v50 = vmul.f32 %v4922_v56, %v4132_v7  ;;  %v5790_v4 = vpop.f32.mrf.mxu1 }
 0x58b   : > { %v6901_v39 = vmul.f32 %v13252_v35, %v5790_v4  ;;  %v15263_v35 = vld [vmem:[#allocation266_spill] sm:$0xff]  ;;  %v7170_v4 = vadd.f32 %v7169_v44, %v7168_v54  ;;  %v7176_v48 = vadd.f32 %v7175_v16, %v7174_v5  ;;  %v7147_v54 = vrot.slane %v7146_v40, 1 }
 0x58c   : > { %9170 = vmatmul.msk.f32.gmra.mxu3 %vm1492_vm0, %v14910_v60  ;;  %9298 = vmatmul.msk.f32.gmra.mxu0 %vm4378_vm2, %v654_v34  ;;  %v3734_v59 = vadd.f32 %v15263_v35, %v3333_v21  ;;  %v655_v34 = vld [vmem:[%s12372_s23 + $0x1f8] sm:$0xff]  ;;  %v7154_v35 = vadd.f32 %v7153_v23, %v7152_v2 }
 0x58d   : > { %v7179_v43 = vrot.slane %v6901_v39, 4  ;;  %9410 = vmatmul.msk.f32.gmra.mxu1 %vm5298_vm5, %v5214_v50  ;;  %9543 = vmatmul.msk.f32.gmra.mxu2 %vm6085_vm15, %v771_v1  ;;  %v15266_v21 = vld [vmem:[#allocation276_spill] sm:$0xff]  ;;  %v7160_v1 = vadd.f32 %v7159_v10, %v7158_v32  ;;  %v15269_v10 = vld [vmem:[#allocation271_spill] sm:$0xff] }
 0x58e   : > { %v3336_v42 = vadd.f32 %v15266_v21, %v15265_v41 }
 0x58f   : > { %v7180_v26 = vadd.f32 %v7179_v43, %v6901_v39  ;;  %v4134_v29 = vpop.f32.mrf.mxu3  ;;  %v7171_v43 = vrot.slane %v7170_v4, 1 }
 0x590   : > { %v4135_v12 = vadd.f32 %v4134_v29, %v3734_v59  ;;  %v13326_v39 = vpop.f32.mrf.mxu2  ;;  %v7177_v59 = vrot.slane %v7176_v48, 1  ;;  %v772_v29 = vld [vmem:[%s12537_s17 + $0x1a0] sm:$0xff] }
 0x591   : > { %v7181_v7 = vrot.slane %v7180_v26, 2  ;;  %v4925_v56 = vpop.f32.mrf.mxu0 }
 0x592   : > { %v5215_v17 = vmul.f32 %v4925_v56, %v4135_v12  ;;  %v5793_v50 = vpop.f32.mrf.mxu1  ;;  %v7166_v56 = vadd.f32 %v7165_v37, %v7164_v13  ;;  %v7178_v23 = vadd.f32 %v7177_v59, %v7176_v48 }
 0x593   : > { %v6902_v63 = vmul.f32 %v13265_v25, %v5793_v50  ;;  %v7182_v31 = vadd.f32 %v7181_v7, %v7180_v26  ;;  %v15267_v25 = vld [vmem:[#allocation270_spill] sm:$0xff]  ;;  %v7148_v7 = vadd.f32 %v7147_v54, %v7146_v40  ;;  %v15270_v40 = vld [vmem:[#allocation281_spill] sm:$0xff] }
 0x594   : > { %9171 = vmatmul.msk.f32.gmra.mxu3 %vm1496_vm1, %v14910_v60  ;;  %9299 = vmatmul.msk.f32.gmra.mxu0 %vm4378_vm2, %v655_v34  ;;  %v3737_v24 = vadd.f32 %v15267_v25, %v3336_v42  ;;  %v15268_v42 = vld [vmem:[#allocation269_spill] sm:$0xff]  ;;  %v3339_v13 = vadd.f32 %v15270_v40, %v15269_v10  ;;  %v658_v40 = vld [vmem:[%s12372_s23 + $0x210] sm:$0xff] }
 0x595   : > { %v7185_v5 = vrot.slane %v6902_v63, 4  ;;  %9411 = vmatmul.msk.f32.gmra.mxu1 %vm5298_vm5, %v5215_v17  ;;  %v7183_v26 = vrot.slane %v7182_v31, 1  ;;  %9544 = vmatmul.msk.f32.gmra.mxu2 %vm6085_vm15, %v772_v29  ;;  %v7172_v17 = vadd.f32 %v7171_v43, %v7170_v4  ;;  %v7923_v2 = vsel %vm7895_vm3, %v7154_v35, %v7148_v7 }
 0x596   : > { %vm1500_vm7 = vcmp.eq.s32.totalorder %v15268_v42, %v12350_v20  ;;  %v7924_v54 = vsel %vm7897_vm4, %v7160_v1, %v7923_v2 }
 0x597   : > { %v7186_v44 = vadd.f32 %v7185_v5, %v6902_v63  ;;  %v4137_v16 = vpop.f32.mrf.mxu3  ;;  %v7184_v37 = vadd.f32 %v7183_v26, %v7182_v31  ;;  %v7925_v4 = vsel %vm7899_vm6, %v7166_v56, %v7924_v54  ;;  %v15271_v5 = vld [vmem:[#allocation274_spill] sm:$0xff]  ;;  %v15272_v56 = vld [vmem:[#allocation273_spill] sm:$0xff] }
 0x598   : > { %v4138_v12 = vadd.f32 %v4137_v16, %v3737_v24  ;;  %v13342_v32 = vpop.f32.mrf.mxu2  ;;  %v3740_v25 = vadd.f32 %v15271_v5, %v3339_v13  ;;  %v7926_v24 = vsel %vm7901_vm8, %v7172_v17, %v7925_v4  ;;  %v773_v31 = vld [vmem:[%s12537_s17 + $0x1a8] sm:$0xff]  ;;  %vm1504_vm12 = vcmp.eq.s32.totalorder %v15272_v56, %v12350_v20 }
 0x599   : > { %v7187_v34 = vrot.slane %v7186_v44, 2  ;;  %v4928_v50 = vpop.f32.mrf.mxu0  ;;  %v7927_v43 = vsel %vm7903_vm9, %v7178_v23, %v7926_v24  ;;  %v657_v26 = vld [vmem:[%s12372_s23 + $0x208] sm:$0xff]  ;;  %v15279_v24 = vld [vmem:[#allocation283_spill] sm:$0xff] }
 0x59a   : > { %v5216_v41 = vmul.f32 %v4928_v50, %v4138_v12  ;;  %v13337_v21 = vpop.f32.mrf.mxu1  ;;  %v15273_v50 = vld [vmem:[#allocation275_spill] sm:$0xff]  ;;  %v15278_v5 = vld [vmem:[#allocation290_spill] sm:$0xff] }
 0x59b   : > { %v7188_v63 = vadd.f32 %v7187_v34, %v7186_v44  ;;  %v7928_v44 = vsel %vm7905_vm10, %v7184_v37, %v7927_v43  ;;  %v15276_v37 = vld [vmem:[#allocation277_spill] sm:$0xff]  ;;  %v15281_v56 = vld [vmem:[#allocation282_spill] sm:$0xff] }
 0x59c   : > { %9172 = vmatmul.msk.f32.gmra.mxu3 %vm1500_vm7, %v14910_v60  ;;  %9300 = vmatmul.msk.f32.gmra.mxu0 %vm4378_vm2, %v656_v49  ;;  %v15274_v49 = vld [vmem:[#allocation286_spill] sm:$0xff]  ;;  %vm1508_vm13 = vcmp.eq.s32.totalorder %v15276_v37, %v12350_v20  ;;  %v15284_v37 = vld [vmem:[#allocation284_spill] sm:$0xff] }
 0x59d   : > { %v7189_v48 = vrot.slane %v7188_v63, 1  ;;  %9412 = vmatmul.msk.f32.gmra.mxu1 %vm5298_vm5, %v5216_v41  ;;  %9545 = vmatmul.msk.f32.gmra.mxu2 %vm6085_vm15, %v773_v31  ;;  %v3342_v17 = vadd.f32 %v15274_v49, %v15273_v50  ;;  %v15275_v41 = vld [vmem:[#allocation278_spill] sm:$0xff]  ;;  %vm1516_vm0 = vcmp.eq.s32.totalorder %v15284_v37, %v12350_v20  ;;  %v778_v37 = vld [vmem:[%s12537_s17 + $0x1d0] sm:$0xff] }
 0x59e   : > { %v15282_v50 = vld [vmem:[#allocation294_spill] sm:$0xff] }
 0x59f   : > { %v7190_v35 = vadd.f32 %v7189_v48, %v7188_v63  ;;  %v4140_v59 = vpop.f32.mrf.mxu3  ;;  %v3743_v2 = vadd.f32 %v15275_v41, %v3342_v17  ;;  %v774_v63 = vld [vmem:[%s12537_s17 + $0x1b0] sm:$0xff]  ;;  %v3348_v49 = vadd.f32 %v15282_v50, %v15281_v56 }
 0x5a0   : > { %v4141_v16 = vadd.f32 %v4140_v59, %v3740_v25  ;;  %v13362_v34 = vpop.f32.mrf.mxu2  ;;  %v15277_v48 = vld [vmem:[#allocation279_spill] sm:$0xff]  ;;  %v775_v59 = vld [vmem:[%s12537_s17 + $0x1b8] sm:$0xff] }
 0x5a1   : > { %v7929_v29 = vsel %vm7907_vm11, %v7190_v35, %v7928_v44  ;;  %v4931_v1 = vpop.f32.mrf.mxu0  ;;  %v3345_v25 = vadd.f32 %v15278_v5, %v15277_v48  ;;  %v15283_v17 = vld [vmem:[#allocation287_spill] sm:$0xff]  ;;  %v15285_v5 = vld [vmem:[#allocation285_spill] sm:$0xff] }
 0x5a2   : > { %8033 = vst [vmem:[%s12988_s16 + $0x18] sm:$0xff] %v7929_v29  ;;  %v5217_v12 = vmul.f32 %v4931_v1, %v4141_v16  ;;  %v5799_v7 = vpop.f32.mrf.mxu1  ;;  %v659_v16 = vld [vmem:[%s12372_s23 + $0x218] sm:$0xff]  ;;  %v3749_v41 = vadd.f32 %v15283_v17, %v3348_v49  ;;  %v661_v49 = vld [vmem:[%s12372_s23 + $0x228] sm:$0xff] }
 0x5a3   : > { %v3746_v43 = vadd.f32 %v15279_v24, %v3345_v25  ;;  %v15286_v25 = vld [vmem:[#allocation299_spill] sm:$0xff] }
 0x5a4   : > { %9173 = vmatmul.msk.f32.gmra.mxu3 %vm1504_vm12, %v14910_v60  ;;  %9301 = vmatmul.msk.f32.gmra.mxu0 %vm4378_vm2, %v657_v26  ;;  %v15280_v26 = vld [vmem:[#allocation280_spill] sm:$0xff]  ;;  %v3351_v24 = vadd.f32 %v15286_v25, %v15285_v5 }
 0x5a5   : > { %9413 = vmatmul.msk.f32.gmra.mxu1 %vm5298_vm5, %v5217_v12  ;;  %9546 = vmatmul.msk.f32.gmra.mxu2 %vm6085_vm15, %v774_v63  ;;  %vm1512_vm14 = vcmp.eq.s32.totalorder %v15280_v26, %v12350_v20  ;;  %v6903_v26 = vmul.f32 %v13278_v8, %v13337_v21 }
 0x5a7   : > { %v4143_v23 = vpop.f32.mrf.mxu3 }
 0x5a8   : > { %v4144_v42 = vadd.f32 %v4143_v23, %v3743_v2  ;;  %v13375_v4 = vpop.f32.mrf.mxu2  ;;  %v776_v23 = vld [vmem:[%s12537_s17 + $0x1c0] sm:$0xff] }
 0x5a9   : > { %v4934_v10 = vpop.f32.mrf.mxu0 }
 0x5aa   : > { %v5218_v13 = vmul.f32 %v4934_v10, %v4144_v42  ;;  %v5802_v54 = vpop.f32.mrf.mxu1  ;;  %v660_v10 = vld [vmem:[%s12372_s23 + $0x220] sm:$0xff] }
 0x5ac   : > { %9174 = vmatmul.msk.f32.gmra.mxu3 %vm1508_vm13, %v14910_v60  ;;  %9302 = vmatmul.msk.f32.gmra.mxu0 %vm4378_vm2, %v658_v40 }
 0x5ad   : > { %9414 = vmatmul.msk.f32.gmra.mxu1 %vm5298_vm5, %v5218_v13  ;;  %9547 = vmatmul.msk.f32.gmra.mxu2 %vm6085_vm15, %v775_v59  ;;  %v6904_v59 = vmul.f32 %v13298_v11, %v5799_v7 }
 0x5af   : > { %v4146_v35 = vpop.f32.mrf.mxu3 }
 0x5b0   : > { %v4147_v31 = vadd.f32 %v4146_v35, %v3746_v43  ;;  %v13388_v12 = vpop.f32.mrf.mxu2  ;;  %v15287_v43 = vld [vmem:[#allocation291_spill] sm:$0xff] }
 0x5b1   : > { %v4937_v44 = vpop.f32.mrf.mxu0  ;;  %v3752_v35 = vadd.f32 %v15287_v43, %v3351_v24 }
 0x5b2   : > { %v5219_v29 = vmul.f32 %v4937_v44, %v4147_v31  ;;  %v5805_v1 = vpop.f32.mrf.mxu1  ;;  %v777_v44 = vld [vmem:[%s12537_s17 + $0x1c8] sm:$0xff] }
 0x5b3   : > { %v6906_v56 = vmul.f32 %v13326_v39, %v5805_v1  ;;  %v7191_v39 = vrot.slane %v6903_v26, 4  ;;  %v15291_v1 = vld [vmem:[#allocation296_spill] sm:$0xff] }
 0x5b4   : > { %9175 = vmatmul.msk.f32.gmra.mxu3 %vm1512_vm14, %v14910_v60  ;;  %9303 = vmatmul.msk.f32.gmra.mxu0 %vm4378_vm2, %v659_v16  ;;  %v6905_v16 = vmul.f32 %v13312_v46, %v5802_v54  ;;  %v15288_v46 = vld [vmem:[#allocation288_spill] sm:$0xff]  ;;  %v15289_v54 = vld [vmem:[#allocation289_spill] sm:$0xff] }
 0x5b5   : > { %9415 = vmatmul.msk.f32.gmra.mxu1 %vm5298_vm5, %v5219_v29  ;;  %9548 = vmatmul.msk.f32.gmra.mxu2 %vm6085_vm15, %v776_v23  ;;  %v7197_v23 = vrot.slane %v6904_v59, 4  ;;  %vm1520_vm1 = vcmp.eq.s32.totalorder %v15288_v46, %v12350_v20  ;;  %v7192_v24 = vadd.f32 %v7191_v39, %v6903_v26  ;;  %v15294_v46 = vld [vmem:[#allocation308_spill] sm:$0xff] }
 0x5b6   : > { %v7203_v21 = vrot.slane %v6905_v16, 4 }
 0x5b7   : > { %v4149_v2 = vpop.f32.mrf.mxu3 }
 0x5b8   : > { %v4150_v63 = vadd.f32 %v4149_v2, %v3749_v41  ;;  %v13401_v48 = vpop.f32.mrf.mxu2  ;;  %v7204_v5 = vadd.f32 %v7203_v21, %v6905_v16  ;;  %v15293_v16 = vld [vmem:[#allocation293_spill] sm:$0xff] }
 0x5b9   : > { %v4940_v42 = vpop.f32.mrf.mxu0 }
 0x5ba   : > { %v5220_v40 = vmul.f32 %v4940_v42, %v4150_v63  ;;  %v5808_v13 = vpop.f32.mrf.mxu1  ;;  %v15290_v63 = vld [vmem:[#allocation304_spill] sm:$0xff]  ;;  %v7205_v26 = vrot.slane %v7204_v5, 2 }
 0x5bb   : > { %v6907_v17 = vmul.f32 %v13342_v32, %v5808_v13  ;;  %v3354_v8 = vadd.f32 %v15290_v63, %v15289_v54  ;;  %v7209_v32 = vrot.slane %v6906_v56, 4  ;;  %v3357_v54 = vadd.f32 %v15294_v46, %v15293_v16 }
 0x5bc   : > { %9176 = vmatmul.msk.f32.gmra.mxu3 %vm1516_vm0, %v14910_v60  ;;  %9304 = vmatmul.msk.f32.gmra.mxu0 %vm4378_vm2, %v660_v10  ;;  %v7198_v10 = vadd.f32 %v7197_v23, %v6904_v59  ;;  %v15292_v59 = vld [vmem:[#allocation292_spill] sm:$0xff] }
 0x5bd   : > { %9416 = vmatmul.msk.f32.gmra.mxu1 %vm5298_vm5, %v5220_v40  ;;  %9549 = vmatmul.msk.f32.gmra.mxu2 %vm6085_vm15, %v777_v44  ;;  %v7215_v42 = vrot.slane %v6907_v17, 4  ;;  %v7210_v43 = vadd.f32 %v7209_v32, %v6906_v56  ;;  %vm1524_vm7 = vcmp.eq.s32.totalorder %v15292_v59, %v12350_v20  ;;  %v7193_v56 = vrot.slane %v7192_v24, 2 }
 0x5bf   : > { %v4152_v31 = vpop.f32.mrf.mxu3  ;;  %v7216_v44 = vadd.f32 %v7215_v42, %v6907_v17  ;;  %v7211_v17 = vrot.slane %v7210_v43, 2  ;;  %v7206_v42 = vadd.f32 %v7205_v26, %v7204_v5  ;;  %v15297_v5 = vld [vmem:[#allocation297_spill] sm:$0xff] }
 0x5c0   : > { %v4153_v29 = vadd.f32 %v4152_v31, %v3752_v35  ;;  %v13421_v7 = vpop.f32.mrf.mxu2  ;;  %v662_v31 = vld [vmem:[%s12372_s23 + $0x230] sm:$0xff] }
 0x5c1   : > { %v4943_v50 = vpop.f32.mrf.mxu0 }
 0x5c2   : > { %v5221_v41 = vmul.f32 %v4943_v50, %v4153_v29  ;;  %v5811_v2 = vpop.f32.mrf.mxu1 }
 0x5c3   : > { %v6908_v11 = vmul.f32 %v13362_v34, %v5811_v2  ;;  %v3755_v34 = vadd.f32 %v15291_v1, %v3354_v8  ;;  %v7217_v8 = vrot.slane %v7216_v44, 2 }
 0x5c4   : > { %9177 = vmatmul.msk.f32.gmra.mxu3 %vm1520_vm1, %v14910_v60  ;;  %9305 = vmatmul.msk.f32.gmra.mxu0 %vm4378_vm2, %v661_v49  ;;  %v7199_v49 = vrot.slane %v7198_v10, 2 }
 0x5c5   : > { %9417 = vmatmul.msk.f32.gmra.mxu1 %vm5298_vm5, %v5221_v41  ;;  %v7221_v40 = vrot.slane %v6908_v11, 4  ;;  %9550 = vmatmul.msk.f32.gmra.mxu2 %vm6085_vm15, %v778_v37  ;;  %v7212_v37 = vadd.f32 %v7211_v17, %v7210_v43  ;;  %v7207_v43 = vrot.slane %v7206_v42, 1 }
 0x5c6   : > { %v7200_v21 = vadd.f32 %v7199_v49, %v7198_v10  ;;  %v15296_v49 = vld [vmem:[#allocation295_spill] sm:$0xff] }
 0x5c7   : > { %v4155_v13 = vpop.f32.mrf.mxu3  ;;  %v7222_v41 = vadd.f32 %v7221_v40, %v6908_v11  ;;  %vm1528_vm12 = vcmp.eq.s32.totalorder %v15296_v49, %v12350_v20  ;;  %v664_v49 = vld [vmem:[%s12372_s23 + $0x240] sm:$0xff] }
 0x5c8   : > { %v4156_v25 = vadd.f32 %v4155_v13, %v3755_v34  ;;  %v13435_v23 = vpop.f32.mrf.mxu2  ;;  %v779_v34 = vld [vmem:[%s12537_s17 + $0x1d8] sm:$0xff]  ;;  %v7194_v13 = vadd.f32 %v7193_v56, %v7192_v24  ;;  %v7201_v16 = vrot.slane %v7200_v21, 1  ;;  %v7213_v56 = vrot.slane %v7212_v37, 1 }
 0x5c9   : > { %v4946_v35 = vpop.f32.mrf.mxu0  ;;  %v7223_v39 = vrot.slane %v7222_v41, 2 }
 0x5ca   : > { %v5222_v29 = vmul.f32 %v4946_v35, %v4156_v25  ;;  %v5814_v50 = vpop.f32.mrf.mxu1 }
 0x5cb   : > { %v6909_v2 = vmul.f32 %v13375_v4, %v5814_v50  ;;  %v15295_v4 = vld [vmem:[#allocation301_spill] sm:$0xff]  ;;  %v7218_v50 = vadd.f32 %v7217_v8, %v7216_v44  ;;  %v7224_v46 = vadd.f32 %v7223_v39, %v7222_v41  ;;  %v7195_v44 = vrot.slane %v7194_v13, 1 }
 0x5cc   : > { %9178 = vmatmul.msk.f32.gmra.mxu3 %vm1524_vm7, %v14910_v60  ;;  %9306 = vmatmul.msk.f32.gmra.mxu0 %vm4378_vm2, %v662_v31  ;;  %v3758_v11 = vadd.f32 %v15295_v4, %v3357_v54  ;;  %v663_v31 = vld [vmem:[%s12372_s23 + $0x238] sm:$0xff]  ;;  %v7202_v4 = vadd.f32 %v7201_v16, %v7200_v21 }
 0x5cd   : > { %v7227_v63 = vrot.slane %v6909_v2, 4  ;;  %9418 = vmatmul.msk.f32.gmra.mxu1 %vm5298_vm5, %v5222_v29  ;;  %9551 = vmatmul.msk.f32.gmra.mxu2 %vm6085_vm15, %v779_v34  ;;  %v15298_v54 = vld [vmem:[#allocation312_spill] sm:$0xff]  ;;  %v7208_v34 = vadd.f32 %v7207_v43, %v7206_v42 }
 0x5ce   : > { %v3360_v24 = vadd.f32 %v15298_v54, %v15297_v5  ;;  %v15301_v43 = vld [vmem:[#allocation300_spill] sm:$0xff] }
 0x5cf   : > { %v7228_v32 = vadd.f32 %v7227_v63, %v6909_v2  ;;  %v4158_v1 = vpop.f32.mrf.mxu3  ;;  %v7219_v63 = vrot.slane %v7218_v50, 1 }
 0x5d0   : > { %v4159_v40 = vadd.f32 %v4158_v1, %v3758_v11  ;;  %v13449_v2 = vpop.f32.mrf.mxu2  ;;  %v7225_v11 = vrot.slane %v7224_v46, 1  ;;  %v780_v1 = vld [vmem:[%s12537_s17 + $0x1e0] sm:$0xff] }
 0x5d1   : > { %v7229_v25 = vrot.slane %v7228_v32, 2  ;;  %v4949_v35 = vpop.f32.mrf.mxu0 }
 0x5d2   : > { %v5223_v59 = vmul.f32 %v4949_v35, %v4159_v40  ;;  %v5817_v29 = vpop.f32.mrf.mxu1  ;;  %v7214_v35 = vadd.f32 %v7213_v56, %v7212_v37  ;;  %v7226_v16 = vadd.f32 %v7225_v11, %v7224_v46 }
 0x5d3   : > { %v6910_v10 = vmul.f32 %v13388_v12, %v5817_v29  ;;  %v7230_v26 = vadd.f32 %v7229_v25, %v7228_v32  ;;  %v15299_v12 = vld [vmem:[#allocation305_spill] sm:$0xff]  ;;  %v7196_v25 = vadd.f32 %v7195_v44, %v7194_v13 }
 0x5d4   : > { %9179 = vmatmul.msk.f32.gmra.mxu3 %vm1528_vm12, %v14910_v60  ;;  %9307 = vmatmul.msk.f32.gmra.mxu0 %vm4378_vm2, %v663_v31  ;;  %v3761_v17 = vadd.f32 %v15299_v12, %v3360_v24  ;;  %v15300_v24 = vld [vmem:[#allocation298_spill] sm:$0xff]  ;;  %v15302_v13 = vld [vmem:[#allocation317_spill] sm:$0xff] }
 0x5d5   : > { %v7233_v41 = vrot.slane %v6910_v10, 4  ;;  %9419 = vmatmul.msk.f32.gmra.mxu1 %vm5298_vm5, %v5223_v59  ;;  %v7231_v32 = vrot.slane %v7230_v26, 1  ;;  %9552 = vmatmul.msk.f32.gmra.mxu2 %vm6085_vm15, %v780_v1  ;;  %v7220_v59 = vadd.f32 %v7219_v63, %v7218_v50  ;;  %v7930_v21 = vsel %vm7895_vm3, %v7202_v4, %v7196_v25 }
 0x5d6   : > { %vm1532_vm13 = vcmp.eq.s32.totalorder %v15300_v24, %v12350_v20  ;;  %v3363_v37 = vadd.f32 %v15302_v13, %v15301_v43  ;;  %v7931_v44 = vsel %vm7897_vm4, %v7208_v34, %v7930_v21  ;;  %v666_v13 = vld [vmem:[%s12372_s23 + $0x250] sm:$0xff] }
 0x5d7   : > { %v7234_v8 = vadd.f32 %v7233_v41, %v6910_v10  ;;  %v4161_v39 = vpop.f32.mrf.mxu3  ;;  %v7232_v56 = vadd.f32 %v7231_v32, %v7230_v26  ;;  %v7932_v50 = vsel %vm7899_vm6, %v7214_v35, %v7931_v44  ;;  %v15303_v41 = vld [vmem:[#allocation309_spill] sm:$0xff]  ;;  %v781_v26 = vld [vmem:[%s12537_s17 + $0x1e8] sm:$0xff] }
 0x5d8   : > { %v4162_v40 = vadd.f32 %v4161_v39, %v3761_v17  ;;  %v13465_v42 = vpop.f32.mrf.mxu2  ;;  %v3764_v12 = vadd.f32 %v15303_v41, %v3363_v37  ;;  %v7933_v17 = vsel %vm7901_vm8, %v7220_v59, %v7932_v50  ;;  %v665_v32 = vld [vmem:[%s12372_s23 + $0x248] sm:$0xff] }
 0x5d9   : > { %v7235_v31 = vrot.slane %v7234_v8, 2  ;;  %v4952_v29 = vpop.f32.mrf.mxu0  ;;  %v7934_v63 = vsel %vm7903_vm9, %v7226_v16, %v7933_v17  ;;  %v15304_v35 = vld [vmem:[#allocation302_spill] sm:$0xff] }
 0x5da   : > { %v5224_v5 = vmul.f32 %v4952_v29, %v4162_v40  ;;  %v13460_v54 = vpop.f32.mrf.mxu1  ;;  %vm1536_vm14 = vcmp.eq.s32.totalorder %v15304_v35, %v12350_v20  ;;  %v15305_v29 = vld [vmem:[#allocation303_spill] sm:$0xff]  ;;  %v15313_v35 = vld [vmem:[#allocation322_spill] sm:$0xff] }
 0x5db   : > { %v7236_v10 = vadd.f32 %v7235_v31, %v7234_v8  ;;  %v7935_v8 = vsel %vm7905_vm10, %v7232_v56, %v7934_v63  ;;  %v15308_v56 = vld [vmem:[#allocation306_spill] sm:$0xff] }
 0x5dc   : > { %9180 = vmatmul.msk.f32.gmra.mxu3 %vm1532_vm13, %v14910_v60  ;;  %9308 = vmatmul.msk.f32.gmra.mxu0 %vm4378_vm2, %v664_v49  ;;  %v15306_v49 = vld [vmem:[#allocation321_spill] sm:$0xff]  ;;  %vm1540_vm0 = vcmp.eq.s32.totalorder %v15308_v56, %v12350_v20  ;;  %vm1556_vm13 = vcmp.eq.s32.totalorder %v11969_v22, %v12350_v20 }
 0x5dd   : > { %v7237_v46 = vrot.slane %v7236_v10, 1  ;;  %9420 = vmatmul.msk.f32.gmra.mxu1 %vm5298_vm5, %v5224_v5  ;;  %9553 = vmatmul.msk.f32.gmra.mxu2 %vm6085_vm15, %v781_v26  ;;  %v3366_v59 = vadd.f32 %v15306_v49, %v15305_v29  ;;  %v15307_v5 = vld [vmem:[#allocation314_spill] sm:$0xff] }
 0x5df   : > { %v7238_v4 = vadd.f32 %v7237_v46, %v7236_v10  ;;  %v4164_v11 = vpop.f32.mrf.mxu3  ;;  %v3767_v21 = vadd.f32 %v15307_v5, %v3366_v59  ;;  %v782_v10 = vld [vmem:[%s12537_s17 + $0x1f0] sm:$0xff]  ;;  %v784_v59 = vld [vmem:[%s12537_s17 + $0x200] sm:$0xff] }
 0x5e0   : > { %v4165_v39 = vadd.f32 %v4164_v11, %v3764_v12  ;;  %v13485_v31 = vpop.f32.mrf.mxu2  ;;  %v15309_v46 = vld [vmem:[#allocation307_spill] sm:$0xff] }
 0x5e1   : > { %v7936_v1 = vsel %vm7907_vm11, %v7238_v4, %v7935_v8  ;;  %v4955_v34 = vpop.f32.mrf.mxu0  ;;  %v3369_v41 = vadd.f32 %v12008_v57, %v15309_v46  ;;  %v15310_v12 = vld [vmem:[#allocation319_spill] sm:$0xff]  ;;  %v783_v4 = vld [vmem:[%s12537_s17 + $0x1f8] sm:$0xff]  ;;  %v15311_v57 = vld [vmem:[#allocation310_spill] sm:$0xff] }
 0x5e2   : > { %8034 = vst [vmem:[%s12988_s16 + $0x20] sm:$0xff] %v7936_v1  ;;  %v5225_v40 = vmul.f32 %v4955_v34, %v4165_v39  ;;  %v5823_v25 = vpop.f32.mrf.mxu1  ;;  %v667_v8 = vld [vmem:[%s12372_s23 + $0x258] sm:$0xff]  ;;  %vm1544_vm1 = vcmp.eq.s32.totalorder %v15311_v57, %v12350_v20 }
 0x5e3   : > { %v3770_v17 = vadd.f32 %v15310_v12, %v3369_v41  ;;  %v6912_v46 = vmul.f32 %v13421_v7, %v5823_v25  ;;  %v785_v12 = vld [vmem:[%s12537_s17 + $0x208] sm:$0xff] }
 0x5e4   : > { %9181 = vmatmul.msk.f32.gmra.mxu3 %vm1536_vm14, %v14910_v60  ;;  %9309 = vmatmul.msk.f32.gmra.mxu0 %vm4378_vm2, %v665_v32  ;;  %v15312_v32 = vld [vmem:[#allocation311_spill] sm:$0xff]  ;;  %vm1560_vm14 = vcmp.eq.s32.totalorder %v11992_v61, %v12350_v20 }
 0x5e5   : > { %9421 = vmatmul.msk.f32.gmra.mxu1 %vm5298_vm5, %v5225_v40  ;;  %9554 = vmatmul.msk.f32.gmra.mxu2 %vm6085_vm15, %v782_v10  ;;  %v3372_v40 = vadd.f32 %v12037_v27, %v15312_v32  ;;  %v15314_v27 = vld [vmem:[#allocation313_spill] sm:$0xff]  ;;  %v7245_v57 = vrot.slane %v6912_v46, 4 }
 0x5e6   : > { %vm1548_vm7 = vcmp.eq.s32.totalorder %v15314_v27, %v12350_v20 }
 0x5e7   : > { %v4167_v16 = vpop.f32.mrf.mxu3  ;;  %v3773_v29 = vadd.f32 %v15313_v35, %v3372_v40  ;;  %v7246_v32 = vadd.f32 %v7245_v57, %v6912_v46  ;;  %v15318_v46 = vld [vmem:[#allocation320_spill] sm:$0xff] }
 0x5e8   : > { %v4168_v24 = vadd.f32 %v4167_v16, %v3767_v21  ;;  %v13498_v50 = vpop.f32.mrf.mxu2  ;;  %v668_v16 = vld [vmem:[%s12372_s23 + $0x260] sm:$0xff] }
 0x5e9   : > { %v4958_v43 = vpop.f32.mrf.mxu0 }
 0x5ea   : > { %v5226_v37 = vmul.f32 %v4958_v43, %v4168_v24  ;;  %v5826_v44 = vpop.f32.mrf.mxu1 }
 0x5ec   : > { %9182 = vmatmul.msk.f32.gmra.mxu3 %vm1540_vm0, %v14910_v60  ;;  %9310 = vmatmul.msk.f32.gmra.mxu0 %vm4378_vm2, %v666_v13  ;;  %v15315_v13 = vld [vmem:[#allocation315_spill] sm:$0xff] }
 0x5ed   : > { %9422 = vmatmul.msk.f32.gmra.mxu1 %vm5298_vm5, %v5226_v37  ;;  %9555 = vmatmul.msk.f32.gmra.mxu2 %vm6085_vm15, %v783_v4  ;;  %v3375_v37 = vadd.f32 %v12065_v9, %v15315_v13  ;;  %v6911_v9 = vmul.f32 %v13401_v48, %v13460_v54  ;;  %v7247_v13 = vrot.slane %v7246_v32, 2 }
 0x5ef   : > { %v4170_v63 = vpop.f32.mrf.mxu3  ;;  %v3776_v56 = vadd.f32 %v12014_v0, %v3375_v37 }
 0x5f0   : > { %v4171_v11 = vadd.f32 %v4170_v63, %v3770_v17  ;;  %v13511_v34 = vpop.f32.mrf.mxu2  ;;  %v6913_v17 = vmul.f32 %v13435_v23, %v5826_v44  ;;  %v15316_v23 = vld [vmem:[#allocation316_spill] sm:$0xff]  ;;  %v15317_v44 = vld [vmem:[#allocation318_spill] sm:$0xff] }
 0x5f1   : > { %v4961_v26 = vpop.f32.mrf.mxu0  ;;  %vm1552_vm12 = vcmp.eq.s32.totalorder %v15316_v23, %v12350_v20  ;;  %v3378_v48 = vadd.f32 %v12092_v58, %v15317_v44 }
 0x5f2   : > { %v5227_v39 = vmul.f32 %v4961_v26, %v4171_v11  ;;  %v5829_v1 = vpop.f32.mrf.mxu1  ;;  %v669_v26 = vld [vmem:[%s12372_s23 + $0x268] sm:$0xff]  ;;  %v7251_v54 = vrot.slane %v6913_v17, 4 }
 0x5f3   : > { %v6914_v4 = vmul.f32 %v13449_v2, %v5829_v1  ;;  %v7239_v2 = vrot.slane %v6911_v9, 4 }
 0x5f4   : > { %9183 = vmatmul.msk.f32.gmra.mxu3 %vm1544_vm1, %v14910_v60  ;;  %9311 = vmatmul.msk.f32.gmra.mxu0 %vm4378_vm2, %v667_v8  ;;  %vm1568_vm1 = vcmp.eq.s32.totalorder %v12039_v38, %v12350_v20 }
 0x5f5   : > { %9423 = vmatmul.msk.f32.gmra.mxu1 %vm5298_vm5, %v5227_v39  ;;  %9556 = vmatmul.msk.f32.gmra.mxu2 %vm6085_vm15, %v784_v59  ;;  %v7240_v58 = vadd.f32 %v7239_v2, %v6911_v9 }
 0x5f7   : > { %v4173_v49 = vpop.f32.mrf.mxu3 }
 0x5f8   : > { %v4174_v5 = vadd.f32 %v4173_v49, %v3773_v29  ;;  %v13524_v43 = vpop.f32.mrf.mxu2  ;;  %v786_v29 = vld [vmem:[%s12537_s17 + $0x210] sm:$0xff]  ;;  %v7252_v49 = vadd.f32 %v7251_v54, %v6913_v17  ;;  %v7241_v17 = vrot.slane %v7240_v58, 2 }
 0x5f9   : > { %v4964_v21 = vpop.f32.mrf.mxu0 }
 0x5fa   : > { %v5228_v10 = vmul.f32 %v4964_v21, %v4174_v5  ;;  %v5832_v24 = vpop.f32.mrf.mxu1  ;;  %v7242_v57 = vadd.f32 %v7241_v17, %v7240_v58 }
 0x5fb   : > { %v6915_v8 = vmul.f32 %v13465_v42, %v5832_v24  ;;  %v7257_v42 = vrot.slane %v6914_v4, 4 }
 0x5fc   : > { %9184 = vmatmul.msk.f32.gmra.mxu3 %vm1548_vm7, %v14910_v60  ;;  %9312 = vmatmul.msk.f32.gmra.mxu0 %vm4378_vm2, %v668_v16  ;;  %v670_v16 = vld [vmem:[%s12372_s23 + $0x270] sm:$0xff] }
 0x5fd   : > { %9424 = vmatmul.msk.f32.gmra.mxu1 %vm5298_vm5, %v5228_v10  ;;  %9557 = vmatmul.msk.f32.gmra.mxu2 %vm6085_vm15, %v785_v12  ;;  %v7263_v1 = vrot.slane %v6915_v8, 4  ;;  %v7258_v5 = vadd.f32 %v7257_v42, %v6914_v4  ;;  %v7253_v12 = vrot.slane %v7252_v49, 2  ;;  %v7248_v4 = vadd.f32 %v7247_v13, %v7246_v32 }
 0x5ff   : > { %v4176_v41 = vpop.f32.mrf.mxu3  ;;  %v7264_v10 = vadd.f32 %v7263_v1, %v6915_v8 }
 0x600   : > { %v4177_v63 = vadd.f32 %v4176_v41, %v3776_v56  ;;  %v13544_v25 = vpop.f32.mrf.mxu2  ;;  %v3381_v41 = vadd.f32 %v12126_v51, %v15318_v46  ;;  %v7254_v51 = vadd.f32 %v7253_v12, %v7252_v49  ;;  %v7243_v49 = vrot.slane %v7242_v57, 1 }
 0x601   : > { %v4967_v11 = vpop.f32.mrf.mxu0  ;;  %v7265_v22 = vrot.slane %v7264_v10, 2 }
 0x602   : > { %v5229_v39 = vmul.f32 %v4967_v11, %v4177_v63  ;;  %v5835_v0 = vpop.f32.mrf.mxu1  ;;  %v7259_v63 = vrot.slane %v7258_v5, 2  ;;  %v7244_v13 = vadd.f32 %v7243_v49, %v7242_v57 }
 0x603   : > { %v6916_v7 = vmul.f32 %v13485_v31, %v5835_v0  ;;  %v3779_v31 = vadd.f32 %v12041_v19, %v3378_v48  ;;  %v671_v48 = vld [vmem:[%s12372_s23 + $0x278] sm:$0xff]  ;;  %v7266_v54 = vadd.f32 %v7265_v22, %v7264_v10 }
 0x604   : > { %9185 = vmatmul.msk.f32.gmra.mxu3 %vm1552_vm12, %v14910_v60  ;;  %9313 = vmatmul.msk.f32.gmra.mxu0 %vm4378_vm2, %v669_v26  ;;  %v15319_v22 = vld [vmem:[#allocation324_spill] sm:$0xff]  ;;  %vm1576_vm12 = vcmp.eq.s32.totalorder %v12086_v55, %v12350_v20 }
 0x605   : > { %9425 = vmatmul.msk.f32.gmra.mxu1 %vm5298_vm5, %v5229_v39  ;;  %v7269_v40 = vrot.slane %v6916_v7, 4  ;;  %9558 = vmatmul.msk.f32.gmra.mxu2 %vm6085_vm15, %v786_v29  ;;  %v787_v39 = vld [vmem:[%s12537_s17 + $0x218] sm:$0xff]  ;;  %vm1564_vm0 = vcmp.eq.s32.totalorder %v15319_v22, %v12350_v20 }
 0x606   : > { %v15325_v22 = vld [vmem:[#allocation356_spill] sm:$0xff] }
 0x607   : > { %v4179_v35 = vpop.f32.mrf.mxu3  ;;  %v7270_v37 = vadd.f32 %v7269_v40, %v6916_v7  ;;  %v7260_v7 = vadd.f32 %v7259_v63, %v7258_v5  ;;  %v3384_v40 = vadd.f32 %v12155_v28, %v11996_v52  ;;  %v788_v52 = vld [vmem:[%s12537_s17 + $0x220] sm:$0xff] }
 0x608   : > { %v4180_v59 = vadd.f32 %v4179_v35, %v3779_v31  ;;  %v13558_v56 = vpop.f32.mrf.mxu2  ;;  %v7249_v31 = vrot.slane %v7248_v4, 1  ;;  %v7255_v35 = vrot.slane %v7254_v51, 1 }
 0x609   : > { %v4970_v21 = vpop.f32.mrf.mxu0  ;;  %v7271_v11 = vrot.slane %v7270_v37, 2  ;;  %v3785_v61 = vadd.f32 %v12098_v36, %v3384_v40 }
 0x60a   : > { %v5230_v24 = vmul.f32 %v4970_v21, %v4180_v59  ;;  %v5838_v27 = vpop.f32.mrf.mxu1  ;;  %v7261_v59 = vrot.slane %v7260_v7, 1  ;;  %v7250_v5 = vadd.f32 %v7249_v31, %v7248_v4  ;;  %v7256_v28 = vadd.f32 %v7255_v35, %v7254_v51 }
 0x60b   : > { %v6917_v19 = vmul.f32 %v13498_v50, %v5838_v27  ;;  %v3782_v50 = vadd.f32 %v12069_v53, %v3381_v41  ;;  %v7272_v53 = vadd.f32 %v7271_v11, %v7270_v37  ;;  %v672_v41 = vld [vmem:[%s12372_s23 + $0x280] sm:$0xff]  ;;  %v15320_v11 = vld [vmem:[#allocation326_spill] sm:$0xff]  ;;  %v3390_v35 = vadd.f32 %v12210_v47, %v12045_v18  ;;  %v15321_v47 = vld [vmem:[#allocation328_spill] sm:$0xff] }
 0x60c   : > { %9186 = vmatmul.msk.f32.gmra.mxu3 %vm1556_vm13, %v14910_v60  ;;  %9314 = vmatmul.msk.f32.gmra.mxu0 %vm4378_vm2, %v670_v16  ;;  %v7262_v37 = vadd.f32 %v7261_v59, %v7260_v7  ;;  %v7937_v36 = vsel %vm7895_vm3, %v7250_v5, %v7244_v13  ;;  %v790_v59 = vld [vmem:[%s12537_s17 + $0x230] sm:$0xff]  ;;  %vm1572_vm7 = vcmp.eq.s32.totalorder %v15321_v47, %v12350_v20 }
 0x60d   : > { %v7275_v9 = vrot.slane %v6917_v19, 4  ;;  %9426 = vmatmul.msk.f32.gmra.mxu1 %vm5298_vm5, %v5230_v24  ;;  %9559 = vmatmul.msk.f32.gmra.mxu2 %vm6085_vm15, %v787_v39  ;;  %v7273_v21 = vrot.slane %v7272_v53, 1 }
 0x60f   : > { %v7276_v26 = vadd.f32 %v7275_v9, %v6917_v19  ;;  %v4182_v8 = vpop.f32.mrf.mxu3  ;;  %v7274_v9 = vadd.f32 %v7273_v21, %v7272_v53  ;;  %v673_v53 = vld [vmem:[%s12372_s23 + $0x288] sm:$0xff] }
 0x610   : > { %v4183_v0 = vadd.f32 %v4182_v8, %v3782_v50  ;;  %v13572_v32 = vpop.f32.mrf.mxu2  ;;  %v7938_v8 = vsel %vm7897_vm4, %v7256_v28, %v7937_v36  ;;  %v15322_v21 = vld [vmem:[#allocation330_spill] sm:$0xff] }
 0x611   : > { %v7277_v23 = vrot.slane %v7276_v26, 2  ;;  %v4973_v44 = vpop.f32.mrf.mxu0  ;;  %v7939_v51 = vsel %vm7899_vm6, %v7262_v37, %v7938_v8 }
 0x612   : > { %v5231_v2 = vmul.f32 %v4973_v44, %v4183_v0  ;;  %v5841_v42 = vpop.f32.mrf.mxu1 }
 0x613   : > { %v6918_v1 = vmul.f32 %v13511_v34, %v5841_v42  ;;  %v7278_v29 = vadd.f32 %v7277_v23, %v7276_v26  ;;  %v7267_v34 = vrot.slane %v7266_v54, 1  ;;  %v3387_v26 = vadd.f32 %v12184_v3, %v15320_v11 }
 0x614   : > { %9187 = vmatmul.msk.f32.gmra.mxu3 %vm1560_vm14, %v14910_v60  ;;  %9315 = vmatmul.msk.f32.gmra.mxu0 %vm4378_vm2, %v671_v48  ;;  %v789_v48 = vld [vmem:[%s12537_s17 + $0x228] sm:$0xff] }
 0x615   : > { %v7281_v58 = vrot.slane %v6918_v1, 4  ;;  %9427 = vmatmul.msk.f32.gmra.mxu1 %vm5298_vm5, %v5231_v2  ;;  %v7279_v24 = vrot.slane %v7278_v29, 1  ;;  %9560 = vmatmul.msk.f32.gmra.mxu2 %vm6085_vm15, %v788_v52  ;;  %v7268_v12 = vadd.f32 %v7267_v34, %v7266_v54  ;;  %v3788_v57 = vadd.f32 %v12133_v33, %v3387_v26  ;;  %v791_v52 = vld [vmem:[%s12537_s17 + $0x238] sm:$0xff] }
 0x617   : > { %v7282_v16 = vadd.f32 %v7281_v58, %v6918_v1  ;;  %v4185_v10 = vpop.f32.mrf.mxu3  ;;  %v7280_v39 = vadd.f32 %v7279_v24, %v7278_v29  ;;  %v7940_v7 = vsel %vm7901_vm8, %v7268_v12, %v7939_v51  ;;  %v3791_v29 = vadd.f32 %v12159_v6, %v3390_v35  ;;  %v793_v51 = vld [vmem:[%s12537_s17 + $0x248] sm:$0xff] }
 0x618   : > { %v4186_v27 = vadd.f32 %v4185_v10, %v3785_v61  ;;  %v13588_v4 = vpop.f32.mrf.mxu2  ;;  %v7941_v3 = vsel %vm7903_vm9, %v7274_v9, %v7940_v7  ;;  %v674_v61 = vld [vmem:[%s12372_s23 + $0x290] sm:$0xff] }
 0x619   : > { %v7283_v19 = vrot.slane %v7282_v16, 2  ;;  %v4976_v46 = vpop.f32.mrf.mxu0  ;;  %v7942_v54 = vsel %vm7905_vm10, %v7280_v39, %v7941_v3 }
 0x61a   : > { %v5232_v17 = vmul.f32 %v4976_v46, %v4186_v27  ;;  %v13583_v63 = vpop.f32.mrf.mxu1  ;;  %v675_v27 = vld [vmem:[%s12372_s23 + $0x298] sm:$0xff] }
 0x61b   : > { %v7284_v50 = vadd.f32 %v7283_v19, %v7282_v16  ;;  %v3393_v16 = vadd.f32 %v12245_v15, %v15322_v21  ;;  %v3396_v19 = vadd.f32 %v12273_v45, %v12090_v30  ;;  %v15323_v30 = vld [vmem:[#allocation332_spill] sm:$0xff]  ;;  %v6919_v7 = vmul.f32 %v13524_v43, %v13583_v63  ;;  %v678_v21 = vld [vmem:[%s12372_s23 + $0x2b0] sm:$0xff] }
 0x61c   : > { %9188 = vmatmul.msk.f32.gmra.mxu3 %vm1564_vm0, %v14910_v60  ;;  %9316 = vmatmul.msk.f32.gmra.mxu0 %vm4378_vm2, %v672_v41  ;;  %v792_v41 = vld [vmem:[%s12537_s17 + $0x240] sm:$0xff]  ;;  %vm1580_vm13 = vcmp.eq.s32.totalorder %v15323_v30, %v12350_v20 }
 0x61d   : > { %v7285_v0 = vrot.slane %v7284_v50, 1  ;;  %9428 = vmatmul.msk.f32.gmra.mxu1 %vm5298_vm5, %v5232_v17  ;;  %9561 = vmatmul.msk.f32.gmra.mxu2 %vm6085_vm15, %v789_v48  ;;  %v3794_v6 = vadd.f32 %v12188_v14, %v3393_v16  ;;  %v3797_v14 = vadd.f32 %v12216_v62, %v3396_v19  ;;  %v676_v17 = vld [vmem:[%s12372_s23 + $0x2a0] sm:$0xff]  ;;  %v15333_v19 = vld [vmem:[#allocation7_spill] sm:$0xff] }
 0x61e   : > { %v15326_v62 = vld [vmem:[#allocation93_spill] sm:$0xff] }
 0x61f   : > { %v7286_v23 = vadd.f32 %v7285_v0, %v7284_v50  ;;  %v4188_v44 = vpop.f32.mrf.mxu3  ;;  %v15324_v50 = vld [vmem:[#allocation334_spill] sm:$0xff] }
 0x620   : > { %v4189_v2 = vadd.f32 %v4188_v44, %v3788_v57  ;;  %v13608_v40 = vpop.f32.mrf.mxu2  ;;  %v3399_v11 = vadd.f32 %v15325_v22, %v15324_v50  ;;  %v677_v44 = vld [vmem:[%s12372_s23 + $0x2a8] sm:$0xff] }
 0x621   : > { %v7943_v42 = vsel %vm7907_vm11, %v7286_v23, %v7942_v54  ;;  %v4979_v31 = vpop.f32.mrf.mxu0 }
 0x622   : > { %8035 = vst [vmem:[%s12988_s16 + $0x28] sm:$0xff] %v7943_v42  ;;  %v5233_v33 = vmul.f32 %v4979_v31, %v4189_v2  ;;  %v5847_v1 = vpop.f32.mrf.mxu1  ;;  %v3800_v26 = vadd.f32 %v15326_v62, %v3399_v11  ;;  %v795_v11 = vld [vmem:[%s12537_s17 + $0x258] sm:$0xff] }
 0x623   : > { %v6920_v8 = vmul.f32 %v13544_v25, %v5847_v1  ;;  %v15330_v1 = vld [vmem:[#allocation248_spill] sm:$0xff] }
 0x624   : > { %9189 = vmatmul.msk.f32.gmra.mxu3 %vm1568_vm1, %v14910_v60  ;;  %9317 = vmatmul.msk.f32.gmra.mxu0 %vm4378_vm2, %v673_v53  ;;  %v15328_v53 = vld [vmem:[#allocation337_spill] sm:$0xff] }
 0x625   : > { %9429 = vmatmul.msk.f32.gmra.mxu1 %vm5298_vm5, %v5233_v33  ;;  %9562 = vmatmul.msk.f32.gmra.mxu2 %vm6085_vm15, %v790_v59  ;;  %v7293_v42 = vrot.slane %v6920_v8, 4  ;;  %v15329_v33 = vld [vmem:[#allocation361_spill] sm:$0xff] }
 0x626   : > { %v3402_v43 = vadd.f32 %v15329_v33, %v15328_v53 }
 0x627   : > { %v4191_v49 = vpop.f32.mrf.mxu3 }
 0x628   : > { %v4192_v58 = vadd.f32 %v4191_v49, %v3791_v29  ;;  %v13621_v18 = vpop.f32.mrf.mxu2  ;;  %v7294_v29 = vadd.f32 %v7293_v42, %v6920_v8 }
 0x629   : > { %v4982_v38 = vpop.f32.mrf.mxu0 }
 0x62a   : > { %v5234_v34 = vmul.f32 %v4982_v38, %v4192_v58  ;;  %v5850_v5 = vpop.f32.mrf.mxu1  ;;  %v794_v58 = vld [vmem:[%s12537_s17 + $0x250] sm:$0xff] }
 0x62b   : > { %v6921_v0 = vmul.f32 %v13558_v56, %v5850_v5  ;;  %v15327_v56 = vld [vmem:[#allocation335_spill] sm:$0xff] }
 0x62c   : > { %9190 = vmatmul.msk.f32.gmra.mxu3 %vm1572_vm7, %v14910_v60  ;;  %9318 = vmatmul.msk.f32.gmra.mxu0 %vm4378_vm2, %v674_v61  ;;  %vm1584_vm14 = vcmp.eq.s32.totalorder %v15327_v56, %v12350_v20  ;;  %v15337_v56 = vld [vmem:[#allocation12_spill] sm:$0xff] }
 0x62d   : > { %9430 = vmatmul.msk.f32.gmra.mxu1 %vm5298_vm5, %v5234_v34  ;;  %9563 = vmatmul.msk.f32.gmra.mxu2 %vm6085_vm15, %v791_v52  ;;  %v7299_v63 = vrot.slane %v6921_v0, 4  ;;  %v7295_v52 = vrot.slane %v7294_v29, 2 }
 0x62f   : > { %v4194_v10 = vpop.f32.mrf.mxu3  ;;  %v7300_v38 = vadd.f32 %v7299_v63, %v6921_v0 }
 0x630   : > { %v4195_v28 = vadd.f32 %v4194_v10, %v3794_v6  ;;  %v13634_v15 = vpop.f32.mrf.mxu2 }
 0x631   : > { %v4985_v24 = vpop.f32.mrf.mxu0 }
 0x632   : > { %v5235_v13 = vmul.f32 %v4985_v24, %v4195_v28  ;;  %v5853_v37 = vpop.f32.mrf.mxu1 }
 0x633   : > { %v6922_v3 = vmul.f32 %v13572_v32, %v5853_v37  ;;  %v7287_v32 = vrot.slane %v6919_v7, 4  ;;  %v15332_v37 = vld [vmem:[#allocation340_spill] sm:$0xff] }
 0x634   : > { %9191 = vmatmul.msk.f32.gmra.mxu3 %vm1576_vm12, %v14910_v60  ;;  %9319 = vmatmul.msk.f32.gmra.mxu0 %vm4378_vm2, %v675_v27  ;;  %v15331_v27 = vld [vmem:[#allocation338_spill] sm:$0xff] }
 0x635   : > { %9431 = vmatmul.msk.f32.gmra.mxu1 %vm5298_vm5, %v5235_v13  ;;  %9564 = vmatmul.msk.f32.gmra.mxu2 %vm6085_vm15, %v792_v41  ;;  %v7288_v34 = vadd.f32 %v7287_v32, %v6919_v7  ;;  %vm1588_vm0 = vcmp.eq.s32.totalorder %v15331_v27, %v12350_v20 }
 0x637   : > { %v4197_v46 = vpop.f32.mrf.mxu3  ;;  %v7289_v41 = vrot.slane %v7288_v34, 2 }
 0x638   : > { %v4198_v12 = vadd.f32 %v4197_v46, %v3797_v14  ;;  %v13647_v45 = vpop.f32.mrf.mxu2  ;;  %v3405_v14 = vadd.f32 %v15333_v19, %v15332_v37  ;;  %v7301_v46 = vrot.slane %v7300_v38, 2  ;;  %v15339_v19 = vld [vmem:[#allocation344_spill] sm:$0xff] }
 0x639   : > { %v4988_v55 = vpop.f32.mrf.mxu0  ;;  %v7290_v8 = vadd.f32 %v7289_v41, %v7288_v34  ;;  %vm1596_vm7 = vcmp.eq.s32.totalorder %v15339_v19, %v12350_v20  ;;  %v15341_v41 = vld [vmem:[#allocation141_spill] sm:$0xff] }
 0x63a   : > { %v5236_v36 = vmul.f32 %v4988_v55, %v4198_v12  ;;  %v5856_v9 = vpop.f32.mrf.mxu1  ;;  %v7302_v62 = vadd.f32 %v7301_v46, %v7300_v38  ;;  %v15340_v46 = vld [vmem:[#allocation346_spill] sm:$0xff] }
 0x63b   : > { %v6923_v48 = vmul.f32 %v13588_v4, %v5856_v9  ;;  %v7305_v4 = vrot.slane %v6922_v3, 4  ;;  %v7296_v9 = vadd.f32 %v7295_v52, %v7294_v29  ;;  %v7291_v63 = vrot.slane %v7290_v8, 1 }
 0x63c   : > { %9192 = vmatmul.msk.f32.gmra.mxu3 %vm1580_vm13, %v14910_v60  ;;  %9320 = vmatmul.msk.f32.gmra.mxu0 %vm4378_vm2, %v676_v17  ;;  %v7303_v33 = vrot.slane %v7302_v62, 1 }
 0x63d   : > { %9432 = vmatmul.msk.f32.gmra.mxu1 %vm5298_vm5, %v5236_v36  ;;  %9565 = vmatmul.msk.f32.gmra.mxu2 %vm6085_vm15, %v793_v51  ;;  %v7311_v35 = vrot.slane %v6923_v48, 4  ;;  %v7306_v5 = vadd.f32 %v7305_v4, %v6922_v3 }
 0x63e   : > { %v7304_v38 = vadd.f32 %v7303_v33, %v7302_v62  ;;  %v798_v33 = vld [vmem:[%s12537_s17 + $0x270] sm:$0xff] }
 0x63f   : > { %v4200_v39 = vpop.f32.mrf.mxu3  ;;  %v7312_v16 = vadd.f32 %v7311_v35, %v6923_v48  ;;  %v7307_v12 = vrot.slane %v7306_v5, 2 }
 0x640   : > { %v4201_v57 = vadd.f32 %v4200_v39, %v3800_v26  ;;  %v13667_v31 = vpop.f32.mrf.mxu2 }
 0x641   : > { %v4991_v23 = vpop.f32.mrf.mxu0  ;;  %v7313_v36 = vrot.slane %v7312_v16, 2  ;;  %v7308_v39 = vadd.f32 %v7307_v12, %v7306_v5  ;;  %v7292_v5 = vadd.f32 %v7291_v63, %v7290_v8  ;;  %v3411_v12 = vadd.f32 %v15341_v41, %v15340_v46  ;;  %v800_v41 = vld [vmem:[%s12537_s17 + $0x280] sm:$0xff] }
 0x642   : > { %v5237_v54 = vmul.f32 %v4991_v23, %v4201_v57  ;;  %v5859_v2 = vpop.f32.mrf.mxu1  ;;  %v679_v57 = vld [vmem:[%s12372_s23 + $0x2b8] sm:$0xff] }
 0x643   : > { %v6924_v25 = vmul.f32 %v13608_v40, %v5859_v2  ;;  %v3803_v40 = vadd.f32 %v15330_v1, %v3402_v43  ;;  %v7314_v7 = vadd.f32 %v7313_v36, %v7312_v16  ;;  %v15335_v2 = vld [vmem:[#allocation341_spill] sm:$0xff]  ;;  %v7309_v32 = vrot.slane %v7308_v39, 1 }
 0x644   : > { %9193 = vmatmul.msk.f32.gmra.mxu3 %vm1584_vm14, %v14910_v60  ;;  %9321 = vmatmul.msk.f32.gmra.mxu0 %vm4378_vm2, %v677_v44  ;;  %v7297_v44 = vrot.slane %v7296_v9, 1  ;;  %vm1592_vm1 = vcmp.eq.s32.totalorder %v15335_v2, %v12350_v20 }
 0x645   : > { %9433 = vmatmul.msk.f32.gmra.mxu1 %vm5298_vm5, %v5237_v54  ;;  %v7317_v49 = vrot.slane %v6924_v25, 4  ;;  %9566 = vmatmul.msk.f32.gmra.mxu2 %vm6085_vm15, %v794_v58  ;;  %v796_v58 = vld [vmem:[%s12537_s17 + $0x260] sm:$0xff] }
 0x646   : > { %v7298_v35 = vadd.f32 %v7297_v44, %v7296_v9  ;;  %v15342_v9 = vld [vmem:[#allocation121_spill] sm:$0xff] }
 0x647   : > { %v4203_v59 = vpop.f32.mrf.mxu3  ;;  %v7318_v28 = vadd.f32 %v7317_v49, %v6924_v25  ;;  %v15336_v25 = vld [vmem:[#allocation343_spill] sm:$0xff] }
 0x648   : > { %v4204_v61 = vadd.f32 %v4203_v59, %v3803_v40  ;;  %v13681_v13 = vpop.f32.mrf.mxu2  ;;  %v3408_v53 = vadd.f32 %v15337_v56, %v15336_v25  ;;  %v7315_v40 = vrot.slane %v7314_v7, 1  ;;  %v15346_v25 = vld [vmem:[#allocation9_spill] sm:$0xff] }
 0x649   : > { %v4994_v47 = vpop.f32.mrf.mxu0  ;;  %v7319_v30 = vrot.slane %v7318_v28, 2 }
 0x64a   : > { %v5238_v6 = vmul.f32 %v4994_v47, %v4204_v61  ;;  %v5862_v10 = vpop.f32.mrf.mxu1  ;;  %v7310_v47 = vadd.f32 %v7309_v32, %v7308_v39  ;;  %v682_v32 = vld [vmem:[%s12372_s23 + $0x2d0] sm:$0xff] }
 0x64b   : > { %v6925_v24 = vmul.f32 %v13621_v18, %v5862_v10  ;;  %v15334_v18 = vld [vmem:[#allocation358_spill] sm:$0xff]  ;;  %v7320_v48 = vadd.f32 %v7319_v30, %v7318_v28  ;;  %v7316_v10 = vadd.f32 %v7315_v40, %v7314_v7  ;;  %v3812_v30 = vadd.f32 %v15342_v9, %v3411_v12  ;;  %v15355_v9 = vld [vmem:[#allocation105_spill] sm:$0xff] }
 0x64c   : > { %9194 = vmatmul.msk.f32.gmra.mxu3 %vm1588_vm0, %v14910_v60  ;;  %9322 = vmatmul.msk.f32.gmra.mxu0 %vm4378_vm2, %v678_v21  ;;  %v3806_v17 = vadd.f32 %v15334_v18, %v3405_v14  ;;  %vm1612_vm0 = vcmp.eq.s32.totalorder %v15355_v9, %v12350_v20 }
 0x64d   : > { %v7323_v55 = vrot.slane %v6925_v24, 4  ;;  %9434 = vmatmul.msk.f32.gmra.mxu1 %vm5298_vm5, %v5238_v6  ;;  %9567 = vmatmul.msk.f32.gmra.mxu2 %vm6085_vm15, %v795_v11  ;;  %v7321_v29 = vrot.slane %v7320_v48, 1  ;;  %v680_v6 = vld [vmem:[%s12372_s23 + $0x2c0] sm:$0xff] }
 0x64f   : > { %v7324_v50 = vadd.f32 %v7323_v55, %v6925_v24  ;;  %v4206_v22 = vpop.f32.mrf.mxu3  ;;  %v7944_v24 = vsel %vm7895_vm3, %v7298_v35, %v7292_v5  ;;  %v7322_v27 = vadd.f32 %v7321_v29, %v7320_v48  ;;  %v15344_v48 = vld [vmem:[#allocation349_spill] sm:$0xff]  ;;  %v15348_v35 = vld [vmem:[#allocation352_spill] sm:$0xff]  ;;  %v15349_v29 = vld [vmem:[#allocation374_spill] sm:$0xff] }
 0x650   : > { %v4207_v26 = vadd.f32 %v4206_v22, %v3806_v17  ;;  %v13695_v42 = vpop.f32.mrf.mxu2  ;;  %v7945_v55 = vsel %vm7897_vm4, %v7304_v38, %v7944_v24  ;;  %v15353_v24 = vld [vmem:[#allocation22_spill] sm:$0xff] }
 0x651   : > { %v7325_v51 = vrot.slane %v7324_v50, 2  ;;  %v4997_v0 = vpop.f32.mrf.mxu0  ;;  %v7946_v17 = vsel %vm7899_vm6, %v7310_v47, %v7945_v55  ;;  %v683_v47 = vld [vmem:[%s12372_s23 + $0x2d8] sm:$0xff] }
 0x652   : > { %v5239_v3 = vmul.f32 %v4997_v0, %v4207_v26  ;;  %v5865_v23 = vpop.f32.mrf.mxu1  ;;  %v797_v26 = vld [vmem:[%s12537_s17 + $0x268] sm:$0xff] }
 0x653   : > { %v6926_v54 = vmul.f32 %v13634_v15, %v5865_v23  ;;  %v7326_v43 = vadd.f32 %v7325_v51, %v7324_v50  ;;  %v15338_v15 = vld [vmem:[#allocation362_spill] sm:$0xff]  ;;  %v7947_v50 = vsel %vm7901_vm8, %v7316_v10, %v7946_v17  ;;  %v15343_v23 = vld [vmem:[#allocation347_spill] sm:$0xff] }
 0x654   : > { %9195 = vmatmul.msk.f32.gmra.mxu3 %vm1592_vm1, %v14910_v60  ;;  %9323 = vmatmul.msk.f32.gmra.mxu0 %vm4378_vm2, %v679_v57  ;;  %v3809_v1 = vadd.f32 %v15338_v15, %v3408_v53  ;;  %v7948_v22 = vsel %vm7903_vm9, %v7322_v27, %v7947_v50  ;;  %v681_v57 = vld [vmem:[%s12372_s23 + $0x2c8] sm:$0xff]  ;;  %vm1600_vm12 = vcmp.eq.s32.totalorder %v15343_v23, %v12350_v20  ;;  %v15356_v50 = vld [vmem:[#allocation357_spill] sm:$0xff] }
 0x655   : > { %v7329_v4 = vrot.slane %v6926_v54, 4  ;;  %9435 = vmatmul.msk.f32.gmra.mxu1 %vm5298_vm5, %v5239_v3  ;;  %v7327_v61 = vrot.slane %v7326_v43, 1  ;;  %9568 = vmatmul.msk.f32.gmra.mxu2 %vm6085_vm15, %v796_v58 }
 0x657   : > { %v7330_v49 = vadd.f32 %v7329_v4, %v6926_v54  ;;  %v4209_v59 = vpop.f32.mrf.mxu3  ;;  %v7328_v18 = vadd.f32 %v7327_v61, %v7326_v43  ;;  %v15345_v54 = vld [vmem:[#allocation146_spill] sm:$0xff]  ;;  %v799_v61 = vld [vmem:[%s12537_s17 + $0x278] sm:$0xff] }
 0x658   : > { %v4210_v34 = vadd.f32 %v4209_v59, %v3809_v1  ;;  %v13711_v14 = vpop.f32.mrf.mxu2  ;;  %v3414_v2 = vadd.f32 %v15345_v54, %v15344_v48  ;;  %v15347_v1 = vld [vmem:[#allocation350_spill] sm:$0xff]  ;;  %v15350_v59 = vld [vmem:[#allocation367_spill] sm:$0xff] }
 0x659   : > { %v7331_v21 = vrot.slane %v7330_v49, 2  ;;  %v5000_v16 = vpop.f32.mrf.mxu0  ;;  %v7949_v8 = vsel %vm7905_vm10, %v7328_v18, %v7948_v22  ;;  %vm1604_vm13 = vcmp.eq.s32.totalorder %v15347_v1, %v12350_v20  ;;  %v684_v18 = vld [vmem:[%s12372_s23 + $0x2e0] sm:$0xff]  ;;  %v15357_v22 = vld [vmem:[#allocation166_spill] sm:$0xff] }
 0x65a   : > { %v5240_v52 = vmul.f32 %v5000_v16, %v4210_v34  ;;  %v13706_v28 = vpop.f32.mrf.mxu1  ;;  %v3815_v56 = vadd.f32 %v15346_v25, %v3414_v2  ;;  %v685_v54 = vld [vmem:[%s12372_s23 + $0x2e8] sm:$0xff] }
 0x65b   : > { %v7332_v37 = vadd.f32 %v7331_v21, %v7330_v49  ;;  %v3417_v49 = vadd.f32 %v15349_v29, %v15348_v35  ;;  %v802_v35 = vld [vmem:[%s12537_s17 + $0x290] sm:$0xff] }
 0x65c   : > { %9196 = vmatmul.msk.f32.gmra.mxu3 %vm1596_vm7, %v14910_v60  ;;  %9324 = vmatmul.msk.f32.gmra.mxu0 %vm4378_vm2, %v680_v6  ;;  %v15351_v6 = vld [vmem:[#allocation99_spill] sm:$0xff] }
 0x65d   : > { %v7333_v36 = vrot.slane %v7332_v37, 1  ;;  %9436 = vmatmul.msk.f32.gmra.mxu1 %vm5298_vm5, %v5240_v52  ;;  %9569 = vmatmul.msk.f32.gmra.mxu2 %vm6085_vm15, %v797_v26  ;;  %v3818_v58 = vadd.f32 %v15350_v59, %v3417_v49  ;;  %vm1608_vm14 = vcmp.eq.s32.totalorder %v15351_v6, %v12350_v20  ;;  %v15352_v52 = vld [vmem:[#allocation354_spill] sm:$0xff] }
 0x65e   : > { %v3420_v27 = vadd.f32 %v15353_v24, %v15352_v52  ;;  %v15363_v52 = vld [vmem:[#allocation116_spill] sm:$0xff] }
 0x65f   : > { %v7334_v11 = vadd.f32 %v7333_v36, %v7332_v37  ;;  %v4212_v62 = vpop.f32.mrf.mxu3  ;;  %v15354_v37 = vld [vmem:[#allocation14_spill] sm:$0xff]  ;;  %vm1620_vm7 = vcmp.eq.s32.totalorder %v15363_v52, %v12350_v20 }
 0x660   : > { %v4213_v39 = vadd.f32 %v4212_v62, %v3812_v30  ;;  %v13731_v44 = vpop.f32.mrf.mxu2  ;;  %v3821_v19 = vadd.f32 %v15354_v37, %v3420_v27  ;;  %v15358_v62 = vld [vmem:[#allocation16_spill] sm:$0xff]  ;;  %v15364_v27 = vld [vmem:[#allocation363_spill] sm:$0xff]  ;;  %v15365_v37 = vld [vmem:[#allocation382_spill] sm:$0xff] }
 0x661   : > { %v7950_v51 = vsel %vm7907_vm11, %v7334_v11, %v7949_v8  ;;  %v5003_v0 = vpop.f32.mrf.mxu0  ;;  %v3423_v11 = vadd.f32 %v15357_v22, %v15356_v50 }
 0x662   : > { %8036 = vst [vmem:[%s12988_s16 + $0x30] sm:$0xff] %v7950_v51  ;;  %v5241_v7 = vmul.f32 %v5003_v0, %v4213_v39  ;;  %v5871_v3 = vpop.f32.mrf.mxu1  ;;  %v801_v51 = vld [vmem:[%s12537_s17 + $0x288] sm:$0xff] }
 0x663   : > { %v3824_v26 = vadd.f32 %v15358_v62, %v3423_v11  ;;  %v6928_v8 = vmul.f32 %v13667_v31, %v5871_v3  ;;  %v803_v11 = vld [vmem:[%s12537_s17 + $0x298] sm:$0xff] }
 0x664   : > { %9197 = vmatmul.msk.f32.gmra.mxu3 %vm1600_vm12, %v14910_v60  ;;  %9325 = vmatmul.msk.f32.gmra.mxu0 %vm4378_vm2, %v681_v57 }
 0x665   : > { %9437 = vmatmul.msk.f32.gmra.mxu1 %vm5298_vm5, %v5241_v7  ;;  %9570 = vmatmul.msk.f32.gmra.mxu2 %vm6085_vm15, %v798_v33  ;;  %v6927_v7 = vmul.f32 %v13647_v45, %v13706_v28  ;;  %v15360_v33 = vld [vmem:[#allocation360_spill] sm:$0xff] }
 0x667   : > { %v4215_v53 = vpop.f32.mrf.mxu3 }
 0x668   : > { %v4216_v43 = vadd.f32 %v4215_v53, %v3815_v56  ;;  %v13744_v40 = vpop.f32.mrf.mxu2  ;;  %v7341_v53 = vrot.slane %v6928_v8, 4 }
 0x669   : > { %v5006_v63 = vpop.f32.mrf.mxu0 }
 0x66a   : > { %v5242_v4 = vmul.f32 %v5006_v63, %v4216_v43  ;;  %v5874_v15 = vpop.f32.mrf.mxu1  ;;  %v15361_v43 = vld [vmem:[#allocation171_spill] sm:$0xff]  ;;  %v15362_v63 = vld [vmem:[#allocation18_spill] sm:$0xff] }
 0x66b   : > { %v6929_v0 = vmul.f32 %v13681_v13, %v5874_v15  ;;  %v15359_v13 = vld [vmem:[#allocation111_spill] sm:$0xff]  ;;  %v3426_v45 = vadd.f32 %v15361_v43, %v15360_v33 }
 0x66c   : > { %9198 = vmatmul.msk.f32.gmra.mxu3 %vm1604_vm13, %v14910_v60  ;;  %9326 = vmatmul.msk.f32.gmra.mxu0 %vm4378_vm2, %v682_v32  ;;  %vm1616_vm1 = vcmp.eq.s32.totalorder %v15359_v13, %v12350_v20  ;;  %v15369_v13 = vld [vmem:[#allocation32_spill] sm:$0xff] }
 0x66d   : > { %9438 = vmatmul.msk.f32.gmra.mxu1 %vm5298_vm5, %v5242_v4  ;;  %9571 = vmatmul.msk.f32.gmra.mxu2 %vm6085_vm15, %v799_v61  ;;  %v7347_v28 = vrot.slane %v6929_v0, 4  ;;  %v7342_v4 = vadd.f32 %v7341_v53, %v6928_v8  ;;  %v686_v61 = vld [vmem:[%s12372_s23 + $0x2f0] sm:$0xff] }
 0x66f   : > { %v4218_v38 = vpop.f32.mrf.mxu3  ;;  %v7348_v29 = vadd.f32 %v7347_v28, %v6929_v0 }
 0x670   : > { %v4219_v34 = vadd.f32 %v4218_v38, %v3818_v58  ;;  %v13757_v10 = vpop.f32.mrf.mxu2 }
 0x671   : > { %v5009_v5 = vpop.f32.mrf.mxu0 }
 0x672   : > { %v5243_v21 = vmul.f32 %v5009_v5, %v4219_v34  ;;  %v5877_v16 = vpop.f32.mrf.mxu1 }
 0x673   : > { %v6930_v23 = vmul.f32 %v13695_v42, %v5877_v16  ;;  %v7335_v42 = vrot.slane %v6927_v7, 4 }
 0x674   : > { %9199 = vmatmul.msk.f32.gmra.mxu3 %vm1608_vm14, %v14910_v60  ;;  %9327 = vmatmul.msk.f32.gmra.mxu0 %vm4378_vm2, %v683_v47 }
 0x675   : > { %9439 = vmatmul.msk.f32.gmra.mxu1 %vm5298_vm5, %v5243_v21  ;;  %9572 = vmatmul.msk.f32.gmra.mxu2 %vm6085_vm15, %v800_v41  ;;  %v7336_v59 = vadd.f32 %v7335_v42, %v6927_v7  ;;  %v7343_v21 = vrot.slane %v7342_v4, 2 }
 0x677   : > { %v4221_v46 = vpop.f32.mrf.mxu3  ;;  %v7337_v41 = vrot.slane %v7336_v59, 2 }
 0x678   : > { %v4222_v12 = vadd.f32 %v4221_v46, %v3821_v19  ;;  %v13770_v30 = vpop.f32.mrf.mxu2  ;;  %v3429_v19 = vadd.f32 %v15365_v37, %v15364_v27  ;;  %v7349_v46 = vrot.slane %v7348_v29, 2  ;;  %v15371_v37 = vld [vmem:[#allocation6_spill] sm:$0xff] }
 0x679   : > { %v5012_v55 = vpop.f32.mrf.mxu0  ;;  %v7338_v8 = vadd.f32 %v7337_v41, %v7336_v59  ;;  %vm1628_vm13 = vcmp.eq.s32.totalorder %v15371_v37, %v12350_v20  ;;  %v15373_v41 = vld [vmem:[#allocation191_spill] sm:$0xff] }
 0x67a   : > { %v5244_v17 = vmul.f32 %v5012_v55, %v4222_v12  ;;  %v5880_v36 = vpop.f32.mrf.mxu1  ;;  %v7350_v62 = vadd.f32 %v7349_v46, %v7348_v29  ;;  %v15372_v46 = vld [vmem:[#allocation366_spill] sm:$0xff] }
 0x67b   : > { %v6931_v2 = vmul.f32 %v13711_v14, %v5880_v36  ;;  %v7353_v14 = vrot.slane %v6930_v23, 4  ;;  %v7344_v36 = vadd.f32 %v7343_v21, %v7342_v4  ;;  %v7339_v28 = vrot.slane %v7338_v8, 1 }
 0x67c   : > { %9200 = vmatmul.msk.f32.gmra.mxu3 %vm1612_vm0, %v14910_v60  ;;  %9328 = vmatmul.msk.f32.gmra.mxu0 %vm4378_vm2, %v684_v18  ;;  %v7351_v43 = vrot.slane %v7350_v62, 1 }
 0x67d   : > { %9440 = vmatmul.msk.f32.gmra.mxu1 %vm5298_vm5, %v5244_v17  ;;  %9573 = vmatmul.msk.f32.gmra.mxu2 %vm6085_vm15, %v801_v51  ;;  %v7359_v32 = vrot.slane %v6931_v2, 4  ;;  %v7354_v58 = vadd.f32 %v7353_v14, %v6930_v23 }
 0x67e   : > { %v7352_v29 = vadd.f32 %v7351_v43, %v7350_v62  ;;  %v806_v43 = vld [vmem:[%s12537_s17 + $0x2b0] sm:$0xff] }
 0x67f   : > { %v4224_v39 = vpop.f32.mrf.mxu3  ;;  %v7360_v34 = vadd.f32 %v7359_v32, %v6931_v2  ;;  %v7355_v12 = vrot.slane %v7354_v58, 2 }
 0x680   : > { %v4225_v57 = vadd.f32 %v4224_v39, %v3824_v26  ;;  %v13790_v3 = vpop.f32.mrf.mxu2 }
 0x681   : > { %v5015_v48 = vpop.f32.mrf.mxu0  ;;  %v7361_v17 = vrot.slane %v7360_v34, 2  ;;  %v7356_v39 = vadd.f32 %v7355_v12, %v7354_v58  ;;  %v7340_v58 = vadd.f32 %v7339_v28, %v7338_v8  ;;  %v3435_v12 = vadd.f32 %v15373_v41, %v15372_v46  ;;  %v808_v41 = vld [vmem:[%s12537_s17 + $0x2c0] sm:$0xff] }
 0x682   : > { %v5245_v25 = vmul.f32 %v5015_v48, %v4225_v57  ;;  %v5883_v56 = vpop.f32.mrf.mxu1  ;;  %v687_v57 = vld [vmem:[%s12372_s23 + $0x2f8] sm:$0xff] }
 0x683   : > { %v6932_v31 = vmul.f32 %v13731_v44, %v5883_v56  ;;  %v3827_v44 = vadd.f32 %v15362_v63, %v3426_v45  ;;  %v7362_v7 = vadd.f32 %v7361_v17, %v7360_v34  ;;  %v15367_v56 = vld [vmem:[#allocation5_spill] sm:$0xff]  ;;  %v7357_v42 = vrot.slane %v7356_v39, 1 }
 0x684   : > { %9201 = vmatmul.msk.f32.gmra.mxu3 %vm1616_vm1, %v14910_v60  ;;  %9329 = vmatmul.msk.f32.gmra.mxu0 %vm4378_vm2, %v685_v54  ;;  %v7345_v54 = vrot.slane %v7344_v36, 1  ;;  %vm1624_vm12 = vcmp.eq.s32.totalorder %v15367_v56, %v12350_v20 }
 0x685   : > { %9441 = vmatmul.msk.f32.gmra.mxu1 %vm5298_vm5, %v5245_v25  ;;  %v7365_v15 = vrot.slane %v6932_v31, 4  ;;  %9574 = vmatmul.msk.f32.gmra.mxu2 %vm6085_vm15, %v802_v35  ;;  %v804_v35 = vld [vmem:[%s12537_s17 + $0x2a0] sm:$0xff] }
 0x686   : > { %v7346_v32 = vadd.f32 %v7345_v54, %v7344_v36  ;;  %v15374_v36 = vld [vmem:[#allocation26_spill] sm:$0xff] }
 0x687   : > { %v4227_v1 = vpop.f32.mrf.mxu3  ;;  %v7366_v16 = vadd.f32 %v7365_v15, %v6932_v31  ;;  %v15368_v31 = vld [vmem:[#allocation365_spill] sm:$0xff] }
 0x688   : > { %v4228_v49 = vadd.f32 %v4227_v1, %v3827_v44  ;;  %v13804_v24 = vpop.f32.mrf.mxu2  ;;  %v3432_v33 = vadd.f32 %v15369_v13, %v15368_v31  ;;  %v7363_v44 = vrot.slane %v7362_v7, 1  ;;  %v15378_v31 = vld [vmem:[#allocation28_spill] sm:$0xff] }
 0x689   : > { %v5018_v38 = vpop.f32.mrf.mxu0  ;;  %v7367_v9 = vrot.slane %v7366_v16, 2 }
 0x68a   : > { %v5246_v5 = vmul.f32 %v5018_v38, %v4228_v49  ;;  %v5886_v47 = vpop.f32.mrf.mxu1  ;;  %v7358_v38 = vadd.f32 %v7357_v42, %v7356_v39  ;;  %v690_v42 = vld [vmem:[%s12372_s23 + $0x310] sm:$0xff] }
 0x68b   : > { %v6933_v6 = vmul.f32 %v13744_v40, %v5886_v47  ;;  %v15366_v40 = vld [vmem:[#allocation375_spill] sm:$0xff]  ;;  %v7368_v2 = vadd.f32 %v7367_v9, %v7366_v16  ;;  %v7364_v47 = vadd.f32 %v7363_v44, %v7362_v7  ;;  %v3836_v9 = vadd.f32 %v15374_v36, %v3435_v12 }
 0x68c   : > { %9202 = vmatmul.msk.f32.gmra.mxu3 %vm1620_vm7, %v14910_v60  ;;  %9330 = vmatmul.msk.f32.gmra.mxu0 %vm4378_vm2, %v686_v61  ;;  %v3830_v18 = vadd.f32 %v15366_v40, %v3429_v19  ;;  %v15387_v36 = vld [vmem:[#allocation15_spill] sm:$0xff] }
 0x68d   : > { %v7371_v55 = vrot.slane %v6933_v6, 4  ;;  %9442 = vmatmul.msk.f32.gmra.mxu1 %vm5298_vm5, %v5246_v5  ;;  %9575 = vmatmul.msk.f32.gmra.mxu2 %vm6085_vm15, %v803_v11  ;;  %v7369_v4 = vrot.slane %v7368_v2, 1  ;;  %v688_v5 = vld [vmem:[%s12372_s23 + $0x300] sm:$0xff]  ;;  %vm1644_vm7 = vcmp.eq.s32.totalorder %v15387_v36, %v12350_v20 }
 0x68f   : > { %v7372_v50 = vadd.f32 %v7371_v55, %v6933_v6  ;;  %v4230_v22 = vpop.f32.mrf.mxu3  ;;  %v7951_v6 = vsel %vm7895_vm3, %v7346_v32, %v7340_v58  ;;  %v7370_v52 = vadd.f32 %v7369_v4, %v7368_v2  ;;  %v15376_v2 = vld [vmem:[#allocation131_spill] sm:$0xff]  ;;  %v15380_v32 = vld [vmem:[#allocation368_spill] sm:$0xff] }
 0x690   : > { %v4231_v26 = vadd.f32 %v4230_v22, %v3830_v18  ;;  %v13818_v53 = vpop.f32.mrf.mxu2  ;;  %v7952_v55 = vsel %vm7897_vm4, %v7352_v29, %v7951_v6  ;;  %v15381_v4 = vld [vmem:[#allocation40_spill] sm:$0xff] }
 0x691   : > { %v7373_v51 = vrot.slane %v7372_v50, 2  ;;  %v5021_v0 = vpop.f32.mrf.mxu0  ;;  %v7953_v18 = vsel %vm7899_vm6, %v7358_v38, %v7952_v55  ;;  %v691_v38 = vld [vmem:[%s12372_s23 + $0x318] sm:$0xff] }
 0x692   : > { %v5247_v23 = vmul.f32 %v5021_v0, %v4231_v26  ;;  %v5889_v48 = vpop.f32.mrf.mxu1  ;;  %v805_v26 = vld [vmem:[%s12537_s17 + $0x2a8] sm:$0xff]  ;;  %v15385_v6 = vld [vmem:[#allocation44_spill] sm:$0xff] }
 0x693   : > { %v6934_v25 = vmul.f32 %v13757_v10, %v5889_v48  ;;  %v7374_v45 = vadd.f32 %v7373_v51, %v7372_v50  ;;  %v15370_v10 = vld [vmem:[#allocation24_spill] sm:$0xff]  ;;  %v7954_v50 = vsel %vm7901_vm8, %v7364_v47, %v7953_v18 }
 0x694   : > { %9203 = vmatmul.msk.f32.gmra.mxu3 %vm1624_vm12, %v14910_v60  ;;  %9331 = vmatmul.msk.f32.gmra.mxu0 %vm4378_vm2, %v687_v57  ;;  %v3833_v63 = vadd.f32 %v15370_v10, %v3432_v33  ;;  %v7955_v22 = vsel %vm7903_vm9, %v7370_v52, %v7954_v50  ;;  %v689_v57 = vld [vmem:[%s12372_s23 + $0x308] sm:$0xff]  ;;  %v15375_v48 = vld [vmem:[#allocation8_spill] sm:$0xff] }
 0x695   : > { %v7377_v14 = vrot.slane %v6934_v25, 4  ;;  %9443 = vmatmul.msk.f32.gmra.mxu1 %vm5298_vm5, %v5247_v23  ;;  %v7375_v49 = vrot.slane %v7374_v45, 1  ;;  %9576 = vmatmul.msk.f32.gmra.mxu2 %vm6085_vm15, %v804_v35  ;;  %vm1632_vm14 = vcmp.eq.s32.totalorder %v15375_v48, %v12350_v20  ;;  %v15388_v50 = vld [vmem:[#allocation372_spill] sm:$0xff] }
 0x697   : > { %v7378_v15 = vadd.f32 %v7377_v14, %v6934_v25  ;;  %v4233_v1 = vpop.f32.mrf.mxu3  ;;  %v7376_v40 = vadd.f32 %v7375_v49, %v7374_v45  ;;  %v15377_v25 = vld [vmem:[#allocation196_spill] sm:$0xff] }
 0x698   : > { %v4234_v59 = vadd.f32 %v4233_v1, %v3833_v63  ;;  %v13834_v19 = vpop.f32.mrf.mxu2  ;;  %v3438_v56 = vadd.f32 %v15377_v25, %v15376_v2  ;;  %v15379_v63 = vld [vmem:[#allocation11_spill] sm:$0xff]  ;;  %v807_v49 = vld [vmem:[%s12537_s17 + $0x2b8] sm:$0xff]  ;;  %v693_v25 = vld [vmem:[%s12372_s23 + $0x328] sm:$0xff] }
 0x699   : > { %v7379_v61 = vrot.slane %v7378_v15, 2  ;;  %v5024_v34 = vpop.f32.mrf.mxu0  ;;  %v7956_v8 = vsel %vm7905_vm10, %v7376_v40, %v7955_v22  ;;  %vm1636_vm0 = vcmp.eq.s32.totalorder %v15379_v63, %v12350_v20  ;;  %v15382_v1 = vld [vmem:[#allocation383_spill] sm:$0xff]  ;;  %v692_v40 = vld [vmem:[%s12372_s23 + $0x320] sm:$0xff] }
 0x69a   : > { %v5248_v21 = vmul.f32 %v5024_v34, %v4234_v59  ;;  %v13829_v16 = vpop.f32.mrf.mxu1  ;;  %v3839_v13 = vadd.f32 %v15378_v31, %v3438_v56  ;;  %v15389_v22 = vld [vmem:[#allocation45_spill] sm:$0xff] }
 0x69b   : > { %v7380_v27 = vadd.f32 %v7379_v61, %v7378_v15  ;;  %v3441_v15 = vadd.f32 %v15381_v4, %v15380_v32  ;;  %v810_v32 = vld [vmem:[%s12537_s17 + $0x2d0] sm:$0xff] }
 0x69c   : > { %9204 = vmatmul.msk.f32.gmra.mxu3 %vm1628_vm13, %v14910_v60  ;;  %9332 = vmatmul.msk.f32.gmra.mxu0 %vm4378_vm2, %v688_v5  ;;  %v15383_v5 = vld [vmem:[#allocation13_spill] sm:$0xff] }
 0x69d   : > { %v7381_v17 = vrot.slane %v7380_v27, 1  ;;  %9444 = vmatmul.msk.f32.gmra.mxu1 %vm5298_vm5, %v5248_v21  ;;  %9577 = vmatmul.msk.f32.gmra.mxu2 %vm6085_vm15, %v805_v26  ;;  %v3842_v35 = vadd.f32 %v15382_v1, %v3441_v15  ;;  %vm1640_vm1 = vcmp.eq.s32.totalorder %v15383_v5, %v12350_v20  ;;  %v15384_v21 = vld [vmem:[#allocation370_spill] sm:$0xff] }
 0x69e   : > { %v3444_v52 = vadd.f32 %v15385_v6, %v15384_v21  ;;  %v15395_v21 = vld [vmem:[#allocation19_spill] sm:$0xff] }
 0x69f   : > { %v7382_v11 = vadd.f32 %v7381_v17, %v7380_v27  ;;  %v4236_v62 = vpop.f32.mrf.mxu3  ;;  %v15386_v27 = vld [vmem:[#allocation34_spill] sm:$0xff]  ;;  %vm1652_vm13 = vcmp.eq.s32.totalorder %v15395_v21, %v12350_v20 }
 0x6a0   : > { %v4237_v39 = vadd.f32 %v4236_v62, %v3836_v9  ;;  %v13854_v54 = vpop.f32.mrf.mxu2  ;;  %v3845_v37 = vadd.f32 %v15386_v27, %v3444_v52  ;;  %v15390_v62 = vld [vmem:[#allocation36_spill] sm:$0xff]  ;;  %v15397_v27 = vld [vmem:[#allocation50_spill] sm:$0xff] }
 0x6a1   : > { %v7957_v51 = vsel %vm7907_vm11, %v7382_v11, %v7956_v8  ;;  %v5027_v0 = vpop.f32.mrf.mxu0  ;;  %v3447_v11 = vadd.f32 %v15389_v22, %v15388_v50  ;;  %v15396_v52 = vld [vmem:[#allocation156_spill] sm:$0xff] }
 0x6a2   : > { %8037 = vst [vmem:[%s12988_s16 + $0x38] sm:$0xff] %v7957_v51  ;;  %v5249_v7 = vmul.f32 %v5027_v0, %v4237_v39  ;;  %v5895_v23 = vpop.f32.mrf.mxu1  ;;  %v809_v51 = vld [vmem:[%s12537_s17 + $0x2c8] sm:$0xff] }
 0x6a3   : > { %v3848_v26 = vadd.f32 %v15390_v62, %v3447_v11  ;;  %v6936_v8 = vmul.f32 %v13790_v3, %v5895_v23  ;;  %v811_v11 = vld [vmem:[%s12537_s17 + $0x2d8] sm:$0xff] }
 0x6a4   : > { %9205 = vmatmul.msk.f32.gmra.mxu3 %vm1632_vm14, %v14910_v60  ;;  %9333 = vmatmul.msk.f32.gmra.mxu0 %vm4378_vm2, %v689_v57 }
 0x6a5   : > { %9445 = vmatmul.msk.f32.gmra.mxu1 %vm5298_vm5, %v5249_v7  ;;  %9578 = vmatmul.msk.f32.gmra.mxu2 %vm6085_vm15, %v806_v43  ;;  %v6935_v7 = vmul.f32 %v13770_v30, %v13829_v16  ;;  %v15392_v43 = vld [vmem:[#allocation373_spill] sm:$0xff] }
 0x6a7   : > { %v4239_v33 = vpop.f32.mrf.mxu3 }
 0x6a8   : > { %v4240_v45 = vadd.f32 %v4239_v33, %v3839_v13  ;;  %v13867_v44 = vpop.f32.mrf.mxu2  ;;  %v7389_v33 = vrot.slane %v6936_v8, 4 }
 0x6a9   : > { %v5030_v28 = vpop.f32.mrf.mxu0 }
 0x6aa   : > { %v5250_v14 = vmul.f32 %v5030_v28, %v4240_v45  ;;  %v5898_v10 = vpop.f32.mrf.mxu1  ;;  %v15393_v45 = vld [vmem:[#allocation49_spill] sm:$0xff]  ;;  %v15394_v28 = vld [vmem:[#allocation38_spill] sm:$0xff] }
 0x6ab   : > { %v6937_v0 = vmul.f32 %v13804_v24, %v5898_v10  ;;  %v15391_v24 = vld [vmem:[#allocation17_spill] sm:$0xff]  ;;  %v3450_v30 = vadd.f32 %v15393_v45, %v15392_v43 }
 0x6ac   : > { %9206 = vmatmul.msk.f32.gmra.mxu3 %vm1636_vm0, %v14910_v60  ;;  %9334 = vmatmul.msk.f32.gmra.mxu0 %vm4378_vm2, %v690_v42  ;;  %vm1648_vm12 = vcmp.eq.s32.totalorder %v15391_v24, %v12350_v20  ;;  %v15401_v24 = vld [vmem:[#allocation54_spill] sm:$0xff] }
 0x6ad   : > { %9446 = vmatmul.msk.f32.gmra.mxu1 %vm5298_vm5, %v5250_v14  ;;  %9579 = vmatmul.msk.f32.gmra.mxu2 %vm6085_vm15, %v807_v49  ;;  %v7395_v16 = vrot.slane %v6937_v0, 4  ;;  %v7390_v14 = vadd.f32 %v7389_v33, %v6936_v8  ;;  %v694_v49 = vld [vmem:[%s12372_s23 + $0x330] sm:$0xff] }
 0x6af   : > { %v4242_v29 = vpop.f32.mrf.mxu3  ;;  %v7396_v4 = vadd.f32 %v7395_v16, %v6937_v0 }
 0x6b0   : > { %v4243_v59 = vadd.f32 %v4242_v29, %v3842_v35  ;;  %v13880_v47 = vpop.f32.mrf.mxu2 }
 0x6b1   : > { %v5033_v58 = vpop.f32.mrf.mxu0 }
 0x6b2   : > { %v5251_v61 = vmul.f32 %v5033_v58, %v4243_v59  ;;  %v5901_v34 = vpop.f32.mrf.mxu1 }
 0x6b3   : > { %v6938_v48 = vmul.f32 %v13818_v53, %v5901_v34  ;;  %v7383_v53 = vrot.slane %v6935_v7, 4 }
 0x6b4   : > { %9207 = vmatmul.msk.f32.gmra.mxu3 %vm1640_vm1, %v14910_v60  ;;  %9335 = vmatmul.msk.f32.gmra.mxu0 %vm4378_vm2, %v691_v38 }
 0x6b5   : > { %9447 = vmatmul.msk.f32.gmra.mxu1 %vm5298_vm5, %v5251_v61  ;;  %9580 = vmatmul.msk.f32.gmra.mxu2 %vm6085_vm15, %v808_v41  ;;  %v7384_v1 = vadd.f32 %v7383_v53, %v6935_v7  ;;  %v7391_v61 = vrot.slane %v7390_v14, 2 }
 0x6b7   : > { %v4245_v46 = vpop.f32.mrf.mxu3  ;;  %v7385_v41 = vrot.slane %v7384_v1, 2 }
 0x6b8   : > { %v4246_v12 = vadd.f32 %v4245_v46, %v3845_v37  ;;  %v13893_v9 = vpop.f32.mrf.mxu2  ;;  %v3453_v37 = vadd.f32 %v15397_v27, %v15396_v52  ;;  %v7397_v46 = vrot.slane %v7396_v4, 2  ;;  %v15403_v27 = vld [vmem:[#allocation23_spill] sm:$0xff] }
 0x6b9   : > { %v5036_v55 = vpop.f32.mrf.mxu0  ;;  %v7386_v8 = vadd.f32 %v7385_v41, %v7384_v1  ;;  %vm1660_vm0 = vcmp.eq.s32.totalorder %v15403_v27, %v12350_v20  ;;  %v15405_v41 = vld [vmem:[#allocation55_spill] sm:$0xff] }
 0x6ba   : > { %v5252_v18 = vmul.f32 %v5036_v55, %v4246_v12  ;;  %v5904_v17 = vpop.f32.mrf.mxu1  ;;  %v7398_v62 = vadd.f32 %v7397_v46, %v7396_v4  ;;  %v15404_v46 = vld [vmem:[#allocation378_spill] sm:$0xff] }
 0x6bb   : > { %v6939_v56 = vmul.f32 %v13834_v19, %v5904_v17  ;;  %v7401_v19 = vrot.slane %v6938_v48, 4  ;;  %v7392_v17 = vadd.f32 %v7391_v61, %v7390_v14  ;;  %v7387_v16 = vrot.slane %v7386_v8, 1 }
 0x6bc   : > { %9208 = vmatmul.msk.f32.gmra.mxu3 %vm1644_vm7, %v14910_v60  ;;  %9336 = vmatmul.msk.f32.gmra.mxu0 %vm4378_vm2, %v692_v40  ;;  %v7399_v45 = vrot.slane %v7398_v62, 1 }
 0x6bd   : > { %9448 = vmatmul.msk.f32.gmra.mxu1 %vm5298_vm5, %v5252_v18  ;;  %9581 = vmatmul.msk.f32.gmra.mxu2 %vm6085_vm15, %v809_v51  ;;  %v7407_v42 = vrot.slane %v6939_v56, 4  ;;  %v7402_v35 = vadd.f32 %v7401_v19, %v6938_v48 }
 0x6be   : > { %v7400_v4 = vadd.f32 %v7399_v45, %v7398_v62  ;;  %v814_v45 = vld [vmem:[%s12537_s17 + $0x2f0] sm:$0xff] }
 0x6bf   : > { %v4248_v39 = vpop.f32.mrf.mxu3  ;;  %v7408_v59 = vadd.f32 %v7407_v42, %v6939_v56  ;;  %v7403_v12 = vrot.slane %v7402_v35, 2 }
 0x6c0   : > { %v4249_v57 = vadd.f32 %v4248_v39, %v3848_v26  ;;  %v13913_v23 = vpop.f32.mrf.mxu2 }
 0x6c1   : > { %v5039_v2 = vpop.f32.mrf.mxu0  ;;  %v7409_v18 = vrot.slane %v7408_v59, 2  ;;  %v7404_v39 = vadd.f32 %v7403_v12, %v7402_v35  ;;  %v7388_v35 = vadd.f32 %v7387_v16, %v7386_v8  ;;  %v3459_v12 = vadd.f32 %v15405_v41, %v15404_v46  ;;  %v816_v41 = vld [vmem:[%s12537_s17 + $0x300] sm:$0xff] }
 0x6c2   : > { %v5253_v31 = vmul.f32 %v5039_v2, %v4249_v57  ;;  %v5907_v13 = vpop.f32.mrf.mxu1  ;;  %v695_v57 = vld [vmem:[%s12372_s23 + $0x338] sm:$0xff] }
 0x6c3   : > { %v6940_v3 = vmul.f32 %v13854_v54, %v5907_v13  ;;  %v3851_v54 = vadd.f32 %v15394_v28, %v3450_v30  ;;  %v7410_v7 = vadd.f32 %v7409_v18, %v7408_v59  ;;  %v15399_v13 = vld [vmem:[#allocation21_spill] sm:$0xff]  ;;  %v7405_v53 = vrot.slane %v7404_v39, 1 }
 0x6c4   : > { %9209 = vmatmul.msk.f32.gmra.mxu3 %vm1648_vm12, %v14910_v60  ;;  %9337 = vmatmul.msk.f32.gmra.mxu0 %vm4378_vm2, %v693_v25  ;;  %v7393_v25 = vrot.slane %v7392_v17, 1  ;;  %vm1656_vm14 = vcmp.eq.s32.totalorder %v15399_v13, %v12350_v20 }
 0x6c5   : > { %9449 = vmatmul.msk.f32.gmra.mxu1 %vm5298_vm5, %v5253_v31  ;;  %v7413_v10 = vrot.slane %v6940_v3, 4  ;;  %9582 = vmatmul.msk.f32.gmra.mxu2 %vm6085_vm15, %v810_v32  ;;  %v812_v32 = vld [vmem:[%s12537_s17 + $0x2e0] sm:$0xff] }
 0x6c6   : > { %v7394_v42 = vadd.f32 %v7393_v25, %v7392_v17  ;;  %v15406_v17 = vld [vmem:[#allocation46_spill] sm:$0xff] }
 0x6c7   : > { %v4251_v63 = vpop.f32.mrf.mxu3  ;;  %v7414_v34 = vadd.f32 %v7413_v10, %v6940_v3  ;;  %v15400_v3 = vld [vmem:[#allocation376_spill] sm:$0xff] }
 0x6c8   : > { %v4252_v15 = vadd.f32 %v4251_v63, %v3851_v54  ;;  %v13927_v6 = vpop.f32.mrf.mxu2  ;;  %v3456_v43 = vadd.f32 %v15401_v24, %v15400_v3  ;;  %v7411_v54 = vrot.slane %v7410_v7, 1  ;;  %v15410_v3 = vld [vmem:[#allocation47_spill] sm:$0xff] }
 0x6c9   : > { %v5042_v29 = vpop.f32.mrf.mxu0  ;;  %v7415_v36 = vrot.slane %v7414_v34, 2 }
 0x6ca   : > { %v5254_v58 = vmul.f32 %v5042_v29, %v4252_v15  ;;  %v5910_v38 = vpop.f32.mrf.mxu1  ;;  %v7406_v29 = vadd.f32 %v7405_v53, %v7404_v39  ;;  %v698_v53 = vld [vmem:[%s12372_s23 + $0x350] sm:$0xff] }
 0x6cb   : > { %v6941_v5 = vmul.f32 %v13867_v44, %v5910_v38  ;;  %v15398_v44 = vld [vmem:[#allocation41_spill] sm:$0xff]  ;;  %v7416_v56 = vadd.f32 %v7415_v36, %v7414_v34  ;;  %v7412_v38 = vadd.f32 %v7411_v54, %v7410_v7  ;;  %v3860_v36 = vadd.f32 %v15406_v17, %v3459_v12  ;;  %v15419_v17 = vld [vmem:[#allocation31_spill] sm:$0xff] }
 0x6cc   : > { %9210 = vmatmul.msk.f32.gmra.mxu3 %vm1652_vm13, %v14910_v60  ;;  %9338 = vmatmul.msk.f32.gmra.mxu0 %vm4378_vm2, %v694_v49  ;;  %v3854_v40 = vadd.f32 %v15398_v44, %v3453_v37  ;;  %vm1676_vm13 = vcmp.eq.s32.totalorder %v15419_v17, %v12350_v20 }
 0x6cd   : > { %v7419_v55 = vrot.slane %v6941_v5, 4  ;;  %9450 = vmatmul.msk.f32.gmra.mxu1 %vm5298_vm5, %v5254_v58  ;;  %9583 = vmatmul.msk.f32.gmra.mxu2 %vm6085_vm15, %v811_v11  ;;  %v7417_v14 = vrot.slane %v7416_v56, 1  ;;  %v696_v58 = vld [vmem:[%s12372_s23 + $0x340] sm:$0xff] }
 0x6cf   : > { %v7420_v50 = vadd.f32 %v7419_v55, %v6941_v5  ;;  %v4254_v22 = vpop.f32.mrf.mxu3  ;;  %v7958_v5 = vsel %vm7895_vm3, %v7394_v42, %v7388_v35  ;;  %v7418_v21 = vadd.f32 %v7417_v14, %v7416_v56  ;;  %v15408_v56 = vld [vmem:[#allocation380_spill] sm:$0xff]  ;;  %v15412_v42 = vld [vmem:[#allocation381_spill] sm:$0xff] }
 0x6d0   : > { %v4255_v26 = vadd.f32 %v4254_v22, %v3854_v40  ;;  %v13941_v33 = vpop.f32.mrf.mxu2  ;;  %v7959_v55 = vsel %vm7897_vm4, %v7400_v4, %v7958_v5  ;;  %v15413_v14 = vld [vmem:[#allocation60_spill] sm:$0xff] }
 0x6d1   : > { %v7421_v51 = vrot.slane %v7420_v50, 2  ;;  %v5045_v0 = vpop.f32.mrf.mxu0  ;;  %v7960_v40 = vsel %vm7899_vm6, %v7406_v29, %v7959_v55  ;;  %v699_v29 = vld [vmem:[%s12372_s23 + $0x358] sm:$0xff] }
 0x6d2   : > { %v5255_v48 = vmul.f32 %v5045_v0, %v4255_v26  ;;  %v5913_v2 = vpop.f32.mrf.mxu1  ;;  %v813_v26 = vld [vmem:[%s12537_s17 + $0x2e8] sm:$0xff]  ;;  %v15417_v5 = vld [vmem:[#allocation64_spill] sm:$0xff] }
 0x6d3   : > { %v6942_v31 = vmul.f32 %v13880_v47, %v5913_v2  ;;  %v7422_v30 = vadd.f32 %v7421_v51, %v7420_v50  ;;  %v15402_v47 = vld [vmem:[#allocation42_spill] sm:$0xff]  ;;  %v7961_v50 = vsel %vm7901_vm8, %v7412_v38, %v7960_v40  ;;  %v15407_v2 = vld [vmem:[#allocation25_spill] sm:$0xff] }
 0x6d4   : > { %9211 = vmatmul.msk.f32.gmra.mxu3 %vm1656_vm14, %v14910_v60  ;;  %9339 = vmatmul.msk.f32.gmra.mxu0 %vm4378_vm2, %v695_v57  ;;  %v3857_v28 = vadd.f32 %v15402_v47, %v3456_v43  ;;  %v7962_v22 = vsel %vm7903_vm9, %v7418_v21, %v7961_v50  ;;  %v697_v57 = vld [vmem:[%s12372_s23 + $0x348] sm:$0xff]  ;;  %vm1664_vm1 = vcmp.eq.s32.totalorder %v15407_v2, %v12350_v20  ;;  %v15420_v50 = vld [vmem:[#allocation384_spill] sm:$0xff] }
 0x6d5   : > { %v7425_v19 = vrot.slane %v6942_v31, 4  ;;  %9451 = vmatmul.msk.f32.gmra.mxu1 %vm5298_vm5, %v5255_v48  ;;  %v7423_v15 = vrot.slane %v7422_v30, 1  ;;  %9584 = vmatmul.msk.f32.gmra.mxu2 %vm6085_vm15, %v812_v32 }
 0x6d7   : > { %v7426_v10 = vadd.f32 %v7425_v19, %v6942_v31  ;;  %v4257_v63 = vpop.f32.mrf.mxu3  ;;  %v7424_v44 = vadd.f32 %v7423_v15, %v7422_v30  ;;  %v15409_v31 = vld [vmem:[#allocation59_spill] sm:$0xff]  ;;  %v815_v15 = vld [vmem:[%s12537_s17 + $0x2f8] sm:$0xff] }
 0x6d8   : > { %v4258_v1 = vadd.f32 %v4257_v63, %v3857_v28  ;;  %v13957_v37 = vpop.f32.mrf.mxu2  ;;  %v3462_v13 = vadd.f32 %v15409_v31, %v15408_v56  ;;  %v15411_v28 = vld [vmem:[#allocation27_spill] sm:$0xff]  ;;  %v701_v31 = vld [vmem:[%s12372_s23 + $0x368] sm:$0xff] }
 0x6d9   : > { %v7427_v49 = vrot.slane %v7426_v10, 2  ;;  %v5048_v59 = vpop.f32.mrf.mxu0  ;;  %v7963_v8 = vsel %vm7905_vm10, %v7424_v44, %v7962_v22  ;;  %vm1668_vm7 = vcmp.eq.s32.totalorder %v15411_v28, %v12350_v20  ;;  %v15414_v63 = vld [vmem:[#allocation51_spill] sm:$0xff]  ;;  %v700_v44 = vld [vmem:[%s12372_s23 + $0x360] sm:$0xff]  ;;  %v15421_v22 = vld [vmem:[#allocation62_spill] sm:$0xff] }
 0x6da   : > { %v5256_v61 = vmul.f32 %v5048_v59, %v4258_v1  ;;  %v13952_v34 = vpop.f32.mrf.mxu1  ;;  %v3863_v24 = vadd.f32 %v15410_v3, %v3462_v13 }
 0x6db   : > { %v7428_v52 = vadd.f32 %v7427_v49, %v7426_v10  ;;  %v3465_v10 = vadd.f32 %v15413_v14, %v15412_v42  ;;  %v818_v42 = vld [vmem:[%s12537_s17 + $0x310] sm:$0xff] }
 0x6dc   : > { %9212 = vmatmul.msk.f32.gmra.mxu3 %vm1660_vm0, %v14910_v60  ;;  %9340 = vmatmul.msk.f32.gmra.mxu0 %vm4378_vm2, %v696_v58  ;;  %v15415_v58 = vld [vmem:[#allocation29_spill] sm:$0xff] }
 0x6dd   : > { %v7429_v18 = vrot.slane %v7428_v52, 1  ;;  %9452 = vmatmul.msk.f32.gmra.mxu1 %vm5298_vm5, %v5256_v61  ;;  %9585 = vmatmul.msk.f32.gmra.mxu2 %vm6085_vm15, %v813_v26  ;;  %v3866_v32 = vadd.f32 %v15414_v63, %v3465_v10  ;;  %vm1672_vm12 = vcmp.eq.s32.totalorder %v15415_v58, %v12350_v20  ;;  %v15416_v61 = vld [vmem:[#allocation181_spill] sm:$0xff] }
 0x6de   : > { %v3468_v21 = vadd.f32 %v15417_v5, %v15416_v61  ;;  %v15427_v61 = vld [vmem:[#allocation35_spill] sm:$0xff] }
 0x6df   : > { %v7430_v11 = vadd.f32 %v7429_v18, %v7428_v52  ;;  %v4260_v62 = vpop.f32.mrf.mxu3  ;;  %v15418_v52 = vld [vmem:[#allocation52_spill] sm:$0xff]  ;;  %vm1684_vm0 = vcmp.eq.s32.totalorder %v15427_v61, %v12350_v20 }
 0x6e0   : > { %v4261_v39 = vadd.f32 %v4260_v62, %v3860_v36  ;;  %v13977_v25 = vpop.f32.mrf.mxu2  ;;  %v3869_v27 = vadd.f32 %v15418_v52, %v3468_v21  ;;  %v15422_v62 = vld [vmem:[#allocation56_spill] sm:$0xff]  ;;  %v15429_v52 = vld [vmem:[#allocation66_spill] sm:$0xff] }
 0x6e1   : > { %v7964_v51 = vsel %vm7907_vm11, %v7430_v11, %v7963_v8  ;;  %v5051_v0 = vpop.f32.mrf.mxu0  ;;  %v3471_v11 = vadd.f32 %v15421_v22, %v15420_v50  ;;  %v15428_v21 = vld [vmem:[#allocation388_spill] sm:$0xff] }
 0x6e2   : > { %8038 = vst [vmem:[%s12988_s16 + $0x40] sm:$0xff] %v7964_v51  ;;  %v5257_v7 = vmul.f32 %v5051_v0, %v4261_v39  ;;  %v5919_v48 = vpop.f32.mrf.mxu1  ;;  %v817_v51 = vld [vmem:[%s12537_s17 + $0x308] sm:$0xff] }
 0x6e3   : > { %v3872_v26 = vadd.f32 %v15422_v62, %v3471_v11  ;;  %v6944_v8 = vmul.f32 %v13913_v23, %v5919_v48  ;;  %v819_v11 = vld [vmem:[%s12537_s17 + $0x318] sm:$0xff] }
 0x6e4   : > { %9213 = vmatmul.msk.f32.gmra.mxu3 %vm1664_vm1, %v14910_v60  ;;  %9341 = vmatmul.msk.f32.gmra.mxu0 %vm4378_vm2, %v697_v57 }
 0x6e5   : > { %9453 = vmatmul.msk.f32.gmra.mxu1 %vm5298_vm5, %v5257_v7  ;;  %9586 = vmatmul.msk.f32.gmra.mxu2 %vm6085_vm15, %v814_v45  ;;  %v6943_v7 = vmul.f32 %v13893_v9, %v13952_v34  ;;  %v15424_v45 = vld [vmem:[#allocation386_spill] sm:$0xff] }
 0x6e7   : > { %v4263_v43 = vpop.f32.mrf.mxu3 }
 0x6e8   : > { %v4264_v30 = vadd.f32 %v4263_v43, %v3863_v24  ;;  %v13990_v54 = vpop.f32.mrf.mxu2  ;;  %v7437_v43 = vrot.slane %v6944_v8, 4 }
 0x6e9   : > { %v5054_v16 = vpop.f32.mrf.mxu0 }
 0x6ea   : > { %v5258_v19 = vmul.f32 %v5054_v16, %v4264_v30  ;;  %v5922_v47 = vpop.f32.mrf.mxu1  ;;  %v15425_v30 = vld [vmem:[#allocation65_spill] sm:$0xff] }
 0x6eb   : > { %v6945_v0 = vmul.f32 %v13927_v6, %v5922_v47  ;;  %v15423_v6 = vld [vmem:[#allocation33_spill] sm:$0xff]  ;;  %v3474_v9 = vadd.f32 %v15425_v30, %v15424_v45 }
 0x6ec   : > { %9214 = vmatmul.msk.f32.gmra.mxu3 %vm1668_vm7, %v14910_v60  ;;  %9342 = vmatmul.msk.f32.gmra.mxu0 %vm4378_vm2, %v698_v53  ;;  %vm1680_vm14 = vcmp.eq.s32.totalorder %v15423_v6, %v12350_v20  ;;  %v15426_v16 = vld [vmem:[#allocation57_spill] sm:$0xff] }
 0x6ed   : > { %9454 = vmatmul.msk.f32.gmra.mxu1 %vm5298_vm5, %v5258_v19  ;;  %9587 = vmatmul.msk.f32.gmra.mxu2 %vm6085_vm15, %v815_v15  ;;  %v7443_v34 = vrot.slane %v6945_v0, 4  ;;  %v7438_v19 = vadd.f32 %v7437_v43, %v6944_v8  ;;  %v702_v15 = vld [vmem:[%s12372_s23 + $0x370] sm:$0xff] }
 0x6ef   : > { %v4266_v4 = vpop.f32.mrf.mxu3  ;;  %v7444_v14 = vadd.f32 %v7443_v34, %v6945_v0 }
 0x6f0   : > { %v4267_v1 = vadd.f32 %v4266_v4, %v3866_v32  ;;  %v14003_v38 = vpop.f32.mrf.mxu2 }
 0x6f1   : > { %v5057_v35 = vpop.f32.mrf.mxu0 }
 0x6f2   : > { %v5259_v49 = vmul.f32 %v5057_v35, %v4267_v1  ;;  %v5925_v59 = vpop.f32.mrf.mxu1 }
 0x6f3   : > { %v6946_v2 = vmul.f32 %v13941_v33, %v5925_v59  ;;  %v7431_v33 = vrot.slane %v6943_v7, 4 }
 0x6f4   : > { %9215 = vmatmul.msk.f32.gmra.mxu3 %vm1672_vm12, %v14910_v60  ;;  %9343 = vmatmul.msk.f32.gmra.mxu0 %vm4378_vm2, %v699_v29 }
 0x6f5   : > { %9455 = vmatmul.msk.f32.gmra.mxu1 %vm5298_vm5, %v5259_v49  ;;  %9588 = vmatmul.msk.f32.gmra.mxu2 %vm6085_vm15, %v816_v41  ;;  %v7432_v63 = vadd.f32 %v7431_v33, %v6943_v7  ;;  %v7439_v49 = vrot.slane %v7438_v19, 2 }
 0x6f7   : > { %v4269_v46 = vpop.f32.mrf.mxu3  ;;  %v7433_v41 = vrot.slane %v7432_v63, 2 }
 0x6f8   : > { %v4270_v12 = vadd.f32 %v4269_v46, %v3869_v27  ;;  %v14016_v36 = vpop.f32.mrf.mxu2  ;;  %v3477_v27 = vadd.f32 %v15429_v52, %v15428_v21  ;;  %v7445_v46 = vrot.slane %v7444_v14, 2 }
 0x6f9   : > { %v5060_v55 = vpop.f32.mrf.mxu0  ;;  %v7434_v8 = vadd.f32 %v7433_v41, %v7432_v63 }
 0x6fa   : > { %v5260_v40 = vmul.f32 %v5060_v55, %v4270_v12  ;;  %v5928_v18 = vpop.f32.mrf.mxu1  ;;  %v7446_v62 = vadd.f32 %v7445_v46, %v7444_v14 }
 0x6fb   : > { %v6947_v13 = vmul.f32 %v13957_v37, %v5928_v18  ;;  %v7449_v37 = vrot.slane %v6946_v2, 4  ;;  %v7440_v18 = vadd.f32 %v7439_v49, %v7438_v19  ;;  %v7435_v45 = vrot.slane %v7434_v8, 1 }
 0x6fc   : > { %9216 = vmatmul.msk.f32.gmra.mxu3 %vm1676_vm13, %v14910_v60  ;;  %9344 = vmatmul.msk.f32.gmra.mxu0 %vm4378_vm2, %v700_v44 }
 0x6fd   : > { %9456 = vmatmul.msk.f32.gmra.mxu1 %vm5298_vm5, %v5260_v40  ;;  %9589 = vmatmul.msk.f32.gmra.mxu2 %vm6085_vm15, %v817_v51  ;;  %v7455_v53 = vrot.slane %v6947_v13, 4  ;;  %v7450_v32 = vadd.f32 %v7449_v37, %v6946_v2 }
 0x6ff   : > { %v4272_v39 = vpop.f32.mrf.mxu3  ;;  %v7456_v1 = vadd.f32 %v7455_v53, %v6947_v13  ;;  %v7451_v12 = vrot.slane %v7450_v32, 2 }
 0x700   : > { %v4273_v57 = vadd.f32 %v4272_v39, %v3872_v26  ;;  %v14036_v48 = vpop.f32.mrf.mxu2 }
 0x701   : > { %v5063_v56 = vpop.f32.mrf.mxu0  ;;  %v7457_v40 = vrot.slane %v7456_v1, 2  ;;  %v7452_v39 = vadd.f32 %v7451_v12, %v7450_v32  ;;  %v704_v32 = vld [vmem:[%s12372_s23 + $0x380] sm:$0xff] }
 0x702   : > { %v5261_v3 = vmul.f32 %v5063_v56, %v4273_v57  ;;  %v5931_v24 = vpop.f32.mrf.mxu1  ;;  %v703_v57 = vld [vmem:[%s12372_s23 + $0x378] sm:$0xff] }
 0x703   : > { %v6948_v23 = vmul.f32 %v13977_v25, %v5931_v24  ;;  %v3875_v25 = vadd.f32 %v15426_v16, %v3474_v9  ;;  %v7458_v7 = vadd.f32 %v7457_v40, %v7456_v1  ;;  %v15431_v24 = vld [vmem:[#allocation37_spill] sm:$0xff]  ;;  %v7453_v30 = vrot.slane %v7452_v39, 1 }
 0x704   : > { %9217 = vmatmul.msk.f32.gmra.mxu3 %vm1680_vm14, %v14910_v60  ;;  %9345 = vmatmul.msk.f32.gmra.mxu0 %vm4378_vm2, %v701_v31  ;;  %v7441_v31 = vrot.slane %v7440_v18, 1  ;;  %vm1688_vm1 = vcmp.eq.s32.totalorder %v15431_v24, %v12350_v20  ;;  %v15434_v40 = vld [vmem:[#allocation325_spill] sm:$0xff] }
 0x705   : > { %9457 = vmatmul.msk.f32.gmra.mxu1 %vm5298_vm5, %v5261_v3  ;;  %v7461_v47 = vrot.slane %v6948_v23, 4  ;;  %9590 = vmatmul.msk.f32.gmra.mxu2 %vm6085_vm15, %v818_v42  ;;  %v7459_v34 = vrot.slane %v7458_v7, 1  ;;  %v7436_v42 = vadd.f32 %v7435_v45, %v7434_v8  ;;  %v7454_v14 = vadd.f32 %v7453_v30, %v7452_v39 }
 0x707   : > { %v4275_v28 = vpop.f32.mrf.mxu3  ;;  %v7462_v59 = vadd.f32 %v7461_v47, %v6948_v23  ;;  %v7447_v23 = vrot.slane %v7446_v62, 1  ;;  %v15432_v47 = vld [vmem:[#allocation323_spill] sm:$0xff] }
 0x708   : > { %v4276_v10 = vadd.f32 %v4275_v28, %v3875_v25  ;;  %v14050_v5 = vpop.f32.mrf.mxu2  ;;  %v820_v25 = vld [vmem:[%s12537_s17 + $0x320] sm:$0xff] }
 0x709   : > { %v5066_v4 = vpop.f32.mrf.mxu0  ;;  %v7463_v17 = vrot.slane %v7462_v59, 2  ;;  %v7448_v53 = vadd.f32 %v7447_v23, %v7446_v62  ;;  %v823_v23 = vld [vmem:[%s12537_s17 + $0x338] sm:$0xff] }
 0x70a   : > { %v5262_v35 = vmul.f32 %v5066_v4, %v4276_v10  ;;  %v5934_v29 = vpop.f32.mrf.mxu1  ;;  %v7460_v4 = vadd.f32 %v7459_v34, %v7458_v7 }
 0x70b   : > { %v6949_v58 = vmul.f32 %v13990_v54, %v5934_v29  ;;  %v15430_v54 = vld [vmem:[#allocation61_spill] sm:$0xff]  ;;  %v7464_v13 = vadd.f32 %v7463_v17, %v7462_v59  ;;  %v15433_v59 = vld [vmem:[#allocation39_spill] sm:$0xff] }
 0x70c   : > { %9218 = vmatmul.msk.f32.gmra.mxu3 %vm1684_vm0, %v14910_v60  ;;  %9346 = vmatmul.msk.f32.gmra.mxu0 %vm4378_vm2, %v702_v15  ;;  %v3878_v44 = vadd.f32 %v15430_v54, %v3477_v27  ;;  %vm1692_vm7 = vcmp.eq.s32.totalorder %v15433_v59, %v12350_v20  ;;  %v821_v54 = vld [vmem:[%s12537_s17 + $0x328] sm:$0xff] }
 0x70d   : > { %v7467_v55 = vrot.slane %v6949_v58, 4  ;;  %9458 = vmatmul.msk.f32.gmra.mxu1 %vm5298_vm5, %v5262_v35  ;;  %9591 = vmatmul.msk.f32.gmra.mxu2 %vm6085_vm15, %v819_v11  ;;  %v7465_v33 = vrot.slane %v7464_v13, 1 }
 0x70f   : > { %v7468_v50 = vadd.f32 %v7467_v55, %v6949_v58  ;;  %v4278_v22 = vpop.f32.mrf.mxu3  ;;  %v7466_v29 = vadd.f32 %v7465_v33, %v7464_v13  ;;  %v15437_v13 = vld [vmem:[#allocation48_spill] sm:$0xff]  ;;  %v15439_v33 = vld [vmem:[#allocation53_spill] sm:$0xff] }
 0x710   : > { %v4279_v26 = vadd.f32 %v4278_v22, %v3878_v44  ;;  %v14064_v43 = vpop.f32.mrf.mxu2  ;;  %v705_v22 = vld [vmem:[%s12372_s23 + $0x388] sm:$0xff]  ;;  %vm1700_vm13 = vcmp.eq.s32.totalorder %v15437_v13, %v12350_v20  ;;  %vm1704_vm14 = vcmp.eq.s32.totalorder %v15439_v33, %v12350_v20 }
 0x711   : > { %v7469_v51 = vrot.slane %v7468_v50, 2  ;;  %v5069_v0 = vpop.f32.mrf.mxu0 }
 0x712   : > { %v5263_v2 = vmul.f32 %v5069_v0, %v4279_v26  ;;  %v5937_v56 = vpop.f32.mrf.mxu1  ;;  %v15435_v26 = vld [vmem:[#allocation43_spill] sm:$0xff] }
 0x713   : > { %v6950_v3 = vmul.f32 %v14003_v38, %v5937_v56  ;;  %v7470_v6 = vadd.f32 %v7469_v51, %v7468_v50  ;;  %v7442_v38 = vadd.f32 %v7441_v31, %v7440_v18  ;;  %vm1696_vm12 = vcmp.eq.s32.totalorder %v15435_v26, %v12350_v20  ;;  %v822_v51 = vld [vmem:[%s12537_s17 + $0x330] sm:$0xff] }
 0x714   : > { %9219 = vmatmul.msk.f32.gmra.mxu3 %vm1688_vm1, %v14910_v60  ;;  %9347 = vmatmul.msk.f32.gmra.mxu0 %vm4378_vm2, %v703_v57  ;;  %v15436_v0 = vld [vmem:[#allocation327_spill] sm:$0xff] }
 0x715   : > { %v7473_v9 = vrot.slane %v6950_v3, 4  ;;  %9459 = vmatmul.msk.f32.gmra.mxu1 %vm5298_vm5, %v5263_v2  ;;  %v7471_v19 = vrot.slane %v7470_v6, 1  ;;  %9592 = vmatmul.msk.f32.gmra.mxu2 %vm6085_vm15, %v820_v25  ;;  %v7965_v35 = vsel %vm7895_vm3, %v7442_v38, %v7436_v42  ;;  %v706_v2 = vld [vmem:[%s12372_s23 + $0x390] sm:$0xff]  ;;  %v824_v25 = vld [vmem:[%s12537_s17 + $0x340] sm:$0xff] }
 0x716   : > { %v7966_v61 = vsel %vm7897_vm4, %v7448_v53, %v7965_v35  ;;  %v15440_v53 = vld [vmem:[#allocation331_spill] sm:$0xff] }
 0x717   : > { %v7474_v37 = vadd.f32 %v7473_v9, %v6950_v3  ;;  %v4281_v16 = vpop.f32.mrf.mxu3  ;;  %v7472_v21 = vadd.f32 %v7471_v19, %v7470_v6  ;;  %v7967_v52 = vsel %vm7899_vm6, %v7454_v14, %v7966_v61  ;;  %v15438_v6 = vld [vmem:[#allocation329_spill] sm:$0xff]  ;;  %v707_v9 = vld [vmem:[%s12372_s23 + $0x398] sm:$0xff] }
 0x718   : > { %v4282_v28 = vadd.f32 %v4281_v16, %v15432_v47  ;;  %v14078_v58 = vpop.f32.mrf.mxu2  ;;  %v7968_v46 = vsel %vm7901_vm8, %v7460_v4, %v7967_v52  ;;  %v709_v52 = vld [vmem:[%s12372_s23 + $0x3a8] sm:$0xff] }
 0x719   : > { %v7475_v10 = vrot.slane %v7474_v37, 2  ;;  %v5072_v63 = vpop.f32.mrf.mxu0  ;;  %v7969_v41 = vsel %vm7903_vm9, %v7466_v29, %v7968_v46  ;;  %v15442_v29 = vld [vmem:[#allocation333_spill] sm:$0xff] }
 0x71a   : > { %v5264_v15 = vmul.f32 %v5072_v63, %v4282_v28  ;;  %v14073_v1 = vpop.f32.mrf.mxu1  ;;  %v7970_v44 = vsel %vm7905_vm10, %v7472_v21, %v7969_v41  ;;  %v708_v28 = vld [vmem:[%s12372_s23 + $0x3a0] sm:$0xff] }
 0x71b   : > { %v7476_v49 = vadd.f32 %v7475_v10, %v7474_v37  ;;  %v15441_v10 = vld [vmem:[#allocation58_spill] sm:$0xff]  ;;  %v6951_v59 = vmul.f32 %v14016_v36, %v14073_v1 }
 0x71c   : > { %9220 = vmatmul.msk.f32.gmra.mxu3 %vm1692_vm7, %v14910_v60  ;;  %9348 = vmatmul.msk.f32.gmra.mxu0 %vm4378_vm2, %v704_v32  ;;  %vm1708_vm0 = vcmp.eq.s32.totalorder %v15441_v10, %v12350_v20 }
 0x71d   : > { %v7477_v27 = vrot.slane %v7476_v49, 1  ;;  %9460 = vmatmul.msk.f32.gmra.mxu1 %vm5298_vm5, %v5264_v15  ;;  %9593 = vmatmul.msk.f32.gmra.mxu2 %vm6085_vm15, %v821_v54  ;;  %v825_v15 = vld [vmem:[%s12537_s17 + $0x348] sm:$0xff]  ;;  %v7479_v36 = vrot.slane %v6951_v59, 4 }
 0x71f   : > { %v7478_v12 = vadd.f32 %v7477_v27, %v7476_v49  ;;  %v4284_v55 = vpop.f32.mrf.mxu3 }
 0x720   : > { %v4285_v18 = vadd.f32 %v4284_v55, %v15434_v40  ;;  %v6742_v8 = vpop.f32.mrf.mxu2 }
 0x721   : > { %v7971_v17 = vsel %vm7907_vm11, %v7478_v12, %v7970_v44  ;;  %v5075_v50 = vpop.f32.mrf.mxu0 }
 0x722   : > { %8039 = vst [vmem:[%s12988_s16 + $0x48] sm:$0xff] %v7971_v17  ;;  %v5265_v11 = vmul.f32 %v5075_v50, %v4285_v18  ;;  %v5943_v62 = vpop.f32.mrf.mxu1  ;;  %v826_v18 = vld [vmem:[%s12537_s17 + $0x350] sm:$0xff]  ;;  %v15444_v50 = vld [vmem:[#allocation336_spill] sm:$0xff] }
 0x723   : > { %v6952_v32 = vmul.f32 %v14036_v48, %v5943_v62 }
 0x724   : > { %9221 = vmatmul.msk.f32.gmra.mxu3 %vm1696_vm12, %v14910_v60  ;;  %9349 = vmatmul.msk.f32.gmra.mxu0 %vm4378_vm2, %v705_v22 }
 0x725   : > { %9461 = vmatmul.msk.f32.gmra.mxu1 %vm5298_vm5, %v5265_v11  ;;  %9594 = vmatmul.msk.f32.gmra.mxu2 %vm6085_vm15, %v822_v51  ;;  %v7485_v41 = vrot.slane %v6952_v32, 4  ;;  %v7480_v11 = vadd.f32 %v7479_v36, %v6951_v59 }
 0x727   : > { %v4287_v39 = vpop.f32.mrf.mxu3 }
 0x728   : > { %v4288_v57 = vadd.f32 %v4287_v39, %v15436_v0  ;;  %v14105_v3 = vpop.f32.mrf.mxu2 }
 0x729   : > { %v5078_v7 = vpop.f32.mrf.mxu0 }
 0x72a   : > { %v5266_v56 = vmul.f32 %v5078_v7, %v4288_v57  ;;  %v5946_v31 = vpop.f32.mrf.mxu1 }
 0x72b   : > { %v6953_v35 = vmul.f32 %v14050_v5, %v5946_v31  ;;  %v15443_v5 = vld [vmem:[#allocation63_spill] sm:$0xff] }
 0x72c   : > { %9222 = vmatmul.msk.f32.gmra.mxu3 %vm1700_vm13, %v14910_v60  ;;  %9350 = vmatmul.msk.f32.gmra.mxu0 %vm4378_vm2, %v706_v2  ;;  %vm1712_vm1 = vcmp.eq.s32.totalorder %v15443_v5, %v12350_v20  ;;  %v828_v5 = vld [vmem:[%s12537_s17 + $0x360] sm:$0xff] }
 0x72d   : > { %9462 = vmatmul.msk.f32.gmra.mxu1 %vm5298_vm5, %v5266_v56  ;;  %9595 = vmatmul.msk.f32.gmra.mxu2 %vm6085_vm15, %v823_v23  ;;  %v7491_v54 = vrot.slane %v6953_v35, 4  ;;  %v15445_v56 = vld [vmem:[#allocation68_spill] sm:$0xff] }
 0x72e   : > { %vm1716_vm7 = vcmp.eq.s32.totalorder %v15445_v56, %v12350_v20 }
 0x72f   : > { %v4290_v24 = vpop.f32.mrf.mxu3  ;;  %v7492_v17 = vadd.f32 %v7491_v54, %v6953_v35 }
 0x730   : > { %v4291_v45 = vadd.f32 %v4290_v24, %v15438_v6  ;;  %v14116_v37 = vpop.f32.mrf.mxu2  ;;  %v7481_v24 = vrot.slane %v7480_v11, 2 }
 0x731   : > { %v5081_v30 = vpop.f32.mrf.mxu0  ;;  %v7493_v13 = vrot.slane %v7492_v17, 2 }
 0x732   : > { %v5267_v34 = vmul.f32 %v5081_v30, %v4291_v45  ;;  %v5949_v38 = vpop.f32.mrf.mxu1 }
 0x733   : > { %v6954_v61 = vmul.f32 %v14064_v43, %v5949_v38  ;;  %v827_v38 = vld [vmem:[%s12537_s17 + $0x358] sm:$0xff]  ;;  %v7494_v33 = vadd.f32 %v7493_v13, %v7492_v17  ;;  %v712_v17 = vld [vmem:[%s12372_s23 + $0x3c0] sm:$0xff] }
 0x734   : > { %9223 = vmatmul.msk.f32.gmra.mxu3 %vm1704_vm14, %v14910_v60  ;;  %9351 = vmatmul.msk.f32.gmra.mxu0 %vm4378_vm2, %v707_v9 }
 0x735   : > { %9463 = vmatmul.msk.f32.gmra.mxu1 %vm5298_vm5, %v5267_v34  ;;  %9596 = vmatmul.msk.f32.gmra.mxu2 %vm6085_vm15, %v824_v25  ;;  %v7497_v43 = vrot.slane %v6954_v61, 4  ;;  %v7495_v59 = vrot.slane %v7494_v33, 1 }
 0x737   : > { %v4293_v16 = vpop.f32.mrf.mxu3  ;;  %v7498_v62 = vadd.f32 %v7497_v43, %v6954_v61  ;;  %v7496_v54 = vadd.f32 %v7495_v59, %v7494_v33  ;;  %v15448_v43 = vld [vmem:[#allocation342_spill] sm:$0xff]  ;;  %v831_v59 = vld [vmem:[%s12537_s17 + $0x378] sm:$0xff] }
 0x738   : > { %v4294_v19 = vadd.f32 %v4293_v16, %v15440_v53  ;;  %v14127_v63 = vpop.f32.mrf.mxu2  ;;  %v15446_v16 = vld [vmem:[#allocation339_spill] sm:$0xff]  ;;  %v7482_v53 = vadd.f32 %v7481_v24, %v7480_v11 }
 0x739   : > { %v5084_v47 = vpop.f32.mrf.mxu0  ;;  %v7499_v23 = vrot.slane %v7498_v62, 2 }
 0x73a   : > { %v5268_v42 = vmul.f32 %v5084_v47, %v4294_v19  ;;  %v5952_v14 = vpop.f32.mrf.mxu1 }
 0x73b   : > { %v6955_v27 = vmul.f32 %v14078_v58, %v5952_v14  ;;  %v7486_v58 = vadd.f32 %v7485_v41, %v6952_v32  ;;  %v7500_v19 = vadd.f32 %v7499_v23, %v7498_v62 }
 0x73c   : > { %9224 = vmatmul.msk.f32.gmra.mxu3 %vm1708_vm0, %v14910_v60  ;;  %9352 = vmatmul.msk.f32.gmra.mxu0 %vm4378_vm2, %v708_v28 }
 0x73d   : > { %9464 = vmatmul.msk.f32.gmra.mxu1 %vm5298_vm5, %v5268_v42  ;;  %9597 = vmatmul.msk.f32.gmra.mxu2 %vm6085_vm15, %v825_v15  ;;  %v7503_v1 = vrot.slane %v6955_v27, 4  ;;  %v7487_v57 = vrot.slane %v7486_v58, 2  ;;  %v711_v42 = vld [vmem:[%s12372_s23 + $0x3b8] sm:$0xff] }
 0x73f   : > { %v4296_v4 = vpop.f32.mrf.mxu3  ;;  %v7504_v39 = vadd.f32 %v7503_v1, %v6955_v27  ;;  %v7488_v30 = vadd.f32 %v7487_v57, %v7486_v58 }
 0x740   : > { %v4297_v49 = vadd.f32 %v4296_v4, %v15442_v29  ;;  %v14144_v55 = vpop.f32.mrf.mxu2  ;;  %v15447_v29 = vld [vmem:[#allocation73_spill] sm:$0xff] }
 0x741   : > { %v5087_v21 = vpop.f32.mrf.mxu0  ;;  %v7505_v45 = vrot.slane %v7504_v39, 2  ;;  %v7489_v4 = vrot.slane %v7488_v30, 1  ;;  %vm1720_vm12 = vcmp.eq.s32.totalorder %v15447_v29, %v12350_v20 }
 0x742   : > { %v5269_v46 = vmul.f32 %v5087_v21, %v4297_v49  ;;  %v5955_v48 = vpop.f32.mrf.mxu1  ;;  %v7483_v21 = vrot.slane %v7482_v53, 1 }
 0x743   : > { %v6956_v12 = vmul.f32 %v6742_v8, %v5955_v48  ;;  %v710_v8 = vld [vmem:[%s12372_s23 + $0x3b0] sm:$0xff]  ;;  %v7506_v14 = vadd.f32 %v7505_v45, %v7504_v39  ;;  %v15449_v39 = vld [vmem:[#allocation78_spill] sm:$0xff] }
 0x744   : > { %9225 = vmatmul.msk.f32.gmra.mxu3 %vm1712_vm1, %v14910_v60  ;;  %9353 = vmatmul.msk.f32.gmra.mxu0 %vm4378_vm2, %v709_v52  ;;  %v7501_v52 = vrot.slane %v7500_v19, 1  ;;  %v7484_v58 = vadd.f32 %v7483_v21, %v7482_v53  ;;  %vm1724_vm13 = vcmp.eq.s32.totalorder %v15449_v39, %v12350_v20 }
 0x745   : > { %9465 = vmatmul.msk.f32.gmra.mxu1 %vm5298_vm5, %v5269_v46  ;;  %v7509_v44 = vrot.slane %v6956_v12, 4  ;;  %9598 = vmatmul.msk.f32.gmra.mxu2 %vm6085_vm15, %v826_v18  ;;  %v7507_v46 = vrot.slane %v7506_v14, 1 }
 0x747   : > { %v4299_v40 = vpop.f32.mrf.mxu3  ;;  %v7510_v7 = vadd.f32 %v7509_v44, %v6956_v12  ;;  %v7502_v44 = vadd.f32 %v7501_v52, %v7500_v19 }
 0x748   : > { %v4300_v22 = vadd.f32 %v4299_v40, %v15444_v50  ;;  %v14156_v31 = vpop.f32.mrf.mxu2  ;;  %v7508_v50 = vadd.f32 %v7507_v46, %v7506_v14 }
 0x749   : > { %v5090_v26 = vpop.f32.mrf.mxu0  ;;  %v7511_v9 = vrot.slane %v7510_v7, 2 }
 0x74a   : > { %v5270_v51 = vmul.f32 %v5090_v26, %v4300_v22  ;;  %v5958_v0 = vpop.f32.mrf.mxu1 }
 0x74b   : > { %v6957_v2 = vmul.f32 %v14105_v3, %v5958_v0  ;;  %v7512_v15 = vadd.f32 %v7511_v9, %v7510_v7 }
 0x74c   : > { %9226 = vmatmul.msk.f32.gmra.mxu3 %vm1716_vm7, %v14910_v60  ;;  %9354 = vmatmul.msk.f32.gmra.mxu0 %vm4378_vm2, %v710_v8 }
 0x74d   : > { %v7515_v6 = vrot.slane %v6957_v2, 4  ;;  %9466 = vmatmul.msk.f32.gmra.mxu1 %vm5298_vm5, %v5270_v51  ;;  %9599 = vmatmul.msk.f32.gmra.mxu2 %vm6085_vm15, %v827_v38  ;;  %v7513_v48 = vrot.slane %v7512_v15, 1  ;;  %v713_v38 = vld [vmem:[%s12372_s23 + $0x3c8] sm:$0xff] }
 0x74f   : > { %v7516_v3 = vadd.f32 %v7515_v6, %v6957_v2  ;;  %v4302_v34 = vpop.f32.mrf.mxu3  ;;  %v7514_v26 = vadd.f32 %v7513_v48, %v7512_v15  ;;  %v829_v6 = vld [vmem:[%s12537_s17 + $0x368] sm:$0xff]  ;;  %v15453_v15 = vld [vmem:[#allocation88_spill] sm:$0xff] }
 0x750   : > { %v4303_v25 = vadd.f32 %v4302_v34, %v15446_v16  ;;  %v14168_v49 = vpop.f32.mrf.mxu2  ;;  %vm1732_vm0 = vcmp.eq.s32.totalorder %v15453_v15, %v12350_v20  ;;  %v15455_v48 = vld [vmem:[#allocation94_spill] sm:$0xff] }
 0x751   : > { %v7517_v47 = vrot.slane %v7516_v3, 2  ;;  %v5093_v28 = vpop.f32.mrf.mxu0  ;;  %vm1736_vm1 = vcmp.eq.s32.totalorder %v15455_v48, %v12350_v20  ;;  %v15462_v48 = vld [vmem:[#allocation260_spill] sm:$0xff] }
 0x752   : > { %v5271_v10 = vmul.f32 %v5093_v28, %v4303_v25  ;;  %v5961_v32 = vpop.f32.mrf.mxu1  ;;  %v15451_v25 = vld [vmem:[#allocation83_spill] sm:$0xff]  ;;  %v15452_v28 = vld [vmem:[#allocation348_spill] sm:$0xff] }
 0x753   : > { %v6958_v35 = vmul.f32 %v14116_v37, %v5961_v32  ;;  %v7518_v61 = vadd.f32 %v7517_v47, %v7516_v3  ;;  %v7490_v37 = vadd.f32 %v7489_v4, %v7488_v30  ;;  %v15450_v30 = vld [vmem:[#allocation345_spill] sm:$0xff]  ;;  %vm1728_vm14 = vcmp.eq.s32.totalorder %v15451_v25, %v12350_v20  ;;  %v830_v47 = vld [vmem:[%s12537_s17 + $0x370] sm:$0xff] }
 0x754   : > { %9227 = vmatmul.msk.f32.gmra.mxu3 %vm1720_vm12, %v14910_v60  ;;  %9355 = vmatmul.msk.f32.gmra.mxu0 %vm4378_vm2, %v711_v42 }
 0x755   : > { %v7521_v27 = vrot.slane %v6958_v35, 4  ;;  %9467 = vmatmul.msk.f32.gmra.mxu1 %vm5298_vm5, %v5271_v10  ;;  %v7519_v36 = vrot.slane %v7518_v61, 1  ;;  %9600 = vmatmul.msk.f32.gmra.mxu2 %vm6085_vm15, %v828_v5  ;;  %v7972_v62 = vsel %vm7895_vm3, %v7490_v37, %v7484_v58  ;;  %v714_v10 = vld [vmem:[%s12372_s23 + $0x3d0] sm:$0xff]  ;;  %v832_v5 = vld [vmem:[%s12537_s17 + $0x380] sm:$0xff] }
 0x756   : > { %v7973_v0 = vsel %vm7897_vm4, %v7496_v54, %v7972_v62  ;;  %v15456_v54 = vld [vmem:[#allocation353_spill] sm:$0xff] }
 0x757   : > { %v7522_v41 = vadd.f32 %v7521_v27, %v6958_v35  ;;  %v4305_v12 = vpop.f32.mrf.mxu3  ;;  %v7520_v57 = vadd.f32 %v7519_v36, %v7518_v61  ;;  %v7974_v7 = vsel %vm7899_vm6, %v7502_v44, %v7973_v0  ;;  %v15454_v61 = vld [vmem:[#allocation351_spill] sm:$0xff]  ;;  %v715_v27 = vld [vmem:[%s12372_s23 + $0x3d8] sm:$0xff] }
 0x758   : > { %v4306_v1 = vadd.f32 %v4305_v12, %v15448_v43  ;;  %v14182_v51 = vpop.f32.mrf.mxu2  ;;  %v7975_v56 = vsel %vm7901_vm8, %v7508_v50, %v7974_v7  ;;  %v717_v7 = vld [vmem:[%s12372_s23 + $0x3e8] sm:$0xff] }
 0x759   : > { %v7523_v40 = vrot.slane %v7522_v41, 2  ;;  %v5096_v18 = vpop.f32.mrf.mxu0  ;;  %v7976_v13 = vsel %vm7903_vm9, %v7514_v26, %v7975_v56  ;;  %v15458_v26 = vld [vmem:[#allocation355_spill] sm:$0xff] }
 0x75a   : > { %v5272_v22 = vmul.f32 %v5096_v18, %v4306_v1  ;;  %v14177_v11 = vpop.f32.mrf.mxu1  ;;  %v7977_v45 = vsel %vm7905_vm10, %v7520_v57, %v7976_v13  ;;  %v716_v1 = vld [vmem:[%s12372_s23 + $0x3e0] sm:$0xff] }
 0x75b   : > { %v7524_v8 = vadd.f32 %v7523_v40, %v7522_v41  ;;  %v15457_v40 = vld [vmem:[#allocation100_spill] sm:$0xff]  ;;  %v6959_v39 = vmul.f32 %v14127_v63, %v14177_v11 }
 0x75c   : > { %9228 = vmatmul.msk.f32.gmra.mxu3 %vm1724_vm13, %v14910_v60  ;;  %9356 = vmatmul.msk.f32.gmra.mxu0 %vm4378_vm2, %v712_v17  ;;  %vm1740_vm7 = vcmp.eq.s32.totalorder %v15457_v40, %v12350_v20 }
 0x75d   : > { %v7525_v2 = vrot.slane %v7524_v8, 1  ;;  %9468 = vmatmul.msk.f32.gmra.mxu1 %vm5298_vm5, %v5272_v22  ;;  %9601 = vmatmul.msk.f32.gmra.mxu2 %vm6085_vm15, %v829_v6  ;;  %v833_v22 = vld [vmem:[%s12537_s17 + $0x388] sm:$0xff]  ;;  %v7527_v63 = vrot.slane %v6959_v39, 4 }
 0x75f   : > { %v7526_v24 = vadd.f32 %v7525_v2, %v7524_v8  ;;  %v4308_v23 = vpop.f32.mrf.mxu3 }
 0x760   : > { %v4309_v9 = vadd.f32 %v4308_v23, %v15450_v30  ;;  %v6766_v53 = vpop.f32.mrf.mxu2 }
 0x761   : > { %v7978_v3 = vsel %vm7907_vm11, %v7526_v24, %v7977_v45  ;;  %v5099_v34 = vpop.f32.mrf.mxu0 }
 0x762   : > { %8040 = vst [vmem:[%s12988_s16 + $0x50] sm:$0xff] %v7978_v3  ;;  %v5273_v33 = vmul.f32 %v5099_v34, %v4309_v9  ;;  %v5967_v16 = vpop.f32.mrf.mxu1  ;;  %v834_v9 = vld [vmem:[%s12537_s17 + $0x390] sm:$0xff] }
 0x763   : > { %v6960_v17 = vmul.f32 %v14144_v55, %v5967_v16  ;;  %v15460_v34 = vld [vmem:[#allocation359_spill] sm:$0xff] }
 0x764   : > { %9229 = vmatmul.msk.f32.gmra.mxu3 %vm1728_vm14, %v14910_v60  ;;  %9357 = vmatmul.msk.f32.gmra.mxu0 %vm4378_vm2, %v713_v38 }
 0x765   : > { %9469 = vmatmul.msk.f32.gmra.mxu1 %vm5298_vm5, %v5273_v33  ;;  %9602 = vmatmul.msk.f32.gmra.mxu2 %vm6085_vm15, %v830_v47  ;;  %v7533_v13 = vrot.slane %v6960_v17, 4  ;;  %v7528_v33 = vadd.f32 %v7527_v63, %v6959_v39 }
 0x767   : > { %v4311_v19 = vpop.f32.mrf.mxu3 }
 0x768   : > { %v4312_v42 = vadd.f32 %v4311_v19, %v15452_v28  ;;  %v14209_v35 = vpop.f32.mrf.mxu2 }
 0x769   : > { %v5102_v14 = vpop.f32.mrf.mxu0 }
 0x76a   : > { %v5274_v32 = vmul.f32 %v5102_v14, %v4312_v42  ;;  %v5970_v4 = vpop.f32.mrf.mxu1 }
 0x76b   : > { %v6961_v62 = vmul.f32 %v14156_v31, %v5970_v4  ;;  %v15459_v31 = vld [vmem:[#allocation106_spill] sm:$0xff] }
 0x76c   : > { %9230 = vmatmul.msk.f32.gmra.mxu3 %vm1732_vm0, %v14910_v60  ;;  %9358 = vmatmul.msk.f32.gmra.mxu0 %vm4378_vm2, %v714_v10  ;;  %vm1744_vm12 = vcmp.eq.s32.totalorder %v15459_v31, %v12350_v20 }
 0x76d   : > { %9470 = vmatmul.msk.f32.gmra.mxu1 %vm5298_vm5, %v5274_v32  ;;  %9603 = vmatmul.msk.f32.gmra.mxu2 %vm6085_vm15, %v831_v59  ;;  %v7539_v6 = vrot.slane %v6961_v62, 4  ;;  %v15461_v32 = vld [vmem:[#allocation110_spill] sm:$0xff] }
 0x76e   : > { %vm1748_vm13 = vcmp.eq.s32.totalorder %v15461_v32, %v12350_v20 }
 0x76f   : > { %v4314_v29 = vpop.f32.mrf.mxu3  ;;  %v7540_v3 = vadd.f32 %v7539_v6, %v6961_v62 }
 0x770   : > { %v4315_v21 = vadd.f32 %v4314_v29, %v15454_v61  ;;  %v14220_v41 = vpop.f32.mrf.mxu2  ;;  %v7529_v29 = vrot.slane %v7528_v33, 2 }
 0x771   : > { %v5105_v52 = vpop.f32.mrf.mxu0  ;;  %v7541_v15 = vrot.slane %v7540_v3, 2 }
 0x772   : > { %v5275_v46 = vmul.f32 %v5105_v52, %v4315_v21  ;;  %v5973_v37 = vpop.f32.mrf.mxu1 }
 0x773   : > { %v6962_v0 = vmul.f32 %v14168_v49, %v5973_v37  ;;  %v835_v37 = vld [vmem:[%s12537_s17 + $0x398] sm:$0xff]  ;;  %v7542_v20 = vadd.f32 %v7541_v15, %v7540_v3  ;;  %v15464_v15 = vld [vmem:[#allocation126_spill] sm:$0xff] }
 0x774   : > { %9231 = vmatmul.msk.f32.gmra.mxu3 %vm1736_vm1, %v14910_v60  ;;  %9359 = vmatmul.msk.f32.gmra.mxu0 %vm4378_vm2, %v715_v27 }
 0x775   : > { %9471 = vmatmul.msk.f32.gmra.mxu1 %vm5298_vm5, %v5275_v46  ;;  %9604 = vmatmul.msk.f32.gmra.mxu2 %vm6085_vm15, %v832_v5  ;;  %v7545_v49 = vrot.slane %v6962_v0, 4  ;;  %v7543_v62 = vrot.slane %v7542_v20, 1 }
 0x777   : > { %v4317_v12 = vpop.f32.mrf.mxu3  ;;  %v7546_v16 = vadd.f32 %v7545_v49, %v6962_v0 }
 0x778   : > { %v4318_v36 = vadd.f32 %v4317_v12, %v15456_v54  ;;  %v14231_v18 = vpop.f32.mrf.mxu2 }
 0x779   : > { %v5108_v43 = vpop.f32.mrf.mxu0  ;;  %v7547_v59 = vrot.slane %v7546_v16, 2 }
 0x77a   : > { %v5276_v58 = vmul.f32 %v5108_v43, %v4318_v36  ;;  %v5976_v44 = vpop.f32.mrf.mxu1  ;;  %v719_v43 = vld [vmem:[%s12372_s23 + $0x3f8] sm:$0xff] }
 0x77b   : > { %v6963_v2 = vmul.f32 %v14182_v51, %v5976_v44  ;;  %v7534_v51 = vadd.f32 %v7533_v13, %v6960_v17  ;;  %v7548_v5 = vadd.f32 %v7547_v59, %v7546_v16  ;;  %v836_v13 = vld [vmem:[%s12537_s17 + $0x3a0] sm:$0xff] }
 0x77c   : > { %9232 = vmatmul.msk.f32.gmra.mxu3 %vm1740_vm7, %v14910_v60  ;;  %9360 = vmatmul.msk.f32.gmra.mxu0 %vm4378_vm2, %v716_v1 }
 0x77d   : > { %9472 = vmatmul.msk.f32.gmra.mxu1 %vm5298_vm5, %v5276_v58  ;;  %9605 = vmatmul.msk.f32.gmra.mxu2 %vm6085_vm15, %v833_v22  ;;  %v7551_v11 = vrot.slane %v6963_v2, 4  ;;  %v7535_v42 = vrot.slane %v7534_v51, 2  ;;  %v7549_v39 = vrot.slane %v7548_v5, 1 }
 0x77f   : > { %v4320_v50 = vpop.f32.mrf.mxu3  ;;  %v7552_v19 = vadd.f32 %v7551_v11, %v6963_v2  ;;  %v7536_v52 = vadd.f32 %v7535_v42, %v7534_v51  ;;  %v7550_v49 = vadd.f32 %v7549_v39, %v7548_v5 }
 0x780   : > { %v4321_v8 = vadd.f32 %v4320_v50, %v15458_v26  ;;  %v14248_v23 = vpop.f32.mrf.mxu2 }
 0x781   : > { %v5111_v57 = vpop.f32.mrf.mxu0  ;;  %v7553_v21 = vrot.slane %v7552_v19, 2  ;;  %v7537_v40 = vrot.slane %v7536_v52, 1 }
 0x782   : > { %v5277_v56 = vmul.f32 %v5111_v57, %v4321_v8  ;;  %v5979_v55 = vpop.f32.mrf.mxu1 }
 0x783   : > { %v6964_v24 = vmul.f32 %v6766_v53, %v5979_v55  ;;  %v718_v53 = vld [vmem:[%s12372_s23 + $0x3f0] sm:$0xff]  ;;  %v7554_v1 = vadd.f32 %v7553_v21, %v7552_v19  ;;  %s9623_s23 = sshll.u32 %s8058_s21, 3 }
 0x784   : > { %9233 = vmatmul.msk.f32.gmra.mxu3 %vm1744_vm12, %v14910_v60  ;;  %9361 = vmatmul.msk.f32.gmra.mxu0 %vm4378_vm2, %v717_v7  ;;  %v7538_v7 = vadd.f32 %v7537_v40, %v7536_v52  ;;  %s8060_s10 = scalar_lea.hbm %s14451_s7, %s9623_s23 }
 0x785   : > { %9473 = vmatmul.msk.f32.gmra.mxu1 %vm5298_vm5, %v5277_v56  ;;  %v7557_v45 = vrot.slane %v6964_v24, 4  ;;  %9606 = vmatmul.msk.f32.gmra.mxu2 %vm6085_vm15, %v834_v9  ;;  %v7555_v57 = vrot.slane %v7554_v1, 1 }
 0x787   : > { %v4323_v30 = vpop.f32.mrf.mxu3  ;;  %v7558_v14 = vadd.f32 %v7557_v45, %v6964_v24  ;;  %v7544_v24 = vadd.f32 %v7543_v62, %v7542_v20  ;;  %v7556_v45 = vadd.f32 %v7555_v57, %v7554_v1  ;;  %v840_v62 = vld [vmem:[%s12537_s17 + $0x3c0] sm:$0xff] }
 0x788   : > { %v4324_v38 = vadd.f32 %v4323_v30, %v15460_v34  ;;  %v14260_v4 = vpop.f32.mrf.mxu2 }
 0x789   : > { %v5114_v25 = vpop.f32.mrf.mxu0  ;;  %v7559_v27 = vrot.slane %v7558_v14, 2 }
 0x78a   : > { %v5278_v47 = vmul.f32 %v5114_v25, %v4324_v38  ;;  %v5982_v28 = vpop.f32.mrf.mxu1 }
 0x78b   : > { %v6965_v10 = vmul.f32 %v14209_v35, %v5982_v28  ;;  %v7560_v17 = vadd.f32 %v7559_v27, %v7558_v14 }
 0x78c   : > { %9234 = vmatmul.msk.f32.gmra.mxu3 %vm1748_vm13, %v14910_v60  ;;  %9362 = vmatmul.msk.f32.gmra.mxu0 %vm4378_vm2, %v718_v53  ;;  %v7530_v60 = vadd.f32 %v7529_v29, %v7528_v33 }
 0x78d   : > { %v7563_v61 = vrot.slane %v6965_v10, 4  ;;  %9474 = vmatmul.msk.f32.gmra.mxu1 %vm5298_vm5, %v5278_v47  ;;  %9607 = vmatmul.msk.f32.gmra.mxu2 %vm6085_vm15, %v835_v37  ;;  %v7561_v2 = vrot.slane %v7560_v17, 1  ;;  %v15465_v37 = vld [vmem:[#allocation10_spill] sm:$0xff] }
 0x78e   : > { %v7531_v8 = vrot.slane %v7530_v60, 1 }
 0x78f   : > { %v7564_v35 = vadd.f32 %v7563_v61, %v6965_v10  ;;  %v4326_v46 = vpop.f32.mrf.mxu3  ;;  %v7562_v34 = vadd.f32 %v7561_v2, %v7560_v17  ;;  %v837_v10 = vld [vmem:[%s12537_s17 + $0x3a8] sm:$0xff] }
 0x790   : > { %v4327_v12 = vadd.f32 %v4326_v46, %v15462_v48  ;;  %v14270_v22 = vpop.f32.mrf.mxu2  ;;  %v7532_v63 = vadd.f32 %v7531_v8, %v7530_v60  ;;  %v838_v46 = vld [vmem:[%s12537_s17 + $0x3b0] sm:$0xff] }
 0x791   : > { %v7565_v54 = vrot.slane %v7564_v35, 2  ;;  %v5117_v36 = vpop.f32.mrf.mxu0 }
 0x792   : > { %v5279_v58 = vmul.f32 %v5117_v36, %v4327_v12  ;;  %v5985_v44 = vpop.f32.mrf.mxu1  ;;  %v7979_v3 = vsel %vm7895_vm3, %v7538_v7, %v7532_v63  ;;  %v839_v36 = vld [vmem:[%s12537_s17 + $0x3b8] sm:$0xff] }
 0x793   : > { %v6966_v50 = vmul.f32 %v14220_v41, %v5985_v44  ;;  %v7566_v26 = vadd.f32 %v7565_v54, %v7564_v35  ;;  %v15463_v41 = vld [vmem:[#allocation364_spill] sm:$0xff]  ;;  %v7980_v16 = vsel %vm7897_vm4, %v7544_v24, %v7979_v3  ;;  %v15468_v24 = vld [vmem:[#allocation371_spill] sm:$0xff] }
 0x794   : > { %9363 = vmatmul.msk.f32.gmra.mxu0 %vm4378_vm2, %v719_v43  ;;  %v7981_v53 = vsel %vm7899_vm6, %v7550_v49, %v7980_v16  ;;  %v15466_v43 = vld [vmem:[#allocation136_spill] sm:$0xff] }
 0x795   : > { %v7569_v0 = vrot.slane %v6966_v50, 4  ;;  %9475 = vmatmul.msk.f32.gmra.mxu1 %vm5298_vm5, %v5279_v58  ;;  %v7567_v31 = vrot.slane %v7566_v26, 1  ;;  %9608 = vmatmul.msk.f32.gmra.mxu2 %vm6085_vm15, %v836_v13  ;;  %v7982_v47 = vsel %vm7901_vm8, %v7556_v45, %v7981_v53  ;;  %v15469_v53 = vld [vmem:[#allocation151_spill] sm:$0xff] }
 0x796   : > { %v7983_v28 = vsel %vm7903_vm9, %v7562_v34, %v7982_v47 }
 0x797   : > { %v7570_v56 = vadd.f32 %v7569_v0, %v6966_v50  ;;  %v4329_v55 = vpop.f32.mrf.mxu3  ;;  %v7568_v25 = vadd.f32 %v7567_v31, %v7566_v26  ;;  %v15467_v26 = vld [vmem:[#allocation369_spill] sm:$0xff] }
 0x798   : > { %v4330_v6 = vadd.f32 %v4329_v55, %v15463_v41  ;;  %v6787_v33 = vpop.f32.mrf.mxu2  ;;  %v841_v55 = vld [vmem:[%s12537_s17 + $0x3c8] sm:$0xff] }
 0x799   : > { %v7571_v11 = vrot.slane %v7570_v56, 2  ;;  %v5120_v51 = vpop.f32.mrf.mxu0  ;;  %v7984_v32 = vsel %vm7905_vm10, %v7568_v25, %v7983_v28 }
 0x79a   : > { %v5280_v30 = vmul.f32 %v5120_v51, %v4330_v6  ;;  %v5988_v9 = vpop.f32.mrf.mxu1 }
 0x79b   : > { %v7572_v38 = vadd.f32 %v7571_v11, %v7570_v56  ;;  %v6967_v41 = vmul.f32 %v14231_v18, %v5988_v9  ;;  %v842_v9 = vld [vmem:[%s12537_s17 + $0x3d0] sm:$0xff] }
 0x79d   : > { %v7573_v19 = vrot.slane %v7572_v38, 1  ;;  %9476 = vmatmul.msk.f32.gmra.mxu1 %vm5298_vm5, %v5280_v30  ;;  %9609 = vmatmul.msk.f32.gmra.mxu2 %vm6085_vm15, %v837_v10  ;;  %v7575_v34 = vrot.slane %v6967_v41, 4 }
 0x79f   : > { %v7574_v42 = vadd.f32 %v7573_v19, %v7572_v38  ;;  %v4332_v14 = vpop.f32.mrf.mxu3 }
 0x7a0   : > { %v4333_v29 = vadd.f32 %v4332_v14, %v15464_v15  ;;  %v6790_v27 = vpop.f32.mrf.mxu2 }
 0x7a1   : > { %v7985_v59 = vsel %vm7907_vm11, %v7574_v42, %v7984_v32  ;;  %v5123_v61 = vpop.f32.mrf.mxu0 }
 0x7a2   : > { %8041 = vst [vmem:[%s12988_s16 + $0x58] sm:$0xff] %v7985_v59  ;;  %v5281_v21 = vmul.f32 %v5123_v61, %v4333_v29  ;;  %v5991_v52 = vpop.f32.mrf.mxu1 }
 0x7a3   : > { %v6968_v2 = vmul.f32 %v14248_v23, %v5991_v52 }
 0x7a5   : > { %9477 = vmatmul.msk.f32.gmra.mxu1 %vm5298_vm5, %v5281_v21  ;;  %9610 = vmatmul.msk.f32.gmra.mxu2 %vm6085_vm15, %v838_v46  ;;  %v7581_v45 = vrot.slane %v6968_v2, 4 }
 0x7a7   : > { %v4335_v35 = vpop.f32.mrf.mxu3  ;;  %v7582_v16 = vadd.f32 %v7581_v45, %v6968_v2 }
 0x7a8   : > { %v4336_v20 = vadd.f32 %v4335_v35, %v15465_v37  ;;  %v6793_v5 = vpop.f32.mrf.mxu2 }
 0x7a9   : > { %v5126_v48 = vpop.f32.mrf.mxu0  ;;  %v7583_v32 = vrot.slane %v7582_v16, 2 }
 0x7aa   : > { %v5282_v12 = vmul.f32 %v5126_v48, %v4336_v20  ;;  %v5994_v60 = vpop.f32.mrf.mxu1 }
 0x7ab   : > { %v6969_v13 = vmul.f32 %v14260_v4, %v5994_v60  ;;  %v7584_v46 = vadd.f32 %v7583_v32, %v7582_v16  ;;  %v845_v32 = vld [vmem:[%s12537_s17 + $0x3e8] sm:$0xff] }
 0x7ad   : > { %9478 = vmatmul.msk.f32.gmra.mxu1 %vm5298_vm5, %v5282_v12  ;;  %9611 = vmatmul.msk.f32.gmra.mxu2 %vm6085_vm15, %v839_v36  ;;  %v7587_v3 = vrot.slane %v6969_v13, 4  ;;  %v843_v12 = vld [vmem:[%s12537_s17 + $0x3d8] sm:$0xff] }
 0x7af   : > { %v4338_v54 = vpop.f32.mrf.mxu3 }
 0x7b0   : > { %v4339_v1 = vadd.f32 %v4338_v54, %v15466_v43  ;;  %v14297_v17 = vpop.f32.mrf.mxu2  ;;  %v15470_v54 = vld [vmem:[#allocation20_spill] sm:$0xff] }
 0x7b1   : > { %v5129_v58 = vpop.f32.mrf.mxu0 }
 0x7b2   : > { %v5283_v44 = vmul.f32 %v5129_v58, %v4339_v1  ;;  %v5997_v40 = vpop.f32.mrf.mxu1 }
 0x7b3   : > { %v6970_v6 = vmul.f32 %v14270_v22, %v5997_v40  ;;  %v7588_v22 = vadd.f32 %v7587_v3, %v6969_v13 }
 0x7b5   : > { %9479 = vmatmul.msk.f32.gmra.mxu1 %vm5298_vm5, %v5283_v44  ;;  %9612 = vmatmul.msk.f32.gmra.mxu2 %vm6085_vm15, %v840_v62  ;;  %v7593_v4 = vrot.slane %v6970_v6, 4  ;;  %v7589_v61 = vrot.slane %v7588_v22, 2  ;;  %v7585_v62 = vrot.slane %v7584_v46, 1 }
 0x7b7   : > { %v4341_v50 = vpop.f32.mrf.mxu3  ;;  %v7594_v47 = vadd.f32 %v7593_v4, %v6970_v6  ;;  %v7590_v60 = vadd.f32 %v7589_v61, %v7588_v22 }
 0x7b8   : > { %v4342_v8 = vadd.f32 %v4341_v50, %v15467_v26  ;;  %v14303_v7 = vpop.f32.mrf.mxu2 }
 0x7b9   : > { %v5132_v39 = vpop.f32.mrf.mxu0  ;;  %v7595_v52 = vrot.slane %v7594_v47, 2 }
 0x7ba   : > { %v5284_v0 = vmul.f32 %v5132_v39, %v4342_v8  ;;  %v6000_v57 = vpop.f32.mrf.mxu1 }
 0x7bb   : > { %v6971_v49 = vmul.f32 %v6787_v33, %v6000_v57  ;;  %v7576_v33 = vadd.f32 %v7575_v34, %v6967_v41  ;;  %v7596_v43 = vadd.f32 %v7595_v52, %v7594_v47 }
 0x7bd   : > { %9480 = vmatmul.msk.f32.gmra.mxu1 %vm5298_vm5, %v5284_v0  ;;  %9613 = vmatmul.msk.f32.gmra.mxu2 %vm6085_vm15, %v841_v55  ;;  %v7599_v38 = vrot.slane %v6971_v49, 4  ;;  %v7577_v21 = vrot.slane %v7576_v33, 2  ;;  %v7591_v0 = vrot.slane %v7590_v60, 1 }
 0x7bf   : > { %v4344_v56 = vpop.f32.mrf.mxu3  ;;  %v7600_v42 = vadd.f32 %v7599_v38, %v6971_v49  ;;  %v7592_v49 = vadd.f32 %v7591_v0, %v7590_v60  ;;  %v15475_v0 = vld [vmem:[#allocation30_spill] sm:$0xff] }
 0x7c0   : > { %v4345_v31 = vadd.f32 %v4344_v56, %v15468_v24  ;;  %v14313_v23 = vpop.f32.mrf.mxu2  ;;  %v7597_v56 = vrot.slane %v7596_v43, 1  ;;  %v7586_v24 = vadd.f32 %v7585_v62, %v7584_v46 }
 0x7c1   : > { %v5135_v63 = vpop.f32.mrf.mxu0  ;;  %v7601_v35 = vrot.slane %v7600_v42, 2 }
 0x7c2   : > { %v5285_v11 = vmul.f32 %v5135_v63, %v4345_v31  ;;  %v6003_v51 = vpop.f32.mrf.mxu1  ;;  %v844_v63 = vld [vmem:[%s12537_s17 + $0x3e0] sm:$0xff] }
 0x7c3   : > { %v6972_v30 = vmul.f32 %v6790_v27, %v6003_v51  ;;  %v7602_v44 = vadd.f32 %v7601_v35, %v7600_v42  ;;  %v15471_v51 = vld [vmem:[#allocation161_spill] sm:$0xff] }
 0x7c5   : > { %9481 = vmatmul.msk.f32.gmra.mxu1 %vm5298_vm5, %v5285_v11  ;;  %v7605_v25 = vrot.slane %v6972_v30, 4  ;;  %9614 = vmatmul.msk.f32.gmra.mxu2 %vm6085_vm15, %v842_v9  ;;  %v7603_v13 = vrot.slane %v7602_v44, 1 }
 0x7c7   : > { %v4347_v18 = vpop.f32.mrf.mxu3  ;;  %v7606_v15 = vadd.f32 %v7605_v25, %v6972_v30  ;;  %v7598_v30 = vadd.f32 %v7597_v56, %v7596_v43  ;;  %v7604_v4 = vadd.f32 %v7603_v13, %v7602_v44 }
 0x7c8   : > { %v4348_v19 = vadd.f32 %v4347_v18, %v15469_v53  ;;  %v14319_v59 = vpop.f32.mrf.mxu2 }
 0x7c9   : > { %v5138_v28 = vpop.f32.mrf.mxu0  ;;  %v7607_v37 = vrot.slane %v7606_v15, 2 }
 0x7ca   : > { %v5286_v14 = vmul.f32 %v5138_v28, %v4348_v19  ;;  %v6006_v10 = vpop.f32.mrf.mxu1 }
 0x7cb   : > { %v6973_v29 = vmul.f32 %v6793_v5, %v6006_v10  ;;  %v7578_v5 = vadd.f32 %v7577_v21, %v7576_v33  ;;  %v7608_v26 = vadd.f32 %v7607_v37, %v7606_v15 }
 0x7cd   : > { %v7611_v27 = vrot.slane %v6973_v29, 4  ;;  %9482 = vmatmul.msk.f32.gmra.mxu1 %vm5298_vm5, %v5286_v14  ;;  %9615 = vmatmul.msk.f32.gmra.mxu2 %vm6085_vm15, %v843_v12  ;;  %v7579_v2 = vrot.slane %v7578_v5, 1  ;;  %v7609_v31 = vrot.slane %v7608_v26, 1 }
 0x7cf   : > { %v7612_v20 = vadd.f32 %v7611_v27, %v6973_v29  ;;  %v4350_v48 = vpop.f32.mrf.mxu3  ;;  %v7610_v18 = vadd.f32 %v7609_v31, %v7608_v26  ;;  %v15472_v29 = vld [vmem:[#allocation377_spill] sm:$0xff] }
 0x7d0   : > { %v4351_v36 = vadd.f32 %v4350_v48, %v15470_v54  ;;  %v14326_v39 = vpop.f32.mrf.mxu2  ;;  %v15473_v48 = vld [vmem:[#allocation379_spill] sm:$0xff] }
 0x7d1   : > { %v7613_v1 = vrot.slane %v7612_v20, 2  ;;  %v5141_v58 = vpop.f32.mrf.mxu0 }
 0x7d2   : > { %v5287_v40 = vmul.f32 %v5141_v58, %v4351_v36  ;;  %v6009_v50 = vpop.f32.mrf.mxu1  ;;  %v15474_v58 = vld [vmem:[#allocation176_spill] sm:$0xff] }
 0x7d3   : > { %v6974_v8 = vmul.f32 %v14297_v17, %v6009_v50  ;;  %v7614_v57 = vadd.f32 %v7613_v1, %v7612_v20  ;;  %v7580_v17 = vadd.f32 %v7579_v2, %v7578_v5  ;;  %v846_v20 = vld [vmem:[%s12537_s17 + $0x3f0] sm:$0xff]  ;;  %v847_v1 = vld [vmem:[%s12537_s17 + $0x3f8] sm:$0xff]  ;;  %s8063_s17 = sshll.u32 %s8060_s10, 4  ;;  %s8064_s17 = int_to_ptr.hbm [resolvable:$true] %s8063_s17 }
 0x7d4   : > { %s9767_s20 = sshra.s32 %s8064_s17, 4  ;;  %s9768_s20 = int_to_ptr.hbm [resolvable:$true] %s9767_s20 }
 0x7d5   : > { %v7617_v55 = vrot.slane %v6974_v8, 4  ;;  %9483 = vmatmul.msk.f32.gmra.mxu1 %vm5298_vm5, %v5287_v40  ;;  %v7615_v11 = vrot.slane %v7614_v57, 1  ;;  %9616 = vmatmul.msk.f32.gmra.mxu2 %vm6085_vm15, %v844_v63  ;;  %v7986_v25 = vsel %vm7895_vm3, %v7586_v24, %v7580_v17  ;;  %s9769_s22 = scalar_lea.hbm %s9768_s20, 128  ;;  %p9774_p4 = scmp.lt.s32.totalorder %s9768_s20, %s14451_s7 }
 0x7d6   : > { %v7987_v53 = vsel %vm7897_vm4, %v7592_v49, %v7986_v25  ;;  %p9770_p0 = scmp.ne.s32.totalorder %s9768_s20, %s9769_s22  ;;  %p9775_p5 = scmp.lt.s32.totalorder %s9773_s27, %s9769_s22 }
 0x7d7   : > { %v7618_v41 = vadd.f32 %v7617_v55, %v6974_v8  ;;  %v4353_v6 = vpop.f32.mrf.mxu3  ;;  %v7616_v19 = vadd.f32 %v7615_v11, %v7614_v57  ;;  %v7988_v33 = vsel %vm7899_vm6, %v7598_v30, %v7987_v53 }
 0x7d8   : > { %v4354_v45 = vadd.f32 %v4353_v6, %v15471_v51  ;;  %v6811_v22 = vpop.f32.mrf.mxu2  ;;  %v7989_v28 = vsel %vm7901_vm8, %v7604_v4, %v7988_v33  ;;  %v15476_v6 = vld [vmem:[#allocation186_spill] sm:$0xff]  ;;  %p9771_p1 = pnand %p9770_p0, %p9944_p3  ;;  %p9776_p6 = por %p9775_p5, %p9774_p4 }
 0x7d9   : > { %v7619_v3 = vrot.slane %v7618_v41, 2  ;;  %v5144_v34 = vpop.f32.mrf.mxu0  ;;  %v7990_v42 = vsel %vm7903_vm9, %v7610_v18, %v7989_v28 }
 0x7da   : > { %v5288_v38 = vmul.f32 %v5144_v34, %v4354_v45  ;;  %v6012_v16 = vpop.f32.mrf.mxu1  ;;  %v7991_v15 = vsel %vm7905_vm10, %v7616_v19, %v7990_v42  ;;  %p9772_p2 = pneg %p9771_p1 }
 0x7db   : > { %v7620_v9 = vadd.f32 %v7619_v3, %v7618_v41  ;;  %v6975_v49 = vmul.f32 %v14303_v7, %v6012_v16  ;;  %v15477_v16 = vld [vmem:[#allocation385_spill] sm:$0xff] }
 0x7dc   : > { %p9777_p7 = pnand %p9776_p6, %p9772_p2 }
 0x7dd   : > { %v7621_v47 = vrot.slane %v7620_v9, 1  ;;  %9484 = vmatmul.msk.f32.gmra.mxu1 %vm5298_vm5, %v5288_v38  ;;  %9617 = vmatmul.msk.f32.gmra.mxu2 %vm6085_vm15, %v845_v32  ;;  %v7623_v25 = vrot.slane %v6975_v49, 4 }
 0x7df   : > { %v7622_v14 = vadd.f32 %v7621_v47, %v7620_v9  ;;  %v4356_v10 = vpop.f32.mrf.mxu3  ;;  %v7624_v19 = vadd.f32 %v7623_v25, %v6975_v49 }
 0x7e0   : > { %v4357_v61 = vadd.f32 %v4356_v10, %v15472_v29  ;;  %v6814_v46 = vpop.f32.mrf.mxu2 }
 0x7e1   : > { %v7992_v21 = vsel %vm7907_vm11, %v7622_v14, %v7991_v15  ;;  %v5147_v52 = vpop.f32.mrf.mxu0  ;;  %v7625_v29 = vrot.slane %v7624_v19, 2 }
 0x7e2   : > { %8042 = vst [vmem:[%s12988_s16 + $0x60] sm:$0xff] %v7992_v21  ;;  %v5289_v27 = vmul.f32 %v5147_v52, %v4357_v61  ;;  %v6015_v35 = vpop.f32.mrf.mxu1 }
 0x7e3   : > { %v6976_v24 = vmul.f32 %v14313_v23, %v6015_v35 }
 0x7e5   : > { %9485 = vmatmul.msk.f32.gmra.mxu1 %vm5298_vm5, %v5289_v27  ;;  %9618 = vmatmul.msk.f32.gmra.mxu2 %vm6085_vm15, %v846_v20  ;;  %v7629_v3 = vrot.slane %v6976_v24, 4 }
 0x7e7   : > { %v4359_v37 = vpop.f32.mrf.mxu3  ;;  %v7630_v18 = vadd.f32 %v7629_v3, %v6976_v24 }
 0x7e8   : > { %v4360_v12 = vadd.f32 %v4359_v37, %v15473_v48  ;;  %v6817_v5 = vpop.f32.mrf.mxu2 }
 0x7e9   : > { %v5150_v60 = vpop.f32.mrf.mxu0  ;;  %v7631_v14 = vrot.slane %v7630_v18, 2 }
 0x7ea   : > { %v5290_v54 = vmul.f32 %v5150_v60, %v4360_v12  ;;  %v6018_v36 = vpop.f32.mrf.mxu1  ;;  %v15478_v12 = vld [vmem:[#allocation387_spill] sm:$0xff] }
 0x7eb   : > { %v6977_v41 = vmul.f32 %v14319_v59, %v6018_v36  ;;  %v7632_v35 = vadd.f32 %v7631_v14, %v7630_v18 }
 0x7ed   : > { %9486 = vmatmul.msk.f32.gmra.mxu1 %vm5298_vm5, %v5290_v54  ;;  %9619 = vmatmul.msk.f32.gmra.mxu2 %vm6085_vm15, %v847_v1  ;;  %v7635_v4 = vrot.slane %v6977_v41, 4  ;;  %v7626_v54 = vadd.f32 %v7625_v29, %v7624_v19 }
 0x7ef   : > { %v4362_v43 = vpop.f32.mrf.mxu3  ;;  %v7636_v7 = vadd.f32 %v7635_v4, %v6977_v41 }
 0x7f0   : > { %v4363_v44 = vadd.f32 %v4362_v43, %v15474_v58  ;;  %v14352_v26 = vpop.f32.mrf.mxu2 }
 0x7f1   : > { %v5153_v40 = vpop.f32.mrf.mxu0  ;;  %v7637_v15 = vrot.slane %v7636_v7, 2 }
 0x7f2   : > { %v5291_v50 = vmul.f32 %v5153_v40, %v4363_v44  ;;  %v6021_v62 = vpop.f32.mrf.mxu1  ;;  %v7633_v40 = vrot.slane %v7632_v35, 1 }
 0x7f3   : > { %v6978_v11 = vmul.f32 %v14326_v39, %v6021_v62  ;;  %v7638_v48 = vadd.f32 %v7637_v15, %v7636_v7 }
 0x7f4   : > { %v7634_v24 = vadd.f32 %v7633_v40, %v7632_v35 }
 0x7f5   : > { %9487 = vmatmul.msk.f32.gmra.mxu1 %vm5298_vm5, %v5291_v50  ;;  %v7641_v23 = vrot.slane %v6978_v11, 4 }
 0x7f7   : > { %v4365_v8 = vpop.f32.mrf.mxu3 }
 0x7f8   : > { %v4366_v57 = vadd.f32 %v4365_v8, %v15475_v0  ;;  %v14356_v13 = vpop.f32.mrf.mxu2  ;;  %v7639_v8 = vrot.slane %v7638_v48, 1 }
 0x7f9   : > { %v5156_v2 = vpop.f32.mrf.mxu0 }
 0x7fa   : > { %v5292_v56 = vmul.f32 %v5156_v2, %v4366_v57  ;;  %v6024_v55 = vpop.f32.mrf.mxu1  ;;  %v7627_v57 = vrot.slane %v7626_v54, 1 }
 0x7fb   : > { %v6979_v45 = vmul.f32 %v6811_v22, %v6024_v55  ;;  %v7642_v22 = vadd.f32 %v7641_v23, %v6978_v11 }
 0x7fc   : > { %v7628_v11 = vadd.f32 %v7627_v57, %v7626_v54 }
 0x7fd   : > { %9488 = vmatmul.msk.f32.gmra.mxu1 %vm5298_vm5, %v5292_v56  ;;  %v7647_v59 = vrot.slane %v6979_v45, 4  ;;  %v7643_v61 = vrot.slane %v7642_v22, 2 }
 0x7ff   : > { %v4368_v31 = vpop.f32.mrf.mxu3  ;;  %v7648_v47 = vadd.f32 %v7647_v59, %v6979_v45  ;;  %v7644_v36 = vadd.f32 %v7643_v61, %v7642_v22 }
 0x800   : > { %v4369_v63 = vadd.f32 %v4368_v31, %v15476_v6  ;;  %v14364_v38 = vpop.f32.mrf.mxu2  ;;  %v7640_v6 = vadd.f32 %v7639_v8, %v7638_v48 }
 0x801   : > { %v5159_v51 = vpop.f32.mrf.mxu0  ;;  %v7649_v52 = vrot.slane %v7648_v47, 2  ;;  %v7645_v2 = vrot.slane %v7644_v36, 1 }
 0x802   : > { %v5293_v17 = vmul.f32 %v5159_v51, %v4369_v63  ;;  %v6027_v30 = vpop.f32.mrf.mxu1 }
 0x803   : > { %v6980_v34 = vmul.f32 %v6814_v46, %v6027_v30  ;;  %v7646_v51 = vadd.f32 %v7645_v2, %v7644_v36  ;;  %v7993_v30 = vsel %vm7895_vm3, %v7634_v24, %v7628_v11 }
 0x804   : > { %v7994_v4 = vsel %vm7897_vm4, %v7640_v6, %v7993_v30 }
 0x805   : > { %9489 = vmatmul.msk.f32.gmra.mxu1 %vm5298_vm5, %v5293_v17  ;;  %v7653_v9 = vrot.slane %v6980_v34, 4  ;;  %v7995_v23 = vsel %vm7899_vm6, %v7646_v51, %v7994_v4 }
 0x807   : > { %v4371_v53 = vpop.f32.mrf.mxu3  ;;  %v7654_v10 = vadd.f32 %v7653_v9, %v6980_v34 }
 0x808   : > { %v4372_v39 = vadd.f32 %v4371_v53, %v15477_v16  ;;  %v6829_v27 = vpop.f32.mrf.mxu2 }
 0x809   : > { %v5162_v33 = vpop.f32.mrf.mxu0  ;;  %v7655_v46 = vrot.slane %v7654_v10, 2 }
 0x80a   : > { %v5294_v28 = vmul.f32 %v5162_v33, %v4372_v39  ;;  %v6030_v42 = vpop.f32.mrf.mxu1 }
 0x80b   : > { %v6981_v32 = vmul.f32 %v6817_v5, %v6030_v42  ;;  %v7650_v5 = vadd.f32 %v7649_v52, %v7648_v47  ;;  %v7656_v50 = vadd.f32 %v7655_v46, %v7654_v10 }
 0x80d   : > { %v7659_v21 = vrot.slane %v6981_v32, 4  ;;  %9490 = vmatmul.msk.f32.gmra.mxu1 %vm5298_vm5, %v5294_v28  ;;  %v7651_v55 = vrot.slane %v7650_v5, 1  ;;  %v7657_v31 = vrot.slane %v7656_v50, 1 }
 0x80f   : > { %v7660_v37 = vadd.f32 %v7659_v21, %v6981_v32  ;;  %v4374_v20 = vpop.f32.mrf.mxu3  ;;  %v7652_v17 = vadd.f32 %v7651_v55, %v7650_v5  ;;  %v7658_v3 = vadd.f32 %v7657_v31, %v7656_v50 }
 0x810   : > { %v4375_v60 = vadd.f32 %v4374_v20, %v15478_v12  ;;  %v6832_v49 = vpop.f32.mrf.mxu2 }
 0x811   : > { %v7661_v43 = vrot.slane %v7660_v37, 2  ;;  %v5165_v1 = vpop.f32.mrf.mxu0  ;;  %v7996_v18 = vsel %vm7901_vm8, %v7652_v17, %v7995_v23 }
 0x812   : > { %v5295_v58 = vmul.f32 %v5165_v1, %v4375_v60  ;;  %v6033_v44 = vpop.f32.mrf.mxu1  ;;  %v7997_v9 = vsel %vm7903_vm9, %v7658_v3, %v7996_v18 }
 0x813   : > { %v6982_v62 = vmul.f32 %v14352_v26, %v6033_v44  ;;  %v7662_v0 = vadd.f32 %v7661_v43, %v7660_v37 }
 0x815   : > { %v7665_v56 = vrot.slane %v6982_v62, 4  ;;  %9491 = vmatmul.msk.f32.gmra.mxu1 %vm5298_vm5, %v5295_v58  ;;  %v7663_v63 = vrot.slane %v7662_v0, 1 }
 0x817   : > { %v7666_v41 = vadd.f32 %v7665_v56, %v6982_v62  ;;  %v7664_v25 = vadd.f32 %v7663_v63, %v7662_v0 }
 0x818   : > { %v6835_v19 = vpop.f32.mrf.mxu2 }
 0x819   : > { %v7667_v45 = vrot.slane %v7666_v41, 2  ;;  %v7998_v7 = vsel %vm7905_vm10, %v7664_v25, %v7997_v9 }
 0x81a   : > { %v6036_v26 = vpop.f32.mrf.mxu1 }
 0x81b   : > { %v7668_v34 = vadd.f32 %v7667_v45, %v7666_v41  ;;  %v6983_v15 = vmul.f32 %v14356_v13, %v6036_v26 }
 0x81d   : > { %v7669_v59 = vrot.slane %v7668_v34, 1  ;;  %v7671_v37 = vrot.slane %v6983_v15, 4 }
 0x81f   : > { %v7670_v53 = vadd.f32 %v7669_v59, %v7668_v34  ;;  %v7672_v36 = vadd.f32 %v7671_v37, %v6983_v15 }
 0x820   : > { %v6838_v33 = vpop.f32.mrf.mxu2 }
 0x821   : > { %v7999_v16 = vsel %vm7907_vm11, %v7670_v53, %v7998_v7  ;;  %v7673_v40 = vrot.slane %v7672_v36, 2 }
 0x822   : > { %8043 = vst [vmem:[%s12988_s16 + $0x68] sm:$0xff] %v7999_v16  ;;  %v6039_v39 = vpop.f32.mrf.mxu1 }
 0x823   : > { %v6984_v14 = vmul.f32 %v14364_v38, %v6039_v39  ;;  %v7674_v55 = vadd.f32 %v7673_v40, %v7672_v36 }
 0x825   : > { %v7677_v52 = vrot.slane %v6984_v14, 4  ;;  %v7675_v26 = vrot.slane %v7674_v55, 1 }
 0x827   : > { %v7678_v12 = vadd.f32 %v7677_v52, %v6984_v14  ;;  %v7676_v9 = vadd.f32 %v7675_v26, %v7674_v55 }
 0x828   : > { %v6841_v28 = vpop.f32.mrf.mxu2 }
 0x829   : > { %v7679_v5 = vrot.slane %v7678_v12, 2 }
 0x82a   : > { %v6042_v22 = vpop.f32.mrf.mxu1 }
 0x82b   : > { %v6985_v10 = vmul.f32 %v6829_v27, %v6042_v22  ;;  %v7680_v0 = vadd.f32 %v7679_v5, %v7678_v12 }
 0x82d   : > { %v7683_v46 = vrot.slane %v6985_v10, 4  ;;  %v7681_v63 = vrot.slane %v7680_v0, 1 }
 0x82f   : > { %v7684_v54 = vadd.f32 %v7683_v46, %v6985_v10  ;;  %v7682_v4 = vadd.f32 %v7681_v63, %v7680_v0 }
 0x830   : > { %v6844_v32 = vpop.f32.mrf.mxu2 }
 0x831   : > { %v7685_v44 = vrot.slane %v7684_v54, 2 }
 0x832   : > { %v6045_v47 = vpop.f32.mrf.mxu1 }
 0x833   : > { %v6986_v29 = vmul.f32 %v6832_v49, %v6045_v47  ;;  %v7686_v56 = vadd.f32 %v7685_v44, %v7684_v54 }
 0x835   : > { %v7689_v20 = vrot.slane %v6986_v29, 4  ;;  %v7687_v51 = vrot.slane %v7686_v56, 1 }
 0x837   : > { %v7690_v43 = vadd.f32 %v7689_v20, %v6986_v29  ;;  %v7688_v59 = vadd.f32 %v7687_v51, %v7686_v56 }
 0x838   : > { %v6847_v27 = vpop.f32.mrf.mxu2 }
 0x839   : > { %v7691_v50 = vrot.slane %v7690_v43, 2 }
 0x83a   : > { %v6048_v42 = vpop.f32.mrf.mxu1 }
 0x83b   : > { %v6987_v61 = vmul.f32 %v6835_v19, %v6048_v42  ;;  %v7692_v24 = vadd.f32 %v7691_v50, %v7690_v43  ;;  %v8000_v19 = vsel %vm7895_vm3, %v7682_v4, %v7676_v9 }
 0x83c   : > { %v8001_v47 = vsel %vm7897_vm4, %v7688_v59, %v8000_v19 }
 0x83d   : > { %v7695_v48 = vrot.slane %v6987_v61, 4  ;;  %v7693_v30 = vrot.slane %v7692_v24, 1 }
 0x83f   : > { %v7696_v1 = vadd.f32 %v7695_v48, %v6987_v61  ;;  %v7694_v53 = vadd.f32 %v7693_v30, %v7692_v24 }
 0x840   : > { %v6850_v17 = vpop.f32.mrf.mxu2 }
 0x841   : > { %v7697_v8 = vrot.slane %v7696_v1, 2  ;;  %v8002_v42 = vsel %vm7899_vm6, %v7694_v53, %v8001_v47 }
 0x842   : > { %v6051_v21 = vpop.f32.mrf.mxu1 }
 0x843   : > { %v6988_v35 = vmul.f32 %v6838_v33, %v6051_v21  ;;  %v7698_v41 = vadd.f32 %v7697_v8, %v7696_v1 }
 0x845   : > { %v7701_v60 = vrot.slane %v6988_v35, 4  ;;  %v7699_v34 = vrot.slane %v7698_v41, 1 }
 0x847   : > { %v7702_v58 = vadd.f32 %v7701_v60, %v6988_v35  ;;  %v7700_v16 = vadd.f32 %v7699_v34, %v7698_v41 }
 0x849   : > { %v7703_v57 = vrot.slane %v7702_v58, 2  ;;  %v8003_v10 = vsel %vm7901_vm8, %v7700_v16, %v8002_v42 }
 0x84a   : > { %v6054_v38 = vpop.f32.mrf.mxu1 }
 0x84b   : > { %v6989_v13 = vmul.f32 %v6841_v28, %v6054_v38  ;;  %v7704_v49 = vadd.f32 %v7703_v57, %v7702_v58 }
 0x84d   : > { %v7707_v62 = vrot.slane %v6989_v13, 4  ;;  %v7705_v25 = vrot.slane %v7704_v49, 1 }
 0x84f   : > { %v7708_v2 = vadd.f32 %v7707_v62, %v6989_v13  ;;  %v7706_v22 = vadd.f32 %v7705_v25, %v7704_v49 }
 0x851   : > { %v7709_v31 = vrot.slane %v7708_v2, 2  ;;  %v8004_v15 = vsel %vm7903_vm9, %v7706_v22, %v8003_v10 }
 0x852   : > { %v6057_v6 = vpop.f32.mrf.mxu1 }
 0x853   : > { %v6990_v11 = vmul.f32 %v6844_v32, %v6057_v6  ;;  %v7710_v45 = vadd.f32 %v7709_v31, %v7708_v2  ;;  %v6853_v32 = vpop.f32.mrf.mxu2 }
 0x855   : > { %v7713_v3 = vrot.slane %v6990_v11, 4  ;;  %v7711_v18 = vrot.slane %v7710_v45, 1 }
 0x857   : > { %v7714_v23 = vadd.f32 %v7713_v3, %v6990_v11  ;;  %v7712_v28 = vadd.f32 %v7711_v18, %v7710_v45 }
 0x859   : > { %v7715_v7 = vrot.slane %v7714_v23, 2  ;;  %v8005_v61 = vsel %vm7905_vm10, %v7712_v28, %v8004_v15 }
 0x85a   : > { %v6060_v39 = vpop.f32.mrf.mxu1 }
 0x85b   : > { %v7716_v33 = vadd.f32 %v7715_v7, %v7714_v23  ;;  %v6856_v35 = vpop.f32.mrf.mxu2  ;;  %v6991_v36 = vmul.f32 %v6847_v27, %v6060_v39 }
 0x85d   : > { %v7717_v14 = vrot.slane %v7716_v33, 1  ;;  %v7719_v44 = vrot.slane %v6991_v36, 4 }
 0x85f   : > { %v7718_v29 = vadd.f32 %v7717_v14, %v7716_v33  ;;  %v7720_v2 = vadd.f32 %v7719_v44, %v6991_v36 }
 0x861   : > { %v8006_v21 = vsel %vm7907_vm11, %v7718_v29, %v8005_v61  ;;  %v7721_v63 = vrot.slane %v7720_v2, 2 }
 0x862   : > { %8044 = vst [vmem:[%s12988_s16 + $0x70] sm:$0xff] %v8006_v21  ;;  %v6063_v52 = vpop.f32.mrf.mxu1 }
 0x863   : > { %v6859_v20 = vpop.f32.mrf.mxu2  ;;  %v6992_v60 = vmul.f32 %v6850_v17, %v6063_v52  ;;  %v7722_v34 = vadd.f32 %v7721_v63, %v7720_v2 }
 0x865   : > { %v7725_v5 = vrot.slane %v6992_v60, 4  ;;  %v7723_v39 = vrot.slane %v7722_v34, 1 }
 0x867   : > { %v7726_v8 = vadd.f32 %v7725_v5, %v6992_v60 }
 0x869   : > { %v7727_v27 = vrot.slane %v7726_v8, 2 }
 0x86a   : > { %v6066_v46 = vpop.f32.mrf.mxu1 }
 0x86b   : > { %v6862_v12 = vpop.f32.mrf.mxu2  ;;  %v6993_v54 = vmul.f32 %v6853_v32, %v6066_v46  ;;  %v7728_v45 = vadd.f32 %v7727_v27, %v7726_v8  ;;  %v7724_v32 = vadd.f32 %v7723_v39, %v7722_v34 }
 0x86d   : > { %v7731_v13 = vrot.slane %v6993_v54, 4  ;;  %v7729_v18 = vrot.slane %v7728_v45, 1 }
 0x86f   : > { %v7732_v57 = vadd.f32 %v7731_v13, %v6993_v54  ;;  %v7730_v47 = vadd.f32 %v7729_v18, %v7728_v45 }
 0x871   : > { %v7733_v6 = vrot.slane %v7732_v57, 2  ;;  %v8007_v21 = vsel %vm7895_vm3, %v7730_v47, %v7724_v32 }
 0x872   : > { %v6069_v37 = vpop.f32.mrf.mxu1 }
 0x873   : > { %v6994_v43 = vmul.f32 %v6856_v35, %v6069_v37  ;;  %v6865_v62 = vpop.f32.mrf.mxu2  ;;  %v7734_v30 = vadd.f32 %v7733_v6, %v7732_v57 }
 0x875   : > { %v7737_v40 = vrot.slane %v6994_v43, 4  ;;  %v7735_v7 = vrot.slane %v7734_v30, 1 }
 0x877   : > { %v7738_v56 = vadd.f32 %v7737_v40, %v6994_v43  ;;  %v7736_v14 = vadd.f32 %v7735_v7, %v7734_v30 }
 0x879   : > { %v7739_v49 = vrot.slane %v7738_v56, 2  ;;  %v8008_v46 = vsel %vm7897_vm4, %v7736_v14, %v8007_v21 }
 0x87a   : > { %v6072_v48 = vpop.f32.mrf.mxu1 }
 0x87b   : > { %v6995_v1 = vmul.f32 %v6859_v20, %v6072_v48  ;;  %v6868_v3 = vpop.f32.mrf.mxu2  ;;  %v7740_v4 = vadd.f32 %v7739_v49, %v7738_v56 }
 0x87d   : > { %v7743_v50 = vrot.slane %v6995_v1, 4  ;;  %v7741_v19 = vrot.slane %v7740_v4, 1 }
 0x87f   : > { %v7744_v55 = vadd.f32 %v7743_v50, %v6995_v1  ;;  %v7742_v15 = vadd.f32 %v7741_v19, %v7740_v4 }
 0x881   : > { %v7745_v51 = vrot.slane %v7744_v55, 2  ;;  %v8009_v20 = vsel %vm7899_vm6, %v7742_v15, %v8008_v46 }
 0x882   : > { %v6075_v38 = vpop.f32.mrf.mxu1 }
 0x883   : > { %v6996_v58 = vmul.f32 %v6862_v12, %v6075_v38  ;;  %v7746_v23 = vadd.f32 %v7745_v51, %v7744_v55 }
 0x885   : > { %v7749_v0 = vrot.slane %v6996_v58, 4  ;;  %v7747_v33 = vrot.slane %v7746_v23, 1 }
 0x887   : > { %v7750_v31 = vadd.f32 %v7749_v0, %v6996_v58  ;;  %v7748_v61 = vadd.f32 %v7747_v33, %v7746_v23 }
 0x889   : > { %v7751_v17 = vrot.slane %v7750_v31, 2  ;;  %v8010_v12 = vsel %vm7901_vm8, %v7748_v61, %v8009_v20 }
 0x88a   : > { %v6078_v24 = vpop.f32.mrf.mxu1 }
 0x88b   : > { %v6997_v41 = vmul.f32 %v6865_v62, %v6078_v24  ;;  %v7752_v9 = vadd.f32 %v7751_v17, %v7750_v31 }
 0x88d   : > { %v7755_v11 = vrot.slane %v6997_v41, 4  ;;  %v7753_v28 = vrot.slane %v7752_v9, 1 }
 0x88f   : > { %v7756_v26 = vadd.f32 %v7755_v11, %v6997_v41  ;;  %v7754_v52 = vadd.f32 %v7753_v28, %v7752_v9 }
 0x891   : > { %v7757_v25 = vrot.slane %v7756_v26, 2  ;;  %v8011_v60 = vsel %vm7903_vm9, %v7754_v52, %v8010_v12 }
 0x892   : > { %v6081_v59 = vpop.f32.mrf.mxu1 }
 0x893   : > { %v6998_v53 = vmul.f32 %v6868_v3, %v6081_v59  ;;  %v7758_v16 = vadd.f32 %v7757_v25, %v7756_v26 }
 0x895   : > { %v7761_v22 = vrot.slane %v6998_v53, 4  ;;  %v7759_v10 = vrot.slane %v7758_v16, 1 }
 0x897   : > { %v7762_v42 = vadd.f32 %v7761_v22, %v6998_v53  ;;  %v7760_v37 = vadd.f32 %v7759_v10, %v7758_v16 }
 0x899   : > { %v7763_v29 = vrot.slane %v7762_v42, 2  ;;  %v8012_v36 = vsel %vm7905_vm10, %v7760_v37, %v8011_v60 }
 0x89b   : > { %v7764_v35 = vadd.f32 %v7763_v29, %v7762_v42 }
 0x89d   : > { %v7765_v48 = vrot.slane %v7764_v35, 1 }
 0x89f   : > { %v7766_v54 = vadd.f32 %v7765_v48, %v7764_v35 }
 0x8a1   : > { %v8013_v43 = vsel %vm7907_vm11, %v7766_v54, %v8012_v36 }
 0x8a2   : > { %8045 = vst [vmem:[%s12988_s16 + $0x78] sm:$0xff] %v8013_v43 }
 0x8a3   : > { %9780 = shalt.err (!%p9777_p7)
}
 0x8a4   : > { %s9851_s9 = smov 128   ;;  %s9852_s16 = smov 8  }
 0x8a5   : > { %9675 = dma.vmem_to_hbm [thread:$0]  (%p9944_p3), %s8062_s13, 2048, %s8064_s17, %s8047_s18, %s9851_s9, %s9851_s9, %s9852_s16  }
 0x8a6 PF: > { %p9681_p9 = scmp.ge.s32.totalorder %s9847_s8, 2  ;;  %s8078_s21 = sand.u32 1, %s9819_s24  }
 0x8a7   : > { %s8079_s23 = scalar_lea.sflag [#allocation3], %s8078_s21 }
 0x8a8   : > { %p9678_p10 = pnand %p9681_p9, %p9953_p8 }
 0x8aa   : > { %p9679_p11 = pneg %p9678_p10 }
 0x8ac   : > { %9814 = dma.done.wait (%p9679_p11), %s8079_s23, 2048  }
 0x8ad   : > { %9816 = vsyncadd (%p9679_p11), %s8079_s23, 4294965248  ;;  %s20_s8 = sadd.s32 1, %s9847_s8   ;;  %s15479_s24 = smov %s9823_s25 }
 0x8ae   : > { %p17_p12 = scmp.ge.s32.totalorder %s20_s8, 6   ;;  %s15480_s25 = smov %s9827_s26 }
 0x8af   : > { %s15481_s26 = smov %s9962_s19  ;;  %s15482_s27 = smov %s9839_s29 }
 0x8b0   : > { %s15483_s28 = smov %s9843_s30  ;;  %s15484_s29 = smov %s15487_s11 }
 0x8b1   : > { %s15485_s30 = smov %s15491_s12  ;;  %19 = sbr.rel (!%p17_p12) target bundleno = 5 (0x5), region = 92 }
 0x8b6   :  { %8085 = vsyncpa [#allocation3], 1 }
 0x8b7   :  { %8087 = vsyncpa [#allocation3 + $0x1], 1 }

</bundles_post_ra>
